<compile_context>
chip_gen: v7x
topology: tpu7x:2x2x1
jax: 0.10.0
libtpu: 0.0.40
codegen_flags: <defaults>
</compile_context>

<pallas_src>
import functools
from itertools import combinations_with_replacement

import jax
import jax.numpy as jnp
from jax import lax
from jax.experimental import pallas as pl
from jax.experimental.pallas import tpu as pltpu


# TODO(synk): relax to lax.Precision.HIGH (3-pass f32) once validated on HW
#             against the rtol=1e-3 / atol=5e-4 reference check (review item).
_MATMUL_PRECISION = lax.Precision.HIGHEST


# --------------------------- operator construction ---------------------------
def gaussian_kernel1d(sigma, ksize):
    """Normalized 1D Gaussian taps; matches GaussianBlur3D.set_weights."""
    s = jnp.maximum(jnp.float32(0.1),
                    jnp.minimum(jnp.asarray(sigma, jnp.float32), jnp.float32(10.0)))
    x = jnp.arange(ksize, dtype=jnp.float32) - (ksize // 2)
    k = jnp.exp(-(x ** 2) / (2.0 * s ** 2))
    # kernel3d / kernel3d.sum() == outer product of (k / k.sum()) -> separable.
    return k / jnp.sum(k)


def _blur_matrix(k1d, n, p):
    """(n, n) matrix B so that y = x @ B == replicate-padded 1D conv with k1d."""
    ksize = k1d.shape[0]
    j = jnp.arange(n)
    t = jnp.arange(ksize)
    src = jnp.clip(j[None, :] - p + t[:, None], 0, n - 1)          # (K, n)
    cols = jnp.broadcast_to(j[None, :], (ksize, n))
    vals = jnp.broadcast_to(k1d[:, None], (ksize, n))
    return jnp.zeros((n, n), jnp.float32).at[src, cols].add(vals)


def _gradient_matrix(n):
    """(n, n) matrix G so that y = x @ G == torch.gradient(x, spacing=1)."""
    g = jnp.zeros((n, n), jnp.float32)
    i = jnp.arange(n - 2)
    g = g.at[i, i + 1].add(-0.5).at[i + 2, i + 1].add(0.5)
    g = g.at[0, 0].add(-1.0).at[1, 0].add(1.0)
    g = g.at[n - 2, n - 1].add(-1.0).at[n - 1, n - 1].add(1.0)
    return g


def _pick_slab(d, hw, budget_bytes=4 << 20):
    """Largest D-slab (multiple of 8, or full D) whose 6-output block fits budget."""
    slab = (budget_bytes // (6 * hw * 4)) // 8 * 8
    if slab >= d or slab == 0:
        return d, 1
    slab = max(slab, 8)
    return slab, pl.cdiv(d, slab)


# --------------------------------- kernel -----------------------------------
def _hessian_kernel(dops_ref, hwops_ref, x_ref, out_ref, *, hw):
    """One (batch, D-slab) grid step.  Everything is an MXU matmul.

    dops_ref : (3, Ds, D)   [B_d ; G_d B_d ; G_d^2 B_d] rows for this slab
    hwops_ref: (HW, 6*HW)   fused H/W plane operators (column block k == out k)
    x_ref    : (1, D, HW)   one full volume, H*W merged onto the lane axis
    out_ref  : (6, 1, Ds, HW)
    """
    x = x_ref[0]                                               # (D, HW)

    def mm(a, b):
        return jnp.dot(a, b, precision=_MATMUL_PRECISION,
                       preferred_element_type=jnp.float32)

    v = mm(dops_ref[0], x)       # blur3d restricted to D axis        (Ds, HW)
    vd = mm(dops_ref[1], x)      # grad_d(blur-in-D)
    vdd = mm(dops_ref[2], x)     # grad_d^2(blur-in-D)

    # out0 = (d,d)
    out_ref[0, 0] = mm(vdd, hwops_ref[:, 0:hw])
    # out1 = (d,h), out2 = (d,w)   -- one fused (HW, 2*HW) matmul
    ob = mm(vd, hwops_ref[:, hw:3 * hw])
    out_ref[1, 0] = ob[:, 0:hw]
    out_ref[2, 0] = ob[:, hw:2 * hw]
    # out3 = (h,h), out4 = (h,w), out5 = (w,w)  -- one fused (HW, 3*HW) matmul
    oa = mm(v, hwops_ref[:, 3 * hw:6 * hw])
    out_ref[3, 0] = oa[:, 0:hw]
    out_ref[4, 0] = oa[:, hw:2 * hw]
    out_ref[5, 0] = oa[:, 2 * hw:3 * hw]


# --------------------------------- wrapper ----------------------------------
class HessianTorchPallas:
    """Pallas TPU implementation of HessianTorch.forward."""

    def __init__(self, sigma):
        # kernel size is fixed at construction time, exactly like the module
        self.kernel_size = 1 + 6 * int(sigma)

    def __call__(self, vol, sigma):
        # vol: (N, 1, D, H, W) float32
        N, C, D, H, W = vol.shape
        assert C == 1, "GaussianBlur3D is a single-channel conv"
        HW = H * W
        K = self.kernel_size
        p = K // 2

        # TODO(synk): separable fallback for large planes (see header TODO).
        if HW > 1024:
            raise NotImplementedError("fused-plane path supports H*W <= 1024")

        k1d = gaussian_kernel1d(sigma, K)                         # (K,)

        # D-axis operators (left-multiplied): blur, grad(blur), grad^2(blur).
        bd = _blur_matrix(k1d, D, p).T
        gd = _gradient_matrix(D).T
        d_ops = jnp.stack([bd, gd @ bd, gd @ gd @ bd])            # (3, D, D)

        # H/W plane operators (right-multiplied Kronecker products); column
        # block order == combinations_with_replacement((2,3,4), 2) output order.
        bh = _blur_matrix(k1d, H, p)
        gh = _gradient_matrix(H)
        bw = _blur_matrix(k1d, W, p)
        gw = _gradient_matrix(W)
        hw_ops = jnp.concatenate([
            jnp.kron(bh, bw),                    # 0: (d,d)
            jnp.kron(bh @ gh, bw),               # 1: (d,h)
            jnp.kron(bh, bw @ gw),               # 2: (d,w)
            jnp.kron(bh @ gh @ gh, bw),          # 3: (h,h)
            jnp.kron(bh @ gh, bw @ gw),          # 4: (h,w)
            jnp.kron(bh, bw @ gw @ gw),          # 5: (w,w)
        ], axis=1)                               # (HW, 6*HW)

        # Lane-dense volume view (N, D, H*W): free row-major reshape, no pad.
        x = vol.reshape(N, D, HW).astype(jnp.float32)

        # D-slab size keeps the per-step output block inside a VMEM budget.
        d_slab, n_slabs = _pick_slab(D, HW)
        d_pad = d_slab * n_slabs
        if d_pad > D:
            # zero rows for the ragged last slab (its extra output rows are
            # clipped by the partial output block on write-back)
            d_ops = jnp.pad(d_ops, ((0, 0), (0, d_pad - D), (0, 0)))

        # VMEM requirement (double-buffered blocks + live intermediates);
        # raise the scoped limit only when needed, clamped to chip capacity.
        in_blk = D * HW * 4
        out_blk = 6 * d_slab * HW * 4
        dops_blk = 3 * d_slab * D * 4
        hwops_b = HW * 6 * HW * 4
        need = (2 * (in_blk + out_blk + dops_blk + hwops_b)
                + 9 * d_slab * HW * 4 + (2 << 20))
        vmem_limit = None
        if need > (32 << 20):
            cap = 128 << 20
            try:
                cap = int(pltpu.get_tpu_info().vmem_capacity_bytes)
            except Exception:
                pass
            vmem_limit = int(min(need, cap - (4 << 20)))

        flops = 2 * N * (3 * d_pad * D * HW + d_pad * HW * 6 * HW)
        bytes_acc = 4 * (7 * N * D * HW + 3 * D * D + 6 * HW * HW)

        kernel = functools.partial(_hessian_kernel, hw=HW)
        out = pl.pallas_call(
            kernel,
            out_shape=jax.ShapeDtypeStruct((6, N, D, HW), jnp.float32),
            grid_spec=pltpu.PrefetchScalarGridSpec(
                num_scalar_prefetch=0,
                grid=(N, n_slabs),
                in_specs=[
                    # per-slab D operators
                    pl.BlockSpec((3, d_slab, D), lambda b, s: (0, s, 0)),
                    # fused H/W plane operators, resident in VMEM
                    pl.BlockSpec((HW, 6 * HW), lambda b, s: (0, 0)),
                    # one full volume per batch step (constant across slabs,
                    # so the pipeline does not re-fetch it)
                    pl.BlockSpec((1, D, HW), lambda b, s: (b, 0, 0)),
                ],
                out_specs=pl.BlockSpec((6, 1, d_slab, HW),
                                       lambda b, s: (0, b, s, 0)),
            ),
            compiler_params=pltpu.CompilerParams(
                dimension_semantics=("parallel", "parallel"),
                vmem_limit_bytes=vmem_limit),
            cost_estimate=pl.CostEstimate(
                flops=flops, transcendentals=0, bytes_accessed=bytes_acc),
        )(d_ops, hw_ops, x)

        # (6, N, D, H*W) -> (6, N, 1, D, H, W): pure row-major dim split.
        return out.reshape(6, N, 1, D, H, W)


# ---------------- pure-JAX reference (mirrors the torch module) ----------------
def _np_gradient(a, axis):
    g = jnp.gradient(a, axis=axis)
    return g[0] if isinstance(g, (list, tuple)) else g


def reference_hessian(vol, sigma, kernel_size):
    N, C, D, H, W = vol.shape
    p = kernel_size // 2
    k1 = gaussian_kernel1d(sigma, kernel_size)
    k3 = jnp.einsum("i,j,k->ijk", k1, k1, k1)                   # already sums to 1
    x = vol.reshape(N, D, H, W)
    xp = jnp.pad(x, ((0, 0), (p, p), (p, p), (p, p)), mode="edge")
    g = lax.conv_general_dilated(
        xp[:, None].astype(jnp.float32), k3[None, None].astype(jnp.float32),
        window_strides=(1, 1, 1), padding="VALID",
        dimension_numbers=("NCDHW", "OIDHW", "NCDHW"),
        precision=lax.Precision.HIGHEST)                        # (N,1,D,H,W)
    axes = [2, 3, 4]
    grads = [_np_gradient(g, ax) for ax in axes]
    elems = [_np_gradient(grads[a0 - 2], a1)
             for a0, a1 in combinations_with_replacement(axes, 2)]
    return jnp.stack(elems)                                     # (6,N,1,D,H,W)


if __name__ == "__main__":
    key = jax.random.PRNGKey(0)
    N, C, D, H, W = 2, 1, 16, 16, 16
    sigma = 1.0

    vol = jax.random.normal(key, (N, C, D, H, W), dtype=jnp.float32)

    model = HessianTorchPallas(sigma)
    out = jax.block_until_ready(model(vol, sigma))

    assert out.shape == (6, N, 1, D, H, W)
    assert out.dtype == jnp.float32

    ref = reference_hessian(vol, sigma, model.kernel_size)
    max_err = float(jnp.max(jnp.abs(out - ref)))
    if not bool(jnp.allclose(out, ref, rtol=1e-3, atol=5e-4)):
        raise AssertionError(f"Pallas kernel mismatch vs reference, max abs err = {max_err}")

    print("KERNEL_OK")
</pallas_src>

<mosaic_0001>
module attributes {stable_mosaic.version = 11 : i64} {
  func.func @_hessian_kernel(%arg0: i32, %arg1: i32, %arg2: memref<3x16x16xf32, #tpu.memory_space<vmem>>, %arg3: memref<256x1536xf32, #tpu.memory_space<vmem>>, %arg4: memref<1x16x256xf32, #tpu.memory_space<vmem>>, %arg5: memref<6x1x16x256xf32, #tpu.memory_space<vmem>>) attributes {dimension_semantics = [#tpu.dimension_semantics<parallel>, #tpu.dimension_semantics<parallel>], iteration_bounds = array<i64: 2, 1>, scalar_prefetch = 0 : i64, scratch_operands = 0 : i64, tpu.core_type = #tpu.core_type<tc>, window_params = [{transform_indices = @transform_0, window_bounds = array<i64: 3, 16, 16>}, {pipeline_mode = #tpu.pipeline_mode<synchronous>, transform_indices = @transform_1, window_bounds = array<i64: 256, 1536>}, {transform_indices = @transform_2, window_bounds = array<i64: 1, 16, 256>}, {transform_indices = @transform_3, window_bounds = array<i64: 6, 1, 16, 256>}]} {
    %c0 = arith.constant 0 : index
    %c0_0 = arith.constant 0 : index
    %c0_1 = arith.constant 0 : index
    %0 = vector.load %arg4[%c0, %c0_0, %c0_1] : memref<1x16x256xf32, #tpu.memory_space<vmem>>, vector<1x16x256xf32>
    %1 = vector.shape_cast %0 : vector<1x16x256xf32> to vector<16x256xf32>
    %c0_2 = arith.constant 0 : index
    %c0_3 = arith.constant 0 : index
    %c0_4 = arith.constant 0 : index
    %2 = vector.load %arg2[%c0_2, %c0_3, %c0_4] : memref<3x16x16xf32, #tpu.memory_space<vmem>>, vector<1x16x16xf32>
    %3 = vector.shape_cast %2 : vector<1x16x16xf32> to vector<16x16xf32>
    %cst = arith.constant dense<0.000000e+00> : vector<16x256xf32>
    %4 = tpu.matmul %3, %1, %cst {dimension_numbers = #tpu.dot_dimension_numbers<[1], [0], [0], [1], [0, 0, 1, 1], [], []>, precision = #tpu.contract_precision<fp32>} : vector<16x16xf32>, vector<16x256xf32>, vector<16x256xf32> -> vector<16x256xf32>
    %c1 = arith.constant 1 : index
    %c0_5 = arith.constant 0 : index
    %c0_6 = arith.constant 0 : index
    %5 = vector.load %arg2[%c1, %c0_5, %c0_6] : memref<3x16x16xf32, #tpu.memory_space<vmem>>, vector<1x16x16xf32>
    %6 = vector.shape_cast %5 : vector<1x16x16xf32> to vector<16x16xf32>
    %cst_7 = arith.constant dense<0.000000e+00> : vector<16x256xf32>
    %7 = tpu.matmul %6, %1, %cst_7 {dimension_numbers = #tpu.dot_dimension_numbers<[1], [0], [0], [1], [0, 0, 1, 1], [], []>, precision = #tpu.contract_precision<fp32>} : vector<16x16xf32>, vector<16x256xf32>, vector<16x256xf32> -> vector<16x256xf32>
    %c2 = arith.constant 2 : index
    %c0_8 = arith.constant 0 : index
    %c0_9 = arith.constant 0 : index
    %8 = vector.load %arg2[%c2, %c0_8, %c0_9] : memref<3x16x16xf32, #tpu.memory_space<vmem>>, vector<1x16x16xf32>
    %9 = vector.shape_cast %8 : vector<1x16x16xf32> to vector<16x16xf32>
    %cst_10 = arith.constant dense<0.000000e+00> : vector<16x256xf32>
    %10 = tpu.matmul %9, %1, %cst_10 {dimension_numbers = #tpu.dot_dimension_numbers<[1], [0], [0], [1], [0, 0, 1, 1], [], []>, precision = #tpu.contract_precision<fp32>} : vector<16x16xf32>, vector<16x256xf32>, vector<16x256xf32> -> vector<16x256xf32>
    %c0_11 = arith.constant 0 : index
    %c0_12 = arith.constant 0 : index
    %11 = vector.load %arg3[%c0_11, %c0_12] : memref<256x1536xf32, #tpu.memory_space<vmem>>, vector<256x256xf32>
    %cst_13 = arith.constant dense<0.000000e+00> : vector<16x256xf32>
    %12 = tpu.matmul %10, %11, %cst_13 {dimension_numbers = #tpu.dot_dimension_numbers<[1], [0], [0], [1], [0, 0, 1, 1], [], []>, precision = #tpu.contract_precision<fp32>} : vector<16x256xf32>, vector<256x256xf32>, vector<16x256xf32> -> vector<16x256xf32>
    %c0_14 = arith.constant 0 : index
    %c0_15 = arith.constant 0 : index
    %c0_16 = arith.constant 0 : index
    %c0_17 = arith.constant 0 : index
    %13 = vector.load %arg5[%c0_14, %c0_15, %c0_16, %c0_17] : memref<6x1x16x256xf32, #tpu.memory_space<vmem>>, vector<1x1x16x256xf32>
    %14 = vector.shape_cast %13 : vector<1x1x16x256xf32> to vector<16x256xf32>
    %15 = vector.shape_cast %12 : vector<16x256xf32> to vector<1x1x16x256xf32>
    tpu.vector_store %arg5[%c0_14, %c0_15, %c0_16, %c0_17], %15 {strides = array<i32>} : memref<6x1x16x256xf32, #tpu.memory_space<vmem>>, vector<1x1x16x256xf32>,
    %c0_18 = arith.constant 0 : index
    %c256 = arith.constant 256 : index
    %16 = vector.load %arg3[%c0_18, %c256] : memref<256x1536xf32, #tpu.memory_space<vmem>>, vector<256x512xf32>
    %cst_19 = arith.constant dense<0.000000e+00> : vector<16x512xf32>
    %17 = tpu.matmul %7, %16, %cst_19 {dimension_numbers = #tpu.dot_dimension_numbers<[1], [0], [0], [1], [0, 0, 1, 1], [], []>, precision = #tpu.contract_precision<fp32>} : vector<16x256xf32>, vector<256x512xf32>, vector<16x512xf32> -> vector<16x512xf32>
    %18 = vector.extract_strided_slice %17 {offsets = [0, 0], sizes = [16, 256], strides = [1, 1]} : vector<16x512xf32> to vector<16x256xf32>
    %c1_20 = arith.constant 1 : index
    %c0_21 = arith.constant 0 : index
    %c0_22 = arith.constant 0 : index
    %c0_23 = arith.constant 0 : index
    %19 = vector.load %arg5[%c1_20, %c0_21, %c0_22, %c0_23] : memref<6x1x16x256xf32, #tpu.memory_space<vmem>>, vector<1x1x16x256xf32>
    %20 = vector.shape_cast %19 : vector<1x1x16x256xf32> to vector<16x256xf32>
    %21 = vector.shape_cast %18 : vector<16x256xf32> to vector<1x1x16x256xf32>
    tpu.vector_store %arg5[%c1_20, %c0_21, %c0_22, %c0_23], %21 {strides = array<i32>} : memref<6x1x16x256xf32, #tpu.memory_space<vmem>>, vector<1x1x16x256xf32>,
    %22 = vector.extract_strided_slice %17 {offsets = [0, 256], sizes = [16, 256], strides = [1, 1]} : vector<16x512xf32> to vector<16x256xf32>
    %c2_24 = arith.constant 2 : index
    %c0_25 = arith.constant 0 : index
    %c0_26 = arith.constant 0 : index
    %c0_27 = arith.constant 0 : index
    %23 = vector.load %arg5[%c2_24, %c0_25, %c0_26, %c0_27] : memref<6x1x16x256xf32, #tpu.memory_space<vmem>>, vector<1x1x16x256xf32>
    %24 = vector.shape_cast %23 : vector<1x1x16x256xf32> to vector<16x256xf32>
    %25 = vector.shape_cast %22 : vector<16x256xf32> to vector<1x1x16x256xf32>
    tpu.vector_store %arg5[%c2_24, %c0_25, %c0_26, %c0_27], %25 {strides = array<i32>} : memref<6x1x16x256xf32, #tpu.memory_space<vmem>>, vector<1x1x16x256xf32>,
    %c0_28 = arith.constant 0 : index
    %c768 = arith.constant 768 : index
    %26 = vector.load %arg3[%c0_28, %c768] : memref<256x1536xf32, #tpu.memory_space<vmem>>, vector<256x768xf32>
    %cst_29 = arith.constant dense<0.000000e+00> : vector<16x768xf32>
    %27 = tpu.matmul %4, %26, %cst_29 {dimension_numbers = #tpu.dot_dimension_numbers<[1], [0], [0], [1], [0, 0, 1, 1], [], []>, precision = #tpu.contract_precision<fp32>} : vector<16x256xf32>, vector<256x768xf32>, vector<16x768xf32> -> vector<16x768xf32>
    %28 = vector.extract_strided_slice %27 {offsets = [0, 0], sizes = [16, 256], strides = [1, 1]} : vector<16x768xf32> to vector<16x256xf32>
    %c3 = arith.constant 3 : index
    %c0_30 = arith.constant 0 : index
    %c0_31 = arith.constant 0 : index
    %c0_32 = arith.constant 0 : index
    %29 = vector.load %arg5[%c3, %c0_30, %c0_31, %c0_32] : memref<6x1x16x256xf32, #tpu.memory_space<vmem>>, vector<1x1x16x256xf32>
    %30 = vector.shape_cast %29 : vector<1x1x16x256xf32> to vector<16x256xf32>
    %31 = vector.shape_cast %28 : vector<16x256xf32> to vector<1x1x16x256xf32>
    tpu.vector_store %arg5[%c3, %c0_30, %c0_31, %c0_32], %31 {strides = array<i32>} : memref<6x1x16x256xf32, #tpu.memory_space<vmem>>, vector<1x1x16x256xf32>,
    %32 = vector.extract_strided_slice %27 {offsets = [0, 256], sizes = [16, 256], strides = [1, 1]} : vector<16x768xf32> to vector<16x256xf32>
    %c4 = arith.constant 4 : index
    %c0_33 = arith.constant 0 : index
    %c0_34 = arith.constant 0 : index
    %c0_35 = arith.constant 0 : index
    %33 = vector.load %arg5[%c4, %c0_33, %c0_34, %c0_35] : memref<6x1x16x256xf32, #tpu.memory_space<vmem>>, vector<1x1x16x256xf32>
    %34 = vector.shape_cast %33 : vector<1x1x16x256xf32> to vector<16x256xf32>
    %35 = vector.shape_cast %32 : vector<16x256xf32> to vector<1x1x16x256xf32>
    tpu.vector_store %arg5[%c4, %c0_33, %c0_34, %c0_35], %35 {strides = array<i32>} : memref<6x1x16x256xf32, #tpu.memory_space<vmem>>, vector<1x1x16x256xf32>,
    %36 = vector.extract_strided_slice %27 {offsets = [0, 512], sizes = [16, 256], strides = [1, 1]} : vector<16x768xf32> to vector<16x256xf32>
    %c5 = arith.constant 5 : index
    %c0_36 = arith.constant 0 : index
    %c0_37 = arith.constant 0 : index
    %c0_38 = arith.constant 0 : index
    %37 = vector.load %arg5[%c5, %c0_36, %c0_37, %c0_38] : memref<6x1x16x256xf32, #tpu.memory_space<vmem>>, vector<1x1x16x256xf32>
    %38 = vector.shape_cast %37 : vector<1x1x16x256xf32> to vector<16x256xf32>
    %39 = vector.shape_cast %36 : vector<16x256xf32> to vector<1x1x16x256xf32>
    tpu.vector_store %arg5[%c5, %c0_36, %c0_37, %c0_38], %39 {strides = array<i32>} : memref<6x1x16x256xf32, #tpu.memory_space<vmem>>, vector<1x1x16x256xf32>,
    return
  }
  func.func @transform_0(%arg0: i32, %arg1: i32) -> (i32, i32, i32) {
    %c0_i32 = arith.constant 0 : i32
    %c0_i32_0 = arith.constant 0 : i32
    %c0_i32_1 = arith.constant 0 : i32
    return %c0_i32, %arg1, %c0_i32_0 : i32, i32, i32
  }
  func.func @transform_1(%arg0: i32, %arg1: i32) -> (i32, i32) {
    %c0_i32 = arith.constant 0 : i32
    %c0_i32_0 = arith.constant 0 : i32
    %c0_i32_1 = arith.constant 0 : i32
    return %c0_i32, %c0_i32_0 : i32, i32
  }
  func.func @transform_2(%arg0: i32, %arg1: i32) -> (i32, i32, i32) {
    %c0_i32 = arith.constant 0 : i32
    %c0_i32_0 = arith.constant 0 : i32
    %c0_i32_1 = arith.constant 0 : i32
    return %arg0, %c0_i32, %c0_i32_0 : i32, i32, i32
  }
  func.func @transform_3(%arg0: i32, %arg1: i32) -> (i32, i32, i32, i32) {
    %c0_i32 = arith.constant 0 : i32
    %c0_i32_0 = arith.constant 0 : i32
    %c0_i32_1 = arith.constant 0 : i32
    return %c0_i32, %arg0, %arg1, %c0_i32_0 : i32, i32, i32, i32
  }
}

</mosaic_0001>

<bundles_post_ra>
// kernel: tpu_custom_call.1
= control target key start
LH: loop header
LB: loop body
LE: loop exit
PB: predicated region body
PF: predicated region fallthrough
CT: control target
= control target key end

     0   :  { %8 = vsyncpa [#allocation3], 0  ;;  %s19762_s0 = inlined_call_operand.hbm [shape: f32[3,16,16], index: 0, kind: input, shape index: {}]   ;;  %s19763_s1 = inlined_call_operand.hbm [shape: f32[256,1536], index: 1, kind: input, shape index: {}]   ;;  %s19764_s2 = inlined_call_operand.hbm [shape: f32[2,16,256], index: 2, kind: input, shape index: {}]   ;;  %s19765_s3 = inlined_call_operand.hbm [shape: f32[6,2,16,256], index: 3, kind: output, shape index: {}]  }
   0x1   :  { %9 = vsyncpa [#allocation6], 0 }
   0x2   :  { %10 = vsyncpa [#allocation4], 0 }
   0x3   :  { %12 = vsyncpa [#allocation4 + $0x1], 0  ;;  %s13417_s12 = smov 0   ;;  %s13419_s13 = smov 0  }
   0x4   :  { %s13421_s14 = smov 0   ;;  %s13423_s15 = smov 0  }
   0x5   :  { %s13425_s16 = smov 0   ;;  %s13427_s17 = smov 0  }
   0x6 LB: > { %s13448_s18 = sadd.s32 4294967295, %s13378_s17   ;;  %s10532_s19 = sadd.s32 4294967294, %s13378_s17   ;;  %s13378_s17 = sphi %s13427_s17, %s18_s17   ;;  %s13374_s16 = sphi %s13425_s16, %s23960_s16   ;;  %s13370_s15 = sphi %s13423_s15, %s23959_s15   ;;  %s13366_s14 = sphi %s13421_s14, %s23958_s14   ;;  %s13362_s13 = sphi %s13419_s13, %s23957_s13   ;;  %s13358_s12 = sphi %s13417_s12, %s23956_s12  }
   0x7   : > { %p91_p0 = scmp.ne.s32.totalorder %s13366_s14, %s13362_s13  ;;  %p92_p1 = scmp.eq.s32.totalorder %s13378_s17, 0 }
   0x8   : > { %p97_p2 = scmp.ne.s32.totalorder %s13362_s13, %s13358_s12  ;;  %p19766_p3 = scmp.eq.s32.totalorder %s13448_s18, 0 }
   0x9   : > { %p13457_p4 = por %p92_p1, %p91_p0  ;;  %p123_p5 = scmp.eq.s32.totalorder %s13448_s18, 1 }
   0xa   : > { %p13464_p6 = por %p19766_p3, %p97_p2  ;;  %p129_p7 = scmp.eq.s32.totalorder %s10532_s19, 1 }
   0xb   : > { %p13468_p8 = por %p123_p5, %p91_p0  ;;  %p10533_p9 = scmp.ge.s32.totalorder %s13378_s17, 1 }
   0xc   : > { %s21021_s21 = scalar_select %p13464_p6, 1, 0 }
   0xd   : > { %s21022_s22 = scalar_select %p13468_p8, 1, 0 }
   0xe   : > { %p13473_p10 = por %p129_p7, %p97_p2  ;;  %p136_p11 = scmp.lt.s32.totalorder %s13378_s17, 3 }
   0xf   : > { %s13380_s25 = smov [#allocation2]   ;;  %p13162_p1 = scmp.lt.s32.totalorder %s13378_s17, 2 }
  0x10   : > { %s21023_s23 = scalar_select %p13473_p10, 1, 0 }
  0x11   : > { %p13478_p12 = pnand %p10533_p9, %p136_p11  ;;  %s151_s26 = sshll.u32 %s13380_s25, 4  ;;  %s13482_s26 = int_to_ptr.vmem [resolvable:$true] %s151_s26 }
  0x12   : > { %p13496_p2 = pnand %p13162_p1, %p13457_p4  ;;  %s13381_s29 = smov [#allocation5]  }
  0x13   : > { %p13145_p13 = pneg %p13478_p12  ;;  %s164_s30 = sshll.u32 %s13381_s29, 4  ;;  %s13500_s30 = int_to_ptr.vmem [resolvable:$true] %s164_s30 }
  0x14   : > { %s13230_s6 = scalar_lea.hbm %s19762_s0, 768 }
  0x15   : > { %p13490_p5 = pnand %p13145_p13, %p19766_p3  ;;  %p13231_p7 = scmp.ne.s32.totalorder %s19762_s0, %s13230_s6 }
  0x16   : > { %p13237_p13 = scmp.lt.u32.totalorder %s13230_s6, %s19762_s0 }
  0x17   : > { %p13232_p9 = pneg %p13490_p5 }
  0x19   : > { %p13233_p4 = pnand %p13232_p9, %p13231_p7 }
  0x1b   : > { %p13234_p11 = pneg %p13233_p4 }
  0x1d   : > { %p13239_p1 = pnand %p13237_p13, %p13234_p11 }
  0x1f   : > { %13242 = shalt.err (!%p13239_p1)
}
  0x20   : > { %s13243_s11 = scalar_lea.vmem %s13482_s26, 768  ;;  %p13251_p8 = scmp.lt.s32.totalorder %s13482_s26, %s13482_s26 }
  0x21   : > { %p13244_p0 = scmp.ne.s32.totalorder %s13482_s26, %s13243_s11  ;;  %p13252_p7 = scmp.lt.s32.totalorder %s13243_s11, %s13243_s11 }
  0x23   : > { %p13246_p3 = pnand %p13244_p0, %p13232_p9  ;;  %p13253_p4 = por %p13252_p7, %p13251_p8 }
  0x25   : > { %p13247_p10 = pneg %p13246_p3 }
  0x27   : > { %p13254_p6 = pnand %p13253_p4, %p13247_p10 }
  0x29   : > { %13257 = shalt.err (!%p13254_p6)
}
  0x2a   : > { %s13382_s19 = smov 128   ;;  %s13383_s20 = smov 8  }
  0x2b   : > { %13148 = dma.hbm_to_vmem [thread:$0]  (!%p13490_p5), %s19762_s0, 768, %s13482_s26, [#allocation3], %s13382_s19, %s13382_s19, %s13383_s20  }
  0x2c   : > { %s13258_s6 = scalar_lea.hbm %s19763_s1, 49152 }
  0x2d   : > { %p13259_p3 = scmp.ne.s32.totalorder %s19763_s1, %s13258_s6  ;;  %p13265_p10 = scmp.lt.u32.totalorder %s13258_s6, %s19763_s1 }
  0x2f   : > { %p13261_p6 = pnand %p13259_p3, %p13232_p9 }
  0x31   : > { %p13262_p8 = pneg %p13261_p6 }
  0x33   : > { %p13267_p0 = pnand %p13265_p10, %p13262_p8 }
  0x35   : > { %13270 = shalt.err (!%p13267_p0)
}
  0x36   : > { %s13271_s26 = scalar_lea.vmem %s13500_s30, 49152  ;;  %p13279_p7 = scmp.lt.s32.totalorder %s13500_s30, %s13500_s30 }
  0x37   : > { %p13272_p11 = scmp.ne.s32.totalorder %s13500_s30, %s13271_s26  ;;  %p13280_p4 = scmp.lt.s32.totalorder %s13271_s26, %s13271_s26 }
  0x39   : > { %p13274_p13 = pnand %p13272_p11, %p13232_p9  ;;  %p13281_p3 = por %p13280_p4, %p13279_p7 }
  0x3b   : > { %p13275_p1 = pneg %p13274_p13 }
  0x3d   : > { %p13282_p6 = pnand %p13281_p3, %p13275_p1 }
  0x3f   : > { %13285 = shalt.err (!%p13282_p6)
}
  0x40   : > { %s13384_s11 = smov 1536   ;;  %s13385_s19 = smov 96  }
  0x41   : > { %13151 = dma.hbm_to_vmem [thread:$0]  (!%p13490_p5), %s19763_s1, 49152, %s13500_s30, [#allocation6], %s13384_s11, %s13384_s11, %s13385_s19  }
  0x42   : > { %s84_s29 = sadd.s32 1, %s13366_s14  ;;  %s30_s4 = sadd.s32 1, %s13374_s16 }
  0x43   : > { %s178_s5 = sand.u32 1, %s13378_s17   ;;  %p32_p9 = scmp.ge.s32.totalorder %s30_s4, 2 }
  0x44   : > { %s180_s6 = sand.u32 1, %s13366_s14   ;;  %s10568_s7 = sshll.u32 %s13374_s16, 9 }
  0x45   : > { %s23962_s4 = smov (%p32_p9, %s30_s4), 0  ;;  %s10537_s8 = sshll.u32 %s180_s6, 5 }
  0x46   : > { %s13564_s27 = scalar_lea.hbm %s19764_s2, %s10568_s7  ;;  %s81_s30 = ssub.s32 %s13374_s16, %s23962_s4 }
  0x47   : > { %p82_p5 = scmp.eq.s32.totalorder %s81_s30, 0  ;;  %s182_s26 = scalar_lea.vmem [#allocation7], %s10537_s8 }
  0x48   : > { %s189_s11 = sshll.u32 %s182_s26, 4  ;;  %s13573_s20 = scalar_lea.sflag [#allocation3], %s178_s5  ;;  %s13568_s11 = int_to_ptr.vmem [resolvable:$true] %s189_s11 }
  0x49   : > { %s13571_s19 = scalar_select %p82_p5, %s13366_s14, %s84_s29  }
  0x4a   : > { %s13286_s25 = scalar_lea.hbm %s13564_s27, 512  ;;  %p13288_p10 = pneg %p13496_p2 }
  0x4b   : > { %p13287_p8 = scmp.ne.s32.totalorder %s13564_s27, %s13286_s25  ;;  %s13291_s9 = scalar_lea.hbm %s19764_s2, 1024 }
  0x4c   : > { %p13292_p13 = scmp.lt.u32.totalorder %s13564_s27, %s19764_s2  ;;  %p13293_p1 = scmp.lt.u32.totalorder %s13291_s9, %s13286_s25 }
  0x4d   : > { %p13289_p0 = pnand %p13288_p10, %p13287_p8  ;;  %p13295_p4 = scmp.lt.u32.totalorder %s13286_s25, %s13564_s27 }
  0x4e   : > { %p13294_p7 = por %p13293_p1, %p13292_p13 }
  0x4f   : > { %p13290_p11 = pneg %p13289_p0 }
  0x50   : > { %p13296_p3 = por %p13295_p4, %p13294_p7 }
  0x52   : > { %p13297_p6 = pnand %p13296_p3, %p13290_p11 }
  0x54   : > { %13300 = shalt.err (!%p13297_p6)
}
  0x55   : > { %s13301_s29 = scalar_lea.vmem %s13568_s11, 512  ;;  %s13386_s5 = smov [#allocation7]  }
  0x56   : > { %p13302_p9 = scmp.ne.s32.totalorder %s13568_s11, %s13301_s29  ;;  %s13306_s30 = sshll.u32 %s13386_s5, 4  ;;  %s13307_s30 = int_to_ptr.vmem [resolvable:$false] %s13306_s30 }
  0x57   : > { %s13308_s26 = scalar_lea.vmem %s13307_s30, 1024  ;;  %p13309_p0 = scmp.lt.s32.totalorder %s13568_s11, %s13307_s30 }
  0x58   : > { %p13304_p5 = pnand %p13302_p9, %p13288_p10  ;;  %p13310_p13 = scmp.lt.s32.totalorder %s13308_s26, %s13301_s29 }
  0x5a   : > { %p13305_p8 = pneg %p13304_p5  ;;  %p13311_p1 = por %p13310_p13, %p13309_p0 }
  0x5c   : > { %p13312_p7 = pnand %p13311_p1, %p13305_p8 }
  0x5e   : > { %13315 = shalt.err (!%p13312_p7)
}
  0x5f   : > { %s13387_s25 = smov 256   ;;  %s13388_s6 = smov 16  }
  0x60   : > { %13155 = dma.hbm_to_vmem [thread:$0]  (!%p13496_p2), %s13564_s27, 512, %s13568_s11, %s13573_s20, %s13387_s25, %s13387_s25, %s13388_s6  }
  0x61   : > { %201 = sbr.rel (%p13478_p12) target bundleno = 1790 (0x6fe), region = 32 }
  0x68   : > { %p21027_p10 = scmp.eq.s32.totalorder %s13448_s18, 0 }
  0x6a   : > { %13341 = dma.done.wait (%p21027_p10), [#allocation3], 768   ;;  %p21028_p11 = pmov %p21027_p10 }
  0x6b   : > { %p21029_p4 = pmov %p21027_p10 }
  0x6c   : > { %13343 = vsyncadd (%p21028_p11), [#allocation3], 4294966528 }
  0x6d   : > { %13345 = dma.done.wait (%p21029_p4), [#allocation6], 49152   ;;  %p21030_p3 = pmov %p21029_p4 }
  0x6e   : > { %s211_s28 = sand.u32 1, %s13448_s18   ;;  %s13613_s27 = sand.u32 1, %s13362_s13  }
  0x6f   : > { %13347 = vsyncadd (%p21030_p3), [#allocation6], 4294918144  ;;  %s10543_s24 = sshll.u32 %s13613_s27, 5  ;;  %s212_s11 = scalar_lea.sflag [#allocation3], %s211_s28 }
  0x70   : > { %s215_s20 = scalar_lea.vmem [#allocation7], %s10543_s24  ;;  %p21031_p12 = scmp.ne.s32.totalorder %s21021_s21, 0 }
  0x72   : > { %13349 = dma.done.wait (%p21031_p12), %s212_s11, 512  }
  0x73   : > { %13351 = vsyncadd (%p21031_p12), %s212_s11, 4294966784  ;;  %v13389_v0 = vmov 0.0   ;;  %vm246_vm0 = vcmask 130048   ;;  %v241_v1 = vld [vmem:[%s215_s20 + $0x8] sm:$0xff]  ;;  %v243_v2 = vld [vmem:[%s215_s20 + $0x18] sm:$0xff]  ;;  %s13126_s18 = smul.u32 192, %s13613_s27 }
  0x74   : > { %600 = vmatprep.mubr.f32.mxu0 %v13389_v0  ;;  %321 = vmatprep.mubr.f32.mxu1 %v13389_v0  ;;  %v240_v3 = vld [vmem:[%s215_s20] sm:$0xff]  ;;  %v253_v4 = vand.u32 4294901760, %v241_v1  ;;  %v257_v5 = vand.u32 4294901760, %v243_v2  ;;  %v242_v6 = vld [vmem:[%s215_s20 + $0x10] sm:$0xff]  ;;  %v245_v9 = vld [vmem:[#allocation2 + $0x8] sm:$0xff]  ;;  %s10381_s7 = scalar_lea.sflag [#allocation4], %s13613_s27 }
  0x75   : > { %v255_v7 = vand.u32 4294901760, %v240_v3  ;;  %v244_v8 = vld [vmem:[#allocation2] sm:$0xff]  ;;  %v259_v10 = vand.u32 4294901760, %v242_v6  ;;  %v251_v12 = vsel %vm246_vm0, %v245_v9, 0  ;;  %v13661_v42 = vld [vmem:[#allocation5 + $0x8] sm:$0xff]  ;;  %v794_v46 = vld [vmem:[#allocation2 + $0x10] sm:$0xff] }
  0x76   : > { %v248_v11 = vsel %vm246_vm0, %v244_v8, 0  ;;  %v13624_v13 = vpack.c.bf16 %v257_v5, %v253_v4  ;;  %v345_v15 = vsub.f32 %v241_v1, %v253_v4  ;;  %v357_v16 = vsub.f32 %v243_v2, %v257_v5  ;;  %v1343_v35 = vld [vmem:[#allocation2 + $0x20] sm:$0xff]  ;;  %v13667_v47 = vld [vmem:[#allocation5 + $0x68] sm:$0xff]  ;;  %v1344_v50 = vld [vmem:[#allocation2 + $0x28] sm:$0xff]  ;;  %s17392_s21 = scalar_lea.vmem [#allocation8], %s13126_s18 }
  0x77   : > { %v13626_v14 = vand.u32 4294901760, %v248_v11  ;;  %v13628_v17 = vpack.c.bf16 %v259_v10, %v255_v7  ;;  %v13630_v18 = vand.u32 4294901760, %v251_v12  ;;  %v13632_v19 = vsub.f32 %v240_v3, %v255_v7  ;;  %v13673_v51 = vld [vmem:[#allocation5] sm:$0xff]  ;;  %v795_v59 = vld [vmem:[#allocation2 + $0x18] sm:$0xff]  ;;  %v13694_v63 = vld [vmem:[#allocation5 + $0x18] sm:$0xff] }
  0x78   : > { %v13634_v20 = vsub.f32 %v242_v6, %v259_v10  ;;  %10583 = vmatprep.subr.bf16.mxu0 %v13624_v13  ;;  %10571 = vmatprep.subr.bf16.mxu1 %v13624_v13  ;;  %v346_v22 = vand.u32 4294901760, %v345_v15  ;;  %v358_v23 = vand.u32 4294901760, %v357_v16  ;;  %v1346_v45 = vsel %vm246_vm0, %v1343_v35, 0  ;;  %v13675_v52 = vld [vmem:[#allocation5 + $0x60] sm:$0xff]  ;;  %v13702_v2 = vld [vmem:[#allocation5 + $0x78] sm:$0xff]  ;;  %v3305_v35 = vld [vmem:[#allocation5 + $0x10] sm:$0xff] }
  0x79   : > { %v13639_v21 = vsub.f32 %v248_v11, %v13626_v14  ;;  %10585 = vmatpush1.bf16.msra.mxu0 %v13628_v17  ;;  %10573 = vmatpush1.bf16.msra.mxu1 %v13628_v17  ;;  %v13644_v24 = vsub.f32 %v251_v12, %v13630_v18  ;;  %v352_v25 = vand.u32 4294901760, %v13632_v19  ;;  %v13671_v49 = vpack.c.bf16 %v357_v16, %v345_v15 }
  0x7a   : > { %v364_v26 = vand.u32 4294901760, %v13634_v20  ;;  %v347_v28 = vsub.f32 %v345_v15, %v346_v22  ;;  %v359_v29 = vsub.f32 %v357_v16, %v358_v23  ;;  %v13649_v30 = vpack.c.bf16 %v358_v23, %v346_v22 }
  0x7b   : > { %v324_v27 = vand.u32 4294901760, %v13639_v21  ;;  %v335_v31 = vand.u32 4294901760, %v13644_v24  ;;  %v353_v32 = vsub.f32 %v13632_v19, %v352_v25  ;;  %v1955_v54 = vand.u32 4294901760, %v13661_v42 }
  0x7c   : > { %v365_v33 = vsub.f32 %v13634_v20, %v364_v26  ;;  %v13654_v34 = vpack.c.bf16 %v364_v26, %v352_v25  ;;  %v348_v37 = vand.u32 4294901760, %v347_v28  ;;  %v360_v38 = vand.u32 4294901760, %v359_v29  ;;  %10587 = vmatprep.subr.bf16.mxu0 %v13649_v30 }
  0x7d   : > { %604 = vmatmul.mubr.f32.vlgmr.msra.gmra.mrb[0].mxu0 %v324_v27  ;;  %v325_v36 = vsub.f32 %v13639_v21, %v324_v27  ;;  %v354_v39 = vand.u32 4294901760, %v353_v32  ;;  %v336_v41 = vsub.f32 %v13644_v24, %v335_v31  ;;  %v13680_v55 = vand.u32 4294901760, %v1346_v45 }
  0x7e   : > { %609 = vmatprep.mubr.f32.mxu0 %v13389_v0  ;;  %v366_v40 = vand.u32 4294901760, %v365_v33  ;;  %10589 = vmatpush1.bf16.msra.mxu0 %v13654_v34  ;;  %v13663_v44 = vpack.c.bf16 %v360_v38, %v348_v37  ;;  %v797_v56 = vsel %vm246_vm0, %v794_v46, 0  ;;  %v1959_v57 = vand.u32 4294901760, %v13667_v47  ;;  %v3309_v38 = vld [vmem:[#allocation5 + $0x70] sm:$0xff]  ;;  %v13869_v46 = vld [vmem:[#allocation5 + $0xd8] sm:$0xff] }
  0x7f   : > { %v326_v43 = vand.u32 4294901760, %v325_v36  ;;  %10591 = vmatprep.subr.bf16.mxu0 %v13624_v13  ;;  %v337_v53 = vand.u32 4294901760, %v336_v41  ;;  %v1349_v58 = vsel %vm246_vm0, %v1344_v50, 0  ;;  %v13690_v60 = vsub.f32 %v13661_v42, %v1955_v54  ;;  %v1897_v41 = vld [vmem:[#allocation5 + $0x120] sm:$0xff] }
  0x80   : > { %v13669_v48 = vpack.c.bf16 %v366_v40, %v354_v39  ;;  %10575 = vmatprep.subr.bf16.mxu1 %v13663_v44  ;;  %v1957_v61 = vand.u32 4294901760, %v13673_v51  ;;  %v1961_v62 = vand.u32 4294901760, %v13675_v52  ;;  %v13700_v1 = vsub.f32 %v13667_v47, %v1959_v57  ;;  %v1895_v40 = vld [vmem:[#allocation5 + $0xc0] sm:$0xff] }
  0x81   : > { %327 = vmatmul.mubr.f32.vlgmr.msra.gmra.mrb[0].mxu1 %v326_v43  ;;  %613 = vmatmul.mubr.f32.gmra.mrb[2].mxu0 %v335_v31  ;;  %21032 = vst [vmem:[#allocation15_spill] sm:$0xff] %v13690_v60  ;;  %v13706_v3 = vpack.c.bf16 %v13634_v20, %v13632_v19  ;;  %v13708_v4 = vand.u32 4294901760, %v797_v56  ;;  %v13723_v7 = vsub.f32 %v1346_v45, %v13680_v55  ;;  %v13725_v8 = vand.u32 4294901760, %v1349_v58 }
  0x82   : > { %10577 = vmatpush1.bf16.msra.mxu1 %v13669_v48  ;;  %332 = vmatprep.mubr.f32.mxu1 %v13389_v0  ;;  %21033 = vst [vmem:[#allocation16_spill] sm:$0xff] %v13700_v1  ;;  %v13713_v5 = vsub.f32 %v13673_v51, %v1957_v61  ;;  %v13718_v6 = vsub.f32 %v13675_v52, %v1961_v62  ;;  %v800_v9 = vsel %vm246_vm0, %v795_v59, 0  ;;  %v3433_v10 = vand.u32 4294901760, %v13694_v63  ;;  %v13879_v51 = vld [vmem:[#allocation5 + $0x188] sm:$0xff]  ;;  %v13896_v59 = vld [vmem:[#allocation5 + $0x180] sm:$0xff] }
  0x83   : > { %695 = vmatprep.mubr.f32.mxu0 %v13389_v0  ;;  %10579 = vmatprep.subr.bf16.mxu1 %v13671_v49  ;;  %v3437_v11 = vand.u32 4294901760, %v13702_v2  ;;  %v13740_v15 = vsub.f32 %v797_v56, %v13708_v4  ;;  %v13742_v16 = vand.u32 4294901760, %v800_v9  ;;  %v1422_v20 = vand.u32 4294901760, %v13723_v7  ;;  %v13881_v52 = vld [vmem:[#allocation5 + $0x1e8] sm:$0xff] }
  0x84   : > { %21034 = vst [vmem:[#allocation17_spill] sm:$0xff] %v13713_v5  ;;  %21035 = vst [vmem:[#allocation18_spill] sm:$0xff] %v13718_v6  ;;  %v13736_v12 = vsub.f32 %v13694_v63, %v3433_v10  ;;  %v13753_v22 = vsub.f32 %v1349_v58, %v13725_v8  ;;  %v3435_v39 = vand.u32 4294901760, %v3305_v35  ;;  %v3439_v42 = vand.u32 4294901760, %v3309_v38  ;;  %v13894_v58 = vld [vmem:[#allocation5 + $0x130] sm:$0xff] }
  0x85   : > { %338 = vmatmul.mubr.f32.gmra.mrb[2].mxu1 %v337_v53  ;;  %697 = vmatmul.mubr.f32.vlgmr.msra.gmra.mrb[0].mxu0 %v13626_v14  ;;  %v13747_v19 = vsub.f32 %v13702_v2, %v3437_v11  ;;  %v873_v23 = vand.u32 4294901760, %v13740_v15  ;;  %v13761_v25 = vsub.f32 %v800_v9, %v13742_v16  ;;  %v1423_v26 = vsub.f32 %v13723_v7, %v1422_v20  ;;  %v13883_v53 = vld [vmem:[#allocation5 + $0xd0] sm:$0xff] }
  0x86   : > { %428 = vmatprep.mubr.f32.mxu1 %v13389_v0  ;;  %702 = vmatprep.mubr.f32.mxu0 %v13389_v0  ;;  %21036 = vst [vmem:[#allocation19_spill] sm:$0xff] %v13736_v12  ;;  %v1433_v27 = vand.u32 4294901760, %v13753_v22  ;;  %v1965_v43 = vand.u32 4294901760, %v1895_v40  ;;  %v13873_v47 = vpack.c.bf16 %v3439_v42, %v3435_v39  ;;  %v13890_v56 = vsub.f32 %v3305_v35, %v3435_v39 }
  0x87   : > { %10593 = vmatpush1.bf16.msra.mxu0 %v13628_v17  ;;  %21037 = vst [vmem:[#allocation20_spill] sm:$0xff] %v13747_v19  ;;  %v884_v28 = vand.u32 4294901760, %v13761_v25  ;;  %v1424_v29 = vand.u32 4294901760, %v1423_v26  ;;  %v1973_v9 = vand.u32 4294901760, %v13896_v59 }
  0x88   : > { %10619 = vmatprep.subr.bf16.mxu0 %v13624_v13  ;;  %v1434_v31 = vsub.f32 %v13753_v22, %v1433_v27  ;;  %21042 = vst [vmem:[#allocation25_spill] sm:$0xff] %v13873_v47  ;;  %21046 = vst [vmem:[#allocation29_spill] sm:$0xff] %v13890_v56 }
  0x89   : > { %430 = vmatmul.mubr.f32.vlgmr.msra.gmra.mrb[0].mxu1 %v13626_v14  ;;  %704 = vmatmul.mubr.f32.gmra.mrb[2].mxu0 %v13630_v18  ;;  %v885_v32 = vsub.f32 %v13761_v25, %v884_v28 }
  0x8a   : > { %10581 = vmatpush1.bf16.msra.mxu1 %v13706_v3  ;;  %435 = vmatprep.mubr.f32.mxu1 %v13389_v0 }
  0x8b   : > { %778 = vmatprep.mubr.f32.mxu0 %v13389_v0  ;;  %10595 = vmatprep.subr.bf16.mxu1 %v13624_v13  ;;  %v886_v33 = vand.u32 4294901760, %v885_v32 }
  0x8d   : > { %437 = vmatmul.mubr.f32.gmra.mrb[2].mxu1 %v13630_v18  ;;  %780 = vmatmul.mubr.f32.vlgmr.msra.gmra.mrb[0].mxu0 %v13626_v14  ;;  %v874_v14 = vsub.f32 %v13740_v15, %v873_v23 }
  0x8e   : > { %515 = vmatprep.mubr.f32.mxu1 %v13389_v0  ;;  %785 = vmatprep.mubr.f32.mxu0 %v13389_v0 }
  0x8f   : > { %10621 = vmatpush1.bf16.msra.mxu0 %v13628_v17 }
  0x90   : > { %10623 = vmatprep.subr.bf16.mxu0 %v13663_v44 }
  0x91   : > { %518 = vmatmul.mubr.f32.vlgmr.msra.gmra.mrb[0].mxu1 %v13639_v21  ;;  %787 = vmatmul.mubr.f32.gmra.mrb[2].mxu0 %v13630_v18  ;;  %v875_v21 = vand.u32 4294901760, %v874_v14  ;;  %v1435_v18 = vand.u32 4294901760, %v1434_v31  ;;  %v1903_v31 = vld [vmem:[#allocation5 + $0x240] sm:$0xff] }
  0x92   : > { %10597 = vmatpush1.bf16.msra.mxu1 %v13628_v17  ;;  %523 = vmatprep.mubr.f32.mxu1 %v13389_v0  ;;  %v1981_v35 = vand.u32 4294901760, %v1903_v31 }
  0x93   : > { %1419 = vmatprep.mubr.f32.mxu0 %v13389_v0  ;;  %10599 = vmatprep.subr.bf16.mxu1 %v13663_v44  ;;  %v1969_v44 = vand.u32 4294901760, %v1897_v41 }
  0x95   : > { %526 = vmatmul.mubr.f32.gmra.mrb[2].mxu1 %v13644_v24  ;;  %1425 = vmatmul.mubr.f32.vlgmr.msra.gmra.mrb[4].mxu0 %v1424_v29  ;;  %v13833_v24 = vpack.c.bf16 %v3437_v11, %v3433_v10  ;;  %v13904_v63 = vsub.f32 %v1897_v41, %v1969_v44  ;;  %v3322_v10 = vld [vmem:[#allocation5 + $0x198] sm:$0xff]  ;;  %v3325_v29 = vld [vmem:[#allocation5 + $0x1f0] sm:$0xff] }
  0x96   : > { %870 = vmatprep.mubr.f32.mxu1 %v13389_v0  ;;  %1430 = vmatprep.mubr.f32.mxu0 %v13389_v0  ;;  %v3326_v11 = vld [vmem:[#allocation5 + $0x1f8] sm:$0xff] }
  0x97   : > { %10625 = vmatpush1.bf16.msra.mxu0 %v13669_v48  ;;  %21038 = vst [vmem:[#allocation21_spill] sm:$0xff] %v13833_v24  ;;  %21049 = vst [vmem:[#allocation32_spill] sm:$0xff] %v13904_v63 }
  0x98   : > { %10627 = vmatprep.subr.bf16.mxu0 %v13671_v49 }
  0x99   : > { %876 = vmatmul.mubr.f32.vlgmr.msra.gmra.mrb[4].mxu1 %v875_v21  ;;  %1436 = vmatmul.mubr.f32.gmra.mrb[6].mxu0 %v1435_v18  ;;  %v1905_v21 = vld [vmem:[#allocation5 + $0x2a0] sm:$0xff] }
  0x9a   : > { %10601 = vmatpush1.bf16.msra.mxu1 %v13669_v48  ;;  %881 = vmatprep.mubr.f32.mxu1 %v13389_v0  ;;  %v13875_v48 = vpack.c.bf16 %v1969_v44, %v1965_v43  ;;  %v3329_v44 = vld [vmem:[#allocation5 + $0x250] sm:$0xff] }
  0x9b   : > { %1526 = vmatprep.mubr.f32.mxu0 %v13389_v0  ;;  %10603 = vmatprep.subr.bf16.mxu1 %v13671_v49  ;;  %v19770_v49 = vand.u32 4294901760, %v13869_v46 }
  0x9c   : > { %21043 = vst [vmem:[#allocation26_spill] sm:$0xff] %v13875_v48 }
  0x9d   : > { %887 = vmatmul.mubr.f32.gmra.mrb[6].mxu1 %v886_v33  ;;  %1528 = vmatmul.mubr.f32.vlgmr.msra.gmra.mrb[4].mxu0 %v13680_v55 }
  0x9e   : > { %977 = vmatprep.mubr.f32.mxu1 %v13389_v0  ;;  %1533 = vmatprep.mubr.f32.mxu0 %v13389_v0 }
  0x9f   : > { %10629 = vmatpush1.bf16.msra.mxu0 %v13706_v3 }
  0xa0   : > { %10631 = vmatprep.subr.bf16.mxu0 %v13624_v13 }
  0xa1   : > { %979 = vmatmul.mubr.f32.vlgmr.msra.gmra.mrb[4].mxu1 %v13708_v4  ;;  %1535 = vmatmul.mubr.f32.gmra.mrb[6].mxu0 %v13725_v8 }
  0xa2   : > { %10605 = vmatpush1.bf16.msra.mxu1 %v13706_v3  ;;  %984 = vmatprep.mubr.f32.mxu1 %v13389_v0  ;;  %v1971_v3 = vand.u32 4294901760, %v13879_v51 }
  0xa3   : > { %1613 = vmatprep.mubr.f32.mxu0 %v13389_v0  ;;  %10607 = vmatprep.subr.bf16.mxu1 %v13624_v13 }
  0xa5   : > { %986 = vmatmul.mubr.f32.gmra.mrb[6].mxu1 %v13742_v16  ;;  %1616 = vmatmul.mubr.f32.vlgmr.msra.gmra.mrb[4].mxu0 %v13723_v7  ;;  %v3443_v7 = vand.u32 4294901760, %v13883_v53 }
  0xa6   : > { %1064 = vmatprep.mubr.f32.mxu1 %v13389_v0  ;;  %1621 = vmatprep.mubr.f32.mxu0 %v13389_v0 }
  0xa7   : > { %10633 = vmatpush1.bf16.msra.mxu0 %v13628_v17  ;;  %v13958_v56 = vsub.f32 %v13883_v53, %v3443_v7 }
  0xa8   : > { %10635 = vmatprep.subr.bf16.mxu0 %v13649_v30 }
  0xa9   : > { %1067 = vmatmul.mubr.f32.vlgmr.msra.gmra.mrb[4].mxu1 %v13740_v15  ;;  %1624 = vmatmul.mubr.f32.gmra.mrb[6].mxu0 %v13753_v22  ;;  %v1904_v22 = vld [vmem:[#allocation5 + $0x248] sm:$0xff]  ;;  %21065 = vst [vmem:[#allocation46_spill] sm:$0xff] %v13958_v56 }
  0xaa   : > { %10609 = vmatpush1.bf16.msra.mxu1 %v13628_v17  ;;  %1072 = vmatprep.mubr.f32.mxu1 %v13389_v0  ;;  %v1979_v14 = vand.u32 4294901760, %v1904_v22 }
  0xab   : > { %1698 = vmatprep.mubr.f32.mxu0 %v13389_v0  ;;  %10611 = vmatprep.subr.bf16.mxu1 %v13649_v30  ;;  %v13860_v30 = vpack.c.bf16 %v1961_v62, %v1957_v61  ;;  %v13898_v61 = vld [vmem:[#allocation5 + $0x1e0] sm:$0xff]  ;;  %v13902_v62 = vsub.f32 %v1895_v40, %v1965_v43  ;;  %v1910_v43 = vld [vmem:[#allocation5 + $0x368] sm:$0xff] }
  0xac   : > { %v1977_v15 = vand.u32 4294901760, %v13898_v61 }
  0xad   : > { %1075 = vmatmul.mubr.f32.gmra.mrb[6].mxu1 %v13761_v25  ;;  %1702 = vmatmul.mubr.f32.vlgmr.msra.gmra.mrb[4].mxu0 %v1422_v20  ;;  %21040 = vst [vmem:[#allocation23_spill] sm:$0xff] %v13860_v30  ;;  %21048 = vst [vmem:[#allocation31_spill] sm:$0xff] %v13902_v62  ;;  %v3453_v20 = vand.u32 4294901760, %v3326_v11  ;;  %v3321_v25 = vld [vmem:[#allocation5 + $0x190] sm:$0xff]  ;;  %v13951_v62 = vsub.f32 %v13879_v51, %v1971_v3 }
  0xae   : > { %1149 = vmatprep.mubr.f32.mxu1 %v13389_v0  ;;  %1707 = vmatprep.mubr.f32.mxu0 %v13389_v0  ;;  %v13923_v32 = vpack.c.bf16 %v1977_v15, %v1973_v9  ;;  %v3451_v33 = vand.u32 4294901760, %v3321_v25 }
  0xaf   : > { %10637 = vmatpush1.bf16.msra.mxu0 %v13654_v34  ;;  %21063 = vst [vmem:[#allocation44_spill] sm:$0xff] %v13951_v62  ;;  %v13972_v51 = vsub.f32 %v3326_v11, %v3453_v20 }
  0xb0   : > { %10639 = vmatprep.subr.bf16.mxu0 %v13624_v13  ;;  %21053 = vst [vmem:[#allocation36_spill] sm:$0xff] %v13923_v32 }
  0xb1   : > { %1153 = vmatmul.mubr.f32.vlgmr.msra.gmra.mrb[4].mxu1 %v873_v23  ;;  %1711 = vmatmul.mubr.f32.gmra.mrb[6].mxu0 %v1433_v27  ;;  %v1906_v23 = vld [vmem:[#allocation5 + $0x2a8] sm:$0xff]  ;;  %21070 = vst [vmem:[#allocation51_spill] sm:$0xff] %v13972_v51 }
  0xb2   : > { %10613 = vmatpush1.bf16.msra.mxu1 %v13654_v34  ;;  %1158 = vmatprep.mubr.f32.mxu1 %v13389_v0  ;;  %v1898_v34 = vld [vmem:[#allocation5 + $0x128] sm:$0xff] }
  0xb3   : > { %1793 = vmatprep.mubr.f32.mxu0 %v13389_v0  ;;  %10615 = vmatprep.subr.bf16.mxu1 %v13624_v13  ;;  %v13843_v13 = vpack.c.bf16 %v1959_v57, %v1955_v54  ;;  %v1967_v37 = vand.u32 4294901760, %v1898_v34  ;;  %v13892_v57 = vsub.f32 %v3309_v38, %v3439_v42  ;;  %v3334_v38 = vld [vmem:[#allocation5 + $0x2b8] sm:$0xff]  ;;  %v1908_v42 = vld [vmem:[#allocation5 + $0x308] sm:$0xff] }
  0xb4   : > { %v3461_v41 = vand.u32 4294901760, %v3334_v38 }
  0xb5   : > { %1162 = vmatmul.mubr.f32.gmra.mrb[6].mxu1 %v884_v28  ;;  %1795 = vmatmul.mubr.f32.vlgmr.msra.gmra.mrb[4].mxu0 %v13680_v55  ;;  %21039 = vst [vmem:[#allocation22_spill] sm:$0xff] %v13843_v13  ;;  %21047 = vst [vmem:[#allocation30_spill] sm:$0xff] %v13892_v57  ;;  %v1983_v28 = vand.u32 4294901760, %v1906_v23 }
  0xb6   : > { %1244 = vmatprep.mubr.f32.mxu1 %v13389_v0  ;;  %1800 = vmatprep.mubr.f32.mxu0 %v13389_v0  ;;  %v13993_v11 = vsub.f32 %v3334_v38, %v3461_v41  ;;  %v3346_v38 = vld [vmem:[#allocation5 + $0x3d8] sm:$0xff] }
  0xb7   : > { %10641 = vmatpush1.bf16.msra.mxu0 %v13628_v17 }
  0xb8   : > { %11027 = vmatprep.subr.bf16.mxu0 %v13833_v24  ;;  %21080 = vst [vmem:[#allocation61_spill] sm:$0xff] %v13993_v11 }
  0xb9   : > { %1246 = vmatmul.mubr.f32.vlgmr.msra.gmra.mrb[4].mxu1 %v13708_v4  ;;  %1802 = vmatmul.mubr.f32.gmra.mrb[6].mxu0 %v13725_v8 }
  0xba   : > { %10617 = vmatpush1.bf16.msra.mxu1 %v13628_v17  ;;  %1251 = vmatprep.mubr.f32.mxu1 %v13389_v0  ;;  %v1896_v17 = vld [vmem:[#allocation5 + $0xc8] sm:$0xff] }
  0xbb   : > { %1876 = vmatprep.mubr.f32.mxu0 %v13389_v0  ;;  %10643 = vmatprep.subr.bf16.mxu1 %v13843_v13  ;;  %v1963_v36 = vand.u32 4294901760, %v1896_v17 }
  0xbd   : > { %1253 = vmatmul.mubr.f32.gmra.mrb[6].mxu1 %v13742_v16  ;;  %1878 = vmatmul.mubr.f32.vlgmr.msra.gmra.mrb[4].mxu0 %v13680_v55  ;;  %v13867_v45 = vpack.c.bf16 %v1967_v37, %v1963_v36  ;;  %v13886_v54 = vsub.f32 %v1896_v17, %v1963_v36  ;;  %v13888_v55 = vsub.f32 %v1898_v34, %v1967_v37  ;;  %v3455_v17 = vand.u32 4294901760, %v3325_v29  ;;  %v3330_v37 = vld [vmem:[#allocation5 + $0x258] sm:$0xff] }
  0xbe   : > { %1327 = vmatprep.mubr.f32.mxu1 %v13389_v0  ;;  %1883 = vmatprep.mubr.f32.mxu0 %v13389_v0  ;;  %v13929_v34 = vpack.c.bf16 %v1983_v28, %v1979_v14  ;;  %v1985_v36 = vand.u32 4294901760, %v1905_v21  ;;  %v3457_v40 = vand.u32 4294901760, %v3330_v37 }
  0xbf   : > { %21041 = vst [vmem:[#allocation24_spill] sm:$0xff] %v13867_v45  ;;  %21044 = vst [vmem:[#allocation27_spill] sm:$0xff] %v13886_v54  ;;  %11029 = vmatpush1.bf16.msra.mxu0 %v13873_v47  ;;  %v13933_v39 = vpack.c.bf16 %v3455_v17, %v3451_v33  ;;  %v1909_v47 = vld [vmem:[#allocation5 + $0x360] sm:$0xff] }
  0xc0   : > { %21045 = vst [vmem:[#allocation28_spill] sm:$0xff] %v13888_v55  ;;  %21055 = vst [vmem:[#allocation38_spill] sm:$0xff] %v13929_v34  ;;  %v1993_v24 = vand.u32 4294901760, %v1909_v47 }
  0xc1   : > { %1329 = vmatmul.mubr.f32.vlgmr.msra.gmra.mrb[4].mxu1 %v13708_v4  ;;  %1885 = vmatmul.mubr.f32.gmra.mrb[6].mxu0 %v13725_v8  ;;  %v1975_v4 = vand.u32 4294901760, %v13881_v52  ;;  %v3447_v8 = vand.u32 4294901760, %v13894_v58  ;;  %21056 = vst [vmem:[#allocation39_spill] sm:$0xff] %v13933_v39 }
  0xc2   : > { %1334 = vmatprep.mubr.f32.mxu1 %v13389_v0  ;;  %10645 = vmatpush1.bf16.msra.mxu1 %v13860_v30  ;;  %v13871_v0 = vld [vmem:[#allocation5 + $0x138] sm:$0xff]  ;;  %v21059_v30 = vand.u32 4294901760, %v13869_v46 }
  0xc3   : > { %v19769_v50 = vand.u32 4294901760, %v13871_v0  ;;  %10647 = vmatprep.subr.bf16.mxu1 %v13867_v45  ;;  %v13919_v26 = vpack.c.bf16 %v1975_v4, %v1971_v3  ;;  %v13921_v27 = vpack.c.bf16 %v3447_v8, %v3443_v7  ;;  %v13954_v57 = vsub.f32 %v13881_v52, %v1975_v4  ;;  %v3338_v4 = vld [vmem:[#allocation5 + $0x318] sm:$0xff] }
  0xc4   : > { %v13943_v13 = vsub.f32 %v13869_v46, %v21059_v30  ;;  %v13961_v55 = vsub.f32 %v13894_v58, %v3447_v8  ;;  %v13964_v30 = vsub.f32 %v13896_v59, %v1973_v9  ;;  %v13967_v46 = vsub.f32 %v13898_v61, %v1977_v15  ;;  %v3342_v7 = vld [vmem:[#allocation5 + $0x378] sm:$0xff]  ;;  %v1912_v15 = vld [vmem:[#allocation5 + $0x3c8] sm:$0xff] }
  0xc5   : > { %1336 = vmatmul.mubr.f32.gmra.mrb[6].mxu1 %v13742_v16  ;;  %v13910_v2 = vpack.c.bf16 %v19769_v50, %v19770_v49  ;;  %v3449_v16 = vand.u32 4294901760, %v3322_v10  ;;  %21051 = vst [vmem:[#allocation34_spill] sm:$0xff] %v13919_v26  ;;  %21052 = vst [vmem:[#allocation35_spill] sm:$0xff] %v13921_v27  ;;  %v13936_v50 = vpack.c.bf16 %v1985_v36, %v1981_v35  ;;  %v1987_v49 = vand.u32 4294901760, %v1908_v42 }
  0xc6   : > { %10649 = vmatpush1.bf16.msra.mxu1 %v13875_v48  ;;  %v1907_v48 = vld [vmem:[#allocation5 + $0x300] sm:$0xff]  ;;  %21060 = vst [vmem:[#allocation42_spill] sm:$0xff] %v13943_v13  ;;  %21064 = vst [vmem:[#allocation45_spill] sm:$0xff] %v13954_v57  ;;  %v13979_v58 = vsub.f32 %v1904_v22, %v1979_v14  ;;  %v13981_v3 = vsub.f32 %v1906_v23, %v1983_v28  ;;  %v13983_v59 = vsub.f32 %v3321_v25, %v3451_v33  ;;  %v3341_v28 = vld [vmem:[#allocation5 + $0x370] sm:$0xff] }
  0xc7   : > { %21050 = vst [vmem:[#allocation33_spill] sm:$0xff] %v13910_v2  ;;  %11031 = vmatprep.subr.bf16.mxu0 %v13910_v2  ;;  %v13925_v18 = vpack.c.bf16 %v3453_v20, %v3449_v16  ;;  %10651 = vmatprep.subr.bf16.mxu1 %v13919_v26  ;;  %21057 = vst [vmem:[#allocation40_spill] sm:$0xff] %v13936_v50  ;;  %v3333_v26 = vld [vmem:[#allocation5 + $0x2b0] sm:$0xff]  ;;  %v3459_v2 = vand.u32 4294901760, %v3329_v44  ;;  %v1989_v45 = vand.u32 4294901760, %v1907_v48 }
  0xc8   : > { %11033 = vmatpush1.bf16.msra.mxu0 %v13921_v27  ;;  %v1991_v27 = vand.u32 4294901760, %v1910_v43  ;;  %21066 = vst [vmem:[#allocation47_spill] sm:$0xff] %v13961_v55  ;;  %21067 = vst [vmem:[#allocation48_spill] sm:$0xff] %v13964_v30  ;;  %v13985_v61 = vsub.f32 %v3325_v29, %v3455_v17  ;;  %v13987_v8 = vsub.f32 %v1903_v31, %v1981_v35  ;;  %v3337_v20 = vld [vmem:[#allocation5 + $0x310] sm:$0xff]  ;;  %v1911_v29 = vld [vmem:[#allocation5 + $0x3c0] sm:$0xff]  ;;  %v1995_v35 = vand.u32 4294901760, %v1912_v15 }
  0xc9   : > { %21054 = vst [vmem:[#allocation37_spill] sm:$0xff] %v13925_v18  ;;  %11035 = vmatprep.subr.bf16.mxu0 %v13925_v18  ;;  %v3463_v18 = vand.u32 4294901760, %v3333_v26  ;;  %21068 = vst [vmem:[#allocation49_spill] sm:$0xff] %v13967_v46  ;;  %v13989_v9 = vsub.f32 %v1905_v21, %v1985_v36  ;;  %v13996_v22 = vsub.f32 %v1908_v42, %v1987_v49  ;;  %v1913_v31 = vld [vmem:[#allocation5 + $0x420] sm:$0xff]  ;;  %v3467_v36 = vand.u32 4294901760, %v3337_v20  ;;  %v1918_v42 = vld [vmem:[#allocation5 + $0x4e8] sm:$0xff] }
  0xca   : > { %10653 = vmatpush1.bf16.msra.mxu1 %v13923_v32  ;;  %v13938_v32 = vpack.c.bf16 %v3461_v41, %v3457_v40  ;;  %v13975_v52 = vpack.c.bf16 %v1991_v27, %v1987_v49  ;;  %21073 = vst [vmem:[#allocation54_spill] sm:$0xff] %v13979_v58  ;;  %21074 = vst [vmem:[#allocation55_spill] sm:$0xff] %v13981_v3  ;;  %v13998_v23 = vsub.f32 %v1910_v43, %v1991_v27  ;;  %v3345_v43 = vld [vmem:[#allocation5 + $0x3d0] sm:$0xff] }
  0xcb   : > { %10655 = vmatprep.subr.bf16.mxu1 %v13929_v34  ;;  %v21061_v34 = vand.u32 4294901760, %v13871_v0  ;;  %v13977_v53 = vpack.c.bf16 %v3463_v18, %v3459_v2  ;;  %21075 = vst [vmem:[#allocation56_spill] sm:$0xff] %v13983_v59  ;;  %21076 = vst [vmem:[#allocation57_spill] sm:$0xff] %v13985_v61  ;;  %v14001_v25 = vsub.f32 %v3329_v44, %v3459_v2  ;;  %v3469_v49 = vand.u32 4294901760, %v3342_v7 }
  0xcc   : > { %21058 = vst [vmem:[#allocation41_spill] sm:$0xff] %v13938_v32  ;;  %11037 = vmatpush1.bf16.msra.mxu0 %v13933_v39  ;;  %21071 = vst [vmem:[#allocation52_spill] sm:$0xff] %v13975_v52  ;;  %v14003_v14 = vsub.f32 %v3333_v26, %v3463_v18  ;;  %v14005_v21 = vpack.c.bf16 %v1993_v24, %v1989_v45  ;;  %v14007_v33 = vsub.f32 %v1907_v48, %v1989_v45  ;;  %v1916_v48 = vld [vmem:[#allocation5 + $0x488] sm:$0xff]  ;;  %v3358_v39 = vld [vmem:[#allocation5 + $0x4f8] sm:$0xff] }
  0xcd   : > { %v13948_v63 = vsub.f32 %v13871_v0, %v21061_v34  ;;  %v13970_v0 = vsub.f32 %v3322_v10, %v3449_v16  ;;  %11039 = vmatprep.subr.bf16.mxu0 %v13938_v32  ;;  %21072 = vst [vmem:[#allocation53_spill] sm:$0xff] %v13977_v53  ;;  %21077 = vst [vmem:[#allocation58_spill] sm:$0xff] %v13987_v8  ;;  %v13991_v10 = vsub.f32 %v3330_v37, %v3457_v40  ;;  %v1914_v16 = vld [vmem:[#allocation5 + $0x428] sm:$0xff]  ;;  %v3350_v40 = vld [vmem:[#allocation5 + $0x438] sm:$0xff] }
  0xce   : > { %10657 = vmatpush1.bf16.msra.mxu1 %v13936_v50  ;;  %21078 = vst [vmem:[#allocation59_spill] sm:$0xff] %v13989_v9  ;;  %21081 = vst [vmem:[#allocation62_spill] sm:$0xff] %v13996_v22  ;;  %v14009_v17 = vsub.f32 %v1909_v47, %v1993_v24  ;;  %v3465_v34 = vand.u32 4294901760, %v3338_v4  ;;  %v1999_v27 = vand.u32 4294901760, %v1914_v16  ;;  %v3471_v26 = vand.u32 4294901760, %v3341_v28  ;;  %v1917_v32 = vld [vmem:[#allocation5 + $0x4e0] sm:$0xff] }
  0xcf   : > { %21062 = vst [vmem:[#allocation43_spill] sm:$0xff] %v13948_v63  ;;  %21069 = vst [vmem:[#allocation50_spill] sm:$0xff] %v13970_v0  ;;  %10659 = vmatprep.subr.bf16.mxu1 %v13975_v52  ;;  %v1997_v18 = vand.u32 4294901760, %v1911_v29  ;;  %v2001_v37 = vand.u32 4294901760, %v1913_v31  ;;  %v14016_v45 = vsub.f32 %v3342_v7, %v3469_v49  ;;  %v14020_v47 = vsub.f32 %v1912_v15, %v1995_v35  ;;  %v3349_v52 = vld [vmem:[#allocation5 + $0x430] sm:$0xff]  ;;  %v3354_v50 = vld [vmem:[#allocation5 + $0x498] sm:$0xff] }
  0xd0   : > { %21079 = vst [vmem:[#allocation60_spill] sm:$0xff] %v13991_v10  ;;  %21082 = vst [vmem:[#allocation63_spill] sm:$0xff] %v13998_v23  ;;  %11041 = vmatpush1.bf16.msra.mxu0 %v13977_v53  ;;  %v14012_v2 = vsub.f32 %v3338_v4, %v3465_v34  ;;  %v14014_v41 = vpack.c.bf16 %v3469_v49, %v3465_v34  ;;  %v14018_v24 = vpack.c.bf16 %v1999_v27, %v1995_v35  ;;  %v1915_v34 = vld [vmem:[#allocation5 + $0x480] sm:$0xff] }
  0xd1   : > { %21083 = vst [vmem:[#allocation64_spill] sm:$0xff] %v14001_v25  ;;  %21084 = vst [vmem:[#allocation65_spill] sm:$0xff] %v14003_v14  ;;  %v14022_v44 = vsub.f32 %v1914_v16, %v1999_v27  ;;  %v14024_v4 = vpack.c.bf16 %v3471_v26, %v3467_v36  ;;  %v14028_v53 = vsub.f32 %v3341_v28, %v3471_v26  ;;  %v3473_v16 = vand.u32 4294901760, %v3346_v38 }
  0xd2   : > { %21085 = vst [vmem:[#allocation66_spill] sm:$0xff] %v14005_v21  ;;  %21086 = vst [vmem:[#allocation67_spill] sm:$0xff] %v14007_v33  ;;  %10661 = vmatpush1.bf16.msra.mxu1 %v14005_v21  ;;  %v14026_v21 = vsub.f32 %v3337_v20, %v3467_v36  ;;  %11043 = vmatprep.subr.bf16.mxu0 %v14014_v41  ;;  %v14032_v7 = vpack.c.bf16 %v2001_v37, %v1997_v18  ;;  %v3477_v20 = vand.u32 4294901760, %v3350_v40 }
  0xd3   : > { %21087 = vst [vmem:[#allocation68_spill] sm:$0xff] %v14009_v17  ;;  %21088 = vst [vmem:[#allocation69_spill] sm:$0xff] %v14012_v2  ;;  %10663 = vmatprep.subr.bf16.mxu1 %v14018_v24  ;;  %v14034_v15 = vsub.f32 %v1911_v29, %v1997_v18  ;;  %v14036_v49 = vsub.f32 %v1913_v31, %v2001_v37  ;;  %v2003_v35 = vand.u32 4294901760, %v1916_v48  ;;  %v2007_v28 = vand.u32 4294901760, %v1918_v42 }
  0xd4   : > { %21089 = vst [vmem:[#allocation70_spill] sm:$0xff] %v14014_v41  ;;  %21090 = vst [vmem:[#allocation71_spill] sm:$0xff] %v14016_v45  ;;  %11045 = vmatpush1.bf16.msra.mxu0 %v14024_v4  ;;  %v3475_v27 = vand.u32 4294901760, %v3345_v43  ;;  %v14040_v36 = vsub.f32 %v3346_v38, %v3473_v16  ;;  %v3479_v26 = vand.u32 4294901760, %v3349_v52  ;;  %v2005_v41 = vand.u32 4294901760, %v1915_v34 }
  0xd5   : > { %21091 = vst [vmem:[#allocation72_spill] sm:$0xff] %v14018_v24  ;;  %21092 = vst [vmem:[#allocation73_spill] sm:$0xff] %v14020_v47  ;;  %v2009_v24 = vand.u32 4294901760, %v1917_v32  ;;  %v14042_v29 = vpack.c.bf16 %v3477_v20, %v3473_v16  ;;  %v14044_v31 = vsub.f32 %v3350_v40, %v3477_v20  ;;  %v14046_v18 = vpack.c.bf16 %v2007_v28, %v2003_v35  ;;  %v1919_v16 = vld [vmem:[#allocation5 + $0x540] sm:$0xff] }
  0xd6   : > { %21093 = vst [vmem:[#allocation74_spill] sm:$0xff] %v14022_v44  ;;  %21094 = vst [vmem:[#allocation75_spill] sm:$0xff] %v14024_v4  ;;  %10665 = vmatpush1.bf16.msra.mxu1 %v14032_v7  ;;  %v14048_v37 = vsub.f32 %v1916_v48, %v2003_v35  ;;  %v1920_v4 = vld [vmem:[#allocation5 + $0x548] sm:$0xff]  ;;  %v14052_v38 = vpack.c.bf16 %v3479_v26, %v3475_v27  ;;  %v1921_v44 = vld [vmem:[#allocation5 + $0x5a0] sm:$0xff]  ;;  %v14062_v48 = vsub.f32 %v1915_v34, %v2005_v41 }
  0xd7   : > { %21095 = vst [vmem:[#allocation76_spill] sm:$0xff] %v14026_v21  ;;  %21096 = vst [vmem:[#allocation77_spill] sm:$0xff] %v14028_v53  ;;  %v14050_v53 = vsub.f32 %v1918_v42, %v2007_v28  ;;  %v3357_v21 = vld [vmem:[#allocation5 + $0x4f0] sm:$0xff]  ;;  %11047 = vmatprep.subr.bf16.mxu0 %v14042_v29  ;;  %10667 = vmatprep.subr.bf16.mxu1 %v14046_v18  ;;  %v14060_v40 = vpack.c.bf16 %v2009_v24, %v2005_v41  ;;  %v3481_v42 = vand.u32 4294901760, %v3354_v50 }
  0xd8   : > { %21097 = vst [vmem:[#allocation78_spill] sm:$0xff] %v14032_v7  ;;  %21098 = vst [vmem:[#allocation79_spill] sm:$0xff] %v14034_v15  ;;  %v3353_v15 = vld [vmem:[#allocation5 + $0x490] sm:$0xff]  ;;  %v14054_v7 = vsub.f32 %v3345_v43, %v3475_v27  ;;  %v14064_v20 = vsub.f32 %v1917_v32, %v2009_v24  ;;  %11049 = vmatpush1.bf16.msra.mxu0 %v14052_v38  ;;  %v3485_v43 = vand.u32 4294901760, %v3358_v39  ;;  %v2011_v35 = vand.u32 4294901760, %v1920_v4 }
  0xd9   : > { %21099 = vst [vmem:[#allocation80_spill] sm:$0xff] %v14036_v49  ;;  %21100 = vst [vmem:[#allocation81_spill] sm:$0xff] %v14040_v36  ;;  %v1922_v49 = vld [vmem:[#allocation5 + $0x5a8] sm:$0xff]  ;;  %v14056_v36 = vsub.f32 %v3349_v52, %v3479_v26  ;;  %v3483_v28 = vand.u32 4294901760, %v3353_v15  ;;  %v14068_v27 = vsub.f32 %v3354_v50, %v3481_v42  ;;  %v3487_v26 = vand.u32 4294901760, %v3357_v21 }
  0xda   : > { %21101 = vst [vmem:[#allocation82_spill] sm:$0xff] %v14042_v29  ;;  %21102 = vst [vmem:[#allocation83_spill] sm:$0xff] %v14044_v31  ;;  %v2015_v52 = vand.u32 4294901760, %v1922_v49  ;;  %10669 = vmatpush1.bf16.msra.mxu1 %v14060_v40  ;;  %v2013_v29 = vand.u32 4294901760, %v1919_v16  ;;  %v14070_v41 = vpack.c.bf16 %v3485_v43, %v3481_v42  ;;  %v14072_v32 = vsub.f32 %v3358_v39, %v3485_v43  ;;  %v1923_v42 = vld [vmem:[#allocation5 + $0x600] sm:$0xff] }
  0xdb   : > { %21103 = vst [vmem:[#allocation84_spill] sm:$0xff] %v14046_v18  ;;  %21104 = vst [vmem:[#allocation85_spill] sm:$0xff] %v14048_v37  ;;  %v2017_v18 = vand.u32 4294901760, %v1921_v44  ;;  %v14076_v34 = vsub.f32 %v1920_v4, %v2011_v35  ;;  %v14080_v50 = vpack.c.bf16 %v3487_v26, %v3483_v28  ;;  %v3365_v37 = vld [vmem:[#allocation5 + $0x5b0] sm:$0xff]  ;;  %v1925_v31 = vld [vmem:[#allocation5 + $0x660] sm:$0xff] }
  0xdc   : > { %21105 = vst [vmem:[#allocation86_spill] sm:$0xff] %v14050_v53  ;;  %21106 = vst [vmem:[#allocation87_spill] sm:$0xff] %v14052_v38  ;;  %v14074_v24 = vpack.c.bf16 %v2015_v52, %v2011_v35  ;;  %v1924_v38 = vld [vmem:[#allocation5 + $0x608] sm:$0xff]  ;;  %v14078_v53 = vsub.f32 %v1922_v49, %v2015_v52  ;;  %11051 = vmatprep.subr.bf16.mxu0 %v14070_v41  ;;  %v14090_v4 = vsub.f32 %v1919_v16, %v2013_v29 }
  0xdd   : > { %21107 = vst [vmem:[#allocation88_spill] sm:$0xff] %v14054_v7  ;;  %21108 = vst [vmem:[#allocation89_spill] sm:$0xff] %v14056_v36  ;;  %v3362_v36 = vld [vmem:[#allocation5 + $0x558] sm:$0xff]  ;;  %v14088_v39 = vpack.c.bf16 %v2017_v18, %v2013_v29  ;;  %v14092_v43 = vsub.f32 %v1921_v44, %v2017_v18  ;;  %11053 = vmatpush1.bf16.msra.mxu0 %v14080_v50  ;;  %v2019_v35 = vand.u32 4294901760, %v1924_v38 }
  0xde   : > { %21109 = vst [vmem:[#allocation90_spill] sm:$0xff] %v14060_v40  ;;  %21110 = vst [vmem:[#allocation91_spill] sm:$0xff] %v14062_v48  ;;  %v3366_v7 = vld [vmem:[#allocation5 + $0x5b8] sm:$0xff]  ;;  %v3361_v48 = vld [vmem:[#allocation5 + $0x550] sm:$0xff]  ;;  %v14082_v40 = vsub.f32 %v3353_v15, %v3483_v28  ;;  %10671 = vmatprep.subr.bf16.mxu1 %v14074_v24  ;;  %v3489_v49 = vand.u32 4294901760, %v3362_v36 }
  0xdf   : > { %21111 = vst [vmem:[#allocation92_spill] sm:$0xff] %v14064_v20  ;;  %21112 = vst [vmem:[#allocation93_spill] sm:$0xff] %v14068_v27  ;;  %v1926_v20 = vld [vmem:[#allocation5 + $0x668] sm:$0xff]  ;;  %v14084_v27 = vsub.f32 %v3357_v21, %v3487_v26  ;;  %v3493_v15 = vand.u32 4294901760, %v3366_v7  ;;  %v3491_v52 = vand.u32 4294901760, %v3361_v48  ;;  %10673 = vmatpush1.bf16.msra.mxu1 %v14088_v39  ;;  %v3495_v26 = vand.u32 4294901760, %v3365_v37 }
  0xe0   : > { %21113 = vst [vmem:[#allocation94_spill] sm:$0xff] %v14070_v41  ;;  %21114 = vst [vmem:[#allocation95_spill] sm:$0xff] %v14072_v32  ;;  %v2023_v21 = vand.u32 4294901760, %v1926_v20  ;;  %v14096_v28 = vsub.f32 %v3362_v36, %v3489_v49  ;;  %v2021_v41 = vand.u32 4294901760, %v1923_v42  ;;  %v14104_v16 = vsub.f32 %v1924_v38, %v2019_v35  ;;  %v1929_v32 = vld [vmem:[#allocation5 + $0x720] sm:$0xff] }
  0xe1   : > { %21115 = vst [vmem:[#allocation96_spill] sm:$0xff] %v14074_v24  ;;  %21116 = vst [vmem:[#allocation97_spill] sm:$0xff] %v14076_v34  ;;  %v2025_v24 = vand.u32 4294901760, %v1925_v31  ;;  %v14098_v29 = vpack.c.bf16 %v3493_v15, %v3489_v49  ;;  %v14100_v44 = vsub.f32 %v3366_v7, %v3493_v15  ;;  %v14108_v36 = vpack.c.bf16 %v3495_v26, %v3491_v52  ;;  %v3373_v34 = vld [vmem:[#allocation5 + $0x670] sm:$0xff]  ;;  %v1927_v49 = vld [vmem:[#allocation5 + $0x6c0] sm:$0xff] }
  0xe2   : > { %21117 = vst [vmem:[#allocation98_spill] sm:$0xff] %v14078_v53  ;;  %21118 = vst [vmem:[#allocation99_spill] sm:$0xff] %v14080_v50  ;;  %v14102_v18 = vpack.c.bf16 %v2023_v21, %v2019_v35  ;;  %v1928_v50 = vld [vmem:[#allocation5 + $0x6c8] sm:$0xff]  ;;  %v14106_v53 = vsub.f32 %v1926_v20, %v2023_v21  ;;  %v14118_v38 = vsub.f32 %v1923_v42, %v2021_v41 }
  0xe3   : > { %21119 = vst [vmem:[#allocation100_spill] sm:$0xff] %v14082_v40  ;;  %21120 = vst [vmem:[#allocation101_spill] sm:$0xff] %v14084_v27  ;;  %v3370_v27 = vld [vmem:[#allocation5 + $0x618] sm:$0xff]  ;;  %11055 = vmatprep.subr.bf16.mxu0 %v14098_v29  ;;  %v14116_v7 = vpack.c.bf16 %v2025_v24, %v2021_v41  ;;  %v14120_v15 = vsub.f32 %v1925_v31, %v2025_v24  ;;  %v2027_v35 = vand.u32 4294901760, %v1928_v50 }
  0xe4   : > { %21121 = vst [vmem:[#allocation102_spill] sm:$0xff] %v14088_v39  ;;  %21122 = vst [vmem:[#allocation103_spill] sm:$0xff] %v14090_v4  ;;  %v3374_v40 = vld [vmem:[#allocation5 + $0x678] sm:$0xff]  ;;  %v3369_v4 = vld [vmem:[#allocation5 + $0x610] sm:$0xff]  ;;  %v14110_v39 = vsub.f32 %v3361_v48, %v3491_v52  ;;  %10675 = vmatprep.subr.bf16.mxu1 %v14102_v18  ;;  %v3497_v20 = vand.u32 4294901760, %v3370_v27  ;;  %11057 = vmatpush1.bf16.msra.mxu0 %v14108_v36 }
  0xe5   : > { %21123 = vst [vmem:[#allocation104_spill] sm:$0xff] %v14092_v43  ;;  %21124 = vst [vmem:[#allocation105_spill] sm:$0xff] %v14096_v28  ;;  %v1930_v43 = vld [vmem:[#allocation5 + $0x728] sm:$0xff]  ;;  %v14112_v28 = vsub.f32 %v3365_v37, %v3495_v26  ;;  %v3501_v48 = vand.u32 4294901760, %v3374_v40  ;;  %v3499_v21 = vand.u32 4294901760, %v3369_v4  ;;  %10677 = vmatpush1.bf16.msra.mxu1 %v14116_v7  ;;  %v3503_v26 = vand.u32 4294901760, %v3373_v34 }
  0xe6   : > { %21125 = vst [vmem:[#allocation106_spill] sm:$0xff] %v14098_v29  ;;  %21126 = vst [vmem:[#allocation107_spill] sm:$0xff] %v14100_v44  ;;  %v2031_v37 = vand.u32 4294901760, %v1930_v43  ;;  %v14124_v52 = vsub.f32 %v3370_v27, %v3497_v20  ;;  %v2029_v29 = vand.u32 4294901760, %v1927_v49  ;;  %v14132_v42 = vsub.f32 %v1928_v50, %v2027_v35  ;;  %v1933_v44 = vld [vmem:[#allocation5 + $0x7e0] sm:$0xff] }
  0xe7   : > { %21127 = vst [vmem:[#allocation108_spill] sm:$0xff] %v14102_v18  ;;  %21128 = vst [vmem:[#allocation109_spill] sm:$0xff] %v14104_v16  ;;  %v2033_v18 = vand.u32 4294901760, %v1929_v32  ;;  %v14126_v41 = vpack.c.bf16 %v3501_v48, %v3497_v20  ;;  %v14128_v31 = vsub.f32 %v3374_v40, %v3501_v48  ;;  %v14136_v27 = vpack.c.bf16 %v3503_v26, %v3499_v21  ;;  %v3381_v16 = vld [vmem:[#allocation5 + $0x730] sm:$0xff]  ;;  %v1931_v20 = vld [vmem:[#allocation5 + $0x780] sm:$0xff] }
  0xe8   : > { %21129 = vst [vmem:[#allocation110_spill] sm:$0xff] %v14106_v53  ;;  %21130 = vst [vmem:[#allocation111_spill] sm:$0xff] %v14108_v36  ;;  %v14130_v24 = vpack.c.bf16 %v2031_v37, %v2027_v35  ;;  %v1932_v36 = vld [vmem:[#allocation5 + $0x788] sm:$0xff]  ;;  %v14134_v53 = vsub.f32 %v1930_v43, %v2031_v37  ;;  %v14146_v50 = vsub.f32 %v1927_v49, %v2029_v29 }
  0xe9   : > { %21131 = vst [vmem:[#allocation112_spill] sm:$0xff] %v14110_v39  ;;  %21132 = vst [vmem:[#allocation113_spill] sm:$0xff] %v14112_v28  ;;  %v3378_v28 = vld [vmem:[#allocation5 + $0x6d8] sm:$0xff]  ;;  %11059 = vmatprep.subr.bf16.mxu0 %v14126_v41  ;;  %v14144_v40 = vpack.c.bf16 %v2033_v18, %v2029_v29  ;;  %v14148_v48 = vsub.f32 %v1929_v32, %v2033_v18  ;;  %v2035_v35 = vand.u32 4294901760, %v1932_v36 }
  0xea   : > { %21133 = vst [vmem:[#allocation114_spill] sm:$0xff] %v14116_v7  ;;  %21134 = vst [vmem:[#allocation115_spill] sm:$0xff] %v14118_v38  ;;  %v3382_v39 = vld [vmem:[#allocation5 + $0x738] sm:$0xff]  ;;  %v3377_v38 = vld [vmem:[#allocation5 + $0x6d0] sm:$0xff]  ;;  %v14138_v7 = vsub.f32 %v3369_v4, %v3499_v21  ;;  %10679 = vmatprep.subr.bf16.mxu1 %v14130_v24  ;;  %v3505_v43 = vand.u32 4294901760, %v3378_v28  ;;  %11061 = vmatpush1.bf16.msra.mxu0 %v14136_v27 }
  0xeb   : > { %21135 = vst [vmem:[#allocation116_spill] sm:$0xff] %v14120_v15  ;;  %21136 = vst [vmem:[#allocation117_spill] sm:$0xff] %v14124_v52  ;;  %v1934_v15 = vld [vmem:[#allocation5 + $0x7e8] sm:$0xff]  ;;  %v14140_v52 = vsub.f32 %v3373_v34, %v3503_v26  ;;  %v3509_v4 = vand.u32 4294901760, %v3382_v39  ;;  %v3507_v37 = vand.u32 4294901760, %v3377_v38  ;;  %10681 = vmatpush1.bf16.msra.mxu1 %v14144_v40  ;;  %v3511_v26 = vand.u32 4294901760, %v3381_v16 }
  0xec   : > { %21137 = vst [vmem:[#allocation118_spill] sm:$0xff] %v14126_v41  ;;  %21138 = vst [vmem:[#allocation119_spill] sm:$0xff] %v14128_v31  ;;  %v2039_v34 = vand.u32 4294901760, %v1934_v15  ;;  %v14152_v21 = vsub.f32 %v3378_v28, %v3505_v43  ;;  %v2037_v41 = vand.u32 4294901760, %v1931_v20  ;;  %v14160_v49 = vsub.f32 %v1932_v36, %v2035_v35  ;;  %v1937_v31 = vld [vmem:[#allocation5 + $0x8a0] sm:$0xff] }
  0xed   : > { %21139 = vst [vmem:[#allocation120_spill] sm:$0xff] %v14130_v24  ;;  %21140 = vst [vmem:[#allocation121_spill] sm:$0xff] %v14132_v42  ;;  %v2041_v24 = vand.u32 4294901760, %v1933_v44  ;;  %v14154_v29 = vpack.c.bf16 %v3509_v4, %v3505_v43  ;;  %v14156_v32 = vsub.f32 %v3382_v39, %v3509_v4  ;;  %v14164_v28 = vpack.c.bf16 %v3511_v26, %v3507_v37  ;;  %v3389_v42 = vld [vmem:[#allocation5 + $0x7f0] sm:$0xff]  ;;  %v1935_v43 = vld [vmem:[#allocation5 + $0x840] sm:$0xff] }
  0xee   : > { %21141 = vst [vmem:[#allocation122_spill] sm:$0xff] %v14134_v53  ;;  %21142 = vst [vmem:[#allocation123_spill] sm:$0xff] %v14136_v27  ;;  %v14158_v18 = vpack.c.bf16 %v2039_v34, %v2035_v35  ;;  %v1936_v27 = vld [vmem:[#allocation5 + $0x848] sm:$0xff]  ;;  %v14162_v53 = vsub.f32 %v1934_v15, %v2039_v34  ;;  %v14174_v36 = vsub.f32 %v1931_v20, %v2037_v41 }
  0xef   : > { %21143 = vst [vmem:[#allocation124_spill] sm:$0xff] %v14138_v7  ;;  %21144 = vst [vmem:[#allocation125_spill] sm:$0xff] %v14140_v52  ;;  %v3386_v52 = vld [vmem:[#allocation5 + $0x798] sm:$0xff]  ;;  %11063 = vmatprep.subr.bf16.mxu0 %v14154_v29  ;;  %v14172_v39 = vpack.c.bf16 %v2041_v24, %v2037_v41  ;;  %v14176_v4 = vsub.f32 %v1933_v44, %v2041_v24  ;;  %v2043_v35 = vand.u32 4294901760, %v1936_v27 }
  0xf0   : > { %21145 = vst [vmem:[#allocation126_spill] sm:$0xff] %v14144_v40  ;;  %21146 = vst [vmem:[#allocation127_spill] sm:$0xff] %v14146_v50  ;;  %v3390_v7 = vld [vmem:[#allocation5 + $0x7f8] sm:$0xff]  ;;  %v3385_v50 = vld [vmem:[#allocation5 + $0x790] sm:$0xff]  ;;  %v14166_v40 = vsub.f32 %v3377_v38, %v3507_v37  ;;  %10683 = vmatprep.subr.bf16.mxu1 %v14158_v18  ;;  %v3513_v15 = vand.u32 4294901760, %v3386_v52  ;;  %11065 = vmatpush1.bf16.msra.mxu0 %v14164_v28 }
  0xf1   : > { %21147 = vst [vmem:[#allocation128_spill] sm:$0xff] %v14148_v48  ;;  %21148 = vst [vmem:[#allocation129_spill] sm:$0xff] %v14152_v21  ;;  %v1938_v48 = vld [vmem:[#allocation5 + $0x8a8] sm:$0xff]  ;;  %v14168_v21 = vsub.f32 %v3381_v16, %v3511_v26  ;;  %v3517_v38 = vand.u32 4294901760, %v3390_v7  ;;  %v3515_v34 = vand.u32 4294901760, %v3385_v50  ;;  %10685 = vmatpush1.bf16.msra.mxu1 %v14172_v39  ;;  %v3519_v26 = vand.u32 4294901760, %v3389_v42 }
  0xf2   : > { %21149 = vst [vmem:[#allocation130_spill] sm:$0xff] %v14154_v29  ;;  %21150 = vst [vmem:[#allocation131_spill] sm:$0xff] %v14156_v32  ;;  %v2047_v16 = vand.u32 4294901760, %v1938_v48  ;;  %v14180_v37 = vsub.f32 %v3386_v52, %v3513_v15  ;;  %v2045_v29 = vand.u32 4294901760, %v1935_v43  ;;  %v14188_v20 = vsub.f32 %v1936_v27, %v2043_v35 }
  0xf3   : > { %21151 = vst [vmem:[#allocation132_spill] sm:$0xff] %v14158_v18  ;;  %21152 = vst [vmem:[#allocation133_spill] sm:$0xff] %v14160_v49  ;;  %v2049_v18 = vand.u32 4294901760, %v1937_v31  ;;  %v14182_v41 = vpack.c.bf16 %v3517_v38, %v3513_v15  ;;  %v14184_v44 = vsub.f32 %v3390_v7, %v3517_v38  ;;  %v3393_v49 = vld [vmem:[#allocation5 + $0x850] sm:$0xff]  ;;  %v14192_v52 = vpack.c.bf16 %v3519_v26, %v3515_v34  ;;  %v1939_v15 = vld [vmem:[#allocation5 + $0x900] sm:$0xff] }
  0xf4   : > { %21153 = vst [vmem:[#allocation134_spill] sm:$0xff] %v14162_v53  ;;  %21154 = vst [vmem:[#allocation135_spill] sm:$0xff] %v14164_v28  ;;  %v14186_v24 = vpack.c.bf16 %v2047_v16, %v2043_v35  ;;  %v1940_v28 = vld [vmem:[#allocation5 + $0x908] sm:$0xff]  ;;  %v14190_v32 = vsub.f32 %v1938_v48, %v2047_v16  ;;  %v14202_v27 = vsub.f32 %v1935_v43, %v2045_v29  ;;  %v3523_v16 = vand.u32 4294901760, %v3393_v49 }
  0xf5   : > { %21155 = vst [vmem:[#allocation136_spill] sm:$0xff] %v14166_v40  ;;  %21156 = vst [vmem:[#allocation137_spill] sm:$0xff] %v14168_v21  ;;  %v3394_v21 = vld [vmem:[#allocation5 + $0x858] sm:$0xff]  ;;  %v1942_v53 = vld [vmem:[#allocation5 + $0x968] sm:$0xff]  ;;  %11067 = vmatprep.subr.bf16.mxu0 %v14182_v41  ;;  %v14200_v7 = vpack.c.bf16 %v2049_v18, %v2045_v29  ;;  %v14204_v38 = vsub.f32 %v1937_v31, %v2049_v18  ;;  %v2051_v35 = vand.u32 4294901760, %v1940_v28 }
  0xf6   : > { %21157 = vst [vmem:[#allocation138_spill] sm:$0xff] %v14172_v39  ;;  %21158 = vst [vmem:[#allocation139_spill] sm:$0xff] %v14174_v36  ;;  %v3398_v40 = vld [vmem:[#allocation5 + $0x8b8] sm:$0xff]  ;;  %v14194_v39 = vsub.f32 %v3385_v50, %v3515_v34  ;;  %v1941_v36 = vld [vmem:[#allocation5 + $0x960] sm:$0xff]  ;;  %10687 = vmatprep.subr.bf16.mxu1 %v14186_v24  ;;  %v3521_v48 = vand.u32 4294901760, %v3394_v21  ;;  %11069 = vmatpush1.bf16.msra.mxu0 %v14192_v52 }
  0xf7   : > { %21159 = vst [vmem:[#allocation140_spill] sm:$0xff] %v14176_v4  ;;  %21160 = vst [vmem:[#allocation141_spill] sm:$0xff] %v14180_v37  ;;  %v14196_v37 = vsub.f32 %v3389_v42, %v3519_v26  ;;  %v3397_v4 = vld [vmem:[#allocation5 + $0x8b0] sm:$0xff]  ;;  %v3525_v50 = vand.u32 4294901760, %v3398_v40  ;;  %v2055_v42 = vand.u32 4294901760, %v1942_v53  ;;  %10689 = vmatpush1.bf16.msra.mxu1 %v14200_v7  ;;  %v14216_v43 = vsub.f32 %v1940_v28, %v2051_v35 }
  0xf8   : > { %21161 = vst [vmem:[#allocation142_spill] sm:$0xff] %v14182_v41  ;;  %21162 = vst [vmem:[#allocation143_spill] sm:$0xff] %v14184_v44  ;;  %v14208_v34 = vsub.f32 %v3394_v21, %v3521_v48  ;;  %v3527_v26 = vand.u32 4294901760, %v3397_v4  ;;  %v2053_v41 = vand.u32 4294901760, %v1939_v15  ;;  %v1945_v44 = vld [vmem:[#allocation5 + $0xa20] sm:$0xff] }
  0xf9   : > { %21163 = vst [vmem:[#allocation144_spill] sm:$0xff] %v14186_v24  ;;  %21164 = vst [vmem:[#allocation145_spill] sm:$0xff] %v14188_v20  ;;  %v2057_v24 = vand.u32 4294901760, %v1941_v36  ;;  %v14210_v29 = vpack.c.bf16 %v3525_v50, %v3521_v48  ;;  %v14212_v31 = vsub.f32 %v3398_v40, %v3525_v50  ;;  %v14214_v18 = vpack.c.bf16 %v2055_v42, %v2051_v35  ;;  %v3405_v20 = vld [vmem:[#allocation5 + $0x970] sm:$0xff]  ;;  %v1943_v48 = vld [vmem:[#allocation5 + $0x9c0] sm:$0xff] }
  0xfa   : > { %21165 = vst [vmem:[#allocation146_spill] sm:$0xff] %v14190_v32  ;;  %21166 = vst [vmem:[#allocation147_spill] sm:$0xff] %v14192_v52  ;;  %v1944_v52 = vld [vmem:[#allocation5 + $0x9c8] sm:$0xff]  ;;  %v14218_v32 = vsub.f32 %v1942_v53, %v2055_v42  ;;  %v14220_v21 = vpack.c.bf16 %v3527_v26, %v3523_v16  ;;  %v14230_v28 = vsub.f32 %v1939_v15, %v2053_v41 }
  0xfb   : > { %21167 = vst [vmem:[#allocation148_spill] sm:$0xff] %v14194_v39  ;;  %21168 = vst [vmem:[#allocation149_spill] sm:$0xff] %v14196_v37  ;;  %v3402_v37 = vld [vmem:[#allocation5 + $0x918] sm:$0xff]  ;;  %11071 = vmatprep.subr.bf16.mxu0 %v14210_v29  ;;  %10691 = vmatprep.subr.bf16.mxu1 %v14214_v18  ;;  %v14228_v40 = vpack.c.bf16 %v2057_v24, %v2053_v41  ;;  %v14232_v50 = vsub.f32 %v1941_v36, %v2057_v24  ;;  %v2059_v35 = vand.u32 4294901760, %v1944_v52 }
  0xfc   : > { %21169 = vst [vmem:[#allocation150_spill] sm:$0xff] %v14200_v7  ;;  %21170 = vst [vmem:[#allocation151_spill] sm:$0xff] %v14202_v27  ;;  %v3406_v39 = vld [vmem:[#allocation5 + $0x978] sm:$0xff]  ;;  %v3401_v27 = vld [vmem:[#allocation5 + $0x910] sm:$0xff]  ;;  %v14222_v7 = vsub.f32 %v3393_v49, %v3523_v16  ;;  %v3529_v53 = vand.u32 4294901760, %v3402_v37  ;;  %11073 = vmatpush1.bf16.msra.mxu0 %v14220_v21 }
  0xfd   : > { %21171 = vst [vmem:[#allocation152_spill] sm:$0xff] %v14204_v38  ;;  %21172 = vst [vmem:[#allocation153_spill] sm:$0xff] %v14208_v34  ;;  %v1946_v38 = vld [vmem:[#allocation5 + $0xa28] sm:$0xff]  ;;  %v14224_v34 = vsub.f32 %v3397_v4, %v3527_v26  ;;  %v3533_v49 = vand.u32 4294901760, %v3406_v39  ;;  %v3531_v42 = vand.u32 4294901760, %v3401_v27  ;;  %10693 = vmatpush1.bf16.msra.mxu1 %v14228_v40  ;;  %v3535_v26 = vand.u32 4294901760, %v3405_v20 }
  0xfe   : > { %21173 = vst [vmem:[#allocation154_spill] sm:$0xff] %v14210_v29  ;;  %21174 = vst [vmem:[#allocation155_spill] sm:$0xff] %v14212_v31  ;;  %v2063_v4 = vand.u32 4294901760, %v1946_v38  ;;  %v14236_v16 = vsub.f32 %v3402_v37, %v3529_v53  ;;  %v2061_v29 = vand.u32 4294901760, %v1943_v48  ;;  %v14244_v15 = vsub.f32 %v1944_v52, %v2059_v35  ;;  %v1949_v31 = vld [vmem:[#allocation5 + $0xae0] sm:$0xff] }
  0xff   : > { %21175 = vst [vmem:[#allocation156_spill] sm:$0xff] %v14214_v18  ;;  %21176 = vst [vmem:[#allocation157_spill] sm:$0xff] %v14216_v43  ;;  %v2065_v18 = vand.u32 4294901760, %v1945_v44  ;;  %v14238_v41 = vpack.c.bf16 %v3533_v49, %v3529_v53  ;;  %v14240_v36 = vsub.f32 %v3406_v39, %v3533_v49  ;;  %v14248_v37 = vpack.c.bf16 %v3535_v26, %v3531_v42  ;;  %v3413_v43 = vld [vmem:[#allocation5 + $0xa30] sm:$0xff]  ;;  %v1947_v53 = vld [vmem:[#allocation5 + $0xa80] sm:$0xff] }
 0x100   : > { %21177 = vst [vmem:[#allocation158_spill] sm:$0xff] %v14218_v32  ;;  %21178 = vst [vmem:[#allocation159_spill] sm:$0xff] %v14220_v21  ;;  %v14242_v24 = vpack.c.bf16 %v2063_v4, %v2059_v35  ;;  %v1948_v21 = vld [vmem:[#allocation5 + $0xa88] sm:$0xff]  ;;  %v14246_v32 = vsub.f32 %v1946_v38, %v2063_v4  ;;  %v14258_v52 = vsub.f32 %v1943_v48, %v2061_v29 }
 0x101   : > { %21179 = vst [vmem:[#allocation160_spill] sm:$0xff] %v14222_v7  ;;  %21180 = vst [vmem:[#allocation161_spill] sm:$0xff] %v14224_v34  ;;  %v3410_v34 = vld [vmem:[#allocation5 + $0x9d8] sm:$0xff]  ;;  %11075 = vmatprep.subr.bf16.mxu0 %v14238_v41  ;;  %v14256_v39 = vpack.c.bf16 %v2065_v18, %v2061_v29  ;;  %v14260_v49 = vsub.f32 %v1945_v44, %v2065_v18  ;;  %v2067_v35 = vand.u32 4294901760, %v1948_v21 }
 0x102   : > { %21181 = vst [vmem:[#allocation162_spill] sm:$0xff] %v14228_v40  ;;  %21182 = vst [vmem:[#allocation163_spill] sm:$0xff] %v14230_v28  ;;  %v3414_v7 = vld [vmem:[#allocation5 + $0xa38] sm:$0xff]  ;;  %v3409_v28 = vld [vmem:[#allocation5 + $0x9d0] sm:$0xff]  ;;  %v14250_v40 = vsub.f32 %v3401_v27, %v3531_v42  ;;  %10695 = vmatprep.subr.bf16.mxu1 %v14242_v24  ;;  %v3537_v38 = vand.u32 4294901760, %v3410_v34  ;;  %11077 = vmatpush1.bf16.msra.mxu0 %v14248_v37 }
 0x103   : > { %21183 = vst [vmem:[#allocation164_spill] sm:$0xff] %v14232_v50  ;;  %21184 = vst [vmem:[#allocation165_spill] sm:$0xff] %v14236_v16  ;;  %v1950_v50 = vld [vmem:[#allocation5 + $0xae8] sm:$0xff]  ;;  %v14252_v16 = vsub.f32 %v3405_v20, %v3535_v26  ;;  %v3541_v27 = vand.u32 4294901760, %v3414_v7  ;;  %v3539_v4 = vand.u32 4294901760, %v3409_v28  ;;  %10697 = vmatpush1.bf16.msra.mxu1 %v14256_v39  ;;  %v3543_v26 = vand.u32 4294901760, %v3413_v43 }
 0x104   : > { %21185 = vst [vmem:[#allocation166_spill] sm:$0xff] %v14238_v41  ;;  %21186 = vst [vmem:[#allocation167_spill] sm:$0xff] %v14240_v36  ;;  %v2071_v20 = vand.u32 4294901760, %v1950_v50  ;;  %v14264_v42 = vsub.f32 %v3410_v34, %v3537_v38  ;;  %v2069_v41 = vand.u32 4294901760, %v1947_v53  ;;  %v14272_v48 = vsub.f32 %v1948_v21, %v2067_v35  ;;  %v1953_v36 = vld [vmem:[#allocation5 + $0xba0] sm:$0xff] }
 0x105   : > { %21187 = vst [vmem:[#allocation168_spill] sm:$0xff] %v14242_v24  ;;  %21188 = vst [vmem:[#allocation169_spill] sm:$0xff] %v14244_v15  ;;  %v2073_v24 = vand.u32 4294901760, %v1949_v31  ;;  %v14266_v29 = vpack.c.bf16 %v3541_v27, %v3537_v38  ;;  %v14268_v44 = vsub.f32 %v3414_v7, %v3541_v27  ;;  %v14276_v34 = vpack.c.bf16 %v3543_v26, %v3539_v4  ;;  %v3421_v15 = vld [vmem:[#allocation5 + $0xaf0] sm:$0xff]  ;;  %v1951_v38 = vld [vmem:[#allocation5 + $0xb40] sm:$0xff] }
 0x106   : > { %21189 = vst [vmem:[#allocation170_spill] sm:$0xff] %v14246_v32  ;;  %21190 = vst [vmem:[#allocation171_spill] sm:$0xff] %v14248_v37  ;;  %v14270_v18 = vpack.c.bf16 %v2071_v20, %v2067_v35  ;;  %v1952_v37 = vld [vmem:[#allocation5 + $0xb48] sm:$0xff]  ;;  %v14274_v32 = vsub.f32 %v1950_v50, %v2071_v20  ;;  %v14286_v21 = vsub.f32 %v1947_v53, %v2069_v41  ;;  %v3430_v53 = vld [vmem:[#allocation5 + $0xbb8] sm:$0xff] }
 0x107   : > { %21191 = vst [vmem:[#allocation172_spill] sm:$0xff] %v14250_v40  ;;  %21192 = vst [vmem:[#allocation173_spill] sm:$0xff] %v14252_v16  ;;  %v3418_v16 = vld [vmem:[#allocation5 + $0xa98] sm:$0xff]  ;;  %11079 = vmatprep.subr.bf16.mxu0 %v14266_v29  ;;  %v14284_v7 = vpack.c.bf16 %v2073_v24, %v2069_v41  ;;  %v14288_v27 = vsub.f32 %v1949_v31, %v2073_v24  ;;  %v2075_v35 = vand.u32 4294901760, %v1952_v37 }
 0x108   : > { %21193 = vst [vmem:[#allocation174_spill] sm:$0xff] %v14256_v39  ;;  %21194 = vst [vmem:[#allocation175_spill] sm:$0xff] %v14258_v52  ;;  %v3422_v40 = vld [vmem:[#allocation5 + $0xaf8] sm:$0xff]  ;;  %v3417_v52 = vld [vmem:[#allocation5 + $0xa90] sm:$0xff]  ;;  %v14278_v39 = vsub.f32 %v3409_v28, %v3539_v4  ;;  %10699 = vmatprep.subr.bf16.mxu1 %v14270_v18  ;;  %v3545_v50 = vand.u32 4294901760, %v3418_v16  ;;  %11081 = vmatpush1.bf16.msra.mxu0 %v14276_v34 }
 0x109   : > { %21195 = vst [vmem:[#allocation176_spill] sm:$0xff] %v14260_v49  ;;  %21196 = vst [vmem:[#allocation177_spill] sm:$0xff] %v14264_v42  ;;  %v1954_v49 = vld [vmem:[#allocation5 + $0xba8] sm:$0xff]  ;;  %v14280_v42 = vsub.f32 %v3413_v43, %v3543_v26  ;;  %v3549_v28 = vand.u32 4294901760, %v3422_v40  ;;  %v3547_v20 = vand.u32 4294901760, %v3417_v52  ;;  %10701 = vmatpush1.bf16.msra.mxu1 %v14284_v7  ;;  %v3551_v26 = vand.u32 4294901760, %v3421_v15 }
 0x10a   : > { %21197 = vst [vmem:[#allocation178_spill] sm:$0xff] %v14266_v29  ;;  %21198 = vst [vmem:[#allocation179_spill] sm:$0xff] %v14268_v44  ;;  %v2079_v43 = vand.u32 4294901760, %v1954_v49  ;;  %v14292_v4 = vsub.f32 %v3418_v16, %v3545_v50  ;;  %v2077_v29 = vand.u32 4294901760, %v1951_v38  ;;  %v14300_v24 = vsub.f32 %v1952_v37, %v2075_v35 }
 0x10b   : > { %21199 = vst [vmem:[#allocation180_spill] sm:$0xff] %v14270_v18  ;;  %21200 = vst [vmem:[#allocation181_spill] sm:$0xff] %v14272_v48  ;;  %v2081_v18 = vand.u32 4294901760, %v1953_v36  ;;  %v14296_v41 = vsub.f32 %v3422_v40, %v3549_v28  ;;  %v14306_v16 = vsub.f32 %v3417_v52, %v3547_v20  ;;  %v19971_v52 = vand.u32 4294901760, %v13690_v60 }
 0x10c   : > { %21201 = vst [vmem:[#allocation182_spill] sm:$0xff] %v14274_v32  ;;  %21202 = vst [vmem:[#allocation183_spill] sm:$0xff] %v14276_v34  ;;  %v14298_v31 = vpack.c.bf16 %v2079_v43, %v2075_v35  ;;  %v3425_v34 = vld [vmem:[#allocation5 + $0xb50] sm:$0xff] }
 0x10d   : > { %21203 = vst [vmem:[#allocation184_spill] sm:$0xff] %v14278_v39  ;;  %21204 = vst [vmem:[#allocation185_spill] sm:$0xff] %v14280_v42  ;;  %v3426_v42 = vld [vmem:[#allocation5 + $0xb58] sm:$0xff]  ;;  %v14294_v39 = vpack.c.bf16 %v3549_v28, %v3545_v50  ;;  %v14312_v40 = vpack.c.bf16 %v2081_v18, %v2077_v29  ;;  %v14314_v50 = vsub.f32 %v1951_v38, %v2077_v29  ;;  %v3555_v35 = vand.u32 4294901760, %v3425_v34 }
 0x10e   : > { %21205 = vst [vmem:[#allocation186_spill] sm:$0xff] %v14284_v7  ;;  %21206 = vst [vmem:[#allocation187_spill] sm:$0xff] %v14286_v21  ;;  %v14304_v21 = vpack.c.bf16 %v3551_v26, %v3547_v20  ;;  %v14308_v7 = vsub.f32 %v3421_v15, %v3551_v26  ;;  %10703 = vmatprep.subr.bf16.mxu1 %v14298_v31  ;;  %v14316_v37 = vsub.f32 %v1953_v36, %v2081_v18 }
 0x10f   : > { %21207 = vst [vmem:[#allocation188_spill] sm:$0xff] %v14288_v27  ;;  %21208 = vst [vmem:[#allocation189_spill] sm:$0xff] %v14292_v4  ;;  %v14302_v27 = vsub.f32 %v1954_v49, %v2079_v43  ;;  %v3429_v4 = vld [vmem:[#allocation5 + $0xbb0] sm:$0xff]  ;;  %11083 = vmatprep.subr.bf16.mxu0 %v14294_v39  ;;  %v3553_v28 = vand.u32 4294901760, %v3426_v42  ;;  %v3557_v49 = vand.u32 4294901760, %v3430_v53  ;;  %v19972_v15 = vand.u32 4294901760, %v13700_v1  ;;  %10705 = vmatpush1.bf16.msra.mxu1 %v14312_v40 }
 0x110   : > { %21209 = vst [vmem:[#allocation190_spill] sm:$0xff] %v14294_v39  ;;  %21210 = vst [vmem:[#allocation191_spill] sm:$0xff] %v14296_v41  ;;  %11085 = vmatpush1.bf16.msra.mxu0 %v14304_v21  ;;  %v3559_v20 = vand.u32 4294901760, %v3429_v4  ;;  %v2119_v36 = vsub.f32 %v13690_v60, %v19971_v52 }
 0x111   : > { %21211 = vst [vmem:[#allocation192_spill] sm:$0xff] %v14298_v31  ;;  %21212 = vst [vmem:[#allocation193_spill] sm:$0xff] %v14300_v24  ;;  %v14322_v43 = vsub.f32 %v3426_v42, %v3553_v28  ;;  %v14324_v26 = vpack.c.bf16 %v3557_v49, %v3553_v28  ;;  %v14326_v29 = vsub.f32 %v3430_v53, %v3557_v49  ;;  %v19976_v53 = vand.u32 4294901760, %v13736_v12  ;;  %v21227_v31 = vld [vmem:[#allocation32_spill] sm:$0xff] }
 0x112   : > { %21213 = vst [vmem:[#allocation194_spill] sm:$0xff] %v14304_v21  ;;  %21214 = vst [vmem:[#allocation195_spill] sm:$0xff] %v14308_v7  ;;  %v2131_v18 = vsub.f32 %v13700_v1, %v19972_v15  ;;  %v14334_v38 = vpack.c.bf16 %v3559_v20, %v3555_v35  ;;  %v14336_v21 = vsub.f32 %v3425_v34, %v3555_v35  ;;  %v2120_v42 = vand.u32 4294901760, %v2119_v36 }
 0x113   : > { %21215 = vst [vmem:[#allocation196_spill] sm:$0xff] %v14312_v40  ;;  %21216 = vst [vmem:[#allocation197_spill] sm:$0xff] %v14316_v37  ;;  %v14338_v40 = vsub.f32 %v3429_v4, %v3559_v20  ;;  %11087 = vmatprep.subr.bf16.mxu0 %v14324_v26  ;;  %v19975_v49 = vand.u32 4294901760, %v13747_v19  ;;  %v3597_v15 = vsub.f32 %v13736_v12, %v19976_v53  ;;  %v19983_v36 = vand.u32 4294901760, %v13713_v5  ;;  %v21226_v53 = vld [vmem:[#allocation31_spill] sm:$0xff] }
 0x114   : > { %21217 = vst [vmem:[#allocation198_spill] sm:$0xff] %v14322_v43  ;;  %21218 = vst [vmem:[#allocation199_spill] sm:$0xff] %v14324_v26  ;;  %v2132_v28 = vand.u32 4294901760, %v2131_v18  ;;  %11089 = vmatpush1.bf16.msra.mxu0 %v14334_v38  ;;  %v19986_v18 = vand.u32 4294901760, %v13718_v6  ;;  %v21233_v26 = vand.u32 4294901760, %v13943_v13 }
 0x115   : > { %21219 = vst [vmem:[#allocation200_spill] sm:$0xff] %v14326_v29  ;;  %21220 = vst [vmem:[#allocation201_spill] sm:$0xff] %v14334_v38  ;;  %v3609_v34 = vsub.f32 %v13747_v19, %v19975_v49  ;;  %v3598_v4 = vand.u32 4294901760, %v3597_v15  ;;  %v19991_v38 = vand.u32 4294901760, %v13886_v54  ;;  %v21223_v49 = vld [vmem:[#allocation28_spill] sm:$0xff]  ;;  %v21234_v19 = vand.u32 4294901760, %v13948_v63 }
 0x116   : > { %21221 = vst [vmem:[#allocation202_spill] sm:$0xff] %v14336_v21  ;;  %21222 = vst [vmem:[#allocation203_spill] sm:$0xff] %v14338_v40  ;;  %v10706_v52 = vpack.c.bf16 %v2132_v28, %v2120_v42  ;;  %v2125_v42 = vsub.f32 %v13713_v5, %v19983_v36  ;;  %v2137_v28 = vsub.f32 %v13718_v6, %v19986_v18 }
 0x117   : > { %v3610_v35 = vand.u32 4294901760, %v3609_v34  ;;  %v2143_v15 = vsub.f32 %v13886_v54, %v19991_v38  ;;  %v21224_v34 = vld [vmem:[#allocation29_spill] sm:$0xff]  ;;  %v3633_v18 = vsub.f32 %v13948_v63, %v21234_v19 }
 0x118   : > { %10707 = vmatprep.subr.bf16.mxu1 %v10706_v52  ;;  %v2126_v6 = vand.u32 4294901760, %v2125_v42  ;;  %v2138_v38 = vand.u32 4294901760, %v2137_v28  ;;  %v21229_v39 = vand.u32 4294901760, %v21224_v34  ;;  %v21231_v28 = vand.u32 4294901760, %v21226_v53 }
 0x119   : > { %v11090_v20 = vpack.c.bf16 %v3610_v35, %v3598_v4  ;;  %v21225_v35 = vld [vmem:[#allocation30_spill] sm:$0xff]  ;;  %v21228_v4 = vand.u32 4294901760, %v21223_v49  ;;  %v2144_v54 = vand.u32 4294901760, %v2143_v15 }
 0x11a   : > { %v3603_v36 = vsub.f32 %v21224_v34, %v21229_v39  ;;  %v21230_v52 = vand.u32 4294901760, %v21225_v35  ;;  %v2149_v12 = vsub.f32 %v21226_v53, %v21231_v28  ;;  %v3621_v39 = vsub.f32 %v13943_v13, %v21233_v26 }
 0x11b   : > { %11091 = vmatprep.subr.bf16.mxu0 %v11090_v20  ;;  %v2155_v20 = vsub.f32 %v21223_v49, %v21228_v4  ;;  %v21232_v4 = vand.u32 4294901760, %v21227_v31  ;;  %v21235_v34 = vand.u32 4294901760, %v13951_v62  ;;  %v21237_v53 = vand.u32 4294901760, %v13958_v56 }
 0x11c   : > { %v3615_v42 = vsub.f32 %v21225_v35, %v21230_v52  ;;  %v21236_v35 = vand.u32 4294901760, %v13954_v57  ;;  %v21238_v49 = vand.u32 4294901760, %v13961_v55  ;;  %v3604_v63 = vand.u32 4294901760, %v3603_v36 }
 0x11d   : > { %v2161_v15 = vsub.f32 %v21227_v31, %v21232_v4  ;;  %v2167_v52 = vsub.f32 %v13951_v62, %v21235_v34  ;;  %v3627_v4 = vsub.f32 %v13958_v56, %v21237_v53  ;;  %v2156_v31 = vand.u32 4294901760, %v2155_v20 }
 0x11e   : > { %v2179_v28 = vsub.f32 %v13954_v57, %v21236_v35  ;;  %v3639_v26 = vsub.f32 %v13961_v55, %v21238_v49  ;;  %v21239_v34 = vand.u32 4294901760, %v13964_v30  ;;  %v21240_v35 = vand.u32 4294901760, %v13967_v46 }
 0x11f   : > { %v3616_v20 = vand.u32 4294901760, %v3615_v42  ;;  %v2150_v56 = vand.u32 4294901760, %v2149_v12  ;;  %v2162_v5 = vand.u32 4294901760, %v2161_v15  ;;  %v3622_v1 = vand.u32 4294901760, %v3621_v39 }
 0x120   : > { %v2173_v62 = vsub.f32 %v13964_v30, %v21239_v34  ;;  %v2185_v57 = vsub.f32 %v13967_v46, %v21240_v35  ;;  %v3634_v49 = vand.u32 4294901760, %v3633_v18  ;;  %v2168_v55 = vand.u32 4294901760, %v2167_v52  ;;  %v21287_v46 = vld [vmem:[#allocation101_spill] sm:$0xff] }
 0x121   : > { %v2180_v13 = vand.u32 4294901760, %v2179_v28  ;;  %v3628_v60 = vand.u32 4294901760, %v3627_v4  ;;  %v3640_v19 = vand.u32 4294901760, %v3639_v26  ;;  %v21241_v36 = vand.u32 4294901760, %v13970_v0 }
 0x122   : > { %v21242_v34 = vand.u32 4294901760, %v13972_v51  ;;  %v20022_v35 = vand.u32 4294901760, %v13981_v3  ;;  %v2174_v53 = vand.u32 4294901760, %v2173_v62  ;;  %v2186_v42 = vand.u32 4294901760, %v2185_v57 }
 0x123   : > { %v3645_v40 = vsub.f32 %v13970_v0, %v21241_v36  ;;  %v21243_v12 = vand.u32 4294901760, %v13979_v58  ;;  %v20021_v15 = vand.u32 4294901760, %v13983_v59  ;;  %v14430_v39 = vpack.c.bf16 %v2138_v38, %v2126_v6 }
 0x124   : > { %v3657_v30 = vsub.f32 %v13972_v51, %v21242_v34  ;;  %v14432_v52 = vpack.c.bf16 %v2156_v31, %v2144_v54  ;;  %v20020_v28 = vand.u32 4294901760, %v13985_v61  ;;  %v14435_v4 = vpack.c.bf16 %v3616_v20, %v3604_v63 }
 0x125   : > { %v14427_v18 = vsub.f32 %v13979_v58, %v21243_v12  ;;  %v14437_v26 = vpack.c.bf16 %v2162_v5, %v2150_v56  ;;  %v14439_v36 = vpack.c.bf16 %v3634_v49, %v3622_v1  ;;  %v14441_v57 = vpack.c.bf16 %v2180_v13, %v2168_v55 }
 0x126   : > { %v14443_v62 = vpack.c.bf16 %v3640_v19, %v3628_v60  ;;  %v3646_v34 = vand.u32 4294901760, %v3645_v40  ;;  %v3658_v12 = vand.u32 4294901760, %v3657_v30  ;;  %v2203_v6 = vsub.f32 %v13981_v3, %v20022_v35 }
 0x127   : > { %v14448_v54 = vpack.c.bf16 %v2186_v42, %v2174_v53  ;;  %v2192_v31 = vand.u32 4294901760, %v14427_v18  ;;  %v3651_v5 = vsub.f32 %v13983_v59, %v20021_v15  ;;  %v20027_v1 = vand.u32 4294901760, %v13987_v8  ;;  %v21244_v15 = vld [vmem:[#allocation74_spill] sm:$0xff]  ;;  %v21269_v59 = vld [vmem:[#allocation93_spill] sm:$0xff] }
 0x128   : > { %v3663_v60 = vsub.f32 %v13985_v61, %v20020_v28  ;;  %v20023_v13 = vand.u32 4294901760, %v13989_v9  ;;  %v20024_v55 = vand.u32 4294901760, %v13991_v10  ;;  %v20025_v56 = vand.u32 4294901760, %v13993_v11 }
 0x129   : > { %v20026_v63 = vand.u32 4294901760, %v13996_v22  ;;  %v20028_v30 = vand.u32 4294901760, %v13998_v23  ;;  %v20031_v40 = vand.u32 4294901760, %v14001_v25  ;;  %v20034_v38 = vand.u32 4294901760, %v14003_v14 }
 0x12a   : > { %v14465_v19 = vpack.c.bf16 %v3658_v12, %v3646_v34  ;;  %v2204_v53 = vand.u32 4294901760, %v2203_v6  ;;  %v20039_v20 = vand.u32 4294901760, %v14007_v33  ;;  %v20046_v49 = vand.u32 4294901760, %v14009_v17 }
 0x12b   : > { %v3652_v42 = vand.u32 4294901760, %v3651_v5  ;;  %v2197_v18 = vsub.f32 %v13987_v8, %v20027_v1  ;;  %v3664_v35 = vand.u32 4294901760, %v3663_v60  ;;  %v2209_v34 = vsub.f32 %v13989_v9, %v20023_v13 }
 0x12c   : > { %v3669_v12 = vsub.f32 %v13991_v10, %v20024_v55  ;;  %v3681_v6 = vsub.f32 %v13993_v11, %v20025_v56  ;;  %v2215_v5 = vsub.f32 %v13996_v22, %v20026_v63  ;;  %v2227_v60 = vsub.f32 %v13998_v23, %v20028_v30  ;;  %v21248_v10 = vld [vmem:[#allocation77_spill] sm:$0xff] }
 0x12d   : > { %v3675_v13 = vsub.f32 %v14001_v25, %v20031_v40  ;;  %v3687_v55 = vsub.f32 %v14003_v14, %v20034_v38  ;;  %v2221_v56 = vsub.f32 %v14007_v33, %v20039_v20  ;;  %v2233_v63 = vsub.f32 %v14009_v17, %v20046_v49  ;;  %v21247_v14 = vld [vmem:[#allocation76_spill] sm:$0xff] }
 0x12e   : > { %v2198_v28 = vand.u32 4294901760, %v2197_v18  ;;  %v21245_v23 = vand.u32 4294901760, %v14012_v2  ;;  %v21246_v25 = vand.u32 4294901760, %v14016_v45  ;;  %v2210_v20 = vand.u32 4294901760, %v2209_v34 }
 0x12f   : > { %v3670_v33 = vand.u32 4294901760, %v3669_v12  ;;  %v3682_v11 = vand.u32 4294901760, %v3681_v6  ;;  %v20059_v49 = vand.u32 4294901760, %v21248_v10  ;;  %v2216_v17 = vand.u32 4294901760, %v2215_v5 }
 0x130   : > { %v3693_v40 = vsub.f32 %v14012_v2, %v21245_v23  ;;  %v3705_v38 = vsub.f32 %v14016_v45, %v21246_v25  ;;  %v2228_v1 = vand.u32 4294901760, %v2227_v60  ;;  %v3676_v9 = vand.u32 4294901760, %v3675_v13  ;;  %v21252_v13 = vld [vmem:[#allocation79_spill] sm:$0xff]  ;;  %v21253_v60 = vld [vmem:[#allocation80_spill] sm:$0xff] }
 0x131   : > { %v3688_v30 = vand.u32 4294901760, %v3687_v55  ;;  %v2222_v18 = vand.u32 4294901760, %v2221_v56  ;;  %v2234_v8 = vand.u32 4294901760, %v2233_v63  ;;  %v21249_v61 = vand.u32 4294901760, %v14020_v47 }
 0x132   : > { %v21250_v25 = vand.u32 4294901760, %v21244_v15  ;;  %v3694_v34 = vand.u32 4294901760, %v3693_v40  ;;  %v3706_v12 = vand.u32 4294901760, %v3705_v38  ;;  %v21251_v6 = vand.u32 4294901760, %v21247_v14 }
 0x133   : > { %v14514_v23 = vsub.f32 %v14020_v47, %v21249_v61  ;;  %v14527_v56 = vpack.c.bf16 %v2204_v53, %v2192_v31  ;;  %v14529_v63 = vpack.c.bf16 %v3664_v35, %v3652_v42  ;;  %v14534_v61 = vsub.f32 %v21248_v10, %v20059_v49 }
 0x134   : > { %v14519_v22 = vsub.f32 %v21244_v15, %v21250_v25  ;;  %v14524_v5 = vsub.f32 %v21247_v14, %v21251_v6  ;;  %v20062_v25 = vand.u32 4294901760, %v21253_v60  ;;  %v14537_v40 = vpack.c.bf16 %v2210_v20, %v2198_v28  ;;  %v21255_v15 = vld [vmem:[#allocation81_spill] sm:$0xff]  ;;  %v21256_v14 = vld [vmem:[#allocation83_spill] sm:$0xff] }
 0x135   : > { %v14539_v38 = vpack.c.bf16 %v3682_v11, %v3670_v33  ;;  %v20074_v6 = vand.u32 4294901760, %v21255_v15  ;;  %v20078_v47 = vand.u32 4294901760, %v21256_v14  ;;  %v14543_v31 = vpack.c.bf16 %v2228_v1, %v2216_v17  ;;  %v21267_v1 = vld [vmem:[#allocation91_spill] sm:$0xff] }
 0x136   : > { %v14545_v35 = vpack.c.bf16 %v3688_v30, %v3676_v9  ;;  %v14547_v53 = vpack.c.bf16 %v2234_v8, %v2222_v18  ;;  %v2240_v42 = vand.u32 4294901760, %v14514_v23  ;;  %v14550_v10 = vpack.c.bf16 %v3706_v12, %v3694_v34  ;;  %v21262_v9 = vld [vmem:[#allocation85_spill] sm:$0xff]  ;;  %v21263_v30 = vld [vmem:[#allocation86_spill] sm:$0xff]  ;;  %v21264_v12 = vld [vmem:[#allocation88_spill] sm:$0xff] }
 0x137   : > { %21254 = vst [vmem:[#allocation204_spill] sm:$0xff] %v14539_v38  ;;  %21257 = vst [vmem:[#allocation205_spill] sm:$0xff] %v14543_v31  ;;  %v2252_v28 = vand.u32 4294901760, %v14519_v22  ;;  %v3700_v11 = vand.u32 4294901760, %v14524_v5  ;;  %v21261_v33 = vand.u32 4294901760, %v21252_v13  ;;  %v3712_v17 = vand.u32 4294901760, %v14534_v61 }
 0x138   : > { %21258 = vst [vmem:[#allocation206_spill] sm:$0xff] %v14545_v35  ;;  %21259 = vst [vmem:[#allocation207_spill] sm:$0xff] %v14547_v53  ;;  %v2257_v8 = vsub.f32 %v21253_v60, %v20062_v25  ;;  %v3717_v22 = vsub.f32 %v21255_v15, %v20074_v6  ;;  %v3729_v34 = vsub.f32 %v21256_v14, %v20078_v47  ;;  %v21265_v61 = vld [vmem:[#allocation89_spill] sm:$0xff]  ;;  %v21268_v18 = vld [vmem:[#allocation92_spill] sm:$0xff]  ;;  %v21275_v45 = vand.u32 4294901760, %v21263_v30 }
 0x139   : > { %21260 = vst [vmem:[#allocation208_spill] sm:$0xff] %v14550_v10  ;;  %v2245_v20 = vsub.f32 %v21252_v13, %v21261_v33  ;;  %v21271_v15 = vld [vmem:[#allocation95_spill] sm:$0xff]  ;;  %v21272_v47 = vld [vmem:[#allocation97_spill] sm:$0xff]  ;;  %v21273_v5 = vld [vmem:[#allocation98_spill] sm:$0xff]  ;;  %v21277_v14 = vand.u32 4294901760, %v21265_v61 }
 0x13a   : > { %v2275_v2 = vsub.f32 %v21263_v30, %v21275_v45  ;;  %v21280_v45 = vand.u32 4294901760, %v21268_v18  ;;  %v21289_v10 = vld [vmem:[#allocation104_spill] sm:$0xff]  ;;  %v21290_v35 = vld [vmem:[#allocation105_spill] sm:$0xff] }
 0x13b   : > { %v2246_v33 = vand.u32 4294901760, %v2245_v20  ;;  %v3735_v20 = vsub.f32 %v21265_v61, %v21277_v14  ;;  %v21284_v14 = vand.u32 4294901760, %v21272_v47  ;;  %v14623_v61 = vpack.c.bf16 %v3712_v17, %v3700_v11 }
 0x160   : > { %v781_v55 = vpop.f32.mrb[0].mxu0 }
 0x161   : > { %v783_v49 = vpop.f32.mrb[1].mxu0 }
 0x164   : > { %v519_v23 = vpop.f32.mrb[0].mxu1  ;;  %v788_v60 = vpop.f32.mrb[2].mxu0 }
 0x165   : > { %v14571_v13 = vadd.f32 %v781_v55, %v519_v23  ;;  %v521_v25 = vpop.f32.mrb[1].mxu1  ;;  %v790_v6 = vpop.f32.mrb[3].mxu0  ;;  %v2258_v55 = vand.u32 4294901760, %v2257_v8  ;;  %v21274_v23 = vand.u32 4294901760, %v21262_v9 }
 0x166   : > { %v14576_v58 = vadd.f32 %v783_v49, %v521_v25  ;;  %v3718_v49 = vand.u32 4294901760, %v3717_v22  ;;  %v3730_v25 = vand.u32 4294901760, %v3729_v34  ;;  %v2281_v22 = vsub.f32 %v21268_v18, %v21280_v45  ;;  %v21286_v18 = vld [vmem:[#allocation100_spill] sm:$0xff] }
 0x167   : > { %21266 = vst [vmem:[#allocation209_spill] sm:$0xff] %v14571_v13  ;;  %v2263_v13 = vsub.f32 %v21262_v9, %v21274_v23  ;;  %v21279_v23 = vand.u32 4294901760, %v21267_v1  ;;  %v21281_v34 = vand.u32 4294901760, %v21269_v59  ;;  %v2276_v45 = vand.u32 4294901760, %v2275_v2 }
 0x168   : > { %21270 = vst [vmem:[#allocation210_spill] sm:$0xff] %v14576_v58  ;;  %v527_v3 = vpop.f32.mrb[2].mxu1  ;;  %v21276_v58 = vand.u32 4294901760, %v21264_v12  ;;  %v2282_v53 = vand.u32 4294901760, %v2281_v22  ;;  %v14635_v22 = vpack.c.bf16 %v2258_v55, %v2246_v33  ;;  %v21294_v55 = vld [vmem:[#allocation109_spill] sm:$0xff] }
 0x169   : > { %v14593_v8 = vadd.f32 %v788_v60, %v527_v3  ;;  %v529_v0 = vpop.f32.mrb[3].mxu1  ;;  %v2269_v9 = vsub.f32 %v21267_v1, %v21279_v23  ;;  %v3741_v30 = vsub.f32 %v21269_v59, %v21281_v34  ;;  %v2287_v60 = vsub.f32 %v21272_v47, %v21284_v14  ;;  %v21291_v47 = vld [vmem:[#allocation107_spill] sm:$0xff] }
 0x16a   : > { %v3723_v51 = vsub.f32 %v21264_v12, %v21276_v58  ;;  %v14604_v58 = vadd.f32 %v790_v6, %v529_v0  ;;  %v21283_v12 = vand.u32 4294901760, %v21271_v15  ;;  %v21285_v23 = vand.u32 4294901760, %v21273_v5 }
 0x16b   : > { %21278 = vst [vmem:[#allocation211_spill] sm:$0xff] %v14593_v8  ;;  %v2264_v1 = vand.u32 4294901760, %v2263_v13  ;;  %v20102_v34 = vand.u32 4294901760, %v21287_v46  ;;  %v3736_v6 = vand.u32 4294901760, %v3735_v20  ;;  %v20098_v14 = vand.u32 4294901760, %v21290_v35 }
 0x16c   : > { %21282 = vst [vmem:[#allocation212_spill] sm:$0xff] %v14604_v58  ;;  %v3753_v3 = vsub.f32 %v21271_v15, %v21283_v12  ;;  %v2299_v8 = vsub.f32 %v21273_v5, %v21285_v23  ;;  %v3724_v0 = vand.u32 4294901760, %v3723_v51  ;;  %v21288_v58 = vld [vmem:[#allocation103_spill] sm:$0xff]  ;;  %v20099_v12 = vand.u32 4294901760, %v21289_v10 }
 0x16d   : > { %v20100_v59 = vand.u32 4294901760, %v21288_v58  ;;  %v2270_v15 = vand.u32 4294901760, %v2269_v9  ;;  %v20101_v31 = vand.u32 4294901760, %v21291_v47  ;;  %v3742_v38 = vand.u32 4294901760, %v3741_v30 }
 0x16e   : > { %v3754_v23 = vand.u32 4294901760, %v3753_v3  ;;  %v2288_v13 = vand.u32 4294901760, %v2287_v60  ;;  %v2300_v2 = vand.u32 4294901760, %v2299_v8  ;;  %v14621_v5 = vpack.c.bf16 %v2252_v28, %v2240_v42  ;;  %v21304_v60 = vld [vmem:[#allocation141_spill] sm:$0xff] }
 0x16f   : > { %v21292_v51 = vand.u32 4294901760, %v21286_v18  ;;  %v14633_v9 = vsub.f32 %v21287_v46, %v20102_v34  ;;  %v14637_v30 = vpack.c.bf16 %v3730_v25, %v3718_v49  ;;  %v14642_v42 = vsub.f32 %v21288_v58, %v20100_v59 }
 0x170   : > { %v14647_v28 = vsub.f32 %v21289_v10, %v20099_v12  ;;  %v14649_v11 = vpack.c.bf16 %v2276_v45, %v2264_v1  ;;  %v14654_v17 = vsub.f32 %v21290_v35, %v20098_v14  ;;  %v14659_v33 = vsub.f32 %v21291_v47, %v20101_v31  ;;  %v21300_v12 = vld [vmem:[#allocation112_spill] sm:$0xff]  ;;  %v21309_v35 = vld [vmem:[#allocation146_spill] sm:$0xff] }
 0x171   : > { %v14628_v20 = vsub.f32 %v21286_v18, %v21292_v51  ;;  %v20104_v49 = vand.u32 4294901760, %v21294_v55  ;;  %v14662_v25 = vpack.c.bf16 %v3736_v6, %v3724_v0  ;;  %v14664_v8 = vpack.c.bf16 %v2282_v53, %v2270_v15  ;;  %v21299_v51 = vld [vmem:[#allocation110_spill] sm:$0xff]  ;;  %v21301_v0 = vld [vmem:[#allocation139_spill] sm:$0xff]  ;;  %v21302_v15 = vld [vmem:[#allocation140_spill] sm:$0xff] }
 0x172   : > { %21293 = vst [vmem:[#allocation213_spill] sm:$0xff] %v14649_v11  ;;  %v14666_v3 = vpack.c.bf16 %v3754_v23, %v3742_v38  ;;  %v14668_v1 = vpack.c.bf16 %v2300_v2, %v2288_v13  ;;  %v20106_v6 = vand.u32 4294901760, %v21301_v0  ;;  %v20110_v53 = vand.u32 4294901760, %v21302_v15  ;;  %v21303_v2 = vld [vmem:[#allocation113_spill] sm:$0xff]  ;;  %v21305_v38 = vld [vmem:[#allocation143_spill] sm:$0xff] }
 0x173   : > { %21295 = vst [vmem:[#allocation214_spill] sm:$0xff] %v14662_v25  ;;  %21296 = vst [vmem:[#allocation215_spill] sm:$0xff] %v14664_v8  ;;  %v14683_v13 = vsub.f32 %v21294_v55, %v20104_v49  ;;  %v20115_v59 = vand.u32 4294901760, %v21304_v60  ;;  %v21306_v23 = vand.u32 4294901760, %v21299_v51  ;;  %v21307_v49 = vand.u32 4294901760, %v21300_v12  ;;  %v21308_v55 = vld [vmem:[#allocation145_spill] sm:$0xff] }
 0x174   : > { %21297 = vst [vmem:[#allocation216_spill] sm:$0xff] %v14666_v3  ;;  %21298 = vst [vmem:[#allocation217_spill] sm:$0xff] %v14668_v1  ;;  %v2365_v31 = vsub.f32 %v21301_v0, %v20106_v6  ;;  %v2377_v34 = vsub.f32 %v21302_v15, %v20110_v53  ;;  %v20117_v6 = vand.u32 4294901760, %v21308_v55  ;;  %v20119_v10 = vand.u32 4294901760, %v21309_v35  ;;  %v21314_v8 = vld [vmem:[#allocation149_spill] sm:$0xff] }
 0x175   : > { %v14697_v47 = vsub.f32 %v21299_v51, %v21306_v23  ;;  %v14702_v45 = vsub.f32 %v21300_v12, %v21307_v49  ;;  %v3837_v14 = vsub.f32 %v21304_v60, %v20115_v59  ;;  %v21310_v46 = vand.u32 4294901760, %v21305_v38  ;;  %v21311_v51 = vld [vmem:[#allocation115_spill] sm:$0xff] }
 0x176   : > { %v2366_v58 = vand.u32 4294901760, %v2365_v31  ;;  %v2378_v53 = vand.u32 4294901760, %v2377_v34  ;;  %v2383_v49 = vsub.f32 %v21308_v55, %v20117_v6  ;;  %v2395_v12 = vsub.f32 %v21309_v35, %v20119_v10  ;;  %v21312_v31 = vld [vmem:[#allocation148_spill] sm:$0xff] }
 0x177   : > { %v3849_v23 = vsub.f32 %v21305_v38, %v21310_v46  ;;  %v20120_v34 = vand.u32 4294901760, %v21312_v31  ;;  %v3838_v3 = vand.u32 4294901760, %v3837_v14  ;;  %v20123_v25 = vand.u32 4294901760, %v21314_v8  ;;  %v21315_v38 = vld [vmem:[#allocation151_spill] sm:$0xff]  ;;  %v21318_v14 = vld [vmem:[#allocation153_spill] sm:$0xff] }
 0x178   : > { %v14720_v1 = vpack.c.bf16 %v2378_v53, %v2366_v58  ;;  %v2384_v11 = vand.u32 4294901760, %v2383_v49  ;;  %v2396_v46 = vand.u32 4294901760, %v2395_v12  ;;  %v20124_v6 = vand.u32 4294901760, %v21315_v38  ;;  %v21317_v58 = vld [vmem:[#allocation152_spill] sm:$0xff] }
 0x179   : > { %v3850_v59 = vand.u32 4294901760, %v3849_v23  ;;  %v3843_v18 = vsub.f32 %v21312_v31, %v20120_v34  ;;  %v3855_v10 = vsub.f32 %v21314_v8, %v20123_v25  ;;  %v20128_v53 = vand.u32 4294901760, %v21317_v58  ;;  %v21320_v34 = vld [vmem:[#allocation155_spill] sm:$0xff]  ;;  %v21321_v25 = vld [vmem:[#allocation157_spill] sm:$0xff] }
 0x17a   : > { %21313 = vst [vmem:[#allocation218_spill] sm:$0xff] %v14720_v1  ;;  %v20129_v23 = vand.u32 4294901760, %v21318_v14  ;;  %v14734_v1 = vpack.c.bf16 %v2396_v46, %v2384_v11  ;;  %v2389_v12 = vsub.f32 %v21315_v38, %v20124_v6  ;;  %v20130_v31 = vand.u32 4294901760, %v21320_v34  ;;  %v21322_v46 = vld [vmem:[#allocation158_spill] sm:$0xff]  ;;  %v21452_v0 = vld [vmem:[#allocation215_spill] sm:$0xff] }
 0x17b   : > { %v14727_v55 = vpack.c.bf16 %v3850_v59, %v3838_v3  ;;  %v3844_v49 = vand.u32 4294901760, %v3843_v18  ;;  %v3856_v35 = vand.u32 4294901760, %v3855_v10  ;;  %v2401_v59 = vsub.f32 %v21317_v58, %v20128_v53 }
 0x17c   : > { %21319 = vst [vmem:[#allocation220_spill] sm:$0xff] %v14734_v1  ;;  %v3861_v3 = vsub.f32 %v21318_v14, %v20129_v23  ;;  %v2390_v11 = vand.u32 4294901760, %v2389_v12  ;;  %v3873_v18 = vsub.f32 %v21320_v34, %v20130_v31  ;;  %v20136_v6 = vand.u32 4294901760, %v21322_v46  ;;  %v21323_v1 = vld [vmem:[#allocation160_spill] sm:$0xff]  ;;  %v21325_v34 = vld [vmem:[#allocation161_spill] sm:$0xff] }
 0x17d   : > { %21316 = vst [vmem:[#allocation219_spill] sm:$0xff] %v14727_v55  ;;  %v20135_v55 = vand.u32 4294901760, %v21321_v25  ;;  %v20137_v38 = vand.u32 4294901760, %v21323_v1  ;;  %v14752_v10 = vpack.c.bf16 %v3856_v35, %v3844_v49  ;;  %v2402_v8 = vand.u32 4294901760, %v2401_v59  ;;  %v21327_v49 = vld [vmem:[#allocation163_spill] sm:$0xff] }
 0x17e   : > { %v3862_v60 = vand.u32 4294901760, %v3861_v3  ;;  %v3874_v23 = vand.u32 4294901760, %v3873_v18  ;;  %v2419_v12 = vsub.f32 %v21322_v46, %v20136_v6  ;;  %v20140_v14 = vand.u32 4294901760, %v21325_v34  ;;  %v21328_v3 = vld [vmem:[#allocation164_spill] sm:$0xff] }
 0x17f   : > { %21324 = vst [vmem:[#allocation221_spill] sm:$0xff] %v14752_v10  ;;  %v2407_v53 = vsub.f32 %v21321_v25, %v20135_v55  ;;  %v3867_v31 = vsub.f32 %v21323_v1, %v20137_v38  ;;  %v14764_v58 = vpack.c.bf16 %v2402_v8, %v2390_v11  ;;  %v20142_v59 = vand.u32 4294901760, %v21327_v49 }
 0x180   : > { %v20143_v10 = vand.u32 4294901760, %v21328_v3  ;;  %v14768_v15 = vpack.c.bf16 %v3874_v23, %v3862_v60  ;;  %v2420_v18 = vand.u32 4294901760, %v2419_v12  ;;  %v3879_v6 = vsub.f32 %v21325_v34, %v20140_v14 }
 0x181   : > { %21326 = vst [vmem:[#allocation222_spill] sm:$0xff] %v14764_v58  ;;  %v2408_v35 = vand.u32 4294901760, %v2407_v53  ;;  %v3868_v55 = vand.u32 4294901760, %v3867_v31  ;;  %v2413_v38 = vsub.f32 %v21327_v49, %v20142_v59  ;;  %v21330_v53 = vld [vmem:[#allocation165_spill] sm:$0xff]  ;;  %v21331_v58 = vld [vmem:[#allocation167_spill] sm:$0xff] }
 0x182   : > { %21329 = vst [vmem:[#allocation223_spill] sm:$0xff] %v14768_v15  ;;  %v2425_v8 = vsub.f32 %v21328_v3, %v20143_v10  ;;  %v20145_v11 = vand.u32 4294901760, %v21330_v53  ;;  %v20149_v1 = vand.u32 4294901760, %v21331_v58  ;;  %v3880_v23 = vand.u32 4294901760, %v3879_v6  ;;  %v21333_v31 = vld [vmem:[#allocation169_spill] sm:$0xff]  ;;  %v21334_v15 = vld [vmem:[#allocation170_spill] sm:$0xff] }
 0x183   : > { %v14781_v60 = vpack.c.bf16 %v2420_v18, %v2408_v35  ;;  %v20150_v12 = vand.u32 4294901760, %v21333_v31  ;;  %v20151_v46 = vand.u32 4294901760, %v21334_v15  ;;  %v2414_v14 = vand.u32 4294901760, %v2413_v38  ;;  %v21336_v38 = vld [vmem:[#allocation172_spill] sm:$0xff] }
 0x184   : > { %v2426_v34 = vand.u32 4294901760, %v2425_v8  ;;  %v3885_v59 = vsub.f32 %v21330_v53, %v20145_v11  ;;  %v3897_v10 = vsub.f32 %v21331_v58, %v20149_v1  ;;  %v14791_v3 = vpack.c.bf16 %v3880_v23, %v3868_v55  ;;  %v21338_v53 = vld [vmem:[#allocation173_spill] sm:$0xff]  ;;  %v21339_v23 = vld [vmem:[#allocation175_spill] sm:$0xff]  ;;  %v21456_v58 = vld [vmem:[#allocation184_spill] sm:$0xff] }
 0x185   : > { %21332 = vst [vmem:[#allocation224_spill] sm:$0xff] %v14781_v60  ;;  %v2431_v6 = vsub.f32 %v21333_v31, %v20150_v12  ;;  %v2443_v35 = vsub.f32 %v21334_v15, %v20151_v46  ;;  %v20152_v18 = vand.u32 4294901760, %v21336_v38  ;;  %v20154_v49 = vand.u32 4294901760, %v21338_v53 }
 0x186   : > { %21335 = vst [vmem:[#allocation225_spill] sm:$0xff] %v14791_v3  ;;  %v14800_v8 = vpack.c.bf16 %v2426_v34, %v2414_v14  ;;  %v3886_v60 = vand.u32 4294901760, %v3885_v59  ;;  %v3898_v11 = vand.u32 4294901760, %v3897_v10  ;;  %v20155_v12 = vand.u32 4294901760, %v21339_v23  ;;  %v21341_v34 = vld [vmem:[#allocation176_spill] sm:$0xff]  ;;  %v21342_v59 = vld [vmem:[#allocation177_spill] sm:$0xff] }
 0x187   : > { %v2432_v25 = vand.u32 4294901760, %v2431_v6  ;;  %v2444_v1 = vand.u32 4294901760, %v2443_v35  ;;  %v3891_v55 = vsub.f32 %v21336_v38, %v20152_v18  ;;  %v3903_v46 = vsub.f32 %v21338_v53, %v20154_v49 }
 0x188   : > { %21337 = vst [vmem:[#allocation226_spill] sm:$0xff] %v14800_v8  ;;  %v14807_v3 = vpack.c.bf16 %v3898_v11, %v3886_v60  ;;  %v20157_v14 = vand.u32 4294901760, %v21341_v34  ;;  %v20158_v10 = vand.u32 4294901760, %v21342_v59  ;;  %v2437_v35 = vsub.f32 %v21339_v23, %v20155_v12  ;;  %v21344_v12 = vld [vmem:[#allocation184_spill] sm:$0xff] }
 0x189   : > { %v14814_v8 = vpack.c.bf16 %v2444_v1, %v2432_v25  ;;  %v3892_v6 = vand.u32 4294901760, %v3891_v55  ;;  %v20159_v18 = vand.u32 4294901760, %v14268_v44  ;;  %v3904_v38 = vand.u32 4294901760, %v3903_v46 }
 0x18a   : > { %21340 = vst [vmem:[#allocation227_spill] sm:$0xff] %v14807_v3  ;;  %v2449_v11 = vsub.f32 %v21341_v34, %v20157_v14  ;;  %v3909_v60 = vsub.f32 %v21342_v59, %v20158_v10  ;;  %v20165_v49 = vand.u32 4294901760, %v14272_v48  ;;  %v2438_v25 = vand.u32 4294901760, %v2437_v35 }
 0x18b   : > { %21343 = vst [vmem:[#allocation228_spill] sm:$0xff] %v14814_v8  ;;  %v3921_v1 = vsub.f32 %v14268_v44, %v20159_v18  ;;  %v20168_v55 = vand.u32 4294901760, %v14274_v32  ;;  %v20171_v8 = vand.u32 4294901760, %v21344_v12  ;;  %v14832_v46 = vpack.c.bf16 %v3904_v38, %v3892_v6  ;;  %v21346_v44 = vld [vmem:[#allocation185_spill] sm:$0xff]  ;;  %v21348_v6 = vld [vmem:[#allocation187_spill] sm:$0xff] }
 0x18c   : > { %v2450_v3 = vand.u32 4294901760, %v2449_v11  ;;  %v3910_v23 = vand.u32 4294901760, %v3909_v60  ;;  %v2455_v14 = vsub.f32 %v14272_v48, %v20165_v49  ;;  %v20172_v59 = vand.u32 4294901760, %v21346_v44  ;;  %v21349_v60 = vld [vmem:[#allocation188_spill] sm:$0xff] }
 0x18d   : > { %21345 = vst [vmem:[#allocation229_spill] sm:$0xff] %v14832_v46  ;;  %v3922_v10 = vand.u32 4294901760, %v3921_v1  ;;  %v2467_v35 = vsub.f32 %v14274_v32, %v20168_v55  ;;  %v3915_v18 = vsub.f32 %v21344_v12, %v20171_v8  ;;  %v20175_v11 = vand.u32 4294901760, %v21348_v6 }
 0x18e   : > { %v14844_v34 = vpack.c.bf16 %v2450_v3, %v2438_v25  ;;  %v2456_v38 = vand.u32 4294901760, %v2455_v14  ;;  %v20176_v46 = vand.u32 4294901760, %v21349_v60  ;;  %v3927_v55 = vsub.f32 %v21346_v44, %v20172_v59  ;;  %v21352_v25 = vld [vmem:[#allocation189_spill] sm:$0xff] }
 0x18f   : > { %v14848_v49 = vpack.c.bf16 %v3922_v10, %v3910_v23  ;;  %v2468_v1 = vand.u32 4294901760, %v2467_v35  ;;  %v3916_v48 = vand.u32 4294901760, %v3915_v18  ;;  %v2461_v3 = vsub.f32 %v21348_v6, %v20175_v11 }
 0x190   : > { %21347 = vst [vmem:[#allocation230_spill] sm:$0xff] %v14844_v34  ;;  %v1879_v53 = vpop.f32.mrb[4].mxu0  ;;  %v2473_v14 = vsub.f32 %v21349_v60, %v20176_v46  ;;  %v20180_v23 = vand.u32 4294901760, %v21352_v25  ;;  %v3928_v35 = vand.u32 4294901760, %v3927_v55  ;;  %v20182_v59 = vand.u32 4294901760, %v14296_v41 }
 0x191   : > { %21350 = vst [vmem:[#allocation231_spill] sm:$0xff] %v14848_v49  ;;  %v14853_v32 = vand.u32 4294901760, %v1879_v53  ;;  %v1881_v8 = vpop.f32.mrb[5].mxu0  ;;  %v14864_v18 = vpack.c.bf16 %v2468_v1, %v2456_v38  ;;  %v2462_v44 = vand.u32 4294901760, %v2461_v3 }
 0x192   : > { %v14862_v10 = vand.u32 4294901760, %v1881_v8  ;;  %v2474_v12 = vand.u32 4294901760, %v2473_v14  ;;  %v3933_v11 = vsub.f32 %v21352_v25, %v20180_v23  ;;  %v14878_v55 = vpack.c.bf16 %v3928_v35, %v3916_v48 }
 0x193   : > { %21351 = vst [vmem:[#allocation232_spill] sm:$0xff] %v14853_v32  ;;  %21354 = vst [vmem:[#allocation234_spill] sm:$0xff] %v14864_v18  ;;  %v14868_v49 = vsub.f32 %v1879_v53, %v14853_v32  ;;  %v3945_v53 = vsub.f32 %v14296_v41, %v20182_v59 }
 0x194   : > { %21353 = vst [vmem:[#allocation233_spill] sm:$0xff] %v14862_v10  ;;  %v1330_v34 = vpop.f32.mrb[4].mxu1  ;;  %v14874_v46 = vsub.f32 %v1881_v8, %v14862_v10  ;;  %v1886_v1 = vpop.f32.mrb[6].mxu0  ;;  %21358 = vst [vmem:[#allocation238_spill] sm:$0xff] %v14878_v55  ;;  %v14888_v18 = vpack.c.bf16 %v2474_v12, %v2462_v44  ;;  %v3934_v35 = vand.u32 4294901760, %v3933_v11 }
 0x195   : > { %21355 = vst [vmem:[#allocation235_spill] sm:$0xff] %v14868_v49  ;;  %v14876_v60 = vand.u32 4294901760, %v1330_v34  ;;  %v1332_v38 = vpop.f32.mrb[5].mxu1  ;;  %v20187_v3 = vand.u32 4294901760, %v14868_v49  ;;  %v14886_v32 = vand.u32 4294901760, %v1886_v1  ;;  %v1888_v23 = vpop.f32.mrb[7].mxu0 }
 0x196   : > { %21356 = vst [vmem:[#allocation236_spill] sm:$0xff] %v14874_v46  ;;  %v14884_v14 = vand.u32 4294901760, %v1332_v38  ;;  %21361 = vst [vmem:[#allocation241_spill] sm:$0xff] %v14888_v18  ;;  %v14894_v48 = vand.u32 4294901760, %v1888_v23  ;;  %v3946_v12 = vand.u32 4294901760, %v3945_v53  ;;  %v21369_v18 = vand.u32 4294901760, %v14874_v46 }
 0x197   : > { %21357 = vst [vmem:[#allocation237_spill] sm:$0xff] %v14876_v60  ;;  %21360 = vst [vmem:[#allocation240_spill] sm:$0xff] %v14886_v32  ;;  %v14892_v25 = vsub.f32 %v1330_v34, %v14876_v60  ;;  %v2092_v59 = vsub.f32 %v14868_v49, %v20187_v3  ;;  %v14903_v41 = vsub.f32 %v1886_v1, %v14886_v32 }
 0x198   : > { %21359 = vst [vmem:[#allocation239_spill] sm:$0xff] %v14884_v14  ;;  %21363 = vst [vmem:[#allocation243_spill] sm:$0xff] %v14894_v48  ;;  %v14900_v55 = vsub.f32 %v1332_v38, %v14884_v14  ;;  %v1337_v44 = vpop.f32.mrb[6].mxu1  ;;  %v14909_v34 = vsub.f32 %v1888_v23, %v14894_v48  ;;  %v2086_v3 = vsub.f32 %v14874_v46, %v21369_v18 }
 0x199   : > { %21362 = vst [vmem:[#allocation242_spill] sm:$0xff] %v14892_v25  ;;  %21365 = vst [vmem:[#allocation245_spill] sm:$0xff] %v14903_v41  ;;  %v14906_v8 = vand.u32 4294901760, %v14892_v25  ;;  %v14911_v60 = vand.u32 4294901760, %v1337_v44  ;;  %v1339_v11 = vpop.f32.mrb[7].mxu1  ;;  %v2093_v38 = vand.u32 4294901760, %v2092_v59  ;;  %v14936_v46 = vpack.c.bf16 %v3946_v12, %v3934_v35 }
 0x19a   : > { %21364 = vst [vmem:[#allocation244_spill] sm:$0xff] %v14900_v55  ;;  %21367 = vst [vmem:[#allocation247_spill] sm:$0xff] %v14909_v34  ;;  %v20203_v49 = vand.u32 4294901760, %v14903_v41  ;;  %v14917_v1 = vand.u32 4294901760, %v1339_v11  ;;  %v14920_v53 = vand.u32 4294901760, %v14900_v55  ;;  %v20205_v23 = vand.u32 4294901760, %v14909_v34 }
 0x19b   : > { %21366 = vst [vmem:[#allocation246_spill] sm:$0xff] %v14906_v8  ;;  %21368 = vst [vmem:[#allocation248_spill] sm:$0xff] %v14911_v60  ;;  %v3570_v32 = vsub.f32 %v14892_v25, %v14906_v8  ;;  %v14926_v48 = vsub.f32 %v1337_v44, %v14911_v60  ;;  %v2087_v6 = vand.u32 4294901760, %v2086_v3  ;;  %v21429_v25 = vld [vmem:[#allocation146_spill] sm:$0xff] }
 0x19c   : > { %21370 = vst [vmem:[#allocation249_spill] sm:$0xff] %v14917_v1  ;;  %21371 = vst [vmem:[#allocation250_spill] sm:$0xff] %v14920_v53  ;;  %v14929_v15 = vsub.f32 %v1339_v11, %v14917_v1  ;;  %v3564_v59 = vsub.f32 %v14900_v55, %v14920_v53  ;;  %v2108_v18 = vsub.f32 %v14903_v41, %v20203_v49  ;;  %v20204_v11 = vand.u32 4294901760, %v14300_v24  ;;  %v21411_v41 = vld [vmem:[#allocation133_spill] sm:$0xff] }
 0x19d   : > { %21372 = vst [vmem:[#allocation251_spill] sm:$0xff] %v14926_v48  ;;  %v14938_v31 = vand.u32 4294901760, %v3570_v32  ;;  %2088 = vmatprep.mubr.f32.mxu1 %v2087_v6  ;;  %v2102_v44 = vsub.f32 %v14909_v34, %v20205_v23  ;;  %v14944_v3 = vand.u32 4294901760, %v14926_v48  ;;  %v20207_v32 = vand.u32 4294901760, %v14302_v27  ;;  %v21423_v34 = vld [vmem:[#allocation137_spill] sm:$0xff] }
 0x19e   : > { %21373 = vst [vmem:[#allocation252_spill] sm:$0xff] %v14929_v15  ;;  %2094 = vmatmul.mubr.f32.vlgmr.msra.gmra.mrb[8].mxu1 %v2093_v38  ;;  %v14947_v8 = vand.u32 4294901760, %v3564_v59  ;;  %v2109_v53 = vand.u32 4294901760, %v2108_v18  ;;  %v14950_v49 = vand.u32 4294901760, %v14929_v15  ;;  %v2479_v12 = vsub.f32 %v14300_v24, %v20204_v11 }
 0x19f   : > { %21374 = vst [vmem:[#allocation253_spill] sm:$0xff] %v14938_v31  ;;  %21375 = vst [vmem:[#allocation254_spill] sm:$0xff] %v14944_v3  ;;  %10709 = vmatpush1.bf16.msra.mxu1 %v14430_v39  ;;  %v2103_v6 = vand.u32 4294901760, %v2102_v44  ;;  %v3586_v35 = vsub.f32 %v14926_v48, %v14944_v3  ;;  %v20208_v38 = vand.u32 4294901760, %v14306_v16  ;;  %v2491_v39 = vsub.f32 %v14302_v27, %v20207_v32 }
 0x1a0   : > { %21376 = vst [vmem:[#allocation255_spill] sm:$0xff] %v14947_v8  ;;  %21377 = vst [vmem:[#allocation256_spill] sm:$0xff] %v14950_v49  ;;  %3566 = vmatprep.mubr.f32.mxu0 %v14947_v8  ;;  %10711 = vmatprep.subr.bf16.mxu1 %v14432_v52  ;;  %v3580_v59 = vsub.f32 %v14929_v15, %v14950_v49  ;;  %v2480_v23 = vand.u32 4294901760, %v2479_v12  ;;  %v20209_v8 = vand.u32 4294901760, %v14316_v37  ;;  %v21380_v44 = vand.u32 4294901760, %v14308_v7  ;;  %v21409_v49 = vld [vmem:[#allocation129_spill] sm:$0xff] }
 0x1a1   : > { %2104 = vmatprep.mubr.f32.mxu1 %v2103_v6  ;;  %3572 = vmatmul.mubr.f32.vlgmr.msra.gmra.mrb[8].mxu0 %v14938_v31  ;;  %v14970_v11 = vand.u32 4294901760, %v3586_v35  ;;  %v3939_v52 = vsub.f32 %v14306_v16, %v20208_v38  ;;  %v2492_v18 = vand.u32 4294901760, %v2491_v39  ;;  %v21381_v35 = vand.u32 4294901760, %v14314_v50 }
 0x1a2   : > { %11093 = vmatpush1.bf16.msra.mxu0 %v14435_v4  ;;  %2110 = vmatmul.mubr.f32.gmra.mrb[10].mxu1 %v2109_v53  ;;  %v14977_v32 = vand.u32 4294901760, %v3580_v59  ;;  %v3951_v6 = vsub.f32 %v14308_v7, %v21380_v44  ;;  %v2497_v4 = vsub.f32 %v14316_v37, %v20209_v8  ;;  %v20212_v53 = vand.u32 4294901760, %v14322_v43 }
 0x1a3   : > { %21378 = vst [vmem:[#allocation257_spill] sm:$0xff] %v14970_v11  ;;  %v2485_v12 = vsub.f32 %v14314_v50, %v21381_v35  ;;  %10713 = vmatpush1.bf16.msra.mxu1 %v14437_v26  ;;  %2501 = vmatprep.mubr.f32.mxu1 %v14862_v10  ;;  %v3940_v38 = vand.u32 4294901760, %v3939_v52  ;;  %v21382_v39 = vand.u32 4294901760, %v21303_v2  ;;  %v14997_v26 = vpack.c.bf16 %v2492_v18, %v2480_v23  ;;  %v21384_v23 = vld [vmem:[#allocation116_spill] sm:$0xff]  ;;  %v21390_v18 = vld [vmem:[#allocation119_spill] sm:$0xff]  ;;  %v21408_v10 = vld [vmem:[#allocation206_spill] sm:$0xff] }
 0x1a4   : > { %21379 = vst [vmem:[#allocation258_spill] sm:$0xff] %v14977_v32  ;;  %3582 = vmatprep.mubr.f32.mxu0 %v14977_v32  ;;  %11095 = vmatprep.subr.bf16.mxu0 %v14439_v36  ;;  %v3952_v35 = vand.u32 4294901760, %v3951_v6  ;;  %v2498_v8 = vand.u32 4294901760, %v2497_v4  ;;  %v3957_v59 = vsub.f32 %v14322_v43, %v20212_v53  ;;  %v21383_v32 = vand.u32 4294901760, %v14326_v29  ;;  %v21386_v4 = vld [vmem:[#allocation203_spill] sm:$0xff] }
 0x1a5   : > { %v3783_v44 = vsub.f32 %v21303_v2, %v21382_v39  ;;  %v2486_v52 = vand.u32 4294901760, %v2485_v12  ;;  %10715 = vmatprep.subr.bf16.mxu1 %v14441_v57  ;;  %3588 = vmatmul.mubr.f32.gmra.mrb[10].mxu0 %v14970_v11  ;;  %v21385_v57 = vld [vmem:[#allocation117_spill] sm:$0xff]  ;;  %v21388_v6 = vand.u32 4294901760, %v14628_v20  ;;  %v20233_v48 = vand.u32 4294901760, %v21409_v49 }
 0x1a6   : > { %v3969_v36 = vsub.f32 %v14326_v29, %v21383_v32  ;;  %11097 = vmatpush1.bf16.msra.mxu0 %v14443_v62  ;;  %3979 = vmatprep.mubr.f32.mxu0 %v14884_v14  ;;  %v15012_v12 = vpack.c.bf16 %v3952_v35, %v3940_v38  ;;  %v3958_v32 = vand.u32 4294901760, %v3957_v59  ;;  %v21387_v62 = vand.u32 4294901760, %v14336_v21  ;;  %v21391_v39 = vld [vmem:[#allocation121_spill] sm:$0xff]  ;;  %v21407_v14 = vld [vmem:[#allocation128_spill] sm:$0xff] }
 0x1a7   : > { %10717 = vmatpush1.bf16.msra.mxu1 %v14448_v54  ;;  %11099 = vmatprep.subr.bf16.mxu0 %v14465_v19  ;;  %v15017_v53 = vpack.c.bf16 %v2498_v8, %v2486_v52  ;;  %v21389_v38 = vand.u32 4294901760, %v14633_v9  ;;  %v20220_v54 = vand.u32 4294901760, %v21390_v18  ;;  %v21392_v8 = vand.u32 4294901760, %v21386_v4 }
 0x1a8   : > { %v3970_v31 = vand.u32 4294901760, %v3969_v36  ;;  %v3963_v11 = vsub.f32 %v14336_v21, %v21387_v62  ;;  %10719 = vmatprep.subr.bf16.mxu1 %v14527_v56  ;;  %v21393_v52 = vand.u32 4294901760, %v14642_v42  ;;  %v21394_v36 = vand.u32 4294901760, %v14647_v28 }
 0x1a9   : > { %v15027_v35 = vpack.c.bf16 %v21389_v38, %v21388_v6  ;;  %v3975_v59 = vsub.f32 %v21386_v4, %v21392_v8  ;;  %v2312_v56 = vand.u32 4294901760, %v14683_v13  ;;  %v21395_v6 = vand.u32 4294901760, %v14654_v17 }
 0x1aa   : > { %v15038_v62 = vpack.c.bf16 %v21394_v36, %v21393_v52  ;;  %v15041_v20 = vpack.c.bf16 %v3970_v31, %v3958_v32  ;;  %v3964_v9 = vand.u32 4294901760, %v3963_v11  ;;  %11101 = vmatpush1.bf16.msra.mxu0 %v14529_v63  ;;  %v21396_v38 = vand.u32 4294901760, %v14659_v33  ;;  %v21397_v52 = vld [vmem:[#allocation204_spill] sm:$0xff]  ;;  %v21401_v11 = vld [vmem:[#allocation205_spill] sm:$0xff] }
 0x1ab   : > { %v2324_v8 = vand.u32 4294901760, %v14697_v47  ;;  %v3772_v42 = vand.u32 4294901760, %v14702_v45  ;;  %v3976_v28 = vand.u32 4294901760, %v3975_v59  ;;  %10721 = vmatpush1.bf16.msra.mxu1 %v14537_v40  ;;  %11103 = vmatprep.subr.bf16.mxu0 %v21397_v52  ;;  %v3784_v13 = vand.u32 4294901760, %v3783_v44  ;;  %v21403_v59 = vld [vmem:[#allocation122_spill] sm:$0xff] }
 0x1ac   : > { %v15048_v19 = vpack.c.bf16 %v21396_v38, %v21395_v6  ;;  %v21398_v31 = vand.u32 4294901760, %v21311_v51  ;;  %v21399_v17 = vand.u32 4294901760, %v21384_v23  ;;  %v21400_v47 = vand.u32 4294901760, %v21385_v57  ;;  %10723 = vmatprep.subr.bf16.mxu1 %v21401_v11  ;;  %v21404_v38 = vld [vmem:[#allocation124_spill] sm:$0xff] }
 0x1ad   : > { %v15073_v40 = vsub.f32 %v21390_v18, %v20220_v54  ;;  %v21402_v44 = vand.u32 4294901760, %v21391_v39  ;;  %v15081_v6 = vpack.c.bf16 %v3976_v28, %v3964_v9  ;;  %v15088_v54 = vpack.c.bf16 %v2324_v8, %v2312_v56  ;;  %v21412_v9 = vld [vmem:[#allocation207_spill] sm:$0xff]  ;;  %v21413_v28 = vld [vmem:[#allocation208_spill] sm:$0xff]  ;;  %v21509_v18 = vld [vmem:[#allocation54_spill] sm:$0xff] }
 0x1ae   : > { %v15057_v63 = vsub.f32 %v21311_v51, %v21398_v31  ;;  %v15062_v33 = vsub.f32 %v21384_v23, %v21399_v17  ;;  %v15067_v45 = vsub.f32 %v21385_v57, %v21400_v47  ;;  %v21405_v31 = vld [vmem:[#allocation125_spill] sm:$0xff]  ;;  %v21406_v47 = vld [vmem:[#allocation127_spill] sm:$0xff]  ;;  %11105 = vmatpush1.bf16.msra.mxu0 %v21408_v10  ;;  %v15095_v52 = vpack.c.bf16 %v3784_v13, %v3772_v42  ;;  %v21414_v17 = vld [vmem:[#allocation134_spill] sm:$0xff] }
 0x1af   : > { %v15078_v32 = vsub.f32 %v21391_v39, %v21402_v44  ;;  %v21410_v44 = vld [vmem:[#allocation131_spill] sm:$0xff]  ;;  %10725 = vmatpush1.bf16.msra.mxu1 %v21412_v9  ;;  %11107 = vmatprep.subr.bf16.mxu0 %v21413_v28  ;;  %v3802_v8 = vand.u32 4294901760, %v15073_v40  ;;  %v21415_v9 = vand.u32 4294901760, %v21403_v59  ;;  %v21416_v42 = vand.u32 4294901760, %v21404_v38  ;;  %v21421_v10 = vld [vmem:[#allocation136_spill] sm:$0xff]  ;;  %v21447_v39 = vld [vmem:[#allocation173_spill] sm:$0xff] }
 0x1b0   : > { %v20236_v15 = vand.u32 4294901760, %v21410_v44  ;;  %v2318_v11 = vand.u32 4294901760, %v15057_v63  ;;  %v2330_v3 = vand.u32 4294901760, %v15062_v33  ;;  %10727 = vmatprep.subr.bf16.mxu1 %v14621_v5  ;;  %v3790_v56 = vand.u32 4294901760, %v15067_v45  ;;  %v21450_v57 = vld [vmem:[#allocation177_spill] sm:$0xff]  ;;  %v21451_v23 = vld [vmem:[#allocation179_spill] sm:$0xff] }
 0x1b1   : > { %v2336_v36 = vand.u32 4294901760, %v15078_v32  ;;  %v2347_v28 = vsub.f32 %v21403_v59, %v21415_v9  ;;  %v3795_v13 = vsub.f32 %v21404_v38, %v21416_v42  ;;  %v21417_v63 = vand.u32 4294901760, %v21405_v31  ;;  %v21431_v38 = vld [vmem:[#allocation149_spill] sm:$0xff]  ;;  %v21455_v51 = vld [vmem:[#allocation182_spill] sm:$0xff] }
 0x1b2   : > { %v21418_v5 = vand.u32 4294901760, %v21406_v47  ;;  %v21419_v40 = vand.u32 4294901760, %v21407_v14  ;;  %11109 = vmatpush1.bf16.msra.mxu0 %v14623_v61  ;;  %v3813_v9 = vsub.f32 %v21409_v49, %v20233_v48  ;;  %v3825_v42 = vsub.f32 %v21410_v44, %v20236_v15  ;;  %v21439_v49 = vld [vmem:[#allocation161_spill] sm:$0xff]  ;;  %v21453_v44 = vld [vmem:[#allocation216_spill] sm:$0xff] }
 0x1b3   : > { %v3807_v33 = vsub.f32 %v21405_v31, %v21417_v63  ;;  %v21420_v63 = vand.u32 4294901760, %v21411_v41  ;;  %10729 = vmatpush1.bf16.msra.mxu1 %v14635_v22  ;;  %11111 = vmatprep.subr.bf16.mxu0 %v14637_v30  ;;  %v21422_v61 = vand.u32 4294901760, %v21414_v17  ;;  %v21427_v31 = vld [vmem:[#allocation213_spill] sm:$0xff]  ;;  %v2348_v15 = vand.u32 4294901760, %v2347_v28  ;;  %v21458_v30 = vld [vmem:[#allocation187_spill] sm:$0xff]  ;;  %v21459_v22 = vld [vmem:[#allocation188_spill] sm:$0xff] }
 0x1b4   : > { %v15116_v45 = vsub.f32 %v21406_v47, %v21418_v5  ;;  %v15121_v32 = vsub.f32 %v21407_v14, %v21419_v40  ;;  %10731 = vmatprep.subr.bf16.mxu1 %v21427_v31  ;;  %v21457_v31 = vld [vmem:[#allocation185_spill] sm:$0xff]  ;;  %v11122_v47 = vpack.c.bf16 %v3802_v8, %v3790_v56  ;;  %v3814_v56 = vand.u32 4294901760, %v3813_v9  ;;  %v21473_v9 = vld [vmem:[#allocation226_spill] sm:$0xff] }
 0x1b5   : > { %v2359_v5 = vsub.f32 %v21411_v41, %v21420_v63  ;;  %v2371_v40 = vsub.f32 %v21414_v17, %v21422_v61  ;;  %v21443_v63 = vld [vmem:[#allocation214_spill] sm:$0xff]  ;;  %v21454_v41 = vld [vmem:[#allocation181_spill] sm:$0xff]  ;;  %v21462_v61 = vld [vmem:[#allocation191_spill] sm:$0xff]  ;;  %v3796_v17 = vand.u32 4294901760, %v3795_v13  ;;  %v3808_v48 = vand.u32 4294901760, %v3807_v33 }
 0x1b6   : > { %11113 = vmatpush1.bf16.msra.mxu0 %v21443_v63  ;;  %v21460_v59 = vld [vmem:[#allocation217_spill] sm:$0xff]  ;;  %v10740_v63 = vpack.c.bf16 %v2330_v3, %v2318_v11  ;;  %v2342_v3 = vand.u32 4294901760, %v15116_v45  ;;  %v2354_v11 = vand.u32 4294901760, %v15121_v32  ;;  %v10742_v8 = vpack.c.bf16 %v2348_v15, %v2336_v36  ;;  %v21465_v15 = vld [vmem:[#allocation218_spill] sm:$0xff]  ;;  %v21467_v36 = vld [vmem:[#allocation220_spill] sm:$0xff] }
 0x1b7   : > { %10733 = vmatpush1.bf16.msra.mxu1 %v21452_v0  ;;  %11115 = vmatprep.subr.bf16.mxu0 %v21453_v44  ;;  %v21461_v14 = vld [vmem:[#allocation189_spill] sm:$0xff]  ;;  %v21463_v0 = vand.u32 4294901760, %v21421_v10  ;;  %v21464_v44 = vand.u32 4294901760, %v21423_v34  ;;  %v2360_v13 = vand.u32 4294901760, %v2359_v5  ;;  %v2372_v33 = vand.u32 4294901760, %v2371_v40  ;;  %v21475_v5 = vld [vmem:[#allocation228_spill] sm:$0xff] }
 0x1b8   : > { %10735 = vmatprep.subr.bf16.mxu1 %v21460_v59  ;;  %v21476_v40 = vld [vmem:[#allocation229_spill] sm:$0xff] }
 0x1b9   : > { %v3819_v24 = vsub.f32 %v21421_v10, %v21463_v0  ;;  %v3831_v28 = vsub.f32 %v21423_v34, %v21464_v44  ;;  %v11124_v0 = vpack.c.bf16 %v3808_v48, %v3796_v17  ;;  %v10746_v45 = vpack.c.bf16 %v2372_v33, %v2360_v13  ;;  %v21469_v48 = vld [vmem:[#allocation222_spill] sm:$0xff]  ;;  %v21471_v17 = vld [vmem:[#allocation224_spill] sm:$0xff]  ;;  %v21484_v13 = vld [vmem:[#allocation17_spill] sm:$0xff] }
 0x1ba   : > { %11117 = vmatpush1.bf16.msra.mxu0 %v15027_v35  ;;  %v3826_v35 = vand.u32 4294901760, %v3825_v42  ;;  %v21474_v42 = vld [vmem:[#allocation227_spill] sm:$0xff]  ;;  %v21485_v33 = vld [vmem:[#allocation18_spill] sm:$0xff] }
 0x1bb   : > { %10737 = vmatpush1.bf16.msra.mxu1 %v15038_v62  ;;  %11119 = vmatprep.subr.bf16.mxu0 %v15048_v19  ;;  %v3820_v59 = vand.u32 4294901760, %v3819_v24  ;;  %v3832_v44 = vand.u32 4294901760, %v3831_v28  ;;  %v10744_v62 = vpack.c.bf16 %v2354_v11, %v2342_v3  ;;  %v21468_v24 = vld [vmem:[#allocation221_spill] sm:$0xff]  ;;  %v21478_v28 = vld [vmem:[#allocation231_spill] sm:$0xff]  ;;  %v21480_v3 = vld [vmem:[#allocation238_spill] sm:$0xff] }
 0x1bc   : > { %10739 = vmatprep.subr.bf16.mxu1 %v15088_v54  ;;  %v11126_v19 = vpack.c.bf16 %v3826_v35, %v3814_v56  ;;  %v21466_v54 = vld [vmem:[#allocation219_spill] sm:$0xff]  ;;  %v21481_v11 = vld [vmem:[#allocation241_spill] sm:$0xff]  ;;  %v21483_v35 = vld [vmem:[#allocation16_spill] sm:$0xff] }
 0x1bd   : > { %v11128_v32 = vpack.c.bf16 %v3832_v44, %v3820_v59  ;;  %v21479_v59 = vld [vmem:[#allocation234_spill] sm:$0xff]  ;;  %v21482_v56 = vld [vmem:[#allocation15_spill] sm:$0xff] }
 0x1be   : > { %11121 = vmatpush1.bf16.msra.mxu0 %v15095_v52  ;;  %v21470_v52 = vld [vmem:[#allocation223_spill] sm:$0xff] }
 0x1bf   : > { %10741 = vmatpush1.bf16.msra.mxu1 %v10740_v63  ;;  %11123 = vmatprep.subr.bf16.mxu0 %v11122_v47  ;;  %v21472_v47 = vld [vmem:[#allocation225_spill] sm:$0xff]  ;;  %v21477_v63 = vld [vmem:[#allocation230_spill] sm:$0xff]  ;;  %v21486_v44 = vld [vmem:[#allocation19_spill] sm:$0xff] }
 0x1c0   : > { %10743 = vmatprep.subr.bf16.mxu1 %v10742_v8  ;;  %v10770_v8 = vpack.c.bf16 %v21483_v35, %v21482_v56 }
 0x1c2   : > { %11125 = vmatpush1.bf16.msra.mxu0 %v11124_v0  ;;  %v10772_v0 = vpack.c.bf16 %v21485_v33, %v21484_v13 }
 0x1c3   : > { %10745 = vmatpush1.bf16.msra.mxu1 %v10744_v62  ;;  %11127 = vmatprep.subr.bf16.mxu0 %v11126_v19  ;;  %v21487_v62 = vld [vmem:[#allocation20_spill] sm:$0xff] }
 0x1c4   : > { %10747 = vmatprep.subr.bf16.mxu1 %v10746_v45  ;;  %v11154_v19 = vpack.c.bf16 %v21487_v62, %v21486_v44  ;;  %v21488_v45 = vld [vmem:[#allocation27_spill] sm:$0xff] }
 0x1c6   : > { %11129 = vmatpush1.bf16.msra.mxu0 %v11128_v32 }
 0x1c7   : > { %10749 = vmatpush1.bf16.msra.mxu1 %v21465_v15  ;;  %11131 = vmatprep.subr.bf16.mxu0 %v21466_v54  ;;  %v21491_v15 = vld [vmem:[#allocation243_spill] sm:$0xff] }
 0x1c8   : > { %10751 = vmatprep.subr.bf16.mxu1 %v21467_v36  ;;  %v21494_v54 = vld [vmem:[#allocation31_spill] sm:$0xff]  ;;  %v21495_v36 = vld [vmem:[#allocation32_spill] sm:$0xff] }
 0x1ca   : > { %11133 = vmatpush1.bf16.msra.mxu0 %v21468_v24  ;;  %v10776_v24 = vpack.c.bf16 %v21495_v36, %v21494_v54 }
 0x1cb   : > { %10753 = vmatpush1.bf16.msra.mxu1 %v21469_v48  ;;  %11135 = vmatprep.subr.bf16.mxu0 %v21470_v52  ;;  %v21496_v48 = vld [vmem:[#allocation42_spill] sm:$0xff]  ;;  %v21497_v52 = vld [vmem:[#allocation43_spill] sm:$0xff] }
 0x1cc   : > { %10755 = vmatprep.subr.bf16.mxu1 %v21471_v17  ;;  %v11158_v17 = vpack.c.bf16 %v21497_v52, %v21496_v48 }
 0x1ce   : > { %11137 = vmatpush1.bf16.msra.mxu0 %v21472_v47  ;;  %v21498_v47 = vld [vmem:[#allocation237_spill] sm:$0xff] }
 0x1cf   : > { %10757 = vmatpush1.bf16.msra.mxu1 %v21473_v9  ;;  %11139 = vmatprep.subr.bf16.mxu0 %v21474_v42  ;;  %v21499_v9 = vld [vmem:[#allocation44_spill] sm:$0xff]  ;;  %v21500_v42 = vld [vmem:[#allocation45_spill] sm:$0xff] }
 0x1d0   : > { %10759 = vmatprep.subr.bf16.mxu1 %v21475_v5  ;;  %v10778_v5 = vpack.c.bf16 %v21500_v42, %v21499_v9 }
 0x1d2   : > { %11141 = vmatpush1.bf16.msra.mxu0 %v21476_v40  ;;  %v21502_v40 = vld [vmem:[#allocation46_spill] sm:$0xff] }
 0x1d3   : > { %10761 = vmatpush1.bf16.msra.mxu1 %v21477_v63  ;;  %11143 = vmatprep.subr.bf16.mxu0 %v21478_v28  ;;  %v21503_v63 = vld [vmem:[#allocation47_spill] sm:$0xff] }
 0x1d4   : > { %10763 = vmatprep.subr.bf16.mxu1 %v21479_v59  ;;  %v11160_v28 = vpack.c.bf16 %v21503_v63, %v21502_v40  ;;  %v21504_v59 = vld [vmem:[#allocation48_spill] sm:$0xff] }
 0x1d6   : > { %11145 = vmatpush1.bf16.msra.mxu0 %v21480_v3  ;;  %v21505_v3 = vld [vmem:[#allocation49_spill] sm:$0xff] }
 0x1d7   : > { %10765 = vmatpush1.bf16.msra.mxu1 %v21481_v11  ;;  %11147 = vmatprep.subr.bf16.mxu0 %v14936_v46  ;;  %v21489_v46 = vld [vmem:[#allocation28_spill] sm:$0xff]  ;;  %v10780_v11 = vpack.c.bf16 %v21505_v3, %v21504_v59  ;;  %v21517_v59 = vld [vmem:[#allocation62_spill] sm:$0xff] }
 0x1d8   : > { %10767 = vmatprep.subr.bf16.mxu1 %v14997_v26  ;;  %v10774_v32 = vpack.c.bf16 %v21489_v46, %v21488_v45  ;;  %v21490_v26 = vld [vmem:[#allocation232_spill] sm:$0xff] }
 0x1da   : > { %11149 = vmatpush1.bf16.msra.mxu0 %v15012_v12  ;;  %v21493_v12 = vld [vmem:[#allocation30_spill] sm:$0xff] }
 0x1db   : > { %10769 = vmatpush1.bf16.msra.mxu1 %v15017_v53  ;;  %11151 = vmatprep.subr.bf16.mxu0 %v15041_v20  ;;  %v21492_v53 = vld [vmem:[#allocation29_spill] sm:$0xff] }
 0x1dc   : > { %10771 = vmatprep.subr.bf16.mxu1 %v10770_v8  ;;  %v11156_v20 = vpack.c.bf16 %v21493_v12, %v21492_v53  ;;  %v21506_v8 = vld [vmem:[#allocation236_spill] sm:$0xff] }
 0x1de   : > { %2503 = vmatmul.mubr.f32.vlgmr.msra.gmra.mrb[8].mxu1 %v21490_v26  ;;  %11153 = vmatpush1.bf16.msra.mxu0 %v15081_v6  ;;  %v21501_v6 = vld [vmem:[#allocation240_spill] sm:$0xff]  ;;  %v21514_v26 = vld [vmem:[#allocation59_spill] sm:$0xff] }
 0x1df   : > { %2509 = vmatprep.mubr.f32.mxu1 %v21491_v15  ;;  %10773 = vmatpush1.bf16.msra.mxu1 %v10772_v0  ;;  %v21507_v0 = vld [vmem:[#allocation50_spill] sm:$0xff] }
 0x1e0   : > { %11155 = vmatprep.subr.bf16.mxu0 %v11154_v19  ;;  %10775 = vmatprep.subr.bf16.mxu1 %v10774_v32  ;;  %v21508_v19 = vld [vmem:[#allocation51_spill] sm:$0xff] }
 0x1e1   : > { %3981 = vmatmul.mubr.f32.vlgmr.msra.gmra.mrb[8].mxu0 %v21498_v47  ;;  %v11162_v32 = vpack.c.bf16 %v21508_v19, %v21507_v0  ;;  %v21510_v47 = vld [vmem:[#allocation55_spill] sm:$0xff]  ;;  %v21516_v19 = vld [vmem:[#allocation61_spill] sm:$0xff] }
 0x1e2   : > { %2511 = vmatmul.mubr.f32.gmra.mrb[10].mxu1 %v21501_v6  ;;  %3987 = vmatprep.mubr.f32.mxu0 %v14917_v1  ;;  %v10782_v15 = vpack.c.bf16 %v21510_v47, %v21509_v18  ;;  %v21513_v6 = vld [vmem:[#allocation58_spill] sm:$0xff]  ;;  %v21518_v47 = vld [vmem:[#allocation63_spill] sm:$0xff] }
 0x1e3   : > { %11157 = vmatpush1.bf16.msra.mxu0 %v11156_v20  ;;  %10777 = vmatpush1.bf16.msra.mxu1 %v10776_v24  ;;  %v21511_v20 = vld [vmem:[#allocation56_spill] sm:$0xff]  ;;  %v21512_v24 = vld [vmem:[#allocation57_spill] sm:$0xff]  ;;  %v10784_v3 = vpack.c.bf16 %v21514_v26, %v21513_v6  ;;  %v10786_v18 = vpack.c.bf16 %v21518_v47, %v21517_v59  ;;  %v21524_v26 = vld [vmem:[#allocation71_spill] sm:$0xff] }
 0x1e4   : > { %2711 = vmatprep.mubr.f32.mxu1 %v21506_v8  ;;  %11159 = vmatprep.subr.bf16.mxu0 %v11158_v17  ;;  %v11164_v1 = vpack.c.bf16 %v21512_v24, %v21511_v20  ;;  %v21515_v17 = vld [vmem:[#allocation60_spill] sm:$0xff]  ;;  %v21523_v24 = vld [vmem:[#allocation69_spill] sm:$0xff]  ;;  %v21526_v6 = vld [vmem:[#allocation74_spill] sm:$0xff] }
 0x1e5   : > { %3989 = vmatmul.mubr.f32.gmra.mrb[10].mxu0 %v14911_v60  ;;  %10779 = vmatprep.subr.bf16.mxu1 %v10778_v5  ;;  %v11166_v0 = vpack.c.bf16 %v21516_v19, %v21515_v17  ;;  %v21519_v5 = vld [vmem:[#allocation64_spill] sm:$0xff]  ;;  %v21528_v47 = vld [vmem:[#allocation77_spill] sm:$0xff] }
 0x1e6   : > { %4189 = vmatprep.mubr.f32.mxu0 %v14900_v55  ;;  %v21520_v55 = vld [vmem:[#allocation65_spill] sm:$0xff]  ;;  %v21522_v60 = vld [vmem:[#allocation68_spill] sm:$0xff] }
 0x1e7   : > { %11161 = vmatpush1.bf16.msra.mxu0 %v11160_v28  ;;  %10781 = vmatpush1.bf16.msra.mxu1 %v10780_v11  ;;  %v11168_v28 = vpack.c.bf16 %v21520_v55, %v21519_v5  ;;  %v21521_v11 = vld [vmem:[#allocation67_spill] sm:$0xff]  ;;  %v21527_v19 = vld [vmem:[#allocation76_spill] sm:$0xff]  ;;  %v21531_v55 = vld [vmem:[#allocation81_spill] sm:$0xff] }
 0x1e8   : > { %11163 = vmatprep.subr.bf16.mxu0 %v11162_v32  ;;  %10783 = vmatprep.subr.bf16.mxu1 %v10782_v15  ;;  %v10788_v63 = vpack.c.bf16 %v21522_v60, %v21521_v11  ;;  %v11170_v32 = vpack.c.bf16 %v21524_v26, %v21523_v24  ;;  %v21525_v15 = vld [vmem:[#allocation73_spill] sm:$0xff]  ;;  %v21530_v59 = vld [vmem:[#allocation80_spill] sm:$0xff]  ;;  %v21532_v60 = vld [vmem:[#allocation83_spill] sm:$0xff] }
 0x1e9   : > { %v10790_v20 = vpack.c.bf16 %v21526_v6, %v21525_v15  ;;  %v21534_v11 = vld [vmem:[#allocation86_spill] sm:$0xff]  ;;  %v21535_v26 = vld [vmem:[#allocation88_spill] sm:$0xff]  ;;  %v21536_v6 = vld [vmem:[#allocation89_spill] sm:$0xff] }
 0x1ea   : > { %v21538_v15 = vld [vmem:[#allocation92_spill] sm:$0xff] }
 0x1eb   : > { %11165 = vmatpush1.bf16.msra.mxu0 %v11164_v1  ;;  %10785 = vmatpush1.bf16.msra.mxu1 %v10784_v3  ;;  %v11172_v1 = vpack.c.bf16 %v21528_v47, %v21527_v19  ;;  %v21529_v3 = vld [vmem:[#allocation79_spill] sm:$0xff]  ;;  %v21539_v47 = vld [vmem:[#allocation93_spill] sm:$0xff] }
 0x1ec   : > { %11167 = vmatprep.subr.bf16.mxu0 %v11166_v0  ;;  %10787 = vmatprep.subr.bf16.mxu1 %v10786_v18  ;;  %v10792_v17 = vpack.c.bf16 %v21530_v59, %v21529_v3  ;;  %v11174_v0 = vpack.c.bf16 %v21532_v60, %v21531_v55  ;;  %v21533_v18 = vld [vmem:[#allocation85_spill] sm:$0xff]  ;;  %v21540_v59 = vld [vmem:[#allocation95_spill] sm:$0xff]  ;;  %v21542_v3 = vld [vmem:[#allocation98_spill] sm:$0xff] }
 0x1ed   : > { %v10794_v5 = vpack.c.bf16 %v21534_v11, %v21533_v18  ;;  %v21543_v60 = vld [vmem:[#allocation100_spill] sm:$0xff]  ;;  %v21544_v11 = vld [vmem:[#allocation101_spill] sm:$0xff] }
 0x1ee   : > { %v21546_v18 = vld [vmem:[#allocation104_spill] sm:$0xff] }
 0x1ef   : > { %11169 = vmatpush1.bf16.msra.mxu0 %v11168_v28  ;;  %10789 = vmatpush1.bf16.msra.mxu1 %v10788_v63  ;;  %v11176_v28 = vpack.c.bf16 %v21536_v6, %v21535_v26  ;;  %v21537_v63 = vld [vmem:[#allocation91_spill] sm:$0xff]  ;;  %v21547_v6 = vld [vmem:[#allocation105_spill] sm:$0xff] }
 0x1f0   : > { %11171 = vmatprep.subr.bf16.mxu0 %v11170_v32  ;;  %10791 = vmatprep.subr.bf16.mxu1 %v10790_v20  ;;  %v10796_v24 = vpack.c.bf16 %v21538_v15, %v21537_v63  ;;  %v11178_v32 = vpack.c.bf16 %v21540_v59, %v21539_v47  ;;  %v21541_v20 = vld [vmem:[#allocation97_spill] sm:$0xff]  ;;  %v21548_v15 = vld [vmem:[#allocation107_spill] sm:$0xff]  ;;  %v21550_v63 = vld [vmem:[#allocation110_spill] sm:$0xff] }
 0x1f1   : > { %v10798_v19 = vpack.c.bf16 %v21542_v3, %v21541_v20  ;;  %v21551_v59 = vld [vmem:[#allocation112_spill] sm:$0xff] }
 0x1f2   : > { %v21553_v3 = vld [vmem:[#allocation116_spill] sm:$0xff] }
 0x1f3   : > { %11173 = vmatpush1.bf16.msra.mxu0 %v11172_v1  ;;  %10793 = vmatpush1.bf16.msra.mxu1 %v10792_v17  ;;  %v11180_v1 = vpack.c.bf16 %v21544_v11, %v21543_v60  ;;  %v21545_v17 = vld [vmem:[#allocation103_spill] sm:$0xff]  ;;  %v21554_v11 = vld [vmem:[#allocation117_spill] sm:$0xff] }
 0x1f4   : > { %11175 = vmatprep.subr.bf16.mxu0 %v11174_v0  ;;  %10795 = vmatprep.subr.bf16.mxu1 %v10794_v5  ;;  %v10800_v55 = vpack.c.bf16 %v21546_v18, %v21545_v17  ;;  %v11182_v0 = vpack.c.bf16 %v21548_v15, %v21547_v6  ;;  %v21549_v5 = vld [vmem:[#allocation109_spill] sm:$0xff]  ;;  %v21555_v18 = vld [vmem:[#allocation119_spill] sm:$0xff]  ;;  %v21557_v17 = vld [vmem:[#allocation122_spill] sm:$0xff] }
 0x1f5   : > { %v10802_v26 = vpack.c.bf16 %v21550_v63, %v21549_v5  ;;  %v21558_v15 = vld [vmem:[#allocation124_spill] sm:$0xff]  ;;  %v21559_v63 = vld [vmem:[#allocation125_spill] sm:$0xff] }
 0x1f6   : > { %v21561_v5 = vld [vmem:[#allocation128_spill] sm:$0xff] }
 0x1f7   : > { %11177 = vmatpush1.bf16.msra.mxu0 %v11176_v28  ;;  %10797 = vmatpush1.bf16.msra.mxu1 %v10796_v24  ;;  %v11184_v28 = vpack.c.bf16 %v21303_v2, %v21551_v59  ;;  %v21552_v24 = vld [vmem:[#allocation115_spill] sm:$0xff]  ;;  %v21562_v2 = vld [vmem:[#allocation129_spill] sm:$0xff] }
 0x1f8   : > { %11179 = vmatprep.subr.bf16.mxu0 %v11178_v32  ;;  %10799 = vmatprep.subr.bf16.mxu1 %v10798_v19  ;;  %v10804_v20 = vpack.c.bf16 %v21553_v3, %v21552_v24  ;;  %v11186_v32 = vpack.c.bf16 %v21555_v18, %v21554_v11  ;;  %v21556_v19 = vld [vmem:[#allocation121_spill] sm:$0xff]  ;;  %v21563_v3 = vld [vmem:[#allocation131_spill] sm:$0xff]  ;;  %v21565_v24 = vld [vmem:[#allocation134_spill] sm:$0xff] }
 0x1f9   : > { %v10806_v60 = vpack.c.bf16 %v21557_v17, %v21556_v19 }
 0x1fb   : > { %11181 = vmatpush1.bf16.msra.mxu0 %v11180_v1  ;;  %10801 = vmatpush1.bf16.msra.mxu1 %v10800_v55  ;;  %v11188_v1 = vpack.c.bf16 %v21559_v63, %v21558_v15  ;;  %v21560_v55 = vld [vmem:[#allocation127_spill] sm:$0xff] }
 0x1fc   : > { %11183 = vmatprep.subr.bf16.mxu0 %v11182_v0  ;;  %10803 = vmatprep.subr.bf16.mxu1 %v10802_v26  ;;  %v10808_v6 = vpack.c.bf16 %v21561_v5, %v21560_v55  ;;  %v11190_v0 = vpack.c.bf16 %v21563_v3, %v21562_v2  ;;  %v21564_v26 = vld [vmem:[#allocation133_spill] sm:$0xff]  ;;  %v21567_v63 = vld [vmem:[#allocation139_spill] sm:$0xff] }
 0x1fd   : > { %v10810_v59 = vpack.c.bf16 %v21565_v24, %v21564_v26  ;;  %v21572_v3 = vld [vmem:[#allocation145_spill] sm:$0xff] }
 0x1fe   : > { %v21573_v2 = vpack.c.bf16 %v21429_v25, %v21572_v3  ;;  %v21588_v3 = vld [vmem:[#allocation163_spill] sm:$0xff] }
 0x1ff   : > { %11185 = vmatpush1.bf16.msra.mxu0 %v11184_v28  ;;  %10805 = vmatpush1.bf16.msra.mxu1 %v10804_v20  ;;  %v11192_v28 = vpack.c.bf16 %v21423_v34, %v21421_v10  ;;  %v21566_v20 = vld [vmem:[#allocation140_spill] sm:$0xff]  ;;  %v21580_v10 = vld [vmem:[#allocation153_spill] sm:$0xff] }
 0x200   : > { %11187 = vmatprep.subr.bf16.mxu0 %v11186_v32  ;;  %10807 = vmatprep.subr.bf16.mxu1 %v10806_v60  ;;  %v21568_v15 = vpack.c.bf16 %v21566_v20, %v21567_v63  ;;  %v21569_v32 = vld [vmem:[#allocation143_spill] sm:$0xff]  ;;  %v21570_v60 = vld [vmem:[#allocation141_spill] sm:$0xff]  ;;  %v21576_v34 = vld [vmem:[#allocation152_spill] sm:$0xff] }
 0x201   : > { %v21571_v5 = vpack.c.bf16 %v21569_v32, %v21570_v60  ;;  %v21583_v63 = vld [vmem:[#allocation157_spill] sm:$0xff] }
 0x203   : > { %11189 = vmatpush1.bf16.msra.mxu0 %v11188_v1  ;;  %10809 = vmatpush1.bf16.msra.mxu1 %v10808_v6  ;;  %v21574_v6 = vld [vmem:[#allocation148_spill] sm:$0xff] }
 0x204   : > { %11191 = vmatprep.subr.bf16.mxu0 %v11190_v0  ;;  %10811 = vmatprep.subr.bf16.mxu1 %v10810_v59  ;;  %v21575_v1 = vpack.c.bf16 %v21431_v38, %v21574_v6  ;;  %v21577_v0 = vld [vmem:[#allocation151_spill] sm:$0xff]  ;;  %v21591_v6 = vld [vmem:[#allocation165_spill] sm:$0xff] }
 0x205   : > { %v21578_v59 = vpack.c.bf16 %v21576_v34, %v21577_v0  ;;  %v21594_v0 = vld [vmem:[#allocation169_spill] sm:$0xff] }
 0x207   : > { %11193 = vmatpush1.bf16.msra.mxu0 %v11192_v28  ;;  %10813 = vmatpush1.bf16.msra.mxu1 %v21568_v15  ;;  %v21579_v28 = vld [vmem:[#allocation155_spill] sm:$0xff]  ;;  %v21582_v15 = vld [vmem:[#allocation158_spill] sm:$0xff] }
 0x208   : > { %11195 = vmatprep.subr.bf16.mxu0 %v21571_v5  ;;  %10815 = vmatprep.subr.bf16.mxu1 %v21573_v2  ;;  %v21581_v20 = vpack.c.bf16 %v21579_v28, %v21580_v10  ;;  %v21584_v32 = vpack.c.bf16 %v21582_v15, %v21583_v63  ;;  %v21585_v5 = vld [vmem:[#allocation160_spill] sm:$0xff]  ;;  %v21599_v63 = vld [vmem:[#allocation175_spill] sm:$0xff] }
 0x209   : > { %v21586_v25 = vpack.c.bf16 %v21439_v49, %v21585_v5  ;;  %v21587_v2 = vld [vmem:[#allocation164_spill] sm:$0xff] }
 0x20a   : > { %v21589_v38 = vpack.c.bf16 %v21587_v2, %v21588_v3 }
 0x20b   : > { %11197 = vmatpush1.bf16.msra.mxu0 %v21575_v1  ;;  %10817 = vmatpush1.bf16.msra.mxu1 %v21578_v59  ;;  %v21590_v1 = vld [vmem:[#allocation167_spill] sm:$0xff]  ;;  %v21593_v59 = vld [vmem:[#allocation170_spill] sm:$0xff] }
 0x20c   : > { %11199 = vmatprep.subr.bf16.mxu0 %v21581_v20  ;;  %10819 = vmatprep.subr.bf16.mxu1 %v21584_v32  ;;  %v21592_v34 = vpack.c.bf16 %v21590_v1, %v21591_v6  ;;  %v21595_v28 = vpack.c.bf16 %v21593_v59, %v21594_v0  ;;  %v21596_v20 = vld [vmem:[#allocation172_spill] sm:$0xff] }
 0x20d   : > { %v21597_v15 = vpack.c.bf16 %v21447_v39, %v21596_v20  ;;  %v21598_v32 = vld [vmem:[#allocation176_spill] sm:$0xff] }
 0x20e   : > { %v21600_v49 = vpack.c.bf16 %v21598_v32, %v21599_v63 }
 0x20f   : > { %11201 = vmatpush1.bf16.msra.mxu0 %v21586_v25  ;;  %10821 = vmatpush1.bf16.msra.mxu1 %v21589_v38  ;;  %v21601_v25 = vpack.c.bf16 %v21451_v23, %v21450_v57  ;;  %v21602_v38 = vpack.c.bf16 %v21455_v51, %v21454_v41 }
 0x210   : > { %11203 = vmatprep.subr.bf16.mxu0 %v21592_v34  ;;  %10823 = vmatprep.subr.bf16.mxu1 %v21595_v28  ;;  %v21603_v34 = vpack.c.bf16 %v21457_v31, %v21456_v58  ;;  %v21604_v28 = vpack.c.bf16 %v21459_v22, %v21458_v30 }
 0x213   : > { %11205 = vmatpush1.bf16.msra.mxu0 %v21597_v15  ;;  %10825 = vmatpush1.bf16.msra.mxu1 %v21600_v49  ;;  %v21605_v15 = vpack.c.bf16 %v21462_v61, %v21461_v14  ;;  %v21606_v49 = vld [vmem:[#allocation193_spill] sm:$0xff]  ;;  %v21612_v61 = vld [vmem:[#allocation235_spill] sm:$0xff] }
 0x214   : > { %11207 = vmatprep.subr.bf16.mxu0 %v21601_v25  ;;  %10827 = vmatprep.subr.bf16.mxu1 %v21602_v38  ;;  %v21607_v23 = vpack.c.bf16 %v14302_v27, %v21606_v49  ;;  %v21608_v25 = vpack.c.bf16 %v14308_v7, %v14306_v16  ;;  %v21609_v38 = vpack.c.bf16 %v14316_v37, %v14314_v50  ;;  %v21615_v7 = vld [vmem:[#allocation23_spill] sm:$0xff]  ;;  %v21617_v37 = vld [vmem:[#allocation24_spill] sm:$0xff] }
 0x217   : > { %11209 = vmatpush1.bf16.msra.mxu0 %v21603_v34  ;;  %10829 = vmatpush1.bf16.msra.mxu1 %v21604_v28  ;;  %v21610_v34 = vpack.c.bf16 %v14326_v29, %v14322_v43  ;;  %v21611_v28 = vld [vmem:[#allocation22_spill] sm:$0xff]  ;;  %v21619_v29 = vld [vmem:[#allocation245_spill] sm:$0xff] }
 0x218   : > { %11211 = vmatprep.subr.bf16.mxu0 %v21605_v15  ;;  %10831 = vmatprep.subr.bf16.mxu1 %v21607_v23  ;;  %v21613_v15 = vpack.c.bf16 %v21386_v4, %v14336_v21  ;;  %v21614_v23 = vld [vmem:[#allocation247_spill] sm:$0xff]  ;;  %v21622_v43 = vld [vmem:[#allocation26_spill] sm:$0xff]  ;;  %v21624_v4 = vld [vmem:[#allocation33_spill] sm:$0xff] }
 0x219   : > { %v21629_v21 = vld [vmem:[#allocation36_spill] sm:$0xff] }
 0x21b   : > { %11213 = vmatpush1.bf16.msra.mxu0 %v21608_v25  ;;  %10833 = vmatpush1.bf16.msra.mxu1 %v21609_v38  ;;  %v21616_v25 = vld [vmem:[#allocation21_spill] sm:$0xff]  ;;  %v21618_v38 = vld [vmem:[#allocation242_spill] sm:$0xff] }
 0x21c   : > { %11215 = vmatprep.subr.bf16.mxu0 %v21610_v34  ;;  %10835 = vmatprep.subr.bf16.mxu1 %v21611_v28  ;;  %v21620_v34 = vld [vmem:[#allocation252_spill] sm:$0xff]  ;;  %v21621_v28 = vld [vmem:[#allocation25_spill] sm:$0xff] }
 0x21e   : > { %2714 = vmatmul.mubr.f32.vlgmr.msra.gmra.mrb[8].mxu1 %v21612_v61 }
 0x21f   : > { %11217 = vmatpush1.bf16.msra.mxu0 %v21613_v15  ;;  %2721 = vmatprep.mubr.f32.mxu1 %v21614_v23  ;;  %v21623_v15 = vand.u32 4294901760, %v21506_v8  ;;  %v21633_v8 = vld [vmem:[#allocation40_spill] sm:$0xff] }
 0x220   : > { %10837 = vmatpush1.bf16.msra.mxu1 %v21615_v7  ;;  %11219 = vmatprep.subr.bf16.mxu0 %v21616_v25  ;;  %v21625_v7 = vld [vmem:[#allocation34_spill] sm:$0xff]  ;;  %v21626_v25 = vld [vmem:[#allocation251_spill] sm:$0xff] }
 0x221   : > { %10839 = vmatprep.subr.bf16.mxu1 %v21617_v37  ;;  %v21627_v37 = vld [vmem:[#allocation35_spill] sm:$0xff] }
 0x222   : > { %4192 = vmatmul.mubr.f32.vlgmr.msra.gmra.mrb[8].mxu0 %v21618_v38  ;;  %2724 = vmatmul.mubr.f32.gmra.mrb[10].mxu1 %v21619_v29  ;;  %v21628_v38 = vld [vmem:[#allocation250_spill] sm:$0xff] }
 0x223   : > { %4199 = vmatprep.mubr.f32.mxu0 %v21620_v34  ;;  %11221 = vmatpush1.bf16.msra.mxu0 %v21621_v28  ;;  %v21630_v34 = vld [vmem:[#allocation37_spill] sm:$0xff]  ;;  %v21631_v28 = vld [vmem:[#allocation38_spill] sm:$0xff] }
 0x224   : > { %10841 = vmatpush1.bf16.msra.mxu1 %v21622_v43  ;;  %2861 = vmatprep.mubr.f32.mxu1 %v21623_v15  ;;  %v21632_v43 = vld [vmem:[#allocation39_spill] sm:$0xff]  ;;  %v21634_v15 = vld [vmem:[#allocation41_spill] sm:$0xff] }
 0x225   : > { %11223 = vmatprep.subr.bf16.mxu0 %v21624_v4  ;;  %10843 = vmatprep.subr.bf16.mxu1 %v21625_v7  ;;  %v21635_v4 = vld [vmem:[#allocation52_spill] sm:$0xff]  ;;  %v21636_v7 = vld [vmem:[#allocation53_spill] sm:$0xff] }
 0x226   : > { %4202 = vmatmul.mubr.f32.gmra.mrb[10].mxu0 %v21626_v25  ;;  %v21637_v25 = vld [vmem:[#allocation66_spill] sm:$0xff] }
 0x227   : > { %11225 = vmatpush1.bf16.msra.mxu0 %v21627_v37  ;;  %4339 = vmatprep.mubr.f32.mxu0 %v21628_v38  ;;  %v21638_v37 = vld [vmem:[#allocation70_spill] sm:$0xff]  ;;  %v21639_v38 = vld [vmem:[#allocation72_spill] sm:$0xff] }
 0x228   : > { %10845 = vmatpush1.bf16.msra.mxu1 %v21629_v21  ;;  %11227 = vmatprep.subr.bf16.mxu0 %v21630_v34  ;;  %v21640_v21 = vld [vmem:[#allocation75_spill] sm:$0xff]  ;;  %v21641_v34 = vld [vmem:[#allocation78_spill] sm:$0xff] }
 0x229   : > { %10847 = vmatprep.subr.bf16.mxu1 %v21631_v28  ;;  %v21642_v28 = vld [vmem:[#allocation82_spill] sm:$0xff] }
 0x22b   : > { %11229 = vmatpush1.bf16.msra.mxu0 %v21632_v43  ;;  %v21643_v43 = vld [vmem:[#allocation84_spill] sm:$0xff] }
 0x22c   : > { %10849 = vmatpush1.bf16.msra.mxu1 %v21633_v8  ;;  %11231 = vmatprep.subr.bf16.mxu0 %v21634_v15  ;;  %v21644_v8 = vld [vmem:[#allocation87_spill] sm:$0xff]  ;;  %v21645_v15 = vld [vmem:[#allocation90_spill] sm:$0xff] }
 0x22d   : > { %10851 = vmatprep.subr.bf16.mxu1 %v21635_v4  ;;  %v21646_v4 = vld [vmem:[#allocation94_spill] sm:$0xff] }
 0x22f   : > { %11233 = vmatpush1.bf16.msra.mxu0 %v21636_v7  ;;  %v21647_v7 = vld [vmem:[#allocation96_spill] sm:$0xff] }
 0x230   : > { %10853 = vmatpush1.bf16.msra.mxu1 %v21637_v25  ;;  %11235 = vmatprep.subr.bf16.mxu0 %v21638_v37  ;;  %v21648_v25 = vld [vmem:[#allocation99_spill] sm:$0xff]  ;;  %v21649_v37 = vld [vmem:[#allocation102_spill] sm:$0xff] }
 0x231   : > { %10855 = vmatprep.subr.bf16.mxu1 %v21639_v38  ;;  %v21650_v38 = vld [vmem:[#allocation106_spill] sm:$0xff] }
 0x233   : > { %11237 = vmatpush1.bf16.msra.mxu0 %v21640_v21  ;;  %v21651_v21 = vld [vmem:[#allocation108_spill] sm:$0xff] }
 0x234   : > { %10857 = vmatpush1.bf16.msra.mxu1 %v21641_v34  ;;  %11239 = vmatprep.subr.bf16.mxu0 %v21642_v28  ;;  %v21652_v34 = vld [vmem:[#allocation111_spill] sm:$0xff]  ;;  %v21653_v28 = vld [vmem:[#allocation114_spill] sm:$0xff] }
 0x235   : > { %10859 = vmatprep.subr.bf16.mxu1 %v21643_v43  ;;  %v21654_v43 = vld [vmem:[#allocation118_spill] sm:$0xff] }
 0x237   : > { %11241 = vmatpush1.bf16.msra.mxu0 %v21644_v8  ;;  %v21655_v8 = vld [vmem:[#allocation120_spill] sm:$0xff] }
 0x238   : > { %10861 = vmatpush1.bf16.msra.mxu1 %v21645_v15  ;;  %11243 = vmatprep.subr.bf16.mxu0 %v21646_v4  ;;  %v21656_v15 = vld [vmem:[#allocation123_spill] sm:$0xff]  ;;  %v21657_v4 = vld [vmem:[#allocation126_spill] sm:$0xff] }
 0x239   : > { %10863 = vmatprep.subr.bf16.mxu1 %v21647_v7  ;;  %v21658_v7 = vld [vmem:[#allocation130_spill] sm:$0xff] }
 0x23b   : > { %11245 = vmatpush1.bf16.msra.mxu0 %v21648_v25  ;;  %v21659_v25 = vld [vmem:[#allocation132_spill] sm:$0xff] }
 0x23c   : > { %10865 = vmatpush1.bf16.msra.mxu1 %v21649_v37  ;;  %11247 = vmatprep.subr.bf16.mxu0 %v21650_v38  ;;  %v21660_v37 = vld [vmem:[#allocation135_spill] sm:$0xff]  ;;  %v21661_v38 = vld [vmem:[#allocation138_spill] sm:$0xff] }
 0x23d   : > { %10867 = vmatprep.subr.bf16.mxu1 %v21651_v21  ;;  %v21662_v21 = vld [vmem:[#allocation142_spill] sm:$0xff] }
 0x23f   : > { %11249 = vmatpush1.bf16.msra.mxu0 %v21652_v34  ;;  %v21663_v34 = vld [vmem:[#allocation144_spill] sm:$0xff] }
 0x240   : > { %10869 = vmatpush1.bf16.msra.mxu1 %v21653_v28  ;;  %11251 = vmatprep.subr.bf16.mxu0 %v21654_v43  ;;  %v21664_v28 = vld [vmem:[#allocation147_spill] sm:$0xff]  ;;  %v21665_v43 = vld [vmem:[#allocation150_spill] sm:$0xff] }
 0x241   : > { %10871 = vmatprep.subr.bf16.mxu1 %v21655_v8  ;;  %v21666_v8 = vld [vmem:[#allocation154_spill] sm:$0xff] }
 0x243   : > { %11253 = vmatpush1.bf16.msra.mxu0 %v21656_v15  ;;  %v21667_v15 = vld [vmem:[#allocation156_spill] sm:$0xff] }
 0x244   : > { %10873 = vmatpush1.bf16.msra.mxu1 %v21657_v4  ;;  %11255 = vmatprep.subr.bf16.mxu0 %v21658_v7  ;;  %v21668_v4 = vld [vmem:[#allocation159_spill] sm:$0xff]  ;;  %v21669_v7 = vld [vmem:[#allocation162_spill] sm:$0xff] }
 0x245   : > { %10875 = vmatprep.subr.bf16.mxu1 %v21659_v25  ;;  %v21670_v25 = vld [vmem:[#allocation166_spill] sm:$0xff] }
 0x247   : > { %11257 = vmatpush1.bf16.msra.mxu0 %v21660_v37  ;;  %v21671_v37 = vld [vmem:[#allocation168_spill] sm:$0xff] }
 0x248   : > { %10877 = vmatpush1.bf16.msra.mxu1 %v21661_v38  ;;  %11259 = vmatprep.subr.bf16.mxu0 %v21662_v21  ;;  %v21672_v38 = vld [vmem:[#allocation171_spill] sm:$0xff]  ;;  %v21673_v21 = vld [vmem:[#allocation174_spill] sm:$0xff] }
 0x249   : > { %10879 = vmatprep.subr.bf16.mxu1 %v21663_v34  ;;  %v21674_v34 = vld [vmem:[#allocation178_spill] sm:$0xff] }
 0x24b   : > { %11261 = vmatpush1.bf16.msra.mxu0 %v21664_v28  ;;  %v21675_v28 = vld [vmem:[#allocation180_spill] sm:$0xff] }
 0x24c   : > { %10881 = vmatpush1.bf16.msra.mxu1 %v21665_v43  ;;  %11263 = vmatprep.subr.bf16.mxu0 %v21666_v8  ;;  %v21676_v43 = vld [vmem:[#allocation183_spill] sm:$0xff]  ;;  %v21677_v8 = vld [vmem:[#allocation186_spill] sm:$0xff] }
 0x24d   : > { %10883 = vmatprep.subr.bf16.mxu1 %v21667_v15  ;;  %v21678_v15 = vld [vmem:[#allocation190_spill] sm:$0xff] }
 0x24f   : > { %11265 = vmatpush1.bf16.msra.mxu0 %v21668_v4  ;;  %v21679_v4 = vld [vmem:[#allocation192_spill] sm:$0xff] }
 0x250   : > { %10885 = vmatpush1.bf16.msra.mxu1 %v21669_v7  ;;  %11267 = vmatprep.subr.bf16.mxu0 %v21670_v25  ;;  %v21680_v25 = vand.u32 4294901760, %v21482_v56 }
 0x251   : > { %10887 = vmatprep.subr.bf16.mxu1 %v21671_v37  ;;  %v21681_v37 = vand.u32 4294901760, %v21483_v35  ;;  %v21689_v35 = vand.u32 4294901760, %v21488_v45 }
 0x253   : > { %11269 = vmatpush1.bf16.msra.mxu0 %v21672_v38  ;;  %v10898_v7 = vpack.c.bf16 %v21681_v37, %v21680_v25  ;;  %v21682_v38 = vld [vmem:[#allocation194_spill] sm:$0xff]  ;;  %v21690_v37 = vand.u32 4294901760, %v21489_v46 }
 0x254   : > { %10889 = vmatpush1.bf16.msra.mxu1 %v21673_v21  ;;  %11271 = vmatprep.subr.bf16.mxu0 %v21674_v34  ;;  %v21683_v21 = vld [vmem:[#allocation196_spill] sm:$0xff]  ;;  %v21684_v34 = vld [vmem:[#allocation199_spill] sm:$0xff]  ;;  %v21700_v46 = vld [vmem:[#allocation246_spill] sm:$0xff] }
 0x255   : > { %10891 = vmatprep.subr.bf16.mxu1 %v21675_v28  ;;  %v21685_v28 = vand.u32 4294901760, %v21484_v13  ;;  %v10902_v25 = vpack.c.bf16 %v21690_v37, %v21689_v35  ;;  %v21693_v13 = vand.u32 4294901760, %v21614_v23  ;;  %v21703_v23 = vand.u32 4294901760, %v21619_v29  ;;  %v21710_v35 = vld [vmem:[#allocation49_spill] sm:$0xff] }
 0x256   : > { %v21711_v37 = vand.u32 4294901760, %v21710_v35 }
 0x257   : > { %11273 = vmatpush1.bf16.msra.mxu0 %v21676_v43  ;;  %v21686_v43 = vand.u32 4294901760, %v21485_v33 }
 0x258   : > { %10893 = vmatpush1.bf16.msra.mxu1 %v21677_v8  ;;  %11275 = vmatprep.subr.bf16.mxu0 %v21678_v15  ;;  %v21687_v15 = vand.u32 4294901760, %v21486_v44  ;;  %v21697_v44 = vand.u32 4294901760, %v21495_v36  ;;  %v21705_v36 = vand.u32 4294901760, %v21502_v40 }
 0x259   : > { %10895 = vmatprep.subr.bf16.mxu1 %v21679_v4  ;;  %v10900_v8 = vpack.c.bf16 %v21686_v43, %v21685_v28  ;;  %v21688_v4 = vand.u32 4294901760, %v21487_v62  ;;  %v21695_v43 = vand.u32 4294901760, %v21493_v12  ;;  %v21701_v28 = vand.u32 4294901760, %v21499_v9 }
 0x25b   : > { %11277 = vmatpush1.bf16.msra.mxu0 %v21682_v38  ;;  %v11282_v56 = vpack.c.bf16 %v21688_v4, %v21687_v15  ;;  %v21696_v4 = vand.u32 4294901760, %v21494_v54  ;;  %v21704_v54 = vld [vmem:[#allocation256_spill] sm:$0xff] }
 0x25c   : > { %10897 = vmatpush1.bf16.msra.mxu1 %v21683_v21  ;;  %11279 = vmatprep.subr.bf16.mxu0 %v21684_v34  ;;  %v21691_v21 = vand.u32 4294901760, %v21612_v61  ;;  %v21692_v34 = vld [vmem:[#allocation201_spill] sm:$0xff]  ;;  %v21699_v61 = vand.u32 4294901760, %v21497_v52  ;;  %v21708_v15 = vld [vmem:[#allocation48_spill] sm:$0xff] }
 0x25d   : > { %10899 = vmatprep.subr.bf16.mxu1 %v10898_v7  ;;  %v21694_v7 = vand.u32 4294901760, %v21492_v53  ;;  %v10904_v62 = vpack.c.bf16 %v21697_v44, %v21696_v4  ;;  %v21702_v53 = vand.u32 4294901760, %v21500_v42  ;;  %v21713_v42 = vld [vmem:[#allocation50_spill] sm:$0xff]  ;;  %v21719_v44 = vld [vmem:[#allocation55_spill] sm:$0xff] }
 0x25e   : > { %v21714_v29 = vand.u32 4294901760, %v21713_v42  ;;  %v21720_v40 = vand.u32 4294901760, %v21719_v44  ;;  %v21739_v44 = vld [vmem:[#allocation64_spill] sm:$0xff] }
 0x25f   : > { %2865 = vmatmul.mubr.f32.vlgmr.msra.gmra.mrb[8].mxu1 %v21691_v21  ;;  %11281 = vmatpush1.bf16.msra.mxu0 %v21692_v34  ;;  %v11284_v33 = vpack.c.bf16 %v21695_v43, %v21694_v7  ;;  %v21698_v21 = vand.u32 4294901760, %v21496_v48  ;;  %v10906_v12 = vpack.c.bf16 %v21702_v53, %v21701_v28  ;;  %v21706_v48 = vld [vmem:[#allocation47_spill] sm:$0xff]  ;;  %v21723_v28 = vld [vmem:[#allocation56_spill] sm:$0xff] }
 0x260   : > { %2873 = vmatprep.mubr.f32.mxu1 %v21693_v13  ;;  %10901 = vmatpush1.bf16.msra.mxu1 %v10900_v8  ;;  %v21707_v8 = vand.u32 4294901760, %v21706_v48  ;;  %v21715_v13 = vld [vmem:[#allocation51_spill] sm:$0xff]  ;;  %v21724_v53 = vand.u32 4294901760, %v21723_v28  ;;  %v21727_v48 = vld [vmem:[#allocation58_spill] sm:$0xff]  ;;  %v21741_v28 = vld [vmem:[#allocation65_spill] sm:$0xff] }
 0x261   : > { %11283 = vmatprep.subr.bf16.mxu0 %v11282_v56  ;;  %10903 = vmatprep.subr.bf16.mxu1 %v10902_v25  ;;  %v11286_v45 = vpack.c.bf16 %v21699_v61, %v21698_v21  ;;  %v21709_v56 = vand.u32 4294901760, %v21708_v15  ;;  %v21712_v25 = vld [vmem:[#allocation233_spill] sm:$0xff]  ;;  %v21716_v7 = vand.u32 4294901760, %v21715_v13  ;;  %v21721_v21 = vld [vmem:[#allocation254_spill] sm:$0xff]  ;;  %v21722_v61 = vld [vmem:[#allocation239_spill] sm:$0xff] }
 0x262   : > { %4343 = vmatmul.mubr.f32.vlgmr.msra.gmra.mrb[8].mxu0 %v21700_v46  ;;  %v11288_v52 = vpack.c.bf16 %v21707_v8, %v21705_v36  ;;  %v21728_v8 = vand.u32 4294901760, %v21727_v48  ;;  %v21729_v15 = vld [vmem:[#allocation59_spill] sm:$0xff] }
 0x263   : > { %2877 = vmatmul.mubr.f32.gmra.mrb[10].mxu1 %v21703_v23  ;;  %4351 = vmatprep.mubr.f32.mxu0 %v21704_v54  ;;  %v10908_v9 = vpack.c.bf16 %v21711_v37, %v21709_v56  ;;  %v11290_v43 = vpack.c.bf16 %v21716_v7, %v21714_v29  ;;  %v21730_v56 = vand.u32 4294901760, %v21729_v15  ;;  %v21731_v37 = vld [vmem:[#allocation60_spill] sm:$0xff]  ;;  %v21733_v29 = vld [vmem:[#allocation61_spill] sm:$0xff]  ;;  %v21735_v7 = vld [vmem:[#allocation62_spill] sm:$0xff] }
 0x264   : > { %11285 = vmatpush1.bf16.msra.mxu0 %v11284_v33  ;;  %10905 = vmatpush1.bf16.msra.mxu1 %v10904_v62  ;;  %v21717_v33 = vld [vmem:[#allocation54_spill] sm:$0xff]  ;;  %v21732_v42 = vand.u32 4294901760, %v21731_v37  ;;  %v21747_v15 = vld [vmem:[#allocation69_spill] sm:$0xff]  ;;  %v21749_v37 = vld [vmem:[#allocation71_spill] sm:$0xff] }
 0x265   : > { %3140 = vmatprep.mubr.f32.mxu1 %v21712_v25  ;;  %11287 = vmatprep.subr.bf16.mxu0 %v11286_v45  ;;  %v21718_v4 = vand.u32 4294901760, %v21717_v33  ;;  %v21725_v45 = vld [vmem:[#allocation57_spill] sm:$0xff]  ;;  %v10912_v35 = vpack.c.bf16 %v21730_v56, %v21728_v8  ;;  %v21748_v56 = vand.u32 4294901760, %v21747_v15  ;;  %v21765_v15 = vld [vmem:[#allocation83_spill] sm:$0xff] }
 0x266   : > { %4355 = vmatmul.mubr.f32.gmra.mrb[10].mxu0 %v21721_v21  ;;  %10907 = vmatprep.subr.bf16.mxu1 %v10906_v12  ;;  %v21726_v23 = vand.u32 4294901760, %v21725_v45  ;;  %v21734_v12 = vand.u32 4294901760, %v21733_v29  ;;  %v3312_v21 = vld [vmem:[#allocation5 + $0x88] sm:$0xff]  ;;  %v3307_v54 = vld [vmem:[#allocation5 + $0x20] sm:$0xff] }
 0x267   : > { %v10910_v62 = vpack.c.bf16 %v21720_v40, %v21718_v4  ;;  %4618 = vmatprep.mubr.f32.mxu0 %v21722_v61  ;;  %v21740_v40 = vand.u32 4294901760, %v21739_v44  ;;  %v21757_v44 = vld [vmem:[#allocation77_spill] sm:$0xff] }
 0x268   : > { %11289 = vmatpush1.bf16.msra.mxu0 %v11288_v52  ;;  %10909 = vmatpush1.bf16.msra.mxu1 %v10908_v9  ;;  %v11292_v36 = vpack.c.bf16 %v21726_v23, %v21724_v53  ;;  %v11294_v13 = vpack.c.bf16 %v21734_v12, %v21732_v42  ;;  %v21736_v52 = vand.u32 4294901760, %v21735_v7  ;;  %v21737_v9 = vld [vmem:[#allocation63_spill] sm:$0xff]  ;;  %v21742_v53 = vand.u32 4294901760, %v21741_v28  ;;  %v21751_v12 = vld [vmem:[#allocation73_spill] sm:$0xff] }
 0x269   : > { %11291 = vmatprep.subr.bf16.mxu0 %v11290_v43  ;;  %10911 = vmatprep.subr.bf16.mxu1 %v10910_v62  ;;  %v21738_v33 = vand.u32 4294901760, %v21737_v9  ;;  %v21743_v23 = vld [vmem:[#allocation67_spill] sm:$0xff]  ;;  %v21745_v62 = vld [vmem:[#allocation68_spill] sm:$0xff]  ;;  %v21750_v42 = vand.u32 4294901760, %v21749_v37 }
 0x26a   : > { %v11296_v45 = vpack.c.bf16 %v21742_v53, %v21740_v40  ;;  %v21744_v43 = vand.u32 4294901760, %v21743_v23  ;;  %v21746_v48 = vand.u32 4294901760, %v21745_v62  ;;  %v21755_v9 = vld [vmem:[#allocation76_spill] sm:$0xff]  ;;  %v21758_v40 = vand.u32 4294901760, %v21757_v44  ;;  %v21759_v53 = vld [vmem:[#allocation79_spill] sm:$0xff]  ;;  %v21763_v62 = vld [vmem:[#allocation81_spill] sm:$0xff] }
 0x26b   : > { %v10914_v4 = vpack.c.bf16 %v21738_v33, %v21736_v52  ;;  %v11298_v29 = vpack.c.bf16 %v21750_v42, %v21748_v56  ;;  %v21756_v33 = vand.u32 4294901760, %v21755_v9  ;;  %v21766_v56 = vand.u32 4294901760, %v21765_v15  ;;  %v21767_v42 = vld [vmem:[#allocation85_spill] sm:$0xff] }
 0x26c   : > { %11293 = vmatpush1.bf16.msra.mxu0 %v11292_v36  ;;  %10913 = vmatpush1.bf16.msra.mxu1 %v10912_v35  ;;  %v10916_v8 = vpack.c.bf16 %v21746_v48, %v21744_v43  ;;  %v21752_v36 = vand.u32 4294901760, %v21751_v12  ;;  %v21753_v35 = vld [vmem:[#allocation74_spill] sm:$0xff]  ;;  %v21764_v48 = vand.u32 4294901760, %v21763_v62  ;;  %v21773_v9 = vld [vmem:[#allocation89_spill] sm:$0xff] }
 0x26d   : > { %11295 = vmatprep.subr.bf16.mxu0 %v11294_v13  ;;  %10915 = vmatprep.subr.bf16.mxu1 %v10914_v4  ;;  %v21754_v7 = vand.u32 4294901760, %v21753_v35  ;;  %v11300_v28 = vpack.c.bf16 %v21758_v40, %v21756_v33  ;;  %v21760_v13 = vand.u32 4294901760, %v21759_v53  ;;  %v21761_v4 = vld [vmem:[#allocation80_spill] sm:$0xff]  ;;  %v21774_v33 = vand.u32 4294901760, %v21773_v9  ;;  %v21775_v40 = vld [vmem:[#allocation91_spill] sm:$0xff]  ;;  %v21782_v15 = vld [vmem:[#allocation97_spill] sm:$0xff] }
 0x26e   : > { %v21762_v23 = vand.u32 4294901760, %v21761_v4  ;;  %v11302_v37 = vpack.c.bf16 %v21766_v56, %v21764_v48  ;;  %v21771_v35 = vld [vmem:[#allocation88_spill] sm:$0xff]  ;;  %v21779_v4 = vand.u32 4294901760, %v21539_v47  ;;  %v21790_v9 = vld [vmem:[#allocation103_spill] sm:$0xff] }
 0x26f   : > { %v10918_v52 = vpack.c.bf16 %v21754_v7, %v21752_v36  ;;  %v21772_v7 = vand.u32 4294901760, %v21771_v35 }
 0x270   : > { %11297 = vmatpush1.bf16.msra.mxu0 %v11296_v45  ;;  %10917 = vmatpush1.bf16.msra.mxu1 %v10916_v8  ;;  %v10920_v43 = vpack.c.bf16 %v21762_v23, %v21760_v13  ;;  %v21768_v45 = vand.u32 4294901760, %v21767_v42  ;;  %v21769_v8 = vld [vmem:[#allocation86_spill] sm:$0xff]  ;;  %v21780_v23 = vld [vmem:[#allocation95_spill] sm:$0xff] }
 0x271   : > { %11299 = vmatprep.subr.bf16.mxu0 %v11298_v29  ;;  %10919 = vmatprep.subr.bf16.mxu1 %v10918_v52  ;;  %v21770_v12 = vand.u32 4294901760, %v21769_v8  ;;  %v11304_v44 = vpack.c.bf16 %v21774_v33, %v21772_v7  ;;  %v21776_v29 = vand.u32 4294901760, %v21775_v40  ;;  %v21777_v52 = vld [vmem:[#allocation92_spill] sm:$0xff]  ;;  %v21781_v62 = vand.u32 4294901760, %v21780_v23  ;;  %v21794_v40 = vld [vmem:[#allocation105_spill] sm:$0xff] }
 0x272   : > { %v21778_v53 = vand.u32 4294901760, %v21777_v52  ;;  %v21796_v52 = vld [vmem:[#allocation107_spill] sm:$0xff]  ;;  %v21798_v23 = vld [vmem:[#allocation109_spill] sm:$0xff] }
 0x273   : > { %v10922_v36 = vpack.c.bf16 %v21770_v12, %v21768_v45  ;;  %v11306_v48 = vpack.c.bf16 %v21781_v62, %v21779_v4  ;;  %v21786_v45 = vld [vmem:[#allocation100_spill] sm:$0xff]  ;;  %v21788_v12 = vld [vmem:[#allocation101_spill] sm:$0xff] }
 0x274   : > { %11301 = vmatpush1.bf16.msra.mxu0 %v11300_v28  ;;  %10921 = vmatpush1.bf16.msra.mxu1 %v10920_v43  ;;  %v10924_v13 = vpack.c.bf16 %v21778_v53, %v21776_v29  ;;  %v21783_v28 = vand.u32 4294901760, %v21782_v15  ;;  %v21784_v43 = vld [vmem:[#allocation98_spill] sm:$0xff]  ;;  %v21787_v8 = vand.u32 4294901760, %v21786_v45  ;;  %v21789_v35 = vand.u32 4294901760, %v21788_v12 }
 0x275   : > { %11303 = vmatprep.subr.bf16.mxu0 %v11302_v37  ;;  %10923 = vmatprep.subr.bf16.mxu1 %v10922_v36  ;;  %v21785_v56 = vand.u32 4294901760, %v21784_v43  ;;  %v21791_v37 = vand.u32 4294901760, %v21790_v9  ;;  %v21792_v36 = vld [vmem:[#allocation104_spill] sm:$0xff]  ;;  %v21795_v29 = vand.u32 4294901760, %v21794_v40  ;;  %v21797_v53 = vand.u32 4294901760, %v21796_v52  ;;  %v21814_v40 = vld [vmem:[#allocation115_spill] sm:$0xff] }
 0x276   : > { %v11308_v7 = vpack.c.bf16 %v21789_v35, %v21787_v8  ;;  %v21793_v33 = vand.u32 4294901760, %v21792_v36  ;;  %v21806_v8 = vld [vmem:[#allocation211_spill] sm:$0xff]  ;;  %v21810_v35 = vld [vmem:[#allocation112_spill] sm:$0xff] }
 0x277   : > { %v10926_v42 = vpack.c.bf16 %v21785_v56, %v21783_v28  ;;  %v11310_v4 = vpack.c.bf16 %v21797_v53, %v21795_v29  ;;  %v21802_v28 = vld [vmem:[#allocation209_spill] sm:$0xff]  ;;  %v21804_v56 = vld [vmem:[#allocation210_spill] sm:$0xff]  ;;  %v15605_v12 = vand.u32 4294901760, %v21806_v8  ;;  %v21811_v9 = vand.u32 4294901760, %v21810_v35  ;;  %v21816_v52 = vld [vmem:[#allocation116_spill] sm:$0xff] }
 0x278   : > { %11305 = vmatpush1.bf16.msra.mxu0 %v11304_v44  ;;  %10925 = vmatpush1.bf16.msra.mxu1 %v10924_v13  ;;  %v10928_v47 = vpack.c.bf16 %v21793_v33, %v21791_v37  ;;  %v21799_v44 = vand.u32 4294901760, %v21798_v23  ;;  %v21800_v13 = vld [vmem:[#allocation110_spill] sm:$0xff]  ;;  %v15599_v43 = vand.u32 4294901760, %v21802_v28  ;;  %v15602_v45 = vand.u32 4294901760, %v21804_v56  ;;  %v21812_v37 = vld [vmem:[#allocation113_spill] sm:$0xff] }
 0x279   : > { %11307 = vmatprep.subr.bf16.mxu0 %v11306_v48  ;;  %10927 = vmatprep.subr.bf16.mxu1 %v10926_v42  ;;  %v21801_v62 = vand.u32 4294901760, %v21800_v13  ;;  %21807 = vst [vmem:[#allocation206_spill] sm:$0xff] %v15605_v12  ;;  %v21808_v48 = vld [vmem:[#allocation212_spill] sm:$0xff]  ;;  %v21813_v36 = vand.u32 4294901760, %v21812_v37  ;;  %v21815_v29 = vand.u32 4294901760, %v21814_v40  ;;  %v21817_v53 = vand.u32 4294901760, %v21816_v52 }
 0x27a   : > { %21803 = vst [vmem:[#allocation204_spill] sm:$0xff] %v15599_v43  ;;  %21805 = vst [vmem:[#allocation205_spill] sm:$0xff] %v15602_v45  ;;  %v15608_v42 = vand.u32 4294901760, %v21808_v48  ;;  %v21819_v13 = vand.u32 4294901760, %v21555_v18  ;;  %v15632_v37 = vsub.f32 %v21804_v56, %v15602_v45  ;;  %v21826_v18 = vld [vmem:[#allocation124_spill] sm:$0xff] }
 0x27b   : > { %v10930_v15 = vpack.c.bf16 %v21801_v62, %v21799_v44  ;;  %v11312_v33 = vpack.c.bf16 %v21813_v36, %v21811_v9  ;;  %v10932_v23 = vpack.c.bf16 %v21817_v53, %v21815_v29  ;;  %v21818_v44 = vand.u32 4294901760, %v21554_v11  ;;  %v21831_v40 = vld [vmem:[#allocation128_spill] sm:$0xff]  ;;  %v21835_v53 = vld [vmem:[#allocation131_spill] sm:$0xff] }
 0x27c   : > { %21809 = vst [vmem:[#allocation207_spill] sm:$0xff] %v15608_v42  ;;  %11309 = vmatpush1.bf16.msra.mxu0 %v11308_v7  ;;  %10929 = vmatpush1.bf16.msra.mxu1 %v10928_v47  ;;  %v21820_v7 = vand.u32 4294901760, %v21556_v19  ;;  %v21821_v47 = vand.u32 4294901760, %v21557_v17  ;;  %v15628_v9 = vsub.f32 %v21802_v28, %v15599_v43  ;;  %21823 = vst [vmem:[#allocation213_spill] sm:$0xff] %v15632_v37  ;;  %v21827_v17 = vand.u32 4294901760, %v21826_v18  ;;  %v21828_v19 = vld [vmem:[#allocation125_spill] sm:$0xff] }
 0x27d   : > { %11311 = vmatprep.subr.bf16.mxu0 %v11310_v4  ;;  %10931 = vmatprep.subr.bf16.mxu1 %v10930_v15  ;;  %v11314_v62 = vpack.c.bf16 %v21819_v13, %v21818_v44  ;;  %v15636_v4 = vsub.f32 %v21806_v8, %v15605_v12  ;;  %v15640_v11 = vsub.f32 %v21808_v48, %v15608_v42  ;;  %v21829_v15 = vand.u32 4294901760, %v21828_v19  ;;  %v21833_v8 = vld [vmem:[#allocation129_spill] sm:$0xff]  ;;  %v21847_v19 = vld [vmem:[#allocation139_spill] sm:$0xff]  ;;  %v3324_v12 = vld [vmem:[#allocation5 + $0x1a8] sm:$0xff] }
 0x27e   : > { %v10934_v35 = vpack.c.bf16 %v21821_v47, %v21820_v7  ;;  %21822 = vst [vmem:[#allocation208_spill] sm:$0xff] %v15628_v9  ;;  %v21830_v36 = vand.u32 4294901760, %v21560_v55  ;;  %v21832_v56 = vand.u32 4294901760, %v21831_v40  ;;  %v21834_v52 = vand.u32 4294901760, %v21833_v8  ;;  %v3328_v42 = vld [vmem:[#allocation5 + $0x208] sm:$0xff] }
 0x27f   : > { %21824 = vst [vmem:[#allocation214_spill] sm:$0xff] %v15636_v4  ;;  %21825 = vst [vmem:[#allocation173_spill] sm:$0xff] %v15640_v11  ;;  %v11316_v28 = vpack.c.bf16 %v21829_v15, %v21827_v17  ;;  %v21836_v44 = vand.u32 4294901760, %v21835_v53  ;;  %v15659_v7 = vand.u32 4294901760, %v15628_v9  ;;  %v15662_v55 = vand.u32 4294901760, %v15632_v37  ;;  %v6172_v9 = vld [vmem:[#allocation5 + $0x278] sm:$0xff] }
 0x280   : > { %11313 = vmatpush1.bf16.msra.mxu0 %v11312_v33  ;;  %10933 = vmatpush1.bf16.msra.mxu1 %v10932_v23  ;;  %v10936_v29 = vpack.c.bf16 %v21832_v56, %v21830_v36  ;;  %v21837_v33 = vand.u32 4294901760, %v21564_v26  ;;  %v21838_v23 = vand.u32 4294901760, %v21565_v24  ;;  %v15665_v47 = vand.u32 4294901760, %v15640_v11  ;;  %v21845_v26 = vld [vmem:[#allocation137_spill] sm:$0xff]  ;;  %v21849_v36 = vld [vmem:[#allocation140_spill] sm:$0xff] }
 0x281   : > { %11315 = vmatprep.subr.bf16.mxu0 %v11314_v62  ;;  %10935 = vmatprep.subr.bf16.mxu1 %v10934_v35  ;;  %v11318_v48 = vpack.c.bf16 %v21836_v44, %v21834_v52  ;;  %21839 = vst [vmem:[#allocation177_spill] sm:$0xff] %v15659_v7  ;;  %21840 = vst [vmem:[#allocation215_spill] sm:$0xff] %v15662_v55  ;;  %v15668_v62 = vand.u32 4294901760, %v15636_v4  ;;  %v21843_v35 = vld [vmem:[#allocation136_spill] sm:$0xff]  ;;  %v21846_v17 = vand.u32 4294901760, %v21845_v26  ;;  %v21848_v15 = vand.u32 4294901760, %v21847_v19 }
 0x282   : > { %v10938_v13 = vpack.c.bf16 %v21838_v23, %v21837_v33  ;;  %21841 = vst [vmem:[#allocation216_spill] sm:$0xff] %v15665_v47  ;;  %v21844_v18 = vand.u32 4294901760, %v21843_v35  ;;  %v21850_v40 = vand.u32 4294901760, %v21849_v36  ;;  %v21851_v8 = vand.u32 4294901760, %v21570_v60  ;;  %v21852_v52 = vld [vmem:[#allocation143_spill] sm:$0xff]  ;;  %v21854_v33 = vld [vmem:[#allocation145_spill] sm:$0xff] }
 0x283   : > { %21842 = vst [vmem:[#allocation181_spill] sm:$0xff] %v15668_v62  ;;  %v21853_v53 = vand.u32 4294901760, %v21852_v52  ;;  %v21862_v60 = vld [vmem:[#allocation151_spill] sm:$0xff]  ;;  %v6165_v7 = vld [vmem:[#allocation5 + $0x210] sm:$0xff] }
 0x284   : > { %11317 = vmatpush1.bf16.msra.mxu0 %v11316_v28  ;;  %10937 = vmatpush1.bf16.msra.mxu1 %v10936_v29  ;;  %v11320_v24 = vpack.c.bf16 %v21846_v17, %v21844_v18  ;;  %v10940_v56 = vpack.c.bf16 %v21850_v40, %v21848_v15  ;;  %v21855_v28 = vand.u32 4294901760, %v21854_v33  ;;  %v21856_v29 = vld [vmem:[#allocation146_spill] sm:$0xff]  ;;  %v21858_v17 = vld [vmem:[#allocation148_spill] sm:$0xff]  ;;  %v21863_v36 = vand.u32 4294901760, %v21862_v60 }
 0x285   : > { %11319 = vmatprep.subr.bf16.mxu0 %v11318_v48  ;;  %10939 = vmatprep.subr.bf16.mxu1 %v10938_v13  ;;  %v11322_v44 = vpack.c.bf16 %v21853_v53, %v21851_v8  ;;  %v21857_v23 = vand.u32 4294901760, %v21856_v29  ;;  %v21859_v19 = vand.u32 4294901760, %v21858_v17  ;;  %v21860_v48 = vld [vmem:[#allocation149_spill] sm:$0xff]  ;;  %v21864_v40 = vld [vmem:[#allocation152_spill] sm:$0xff]  ;;  %v21866_v29 = vand.u32 4294901760, %v21580_v10  ;;  %v21871_v60 = vld [vmem:[#allocation158_spill] sm:$0xff] }
 0x286   : > { %v21861_v13 = vand.u32 4294901760, %v21860_v48  ;;  %v21865_v8 = vand.u32 4294901760, %v21864_v40  ;;  %v3308_v53 = vld [vmem:[#allocation5 + $0x28] sm:$0xff]  ;;  %v21872_v26 = vand.u32 4294901760, %v21871_v60  ;;  %v21876_v10 = vand.u32 4294901760, %v21588_v3  ;;  %v21887_v60 = vld [vmem:[#allocation179_spill] sm:$0xff] }
 0x287   : > { %v10942_v35 = vpack.c.bf16 %v21857_v23, %v21855_v28  ;;  %v21867_v23 = vld [vmem:[#allocation155_spill] sm:$0xff]  ;;  %v21884_v3 = vand.u32 4294901760, %v21599_v63 }
 0x288   : > { %v11324_v15 = vpack.c.bf16 %v21861_v13, %v21859_v19  ;;  %v10944_v52 = vpack.c.bf16 %v21865_v8, %v21863_v36  ;;  %11321 = vmatpush1.bf16.msra.mxu0 %v11320_v24  ;;  %10941 = vmatpush1.bf16.msra.mxu1 %v10940_v56  ;;  %v21868_v17 = vand.u32 4294901760, %v21867_v23  ;;  %v21869_v19 = vld [vmem:[#allocation157_spill] sm:$0xff]  ;;  %v21873_v36 = vand.u32 4294901760, %v21585_v5  ;;  %v3311_v28 = vld [vmem:[#allocation5 + $0x80] sm:$0xff] }
 0x289   : > { %v21870_v13 = vand.u32 4294901760, %v21869_v19  ;;  %v21874_v8 = vld [vmem:[#allocation161_spill] sm:$0xff]  ;;  %11323 = vmatprep.subr.bf16.mxu0 %v11322_v44  ;;  %10943 = vmatprep.subr.bf16.mxu1 %v10942_v35  ;;  %v21877_v24 = vand.u32 4294901760, %v21587_v2  ;;  %v21879_v23 = vand.u32 4294901760, %v21590_v1  ;;  %v21880_v5 = vand.u32 4294901760, %v21594_v0 }
 0x28a   : > { %v11326_v48 = vpack.c.bf16 %v21868_v17, %v21866_v29  ;;  %v21875_v18 = vand.u32 4294901760, %v21874_v8  ;;  %v21878_v29 = vand.u32 4294901760, %v21591_v6  ;;  %v21881_v17 = vand.u32 4294901760, %v21593_v59  ;;  %v6136_v8 = vld [vmem:[#allocation5 + $0x38] sm:$0xff] }
 0x28b   : > { %v10946_v40 = vpack.c.bf16 %v21872_v26, %v21870_v13  ;;  %v10948_v56 = vpack.c.bf16 %v21877_v24, %v21876_v10  ;;  %v21882_v19 = vand.u32 4294901760, %v21596_v20  ;;  %v21883_v44 = vand.u32 4294901760, %v21447_v39 }
 0x28c   : > { %v11328_v33 = vpack.c.bf16 %v21875_v18, %v21873_v36  ;;  %v11330_v26 = vpack.c.bf16 %v21879_v23, %v21878_v29  ;;  %v10950_v18 = vpack.c.bf16 %v21881_v17, %v21880_v5  ;;  %v21885_v2 = vand.u32 4294901760, %v21598_v32  ;;  %v6142_v29 = vld [vmem:[#allocation5 + $0x98] sm:$0xff]  ;;  %v3316_v32 = vld [vmem:[#allocation5 + $0xe8] sm:$0xff]  ;;  %11325 = vmatpush1.bf16.msra.mxu0 %v11324_v15  ;;  %10945 = vmatpush1.bf16.msra.mxu1 %v10944_v52  ;;  %v21901_v52 = vld [vmem:[#allocation195_spill] sm:$0xff] }
 0x28d   : > { %v11332_v35 = vpack.c.bf16 %v21883_v44, %v21882_v19  ;;  %v21886_v6 = vand.u32 4294901760, %v21450_v57  ;;  %v21888_v1 = vand.u32 4294901760, %v21887_v60  ;;  %v4779_v0 = vand.u32 4294901760, %v3308_v53  ;;  %v3320_v23 = vld [vmem:[#allocation5 + $0x148] sm:$0xff]  ;;  %11327 = vmatprep.subr.bf16.mxu0 %v11326_v48  ;;  %10947 = vmatprep.subr.bf16.mxu1 %v10946_v40  ;;  %v6135_v48 = vld [vmem:[#allocation5 + $0x30] sm:$0xff] }
 0x28e   : > { %v10952_v13 = vpack.c.bf16 %v21885_v2, %v21884_v3  ;;  %v21889_v59 = vand.u32 4294901760, %v21454_v41  ;;  %v21890_v20 = vand.u32 4294901760, %v21455_v51  ;;  %v4783_v39 = vand.u32 4294901760, %v3312_v21  ;;  %v21896_v3 = vld [vmem:[#allocation191_spill] sm:$0xff]  ;;  %v6141_v40 = vld [vmem:[#allocation5 + $0x90] sm:$0xff] }
 0x28f   : > { %v15738_v36 = vpack.c.bf16 %v21888_v1, %v21886_v6  ;;  %v4781_v24 = vand.u32 4294901760, %v3307_v54  ;;  %v4785_v63 = vand.u32 4294901760, %v3311_v28  ;;  %v21891_v57 = vand.u32 4294901760, %v21456_v58  ;;  %v21904_v1 = vld [vmem:[#allocation197_spill] sm:$0xff] }
 0x290   : > { %v15744_v10 = vpack.c.bf16 %v21890_v20, %v21889_v59  ;;  %v21892_v5 = vand.u32 4294901760, %v21457_v31  ;;  %v21893_v41 = vand.u32 4294901760, %v21458_v30  ;;  %v21894_v51 = vand.u32 4294901760, %v21459_v22  ;;  %11329 = vmatpush1.bf16.msra.mxu0 %v11328_v33  ;;  %10949 = vmatpush1.bf16.msra.mxu1 %v10948_v56 }
 0x291   : > { %v21895_v44 = vand.u32 4294901760, %v21461_v14  ;;  %v21897_v2 = vand.u32 4294901760, %v21896_v3  ;;  %v21898_v58 = vand.u32 4294901760, %v21606_v49  ;;  %v21899_v31 = vand.u32 4294901760, %v14302_v27  ;;  %v21908_v3 = vld [vmem:[#allocation200_spill] sm:$0xff]  ;;  %11331 = vmatprep.subr.bf16.mxu0 %v11330_v26  ;;  %10951 = vmatprep.subr.bf16.mxu1 %v10950_v18  ;;  %v6153_v18 = vld [vmem:[#allocation5 + $0x150] sm:$0xff] }
 0x292   : > { %v15750_v17 = vpack.c.bf16 %v21892_v5, %v21891_v57  ;;  %v15756_v19 = vpack.c.bf16 %v21894_v51, %v21893_v41  ;;  %v21900_v30 = vand.u32 4294901760, %v14306_v16  ;;  %v21902_v22 = vand.u32 4294901760, %v21901_v52  ;;  %v3315_v41 = vld [vmem:[#allocation5 + $0xe0] sm:$0xff] }
 0x293   : > { %v15762_v6 = vpack.c.bf16 %v21897_v2, %v21895_v44  ;;  %v15768_v15 = vpack.c.bf16 %v21899_v31, %v21898_v58  ;;  %v21903_v14 = vand.u32 4294901760, %v14314_v50  ;;  %v21905_v59 = vand.u32 4294901760, %v21904_v1  ;;  %v3319_v51 = vld [vmem:[#allocation5 + $0x140] sm:$0xff]  ;;  %v21906_v44 = vld [vmem:[#allocation198_spill] sm:$0xff] }
 0x294   : > { %v15774_v60 = vpack.c.bf16 %v21902_v22, %v21900_v30  ;;  %v6327_v57 = vand.u32 4294901760, %v6136_v8  ;;  %v6331_v49 = vand.u32 4294901760, %v6142_v29  ;;  %v4787_v5 = vand.u32 4294901760, %v3316_v32  ;;  %v21910_v31 = vld [vmem:[#allocation202_spill] sm:$0xff]  ;;  %v21912_v30 = vld [vmem:[#allocation203_spill] sm:$0xff]  ;;  %11333 = vmatpush1.bf16.msra.mxu0 %v11332_v35  ;;  %10953 = vmatpush1.bf16.msra.mxu1 %v10952_v13 }
 0x295   : > { %v15780_v20 = vpack.c.bf16 %v21905_v59, %v21903_v14  ;;  %v4791_v27 = vand.u32 4294901760, %v3320_v23  ;;  %v21907_v16 = vand.u32 4294901760, %v21906_v44  ;;  %v21909_v2 = vand.u32 4294901760, %v21908_v3  ;;  %11335 = vmatprep.subr.bf16.mxu0 %v15738_v36  ;;  %10955 = vmatprep.subr.bf16.mxu1 %v15744_v10 }
 0x296   : > { %v21911_v50 = vand.u32 4294901760, %v21910_v31  ;;  %v21913_v52 = vand.u32 4294901760, %v21912_v30  ;;  %v15794_v14 = vpack.c.bf16 %v4783_v39, %v4779_v0  ;;  %v15796_v1 = vpack.c.bf16 %v4785_v63, %v4781_v24 }
 0x297   : > { %v15786_v58 = vpack.c.bf16 %v21909_v2, %v21907_v16  ;;  %v15798_v59 = vsub.f32 %v3308_v53, %v4779_v0  ;;  %v15800_v46 = vsub.f32 %v3312_v21, %v4783_v39  ;;  %v6329_v44 = vand.u32 4294901760, %v6135_v48  ;;  %v6148_v16 = vld [vmem:[#allocation5 + $0xf8] sm:$0xff]  ;;  %v6147_v0 = vld [vmem:[#allocation5 + $0xf0] sm:$0xff] }
 0x298   : > { %v15792_v22 = vpack.c.bf16 %v21913_v52, %v21911_v50  ;;  %21914 = vst [vmem:[#allocation182_spill] sm:$0xff] %v15794_v14  ;;  %21915 = vst [vmem:[#allocation184_spill] sm:$0xff] %v15796_v1  ;;  %v6333_v3 = vand.u32 4294901760, %v6141_v40  ;;  %v6154_v2 = vld [vmem:[#allocation5 + $0x158] sm:$0xff]  ;;  %v15802_v31 = vsub.f32 %v3307_v54, %v4781_v24  ;;  %v15804_v50 = vsub.f32 %v3311_v28, %v4785_v63  ;;  %v3323_v24 = vld [vmem:[#allocation5 + $0x1a0] sm:$0xff] }
 0x299   : > { %21916 = vst [vmem:[#allocation185_spill] sm:$0xff] %v15798_v59  ;;  %21917 = vst [vmem:[#allocation187_spill] sm:$0xff] %v15800_v46  ;;  %v4789_v30 = vand.u32 4294901760, %v3315_v41  ;;  %v4793_v52 = vand.u32 4294901760, %v3319_v51  ;;  %v15806_v33 = vpack.c.bf16 %v6331_v49, %v6327_v57  ;;  %v15808_v53 = vsub.f32 %v6136_v8, %v6327_v57  ;;  %v3327_v63 = vld [vmem:[#allocation5 + $0x200] sm:$0xff]  ;;  %11337 = vmatpush1.bf16.msra.mxu0 %v15750_v17 }
 0x29a   : > { %21918 = vst [vmem:[#allocation188_spill] sm:$0xff] %v15802_v31  ;;  %21919 = vst [vmem:[#allocation217_spill] sm:$0xff] %v15804_v50  ;;  %v15810_v21 = vsub.f32 %v6142_v29, %v6331_v49  ;;  %v15812_v56 = vpack.c.bf16 %v4791_v27, %v4787_v5  ;;  %v15814_v39 = vsub.f32 %v3316_v32, %v4787_v5  ;;  %v6335_v54 = vand.u32 4294901760, %v6148_v16  ;;  %v6160_v5 = vld [vmem:[#allocation5 + $0x1b8] sm:$0xff] }
 0x29b   : > { %21920 = vst [vmem:[#allocation189_spill] sm:$0xff] %v15806_v33  ;;  %21921 = vst [vmem:[#allocation218_spill] sm:$0xff] %v15808_v53  ;;  %v15816_v26 = vsub.f32 %v3320_v23, %v4791_v27  ;;  %v6339_v28 = vand.u32 4294901760, %v6154_v2  ;;  %v15818_v43 = vpack.c.bf16 %v6333_v3, %v6329_v44  ;;  %v15820_v8 = vsub.f32 %v6135_v48, %v6329_v44  ;;  %v6166_v27 = vld [vmem:[#allocation5 + $0x218] sm:$0xff]  ;;  %v3332_v48 = vld [vmem:[#allocation5 + $0x268] sm:$0xff] }
 0x29c   : > { %21922 = vst [vmem:[#allocation219_spill] sm:$0xff] %v15810_v21  ;;  %21923 = vst [vmem:[#allocation220_spill] sm:$0xff] %v15812_v56  ;;  %v4795_v29 = vand.u32 4294901760, %v3324_v12  ;;  %v4799_v57 = vand.u32 4294901760, %v3328_v42  ;;  %v15824_v32 = vsub.f32 %v6141_v40, %v6333_v3  ;;  %v15826_v23 = vpack.c.bf16 %v4793_v52, %v4789_v30  ;;  %v3336_v44 = vld [vmem:[#allocation5 + $0x2c8] sm:$0xff]  ;;  %v6159_v40 = vld [vmem:[#allocation5 + $0x1b0] sm:$0xff]  ;;  %10957 = vmatpush1.bf16.msra.mxu1 %v15756_v19 }
 0x29d   : > { %21924 = vst [vmem:[#allocation221_spill] sm:$0xff] %v15814_v39  ;;  %21925 = vst [vmem:[#allocation222_spill] sm:$0xff] %v15816_v26  ;;  %v15828_v49 = vsub.f32 %v3315_v41, %v4789_v30  ;;  %v6337_v35 = vand.u32 4294901760, %v6147_v0  ;;  %v6341_v13 = vand.u32 4294901760, %v6153_v18  ;;  %v4797_v45 = vand.u32 4294901760, %v3323_v24  ;;  %11339 = vmatprep.subr.bf16.mxu0 %v15762_v6  ;;  %10959 = vmatprep.subr.bf16.mxu1 %v15768_v15 }
 0x29e   : > { %21926 = vst [vmem:[#allocation223_spill] sm:$0xff] %v15818_v43  ;;  %21927 = vst [vmem:[#allocation224_spill] sm:$0xff] %v15820_v8  ;;  %v4801_v62 = vand.u32 4294901760, %v3327_v63  ;;  %v15830_v4 = vsub.f32 %v3319_v51, %v4793_v52  ;;  %v15832_v47 = vpack.c.bf16 %v6339_v28, %v6335_v54  ;;  %v15834_v36 = vsub.f32 %v6148_v16, %v6335_v54  ;;  %v3331_v51 = vld [vmem:[#allocation5 + $0x260] sm:$0xff] }
 0x29f   : > { %21928 = vst [vmem:[#allocation225_spill] sm:$0xff] %v15824_v32  ;;  %21929 = vst [vmem:[#allocation226_spill] sm:$0xff] %v15826_v23  ;;  %v15836_v10 = vsub.f32 %v6154_v2, %v6339_v28  ;;  %v15840_v41 = vpack.c.bf16 %v4799_v57, %v4795_v29  ;;  %v15842_v3 = vsub.f32 %v3324_v12, %v4795_v29  ;;  %v6343_v30 = vand.u32 4294901760, %v6160_v5  ;;  %v3335_v52 = vld [vmem:[#allocation5 + $0x2c0] sm:$0xff] }
 0x2a0   : > { %21930 = vst [vmem:[#allocation227_spill] sm:$0xff] %v15828_v49  ;;  %21931 = vst [vmem:[#allocation228_spill] sm:$0xff] %v15830_v4  ;;  %v6347_v11 = vand.u32 4294901760, %v6166_v27  ;;  %v15846_v16 = vsub.f32 %v3328_v42, %v4799_v57  ;;  %v15848_v2 = vsub.f32 %v6147_v0, %v6337_v35  ;;  %v4803_v17 = vand.u32 4294901760, %v3332_v48  ;;  %v3340_v42 = vld [vmem:[#allocation5 + $0x328] sm:$0xff]  ;;  %11341 = vmatpush1.bf16.msra.mxu0 %v15774_v60  ;;  %v6177_v60 = vld [vmem:[#allocation5 + $0x2d0] sm:$0xff] }
 0x2a1   : > { %21932 = vst [vmem:[#allocation229_spill] sm:$0xff] %v15832_v47  ;;  %21933 = vst [vmem:[#allocation230_spill] sm:$0xff] %v15834_v36  ;;  %v4807_v54 = vand.u32 4294901760, %v3336_v44  ;;  %v15850_v19 = vpack.c.bf16 %v6341_v13, %v6337_v35  ;;  %v15852_v28 = vsub.f32 %v6153_v18, %v6341_v13  ;;  %v15854_v12 = vpack.c.bf16 %v4801_v62, %v4797_v45  ;;  %v3344_v57 = vld [vmem:[#allocation5 + $0x388] sm:$0xff] }
 0x2a2   : > { %21934 = vst [vmem:[#allocation231_spill] sm:$0xff] %v15836_v10  ;;  %21935 = vst [vmem:[#allocation234_spill] sm:$0xff] %v15840_v41  ;;  %v15856_v29 = vsub.f32 %v3323_v24, %v4797_v45  ;;  %v6178_v41 = vld [vmem:[#allocation5 + $0x2d8] sm:$0xff]  ;;  %v6345_v47 = vand.u32 4294901760, %v6159_v40  ;;  %v6349_v6 = vand.u32 4294901760, %v6165_v7  ;;  %v4805_v23 = vand.u32 4294901760, %v3331_v51  ;;  %10961 = vmatpush1.bf16.msra.mxu1 %v15780_v20  ;;  %11343 = vmatprep.subr.bf16.mxu0 %v15786_v58 }
 0x2a3   : > { %21936 = vst [vmem:[#allocation238_spill] sm:$0xff] %v15842_v3  ;;  %21937 = vst [vmem:[#allocation241_spill] sm:$0xff] %v15846_v16  ;;  %v4809_v15 = vand.u32 4294901760, %v3335_v52  ;;  %v15860_v0 = vsub.f32 %v3327_v63, %v4801_v62  ;;  %v15862_v18 = vpack.c.bf16 %v6347_v11, %v6343_v30  ;;  %v15864_v35 = vsub.f32 %v6160_v5, %v6343_v30  ;;  %v21946_v45 = vld [vmem:[#allocation22_spill] sm:$0xff]  ;;  %v3339_v5 = vld [vmem:[#allocation5 + $0x320] sm:$0xff] }
 0x2a4   : > { %21938 = vst [vmem:[#allocation15_spill] sm:$0xff] %v15848_v2  ;;  %21939 = vst [vmem:[#allocation16_spill] sm:$0xff] %v15850_v19  ;;  %10963 = vmatprep.subr.bf16.mxu1 %v21946_v45  ;;  %v15868_v24 = vsub.f32 %v6166_v27, %v6347_v11  ;;  %v15870_v13 = vpack.c.bf16 %v4807_v54, %v4803_v17  ;;  %v6171_v19 = vld [vmem:[#allocation5 + $0x270] sm:$0xff]  ;;  %v15874_v62 = vsub.f32 %v3336_v44, %v4807_v54  ;;  %v3343_v30 = vld [vmem:[#allocation5 + $0x380] sm:$0xff] }
 0x2a5   : > { %21940 = vst [vmem:[#allocation17_spill] sm:$0xff] %v15852_v28  ;;  %21941 = vst [vmem:[#allocation18_spill] sm:$0xff] %v15854_v12  ;;  %v6355_v12 = vand.u32 4294901760, %v6178_v41  ;;  %v15872_v28 = vsub.f32 %v3332_v48, %v4803_v17  ;;  %v4811_v20 = vand.u32 4294901760, %v3340_v42  ;;  %v4815_v63 = vand.u32 4294901760, %v3344_v57  ;;  %11345 = vmatpush1.bf16.msra.mxu0 %v15792_v22  ;;  %v21956_v48 = vld [vmem:[#allocation243_spill] sm:$0xff] }
 0x2a6   : > { %21942 = vst [vmem:[#allocation19_spill] sm:$0xff] %v15856_v29  ;;  %21943 = vst [vmem:[#allocation20_spill] sm:$0xff] %v15860_v0  ;;  %v6351_v29 = vand.u32 4294901760, %v6172_v9  ;;  %v15877_v58 = vpack.c.bf16 %v6349_v6, %v6345_v47  ;;  %v15879_v11 = vsub.f32 %v6159_v40, %v6345_v47  ;;  %v15881_v27 = vsub.f32 %v6165_v7, %v6349_v6  ;;  %v21960_v47 = vld [vmem:[#allocation21_spill] sm:$0xff]  ;;  %v3352_v22 = vld [vmem:[#allocation5 + $0x448] sm:$0xff] }
 0x2a7   : > { %21944 = vst [vmem:[#allocation27_spill] sm:$0xff] %v15862_v18  ;;  %21945 = vst [vmem:[#allocation28_spill] sm:$0xff] %v15864_v35  ;;  %v21951_v35 = vld [vmem:[#allocation232_spill] sm:$0xff]  ;;  %v15883_v45 = vpack.c.bf16 %v4809_v15, %v4805_v23  ;;  %v15887_v44 = vsub.f32 %v3331_v51, %v4805_v23  ;;  %v15889_v17 = vsub.f32 %v3335_v52, %v4809_v15  ;;  %v6353_v54 = vand.u32 4294901760, %v6171_v19  ;;  %v6196_v0 = vld [vmem:[#allocation5 + $0x3f8] sm:$0xff] }
 0x2a8   : > { %21947 = vst [vmem:[#allocation29_spill] sm:$0xff] %v15868_v24  ;;  %21948 = vst [vmem:[#allocation30_spill] sm:$0xff] %v15870_v13  ;;  %3142 = vmatmul.mubr.f32.vlgmr.msra.gmra.mrb[8].mxu1 %v21951_v35  ;;  %v6184_v24 = vld [vmem:[#allocation5 + $0x338] sm:$0xff]  ;;  %11347 = vmatprep.subr.bf16.mxu0 %v21960_v47  ;;  %v15893_v7 = vpack.c.bf16 %v6355_v12, %v6351_v29  ;;  %v15895_v40 = vsub.f32 %v6172_v9, %v6351_v29  ;;  %v4813_v6 = vand.u32 4294901760, %v3339_v5  ;;  %v21967_v47 = vld [vmem:[#allocation240_spill] sm:$0xff] }
 0x2a9   : > { %21949 = vst [vmem:[#allocation31_spill] sm:$0xff] %v15872_v28  ;;  %21950 = vst [vmem:[#allocation32_spill] sm:$0xff] %v15874_v62  ;;  %v6190_v13 = vld [vmem:[#allocation5 + $0x398] sm:$0xff]  ;;  %3148 = vmatprep.mubr.f32.mxu1 %v21956_v48  ;;  %v6357_v62 = vand.u32 4294901760, %v6177_v60  ;;  %v21959_v28 = vld [vmem:[#allocation23_spill] sm:$0xff]  ;;  %v15898_v23 = vsub.f32 %v6178_v41, %v6355_v12  ;;  %v15900_v51 = vpack.c.bf16 %v4815_v63, %v4811_v20  ;;  %v6359_v52 = vand.u32 4294901760, %v6184_v24 }
 0x2aa   : > { %21952 = vst [vmem:[#allocation42_spill] sm:$0xff] %v15877_v58  ;;  %21953 = vst [vmem:[#allocation43_spill] sm:$0xff] %v15879_v11  ;;  %10965 = vmatpush1.bf16.msra.mxu1 %v21959_v28  ;;  %v3348_v11 = vld [vmem:[#allocation5 + $0x3e8] sm:$0xff]  ;;  %v6363_v15 = vand.u32 4294901760, %v6190_v13  ;;  %v6189_v28 = vld [vmem:[#allocation5 + $0x390] sm:$0xff]  ;;  %v15904_v9 = vsub.f32 %v3340_v42, %v4811_v20  ;;  %v15906_v29 = vsub.f32 %v3344_v57, %v4815_v63  ;;  %v4823_v18 = vand.u32 4294901760, %v3352_v22 }
 0x2ab   : > { %21954 = vst [vmem:[#allocation44_spill] sm:$0xff] %v15881_v27  ;;  %21955 = vst [vmem:[#allocation45_spill] sm:$0xff] %v15883_v45  ;;  %v4817_v27 = vand.u32 4294901760, %v3343_v30  ;;  %v21963_v45 = vld [vmem:[#allocation24_spill] sm:$0xff]  ;;  %v21971_v41 = vld [vmem:[#allocation249_spill] sm:$0xff]  ;;  %v4819_v58 = vand.u32 4294901760, %v3348_v11  ;;  %v15920_v57 = vsub.f32 %v3339_v5, %v4813_v6 }
 0x2ac   : > { %21957 = vst [vmem:[#allocation46_spill] sm:$0xff] %v15887_v44  ;;  %21958 = vst [vmem:[#allocation236_spill] sm:$0xff] %v15889_v17  ;;  %10967 = vmatprep.subr.bf16.mxu1 %v21963_v45  ;;  %v6183_v17 = vld [vmem:[#allocation5 + $0x330] sm:$0xff]  ;;  %3150 = vmatmul.mubr.f32.gmra.mrb[10].mxu1 %v21967_v47  ;;  %v3351_v45 = vld [vmem:[#allocation5 + $0x440] sm:$0xff]  ;;  %v6365_v63 = vand.u32 4294901760, %v6189_v28  ;;  %v15931_v5 = vsub.f32 %v6190_v13, %v6363_v15 }
 0x2ad   : > { %21961 = vst [vmem:[#allocation93_spill] sm:$0xff] %v15893_v7  ;;  %21962 = vst [vmem:[#allocation117_spill] sm:$0xff] %v15895_v40  ;;  %v21966_v44 = vld [vmem:[#allocation237_spill] sm:$0xff]  ;;  %v15908_v40 = vsub.f32 %v6171_v19, %v6353_v54  ;;  %v3347_v7 = vld [vmem:[#allocation5 + $0x3e0] sm:$0xff]  ;;  %3285 = vmatprep.mubr.f32.mxu1 %v21712_v25  ;;  %v15918_v19 = vpack.c.bf16 %v4817_v27, %v4813_v6  ;;  %v6361_v20 = vand.u32 4294901760, %v6183_v17  ;;  %v6367_v6 = vand.u32 4294901760, %v6196_v0 }
 0x2ae   : > { %21964 = vst [vmem:[#allocation119_spill] sm:$0xff] %v15898_v23  ;;  %21965 = vst [vmem:[#allocation121_spill] sm:$0xff] %v15900_v51  ;;  %4620 = vmatmul.mubr.f32.vlgmr.msra.gmra.mrb[8].mxu0 %v21966_v44  ;;  %v21972_v12 = vld [vmem:[#allocation25_spill] sm:$0xff]  ;;  %v15912_v23 = vpack.c.bf16 %v6357_v62, %v6353_v54  ;;  %v15914_v51 = vsub.f32 %v6177_v60, %v6357_v62  ;;  %v6202_v2 = vld [vmem:[#allocation5 + $0x458] sm:$0xff]  ;;  %v15924_v60 = vsub.f32 %v3343_v30, %v4817_v27 }
 0x2af   : > { %21968 = vst [vmem:[#allocation122_spill] sm:$0xff] %v15904_v9  ;;  %21969 = vst [vmem:[#allocation127_spill] sm:$0xff] %v15906_v29  ;;  %4626 = vmatprep.mubr.f32.mxu0 %v21971_v41  ;;  %11349 = vmatpush1.bf16.msra.mxu0 %v21972_v12  ;;  %v21975_v42 = vld [vmem:[#allocation26_spill] sm:$0xff]  ;;  %v15926_v62 = vpack.c.bf16 %v6363_v15, %v6359_v52  ;;  %v4821_v12 = vand.u32 4294901760, %v3347_v7  ;;  %v3356_v29 = vld [vmem:[#allocation5 + $0x4a8] sm:$0xff]  ;;  %v15929_v25 = vsub.f32 %v6184_v24, %v6359_v52 }
 0x2b0   : > { %21970 = vst [vmem:[#allocation133_spill] sm:$0xff] %v15908_v40  ;;  %21973 = vst [vmem:[#allocation134_spill] sm:$0xff] %v15912_v23  ;;  %10969 = vmatpush1.bf16.msra.mxu1 %v21975_v42  ;;  %v21978_v40 = vld [vmem:[#allocation33_spill] sm:$0xff]  ;;  %v21979_v54 = vld [vmem:[#allocation34_spill] sm:$0xff]  ;;  %v15935_v30 = vpack.c.bf16 %v4823_v18, %v4819_v58  ;;  %v15937_v27 = vsub.f32 %v3348_v11, %v4819_v58  ;;  %v15943_v13 = vpack.c.bf16 %v6365_v63, %v6361_v20 }
 0x2b1   : > { %21974 = vst [vmem:[#allocation141_spill] sm:$0xff] %v15914_v51  ;;  %21976 = vst [vmem:[#allocation153_spill] sm:$0xff] %v15918_v19  ;;  %11351 = vmatprep.subr.bf16.mxu0 %v21978_v40  ;;  %10971 = vmatprep.subr.bf16.mxu1 %v21979_v54  ;;  %v4825_v51 = vand.u32 4294901760, %v3351_v45  ;;  %v3360_v42 = vld [vmem:[#allocation5 + $0x508] sm:$0xff]  ;;  %v21985_v19 = vld [vmem:[#allocation35_spill] sm:$0xff]  ;;  %v15939_v40 = vsub.f32 %v3352_v22, %v4823_v18  ;;  %v15945_v52 = vsub.f32 %v6183_v17, %v6361_v20 }
 0x2b2   : > { %21977 = vst [vmem:[#allocation160_spill] sm:$0xff] %v15920_v57  ;;  %21980 = vst [vmem:[#allocation164_spill] sm:$0xff] %v15924_v60  ;;  %v21982_v9 = vld [vmem:[#allocation248_spill] sm:$0xff]  ;;  %v6371_v57 = vand.u32 4294901760, %v6202_v2  ;;  %v6195_v54 = vld [vmem:[#allocation5 + $0x3f0] sm:$0xff]  ;;  %v4827_v15 = vand.u32 4294901760, %v3356_v29  ;;  %v15948_v18 = vsub.f32 %v6189_v28, %v6365_v63  ;;  %v15952_v22 = vsub.f32 %v3347_v7, %v4821_v12 }
 0x2b3   : > { %21981 = vst [vmem:[#allocation163_spill] sm:$0xff] %v15926_v62  ;;  %4628 = vmatmul.mubr.f32.gmra.mrb[10].mxu0 %v21982_v9  ;;  %21983 = vst [vmem:[#allocation167_spill] sm:$0xff] %v15929_v25  ;;  %v6201_v60 = vld [vmem:[#allocation5 + $0x450] sm:$0xff]  ;;  %v3355_v62 = vld [vmem:[#allocation5 + $0x4a0] sm:$0xff]  ;;  %v15950_v11 = vpack.c.bf16 %v4825_v51, %v4821_v12  ;;  %v6369_v17 = vand.u32 4294901760, %v6195_v54 }
 0x2b4   : > { %21984 = vst [vmem:[#allocation165_spill] sm:$0xff] %v15931_v5  ;;  %11353 = vmatpush1.bf16.msra.mxu0 %v21985_v19  ;;  %4763 = vmatprep.mubr.f32.mxu0 %v21722_v61  ;;  %21986 = vst [vmem:[#allocation170_spill] sm:$0xff] %v15935_v30  ;;  %v21989_v23 = vld [vmem:[#allocation36_spill] sm:$0xff]  ;;  %v21990_v24 = vld [vmem:[#allocation37_spill] sm:$0xff]  ;;  %v4831_v19 = vand.u32 4294901760, %v3360_v42  ;;  %v6373_v20 = vand.u32 4294901760, %v6201_v60  ;;  %v15967_v12 = vsub.f32 %v3356_v29, %v4827_v15 }
 0x2b5   : > { %21987 = vst [vmem:[#allocation169_spill] sm:$0xff] %v15937_v27  ;;  %21988 = vst [vmem:[#allocation172_spill] sm:$0xff] %v15939_v40  ;;  %10973 = vmatpush1.bf16.msra.mxu1 %v21989_v23  ;;  %11355 = vmatprep.subr.bf16.mxu0 %v21990_v24  ;;  %v3359_v61 = vld [vmem:[#allocation5 + $0x500] sm:$0xff]  ;;  %v6208_v5 = vld [vmem:[#allocation5 + $0x4b8] sm:$0xff]  ;;  %v15954_v23 = vsub.f32 %v3351_v45, %v4825_v51  ;;  %v15956_v24 = vpack.c.bf16 %v6371_v57, %v6367_v6  ;;  %v4829_v30 = vand.u32 4294901760, %v3355_v62 }
 0x2b6   : > { %21991 = vst [vmem:[#allocation176_spill] sm:$0xff] %v15943_v13  ;;  %21992 = vst [vmem:[#allocation175_spill] sm:$0xff] %v15945_v52  ;;  %v6214_v25 = vld [vmem:[#allocation5 + $0x518] sm:$0xff]  ;;  %v15958_v40 = vsub.f32 %v6196_v0, %v6367_v6  ;;  %v3364_v52 = vld [vmem:[#allocation5 + $0x568] sm:$0xff]  ;;  %v6375_v28 = vand.u32 4294901760, %v6208_v5  ;;  %v15963_v45 = vsub.f32 %v6202_v2, %v6371_v57  ;;  %v15965_v0 = vpack.c.bf16 %v4831_v19, %v4827_v15 }
 0x2b7   : > { %v21993_v58 = vld [vmem:[#allocation38_spill] sm:$0xff]  ;;  %21994 = vst [vmem:[#allocation193_spill] sm:$0xff] %v15948_v18  ;;  %21995 = vst [vmem:[#allocation235_spill] sm:$0xff] %v15950_v11  ;;  %v3368_v27 = vld [vmem:[#allocation5 + $0x5c8] sm:$0xff]  ;;  %v6379_v63 = vand.u32 4294901760, %v6214_v25  ;;  %v15974_v43 = vpack.c.bf16 %v6373_v20, %v6369_v17 }
 0x2b8   : > { %10975 = vmatprep.subr.bf16.mxu1 %v21993_v58  ;;  %21996 = vst [vmem:[#allocation247_spill] sm:$0xff] %v15952_v22  ;;  %21997 = vst [vmem:[#allocation245_spill] sm:$0xff] %v15954_v23  ;;  %v22000_v13 = vld [vmem:[#allocation39_spill] sm:$0xff]  ;;  %v4833_v58 = vand.u32 4294901760, %v3359_v61  ;;  %v6207_v18 = vld [vmem:[#allocation5 + $0x4b0] sm:$0xff]  ;;  %v4835_v23 = vand.u32 4294901760, %v3364_v52 }
 0x2b9   : > { %21998 = vst [vmem:[#allocation194_spill] sm:$0xff] %v15956_v24  ;;  %21999 = vst [vmem:[#allocation201_spill] sm:$0xff] %v15958_v40  ;;  %11357 = vmatpush1.bf16.msra.mxu0 %v22000_v13  ;;  %v6213_v11 = vld [vmem:[#allocation5 + $0x510] sm:$0xff]  ;;  %v22001_v7 = vld [vmem:[#allocation40_spill] sm:$0xff]  ;;  %v15970_v40 = vsub.f32 %v3360_v42, %v4831_v19  ;;  %v15972_v13 = vsub.f32 %v6195_v54, %v6369_v17  ;;  %v4839_v22 = vand.u32 4294901760, %v3368_v27  ;;  %v6377_v2 = vand.u32 4294901760, %v6207_v18 }
 0x2ba   : > { %10977 = vmatpush1.bf16.msra.mxu1 %v22001_v7  ;;  %v22002_v51 = vld [vmem:[#allocation41_spill] sm:$0xff]  ;;  %22003 = vst [vmem:[#allocation47_spill] sm:$0xff] %v15963_v45  ;;  %22004 = vst [vmem:[#allocation48_spill] sm:$0xff] %v15965_v0  ;;  %v22006_v6 = vld [vmem:[#allocation52_spill] sm:$0xff]  ;;  %v15976_v7 = vsub.f32 %v6201_v60, %v6373_v20  ;;  %v6381_v57 = vand.u32 4294901760, %v6213_v11  ;;  %v15979_v15 = vpack.c.bf16 %v4833_v58, %v4829_v30 }
 0x2bb   : > { %11359 = vmatprep.subr.bf16.mxu0 %v22002_v51  ;;  %22005 = vst [vmem:[#allocation49_spill] sm:$0xff] %v15967_v12  ;;  %10979 = vmatprep.subr.bf16.mxu1 %v22006_v6  ;;  %22007 = vst [vmem:[#allocation233_spill] sm:$0xff] %v15970_v40  ;;  %v3363_v24 = vld [vmem:[#allocation5 + $0x560] sm:$0xff]  ;;  %v6220_v51 = vld [vmem:[#allocation5 + $0x578] sm:$0xff]  ;;  %v15981_v42 = vsub.f32 %v3355_v62, %v4829_v30  ;;  %v15983_v54 = vsub.f32 %v3359_v61, %v4833_v58 }
 0x2bc   : > { %22008 = vst [vmem:[#allocation50_spill] sm:$0xff] %v15972_v13  ;;  %v3367_v9 = vld [vmem:[#allocation5 + $0x5c0] sm:$0xff]  ;;  %22009 = vst [vmem:[#allocation51_spill] sm:$0xff] %v15974_v43  ;;  %v6226_v45 = vld [vmem:[#allocation5 + $0x5d8] sm:$0xff]  ;;  %v15985_v19 = vpack.c.bf16 %v6379_v63, %v6375_v28  ;;  %v15989_v20 = vsub.f32 %v6208_v5, %v6375_v28  ;;  %v4837_v40 = vand.u32 4294901760, %v3363_v24  ;;  %v15994_v61 = vpack.c.bf16 %v4839_v22, %v4835_v23 }
 0x2bd   : > { %22010 = vst [vmem:[#allocation54_spill] sm:$0xff] %v15976_v7  ;;  %v22011_v29 = vld [vmem:[#allocation53_spill] sm:$0xff]  ;;  %22012 = vst [vmem:[#allocation55_spill] sm:$0xff] %v15979_v15  ;;  %v3372_v6 = vld [vmem:[#allocation5 + $0x628] sm:$0xff]  ;;  %v15991_v7 = vsub.f32 %v6214_v25, %v6379_v63  ;;  %v15996_v30 = vsub.f32 %v3364_v52, %v4835_v23  ;;  %v6383_v58 = vand.u32 4294901760, %v6220_v51 }
 0x2be   : > { %11361 = vmatpush1.bf16.msra.mxu0 %v22011_v29  ;;  %22013 = vst [vmem:[#allocation56_spill] sm:$0xff] %v15981_v42  ;;  %22014 = vst [vmem:[#allocation57_spill] sm:$0xff] %v15983_v54  ;;  %v3376_v13 = vld [vmem:[#allocation5 + $0x688] sm:$0xff]  ;;  %v22016_v17 = vld [vmem:[#allocation66_spill] sm:$0xff]  ;;  %v4841_v29 = vand.u32 4294901760, %v3367_v9  ;;  %v6387_v54 = vand.u32 4294901760, %v6226_v45  ;;  %v15998_v42 = vsub.f32 %v3368_v27, %v4839_v22 }
 0x2bf   : > { %22015 = vst [vmem:[#allocation58_spill] sm:$0xff] %v15985_v19  ;;  %10981 = vmatpush1.bf16.msra.mxu1 %v22016_v17  ;;  %v22017_v60 = vld [vmem:[#allocation70_spill] sm:$0xff]  ;;  %22018 = vst [vmem:[#allocation59_spill] sm:$0xff] %v15989_v20  ;;  %v6219_v12 = vld [vmem:[#allocation5 + $0x570] sm:$0xff]  ;;  %v16000_v17 = vpack.c.bf16 %v6381_v57, %v6377_v2  ;;  %v4843_v5 = vand.u32 4294901760, %v3372_v6  ;;  %v4847_v28 = vand.u32 4294901760, %v3376_v13  ;;  %v16005_v20 = vsub.f32 %v6213_v11, %v6381_v57 }
 0x2c0   : > { %11363 = vmatprep.subr.bf16.mxu0 %v22017_v60  ;;  %22019 = vst [vmem:[#allocation60_spill] sm:$0xff] %v15991_v7  ;;  %v6225_v15 = vld [vmem:[#allocation5 + $0x5d0] sm:$0xff]  ;;  %v22020_v62 = vld [vmem:[#allocation72_spill] sm:$0xff]  ;;  %22021 = vst [vmem:[#allocation61_spill] sm:$0xff] %v15994_v61  ;;  %v16003_v7 = vsub.f32 %v6207_v18, %v6377_v2  ;;  %v16009_v22 = vpack.c.bf16 %v4841_v29, %v4837_v40  ;;  %v16016_v18 = vpack.c.bf16 %v6387_v54, %v6383_v58 }
 0x2c1   : > { %10983 = vmatprep.subr.bf16.mxu1 %v22020_v62  ;;  %22022 = vst [vmem:[#allocation62_spill] sm:$0xff] %v15996_v30  ;;  %22023 = vst [vmem:[#allocation63_spill] sm:$0xff] %v15998_v42  ;;  %v3371_v25 = vld [vmem:[#allocation5 + $0x620] sm:$0xff]  ;;  %v6385_v62 = vand.u32 4294901760, %v6219_v12  ;;  %v6389_v61 = vand.u32 4294901760, %v6225_v15  ;;  %v6232_v52 = vld [vmem:[#allocation5 + $0x638] sm:$0xff]  ;;  %v16011_v42 = vsub.f32 %v3363_v24, %v4837_v40  ;;  %v16018_v11 = vsub.f32 %v6220_v51, %v6383_v58 }
 0x2c2   : > { %22024 = vst [vmem:[#allocation64_spill] sm:$0xff] %v16000_v17  ;;  %v3375_v63 = vld [vmem:[#allocation5 + $0x680] sm:$0xff]  ;;  %22026 = vst [vmem:[#allocation65_spill] sm:$0xff] %v16003_v7  ;;  %v6238_v23 = vld [vmem:[#allocation5 + $0x698] sm:$0xff]  ;;  %v16013_v17 = vsub.f32 %v3367_v9, %v4841_v29  ;;  %v4845_v2 = vand.u32 4294901760, %v3371_v25  ;;  %v16020_v7 = vsub.f32 %v6226_v45, %v6387_v54  ;;  %v16025_v29 = vsub.f32 %v3372_v6, %v4843_v5 }
 0x2c3   : > { %v22025_v60 = vld [vmem:[#allocation75_spill] sm:$0xff]  ;;  %22027 = vst [vmem:[#allocation67_spill] sm:$0xff] %v16005_v20  ;;  %v22028_v30 = vld [vmem:[#allocation78_spill] sm:$0xff]  ;;  %22030 = vst [vmem:[#allocation68_spill] sm:$0xff] %v16009_v22  ;;  %v4849_v57 = vand.u32 4294901760, %v3375_v63  ;;  %v6395_v22 = vand.u32 4294901760, %v6238_v23  ;;  %v16029_v51 = vpack.c.bf16 %v6389_v61, %v6385_v62  ;;  %v16031_v58 = vsub.f32 %v6219_v12, %v6385_v62 }
 0x2c4   : > { %11365 = vmatpush1.bf16.msra.mxu0 %v22025_v60  ;;  %10985 = vmatpush1.bf16.msra.mxu1 %v22028_v30  ;;  %v22029_v27 = vld [vmem:[#allocation82_spill] sm:$0xff]  ;;  %22031 = vst [vmem:[#allocation69_spill] sm:$0xff] %v16011_v42  ;;  %22032 = vst [vmem:[#allocation71_spill] sm:$0xff] %v16013_v17  ;;  %v22033_v19 = vld [vmem:[#allocation84_spill] sm:$0xff]  ;;  %v16022_v30 = vpack.c.bf16 %v4847_v28, %v4843_v5  ;;  %v16037_v42 = vsub.f32 %v3371_v25, %v4845_v2 }
 0x2c5   : > { %11367 = vmatprep.subr.bf16.mxu0 %v22029_v27  ;;  %10987 = vmatprep.subr.bf16.mxu1 %v22033_v19  ;;  %22034 = vst [vmem:[#allocation73_spill] sm:$0xff] %v16016_v18  ;;  %22035 = vst [vmem:[#allocation74_spill] sm:$0xff] %v16018_v11  ;;  %v3380_v60 = vld [vmem:[#allocation5 + $0x6e8] sm:$0xff]  ;;  %v6391_v27 = vand.u32 4294901760, %v6232_v52  ;;  %v6231_v40 = vld [vmem:[#allocation5 + $0x630] sm:$0xff]  ;;  %v16027_v19 = vsub.f32 %v3376_v13, %v4847_v28  ;;  %v16040_v28 = vpack.c.bf16 %v4849_v57, %v4845_v2 }
 0x2c6   : > { %v3384_v20 = vld [vmem:[#allocation5 + $0x748] sm:$0xff]  ;;  %22036 = vst [vmem:[#allocation76_spill] sm:$0xff] %v16020_v7  ;;  %22037 = vst [vmem:[#allocation77_spill] sm:$0xff] %v16022_v30  ;;  %v6237_v24 = vld [vmem:[#allocation5 + $0x690] sm:$0xff]  ;;  %v16035_v7 = vsub.f32 %v6225_v15, %v6389_v61  ;;  %v4851_v30 = vand.u32 4294901760, %v3380_v60  ;;  %v16042_v12 = vsub.f32 %v3375_v63, %v4849_v57  ;;  %v6393_v62 = vand.u32 4294901760, %v6231_v40 }
 0x2c7   : > { %v22038_v9 = vld [vmem:[#allocation87_spill] sm:$0xff]  ;;  %22039 = vst [vmem:[#allocation79_spill] sm:$0xff] %v16025_v29  ;;  %22040 = vst [vmem:[#allocation80_spill] sm:$0xff] %v16027_v19  ;;  %v22043_v45 = vld [vmem:[#allocation90_spill] sm:$0xff]  ;;  %v16044_v19 = vpack.c.bf16 %v6395_v22, %v6391_v27 }
 0x2c8   : > { %11369 = vmatpush1.bf16.msra.mxu0 %v22038_v9  ;;  %22041 = vst [vmem:[#allocation81_spill] sm:$0xff] %v16029_v51  ;;  %22042 = vst [vmem:[#allocation83_spill] sm:$0xff] %v16031_v58  ;;  %v3379_v11 = vld [vmem:[#allocation5 + $0x6e0] sm:$0xff]  ;;  %10989 = vmatpush1.bf16.msra.mxu1 %v22043_v45  ;;  %v22044_v54 = vld [vmem:[#allocation94_spill] sm:$0xff]  ;;  %v4855_v9 = vand.u32 4294901760, %v3384_v20  ;;  %v6397_v58 = vand.u32 4294901760, %v6237_v24  ;;  %v16046_v45 = vsub.f32 %v6232_v52, %v6391_v27 }
 0x2c9   : > { %v3383_v17 = vld [vmem:[#allocation5 + $0x740] sm:$0xff]  ;;  %11371 = vmatprep.subr.bf16.mxu0 %v22044_v54  ;;  %22045 = vst [vmem:[#allocation85_spill] sm:$0xff] %v16035_v7  ;;  %22046 = vst [vmem:[#allocation86_spill] sm:$0xff] %v16037_v42  ;;  %v6244_v6 = vld [vmem:[#allocation5 + $0x6f8] sm:$0xff]  ;;  %v4853_v15 = vand.u32 4294901760, %v3379_v11  ;;  %v16049_v7 = vsub.f32 %v6238_v23, %v6395_v22  ;;  %v16051_v29 = vsub.f32 %v3380_v60, %v4851_v30 }
 0x2ca   : > { %v6250_v5 = vld [vmem:[#allocation5 + $0x758] sm:$0xff]  ;;  %v22047_v13 = vld [vmem:[#allocation96_spill] sm:$0xff]  ;;  %22048 = vst [vmem:[#allocation88_spill] sm:$0xff] %v16040_v28  ;;  %22049 = vst [vmem:[#allocation89_spill] sm:$0xff] %v16042_v12  ;;  %v4857_v61 = vand.u32 4294901760, %v3383_v17  ;;  %v6399_v2 = vand.u32 4294901760, %v6244_v6  ;;  %v16055_v52 = vpack.c.bf16 %v4855_v9, %v4851_v30  ;;  %v16057_v27 = vsub.f32 %v3384_v20, %v4855_v9 }
 0x2cb   : > { %10991 = vmatprep.subr.bf16.mxu1 %v22047_v13  ;;  %22050 = vst [vmem:[#allocation91_spill] sm:$0xff] %v16044_v19  ;;  %22051 = vst [vmem:[#allocation92_spill] sm:$0xff] %v16046_v45  ;;  %v3388_v25 = vld [vmem:[#allocation5 + $0x7a8] sm:$0xff]  ;;  %v22052_v42 = vld [vmem:[#allocation99_spill] sm:$0xff]  ;;  %v6403_v13 = vand.u32 4294901760, %v6250_v5  ;;  %v16059_v45 = vsub.f32 %v6231_v40, %v6393_v62  ;;  %v16062_v22 = vpack.c.bf16 %v6397_v58, %v6393_v62 }
 0x2cc   : > { %v3392_v54 = vld [vmem:[#allocation5 + $0x808] sm:$0xff]  ;;  %11373 = vmatpush1.bf16.msra.mxu0 %v22052_v42  ;;  %22053 = vst [vmem:[#allocation95_spill] sm:$0xff] %v16049_v7  ;;  %22054 = vst [vmem:[#allocation97_spill] sm:$0xff] %v16051_v29  ;;  %v6243_v63 = vld [vmem:[#allocation5 + $0x6f0] sm:$0xff]  ;;  %v16064_v60 = vsub.f32 %v6237_v24, %v6397_v58  ;;  %v4859_v29 = vand.u32 4294901760, %v3388_v25  ;;  %v16066_v18 = vpack.c.bf16 %v4857_v61, %v4853_v15 }
 0x2cd   : > { %v6249_v57 = vld [vmem:[#allocation5 + $0x750] sm:$0xff]  ;;  %v22055_v12 = vld [vmem:[#allocation102_spill] sm:$0xff]  ;;  %22057 = vst [vmem:[#allocation98_spill] sm:$0xff] %v16055_v52  ;;  %22058 = vst [vmem:[#allocation100_spill] sm:$0xff] %v16057_v27  ;;  %v4863_v7 = vand.u32 4294901760, %v3392_v54  ;;  %v16068_v30 = vsub.f32 %v3379_v11, %v4853_v15  ;;  %v6401_v20 = vand.u32 4294901760, %v6243_v63  ;;  %v16079_v11 = vsub.f32 %v6250_v5, %v6403_v13 }
 0x2ce   : > { %10993 = vmatpush1.bf16.msra.mxu1 %v22055_v12  ;;  %v22056_v28 = vld [vmem:[#allocation106_spill] sm:$0xff]  ;;  %22059 = vst [vmem:[#allocation101_spill] sm:$0xff] %v16059_v45  ;;  %v3387_v19 = vld [vmem:[#allocation5 + $0x7a0] sm:$0xff]  ;;  %v22060_v23 = vld [vmem:[#allocation108_spill] sm:$0xff]  ;;  %v6405_v9 = vand.u32 4294901760, %v6249_v57  ;;  %v16073_v45 = vpack.c.bf16 %v6403_v13, %v6399_v2 }
 0x2cf   : > { %11375 = vmatprep.subr.bf16.mxu0 %v22056_v28  ;;  %v3391_v42 = vld [vmem:[#allocation5 + $0x800] sm:$0xff]  ;;  %10995 = vmatprep.subr.bf16.mxu1 %v22060_v23  ;;  %22061 = vst [vmem:[#allocation103_spill] sm:$0xff] %v16062_v22  ;;  %22062 = vst [vmem:[#allocation104_spill] sm:$0xff] %v16064_v60  ;;  %v6256_v51 = vld [vmem:[#allocation5 + $0x7b8] sm:$0xff]  ;;  %v16071_v28 = vsub.f32 %v3383_v17, %v4857_v61  ;;  %v4861_v62 = vand.u32 4294901760, %v3387_v19  ;;  %v16077_v22 = vsub.f32 %v6244_v6, %v6399_v2 }
 0x2d0   : > { %v6262_v12 = vld [vmem:[#allocation5 + $0x818] sm:$0xff]  ;;  %22063 = vst [vmem:[#allocation105_spill] sm:$0xff] %v16066_v18  ;;  %22064 = vst [vmem:[#allocation107_spill] sm:$0xff] %v16068_v30  ;;  %v22065_v40 = vld [vmem:[#allocation111_spill] sm:$0xff]  ;;  %v4865_v23 = vand.u32 4294901760, %v3391_v42  ;;  %v6407_v15 = vand.u32 4294901760, %v6256_v51  ;;  %v16082_v61 = vpack.c.bf16 %v4863_v7, %v4859_v29  ;;  %v16088_v52 = vsub.f32 %v6243_v63, %v6401_v20 }
 0x2d1   : > { %11377 = vmatpush1.bf16.msra.mxu0 %v22065_v40  ;;  %22066 = vst [vmem:[#allocation109_spill] sm:$0xff] %v16071_v28  ;;  %22067 = vst [vmem:[#allocation110_spill] sm:$0xff] %v16073_v45  ;;  %v3396_v24 = vld [vmem:[#allocation5 + $0x868] sm:$0xff]  ;;  %v22068_v60 = vld [vmem:[#allocation114_spill] sm:$0xff]  ;;  %v6411_v30 = vand.u32 4294901760, %v6262_v12  ;;  %v16084_v28 = vsub.f32 %v3388_v25, %v4859_v29  ;;  %v16086_v45 = vsub.f32 %v3392_v54, %v4863_v7 }
 0x2d2   : > { %v3400_v58 = vld [vmem:[#allocation5 + $0x8c8] sm:$0xff]  ;;  %10997 = vmatpush1.bf16.msra.mxu1 %v22068_v60  ;;  %v22069_v27 = vld [vmem:[#allocation118_spill] sm:$0xff]  ;;  %22070 = vst [vmem:[#allocation209_spill] sm:$0xff] %v16077_v22  ;;  %22071 = vst [vmem:[#allocation210_spill] sm:$0xff] %v16079_v11  ;;  %v16092_v6 = vsub.f32 %v6249_v57, %v6405_v9  ;;  %v4867_v5 = vand.u32 4294901760, %v3396_v24  ;;  %v16097_v29 = vsub.f32 %v3387_v19, %v4861_v62 }
 0x2d3   : > { %11379 = vmatprep.subr.bf16.mxu0 %v22069_v27  ;;  %v6255_v18 = vld [vmem:[#allocation5 + $0x7b0] sm:$0xff]  ;;  %v22072_v17 = vld [vmem:[#allocation120_spill] sm:$0xff]  ;;  %22073 = vst [vmem:[#allocation211_spill] sm:$0xff] %v16082_v61  ;;  %22074 = vst [vmem:[#allocation212_spill] sm:$0xff] %v16084_v28  ;;  %v16090_v27 = vpack.c.bf16 %v6405_v9, %v6401_v20  ;;  %v4871_v2 = vand.u32 4294901760, %v3400_v58  ;;  %v16101_v20 = vsub.f32 %v3391_v42, %v4865_v23 }
 0x2d4   : > { %v6261_v40 = vld [vmem:[#allocation5 + $0x810] sm:$0xff]  ;;  %10999 = vmatprep.subr.bf16.mxu1 %v22072_v17  ;;  %22075 = vst [vmem:[#allocation112_spill] sm:$0xff] %v16086_v45  ;;  %22076 = vst [vmem:[#allocation113_spill] sm:$0xff] %v16088_v52  ;;  %v3395_v60 = vld [vmem:[#allocation5 + $0x860] sm:$0xff]  ;;  %v16095_v17 = vpack.c.bf16 %v4865_v23, %v4861_v62  ;;  %v6409_v7 = vand.u32 4294901760, %v6255_v18  ;;  %v16103_v57 = vpack.c.bf16 %v6411_v30, %v6407_v15 }
 0x2d5   : > { %22077 = vst [vmem:[#allocation115_spill] sm:$0xff] %v16090_v27  ;;  %22078 = vst [vmem:[#allocation116_spill] sm:$0xff] %v16092_v6  ;;  %v3399_v13 = vld [vmem:[#allocation5 + $0x8c0] sm:$0xff]  ;;  %v6268_v11 = vld [vmem:[#allocation5 + $0x878] sm:$0xff]  ;;  %v6413_v25 = vand.u32 4294901760, %v6261_v40  ;;  %v16105_v9 = vsub.f32 %v6256_v51, %v6407_v15  ;;  %v16108_v27 = vsub.f32 %v6262_v12, %v6411_v30  ;;  %v16112_v42 = vsub.f32 %v3396_v24, %v4867_v5 }
 0x2d6   : > { %v6274_v22 = vld [vmem:[#allocation5 + $0x8d8] sm:$0xff]  ;;  %v22079_v43 = vld [vmem:[#allocation123_spill] sm:$0xff]  ;;  %22080 = vst [vmem:[#allocation124_spill] sm:$0xff] %v16095_v17  ;;  %22081 = vst [vmem:[#allocation125_spill] sm:$0xff] %v16097_v29  ;;  %v4873_v28 = vand.u32 4294901760, %v3399_v13  ;;  %v6415_v19 = vand.u32 4294901760, %v6268_v11  ;;  %v16114_v23 = vsub.f32 %v3400_v58, %v4871_v2 }
 0x2d7   : > { %11381 = vmatpush1.bf16.msra.mxu0 %v22079_v43  ;;  %v22082_v54 = vld [vmem:[#allocation126_spill] sm:$0xff]  ;;  %22084 = vst [vmem:[#allocation128_spill] sm:$0xff] %v16101_v20  ;;  %22085 = vst [vmem:[#allocation129_spill] sm:$0xff] %v16103_v57  ;;  %v3404_v6 = vld [vmem:[#allocation5 + $0x928] sm:$0xff]  ;;  %v4869_v43 = vand.u32 4294901760, %v3395_v60  ;;  %v6419_v62 = vand.u32 4294901760, %v6274_v22  ;;  %v16123_v24 = vsub.f32 %v6261_v40, %v6413_v25 }
 0x2d8   : > { %11001 = vmatpush1.bf16.msra.mxu1 %v22082_v54  ;;  %v22083_v63 = vld [vmem:[#allocation130_spill] sm:$0xff]  ;;  %22086 = vst [vmem:[#allocation131_spill] sm:$0xff] %v16105_v9  ;;  %v3408_v52 = vld [vmem:[#allocation5 + $0x988] sm:$0xff]  ;;  %v6267_v29 = vld [vmem:[#allocation5 + $0x870] sm:$0xff]  ;;  %v16110_v54 = vpack.c.bf16 %v4871_v2, %v4867_v5  ;;  %v4875_v9 = vand.u32 4294901760, %v3404_v6 }
 0x2d9   : > { %11383 = vmatprep.subr.bf16.mxu0 %v22083_v63  ;;  %v22087_v45 = vld [vmem:[#allocation132_spill] sm:$0xff]  ;;  %v6273_v17 = vld [vmem:[#allocation5 + $0x8d0] sm:$0xff]  ;;  %22088 = vst [vmem:[#allocation136_spill] sm:$0xff] %v16108_v27  ;;  %22090 = vst [vmem:[#allocation139_spill] sm:$0xff] %v16112_v42  ;;  %v16117_v63 = vpack.c.bf16 %v6413_v25, %v6409_v7  ;;  %v4879_v20 = vand.u32 4294901760, %v3408_v52  ;;  %v16125_v58 = vsub.f32 %v3395_v60, %v4869_v43  ;;  %v6417_v5 = vand.u32 4294901760, %v6267_v29 }
 0x2da   : > { %11003 = vmatprep.subr.bf16.mxu1 %v22087_v45  ;;  %22089 = vst [vmem:[#allocation137_spill] sm:$0xff] %v16110_v54  ;;  %22091 = vst [vmem:[#allocation140_spill] sm:$0xff] %v16114_v23  ;;  %v3403_v51 = vld [vmem:[#allocation5 + $0x920] sm:$0xff]  ;;  %v16119_v45 = vsub.f32 %v6255_v18, %v6409_v7  ;;  %v6280_v61 = vld [vmem:[#allocation5 + $0x938] sm:$0xff]  ;;  %v6421_v2 = vand.u32 4294901760, %v6273_v17  ;;  %v16128_v23 = vpack.c.bf16 %v4873_v28, %v4869_v43 }
 0x2db   : > { %v22092_v15 = vld [vmem:[#allocation135_spill] sm:$0xff]  ;;  %22093 = vst [vmem:[#allocation143_spill] sm:$0xff] %v16117_v63  ;;  %v6286_v0 = vld [vmem:[#allocation5 + $0x998] sm:$0xff]  ;;  %22097 = vst [vmem:[#allocation146_spill] sm:$0xff] %v16123_v24  ;;  %v16130_v18 = vsub.f32 %v3399_v13, %v4873_v28  ;;  %v16132_v7 = vpack.c.bf16 %v6419_v62, %v6415_v19  ;;  %v4877_v27 = vand.u32 4294901760, %v3403_v51  ;;  %v6423_v40 = vand.u32 4294901760, %v6280_v61 }
 0x2dc   : > { %11385 = vmatpush1.bf16.msra.mxu0 %v22092_v15  ;;  %22094 = vst [vmem:[#allocation145_spill] sm:$0xff] %v16119_v45  ;;  %v3407_v57 = vld [vmem:[#allocation5 + $0x980] sm:$0xff]  ;;  %v22095_v12 = vld [vmem:[#allocation138_spill] sm:$0xff]  ;;  %22098 = vst [vmem:[#allocation148_spill] sm:$0xff] %v16125_v58  ;;  %v16134_v45 = vsub.f32 %v6268_v11, %v6415_v19  ;;  %v6427_v25 = vand.u32 4294901760, %v6286_v0  ;;  %v16137_v63 = vsub.f32 %v6274_v22, %v6419_v62 }
 0x2dd   : > { %11005 = vmatpush1.bf16.msra.mxu1 %v22095_v12  ;;  %v22096_v30 = vld [vmem:[#allocation142_spill] sm:$0xff]  ;;  %v22099_v15 = vld [vmem:[#allocation144_spill] sm:$0xff]  ;;  %22100 = vst [vmem:[#allocation149_spill] sm:$0xff] %v16128_v23  ;;  %22101 = vst [vmem:[#allocation151_spill] sm:$0xff] %v16130_v18  ;;  %v16139_v43 = vpack.c.bf16 %v4879_v20, %v4875_v9  ;;  %v16141_v28 = vsub.f32 %v3404_v6, %v4875_v9  ;;  %v16143_v13 = vsub.f32 %v3408_v52, %v4879_v20 }
 0x2de   : > { %11387 = vmatprep.subr.bf16.mxu0 %v22096_v30  ;;  %11007 = vmatprep.subr.bf16.mxu1 %v22099_v15  ;;  %22102 = vst [vmem:[#allocation152_spill] sm:$0xff] %v16132_v7  ;;  %22103 = vst [vmem:[#allocation155_spill] sm:$0xff] %v16134_v45  ;;  %v3412_v42 = vld [vmem:[#allocation5 + $0x9e8] sm:$0xff]  ;;  %v4881_v30 = vand.u32 4294901760, %v3407_v57  ;;  %v6279_v60 = vld [vmem:[#allocation5 + $0x930] sm:$0xff]  ;;  %v16147_v15 = vpack.c.bf16 %v6421_v2, %v6417_v5  ;;  %v16149_v45 = vsub.f32 %v6267_v29, %v6417_v5 }
 0x2df   : > { %v3416_v12 = vld [vmem:[#allocation5 + $0xa48] sm:$0xff]  ;;  %v6285_v58 = vld [vmem:[#allocation5 + $0x990] sm:$0xff]  ;;  %v22104_v24 = vld [vmem:[#allocation147_spill] sm:$0xff]  ;;  %22105 = vst [vmem:[#allocation157_spill] sm:$0xff] %v16137_v63  ;;  %v4883_v18 = vand.u32 4294901760, %v3412_v42  ;;  %v16152_v62 = vsub.f32 %v6273_v17, %v6421_v2  ;;  %v16154_v6 = vsub.f32 %v3403_v51, %v4877_v27  ;;  %v6425_v52 = vand.u32 4294901760, %v6279_v60 }
 0x2e0   : > { %11389 = vmatpush1.bf16.msra.mxu0 %v22104_v24  ;;  %22106 = vst [vmem:[#allocation158_spill] sm:$0xff] %v16139_v43  ;;  %22107 = vst [vmem:[#allocation161_spill] sm:$0xff] %v16141_v28  ;;  %v22109_v11 = vld [vmem:[#allocation150_spill] sm:$0xff]  ;;  %v4887_v7 = vand.u32 4294901760, %v3416_v12  ;;  %v3411_v23 = vld [vmem:[#allocation5 + $0x9e0] sm:$0xff]  ;;  %v6429_v20 = vand.u32 4294901760, %v6285_v58  ;;  %v16160_v29 = vpack.c.bf16 %v6427_v25, %v6423_v40  ;;  %v16162_v5 = vsub.f32 %v6280_v61, %v6423_v40 }
 0x2e1   : > { %22108 = vst [vmem:[#allocation179_spill] sm:$0xff] %v16143_v13  ;;  %11009 = vmatpush1.bf16.msra.mxu1 %v22109_v11  ;;  %v22110_v19 = vld [vmem:[#allocation154_spill] sm:$0xff]  ;;  %22111 = vst [vmem:[#allocation191_spill] sm:$0xff] %v16147_v15  ;;  %v3415_v24 = vld [vmem:[#allocation5 + $0xa40] sm:$0xff]  ;;  %v16156_v13 = vpack.c.bf16 %v4881_v30, %v4877_v27  ;;  %v16165_v17 = vsub.f32 %v6286_v0, %v6427_v25  ;;  %v16167_v51 = vsub.f32 %v3412_v42, %v4883_v18 }
 0x2e2   : > { %11391 = vmatprep.subr.bf16.mxu0 %v22110_v19  ;;  %22112 = vst [vmem:[#allocation195_spill] sm:$0xff] %v16149_v45  ;;  %v22113_v22 = vld [vmem:[#allocation156_spill] sm:$0xff]  ;;  %22114 = vst [vmem:[#allocation197_spill] sm:$0xff] %v16152_v62  ;;  %v6292_v9 = vld [vmem:[#allocation5 + $0x9f8] sm:$0xff]  ;;  %v16158_v19 = vsub.f32 %v3407_v57, %v4881_v30  ;;  %v4885_v2 = vand.u32 4294901760, %v3411_v23  ;;  %v16171_v61 = vpack.c.bf16 %v4887_v7, %v4883_v18 }
 0x2e3   : > { %11011 = vmatprep.subr.bf16.mxu1 %v22113_v22  ;;  %22115 = vst [vmem:[#allocation198_spill] sm:$0xff] %v16154_v6  ;;  %v6298_v11 = vld [vmem:[#allocation5 + $0xa58] sm:$0xff]  ;;  %22116 = vst [vmem:[#allocation200_spill] sm:$0xff] %v16156_v13  ;;  %v3420_v45 = vld [vmem:[#allocation5 + $0xaa8] sm:$0xff]  ;;  %v4889_v6 = vand.u32 4294901760, %v3415_v24  ;;  %v16173_v40 = vsub.f32 %v3416_v12, %v4887_v7  ;;  %v16176_v0 = vpack.c.bf16 %v6429_v20, %v6425_v52 }
 0x2e4   : > { %22117 = vst [vmem:[#allocation202_spill] sm:$0xff] %v16158_v19  ;;  %22118 = vst [vmem:[#allocation203_spill] sm:$0xff] %v16160_v29  ;;  %v3424_v28 = vld [vmem:[#allocation5 + $0xb08] sm:$0xff]  ;;  %v6291_v63 = vld [vmem:[#allocation5 + $0x9f0] sm:$0xff]  ;;  %v6435_v19 = vand.u32 4294901760, %v6298_v11  ;;  %v16178_v42 = vsub.f32 %v6279_v60, %v6425_v52  ;;  %v4891_v25 = vand.u32 4294901760, %v3420_v45  ;;  %v16181_v7 = vsub.f32 %v6285_v58, %v6429_v20 }
 0x2e5   : > { %22119 = vst [vmem:[#allocation22_spill] sm:$0xff] %v16162_v5  ;;  %v22120_v22 = vld [vmem:[#allocation159_spill] sm:$0xff]  ;;  %22121 = vst [vmem:[#allocation232_spill] sm:$0xff] %v16165_v17  ;;  %v6297_v62 = vld [vmem:[#allocation5 + $0xa50] sm:$0xff]  ;;  %v6431_v5 = vand.u32 4294901760, %v6292_v9  ;;  %v6433_v15 = vand.u32 4294901760, %v6291_v63  ;;  %v16183_v12 = vpack.c.bf16 %v4889_v6, %v4885_v2 }
 0x2e6   : > { %11393 = vmatpush1.bf16.msra.mxu0 %v22120_v22  ;;  %22122 = vst [vmem:[#allocation243_spill] sm:$0xff] %v16167_v51  ;;  %v3419_v27 = vld [vmem:[#allocation5 + $0xaa0] sm:$0xff]  ;;  %v22123_v57 = vld [vmem:[#allocation162_spill] sm:$0xff]  ;;  %22125 = vst [vmem:[#allocation23_spill] sm:$0xff] %v16171_v61  ;;  %v4895_v51 = vand.u32 4294901760, %v3424_v28  ;;  %v16196_v20 = vsub.f32 %v6298_v11, %v6435_v19 }
 0x2e7   : > { %v3423_v13 = vld [vmem:[#allocation5 + $0xb00] sm:$0xff]  ;;  %11013 = vmatpush1.bf16.msra.mxu1 %v22123_v57  ;;  %v22124_v30 = vld [vmem:[#allocation166_spill] sm:$0xff]  ;;  %22126 = vst [vmem:[#allocation21_spill] sm:$0xff] %v16173_v40  ;;  %v22127_v22 = vld [vmem:[#allocation168_spill] sm:$0xff]  ;;  %v6437_v57 = vand.u32 4294901760, %v6297_v62  ;;  %v4893_v43 = vand.u32 4294901760, %v3419_v27  ;;  %v16185_v40 = vsub.f32 %v3411_v23, %v4885_v2 }
 0x2e8   : > { %11395 = vmatprep.subr.bf16.mxu0 %v22124_v30  ;;  %11015 = vmatprep.subr.bf16.mxu1 %v22127_v22  ;;  %22128 = vst [vmem:[#allocation24_spill] sm:$0xff] %v16176_v0  ;;  %22129 = vst [vmem:[#allocation240_spill] sm:$0xff] %v16178_v42  ;;  %v6304_v17 = vld [vmem:[#allocation5 + $0xab8] sm:$0xff]  ;;  %v4897_v30 = vand.u32 4294901760, %v3423_v13  ;;  %v22130_v18 = vld [vmem:[#allocation171_spill] sm:$0xff]  ;;  %v16187_v22 = vsub.f32 %v3415_v24, %v4889_v6  ;;  %v16191_v42 = vpack.c.bf16 %v6435_v19, %v6431_v5 }
 0x2e9   : > { %v6310_v29 = vld [vmem:[#allocation5 + $0xb18] sm:$0xff]  ;;  %22131 = vst [vmem:[#allocation25_spill] sm:$0xff] %v16181_v7  ;;  %22132 = vst [vmem:[#allocation26_spill] sm:$0xff] %v16183_v12  ;;  %v16193_v0 = vsub.f32 %v6292_v9, %v6431_v5  ;;  %v6439_v61 = vand.u32 4294901760, %v6304_v17  ;;  %v3428_v16 = vld [vmem:[#allocation5 + $0xb68] sm:$0xff]  ;;  %v16198_v23 = vpack.c.bf16 %v4895_v51, %v4891_v25  ;;  %v16200_v24 = vsub.f32 %v3420_v45, %v4891_v25 }
 0x2ea   : > { %11397 = vmatpush1.bf16.msra.mxu0 %v22130_v18  ;;  %22133 = vst [vmem:[#allocation33_spill] sm:$0xff] %v16185_v40  ;;  %22134 = vst [vmem:[#allocation34_spill] sm:$0xff] %v16187_v22  ;;  %v22135_v60 = vld [vmem:[#allocation174_spill] sm:$0xff]  ;;  %v6443_v54 = vand.u32 4294901760, %v6310_v29  ;;  %v3432_v18 = vld [vmem:[#allocation5 + $0xbc8] sm:$0xff]  ;;  %v16202_v6 = vsub.f32 %v3424_v28, %v4895_v51  ;;  %v16206_v9 = vsub.f32 %v6291_v63, %v6433_v15  ;;  %v4899_v28 = vand.u32 4294901760, %v3428_v16 }
 0x2eb   : > { %11017 = vmatpush1.bf16.msra.mxu1 %v22135_v60  ;;  %v22136_v52 = vld [vmem:[#allocation178_spill] sm:$0xff]  ;;  %22137 = vst [vmem:[#allocation35_spill] sm:$0xff] %v16191_v42  ;;  %22138 = vst [vmem:[#allocation36_spill] sm:$0xff] %v16193_v0  ;;  %v22139_v58 = vld [vmem:[#allocation180_spill] sm:$0xff]  ;;  %v16208_v5 = vsub.f32 %v6297_v62, %v6437_v57  ;;  %v16210_v0 = vpack.c.bf16 %v4897_v30, %v4893_v43  ;;  %v16213_v19 = vsub.f32 %v3419_v27, %v4893_v43 }
 0x2ec   : > { %11399 = vmatprep.subr.bf16.mxu0 %v22136_v52  ;;  %11019 = vmatprep.subr.bf16.mxu1 %v22139_v58  ;;  %22140 = vst [vmem:[#allocation37_spill] sm:$0xff] %v16196_v20  ;;  %22141 = vst [vmem:[#allocation38_spill] sm:$0xff] %v16198_v23  ;;  %v6303_v2 = vld [vmem:[#allocation5 + $0xab0] sm:$0xff]  ;;  %v16204_v52 = vpack.c.bf16 %v6437_v57, %v6433_v15  ;;  %v3427_v22 = vld [vmem:[#allocation5 + $0xb60] sm:$0xff]  ;;  %v16215_v45 = vsub.f32 %v3423_v13, %v4897_v30  ;;  %v4903_v51 = vand.u32 4294901760, %v3432_v18 }
 0x2ed   : > { %22142 = vst [vmem:[#allocation39_spill] sm:$0xff] %v16200_v24  ;;  %22143 = vst [vmem:[#allocation40_spill] sm:$0xff] %v16202_v6  ;;  %v6309_v60 = vld [vmem:[#allocation5 + $0xb10] sm:$0xff]  ;;  %v3431_v58 = vld [vmem:[#allocation5 + $0xbc0] sm:$0xff]  ;;  %v16219_v15 = vpack.c.bf16 %v6443_v54, %v6439_v61  ;;  %v6441_v62 = vand.u32 4294901760, %v6303_v2  ;;  %v16225_v13 = vsub.f32 %v6304_v17, %v6439_v61  ;;  %v4901_v27 = vand.u32 4294901760, %v3427_v22 }
 0x2ee   : > { %22144 = vst [vmem:[#allocation41_spill] sm:$0xff] %v16204_v52  ;;  %22145 = vst [vmem:[#allocation52_spill] sm:$0xff] %v16206_v9  ;;  %v22148_v11 = vld [vmem:[#allocation183_spill] sm:$0xff]  ;;  %v6316_v25 = vld [vmem:[#allocation5 + $0xb78] sm:$0xff]  ;;  %v6445_v57 = vand.u32 4294901760, %v6309_v60  ;;  %v4905_v30 = vand.u32 4294901760, %v3431_v58  ;;  %v16235_v40 = vsub.f32 %v3432_v18, %v4903_v51 }
 0x2ef   : > { %22146 = vst [vmem:[#allocation53_spill] sm:$0xff] %v16208_v5  ;;  %22147 = vst [vmem:[#allocation66_spill] sm:$0xff] %v16210_v0  ;;  %11401 = vmatpush1.bf16.msra.mxu0 %v22148_v11  ;;  %v6322_v6 = vld [vmem:[#allocation5 + $0xbd8] sm:$0xff]  ;;  %v6315_v9 = vld [vmem:[#allocation5 + $0xb70] sm:$0xff]  ;;  %v16233_v5 = vpack.c.bf16 %v4903_v51, %v4899_v28  ;;  %v16255_v51 = vsub.f32 %v3427_v22, %v4901_v27  ;;  %v22172_v22 = vsub.f32 %v15632_v37, %v15662_v55 }
 0x2f0   : > { %22149 = vst [vmem:[#allocation70_spill] sm:$0xff] %v16213_v19  ;;  %22150 = vst [vmem:[#allocation72_spill] sm:$0xff] %v16215_v45  ;;  %v22151_v24 = vld [vmem:[#allocation186_spill] sm:$0xff]  ;;  %v16222_v11 = vld [vmem:[#allocation5 + $0xbd0] sm:$0xff]  ;;  %v6447_v19 = vand.u32 4294901760, %v6316_v25  ;;  %v6451_v20 = vand.u32 4294901760, %v6322_v6  ;;  %v16240_v45 = vpack.c.bf16 %v6445_v57, %v6441_v62  ;;  %v16251_v18 = vsub.f32 %v6309_v60, %v6445_v57 }
 0x2f1   : > { %11021 = vmatpush1.bf16.msra.mxu1 %v22151_v24  ;;  %v22152_v63 = vld [vmem:[#allocation190_spill] sm:$0xff]  ;;  %22153 = vst [vmem:[#allocation75_spill] sm:$0xff] %v16219_v15  ;;  %v22154_v43 = vld [vmem:[#allocation192_spill] sm:$0xff]  ;;  %22155 = vst [vmem:[#allocation78_spill] sm:$0xff] %v16225_v13  ;;  %v16228_v24 = vsub.f32 %v6310_v29, %v6443_v54  ;;  %v6449_v7 = vand.u32 4294901760, %v6315_v9  ;;  %v20443_v17 = vand.u32 4294901760, %v16222_v11  ;;  %v16242_v54 = vsub.f32 %v6303_v2, %v6441_v62 }
 0x2f2   : > { %11403 = vmatprep.subr.bf16.mxu0 %v22152_v63  ;;  %11023 = vmatprep.subr.bf16.mxu1 %v22154_v43  ;;  %v16230_v63 = vsub.f32 %v3428_v16, %v4899_v28  ;;  %22158 = vst [vmem:[#allocation87_spill] sm:$0xff] %v16233_v5  ;;  %22159 = vst [vmem:[#allocation90_spill] sm:$0xff] %v16235_v40  ;;  %v22160_v61 = vld [vmem:[#allocation196_spill] sm:$0xff]  ;;  %v22161_v43 = vld [vmem:[#allocation199_spill] sm:$0xff]  ;;  %v22164_v16 = vand.u32 4294901760, %v15798_v59  ;;  %v16253_v28 = vpack.c.bf16 %v4905_v30, %v4901_v27 }
 0x2f3   : > { %22156 = vst [vmem:[#allocation82_spill] sm:$0xff] %v16228_v24  ;;  %11405 = vmatpush1.bf16.msra.mxu0 %v21682_v38  ;;  %22162 = vst [vmem:[#allocation94_spill] sm:$0xff] %v16240_v45  ;;  %v16262_v62 = vsub.f32 %v3431_v58, %v4905_v30  ;;  %v20444_v38 = vand.u32 4294901760, %v15804_v50  ;;  %v16274_v60 = vand.u32 4294901760, %v22172_v22  ;;  %v16276_v57 = vsub.f32 %v6322_v6, %v6451_v20  ;;  %v22181_v22 = vld [vmem:[#allocation15_spill] sm:$0xff]  ;;  %v22315_v40 = vld [vmem:[#allocation129_spill] sm:$0xff] }
 0x2f4   : > { %22157 = vst [vmem:[#allocation84_spill] sm:$0xff] %v16230_v63  ;;  %11407 = vmatprep.subr.bf16.mxu0 %v22161_v43  ;;  %22163 = vst [vmem:[#allocation96_spill] sm:$0xff] %v16242_v54  ;;  %v16247_v29 = vsub.f32 %v15798_v59, %v22164_v16  ;;  %v16264_v43 = vpack.c.bf16 %v6451_v20, %v6447_v19  ;;  %v16266_v16 = vsub.f32 %v6316_v25, %v6447_v19  ;;  %v22178_v25 = vld [vmem:[#allocation241_spill] sm:$0xff]  ;;  %v22183_v55 = vld [vmem:[#allocation255_spill] sm:$0xff] }
 0x2f5   : > { %11025 = vmatpush1.bf16.msra.mxu1 %v22160_v61  ;;  %22165 = vst [vmem:[#allocation99_spill] sm:$0xff] %v16251_v18  ;;  %22166 = vst [vmem:[#allocation102_spill] sm:$0xff] %v16253_v28  ;;  %v22168_v61 = vand.u32 4294901760, %v15800_v46  ;;  %v16280_v58 = vpack.c.bf16 %v20443_v17, %v6449_v7  ;;  %v16282_v27 = vsub.f32 %v6315_v9, %v6449_v7  ;;  %v20447_v20 = vand.u32 4294901760, %v15808_v53  ;;  %v22189_v7 = vld [vmem:[#allocation234_spill] sm:$0xff]  ;;  %v22310_v18 = vld [vmem:[#allocation63_spill] sm:$0xff] }
 0x2f6   : > { %11411 = vmatprep.subr.bf16.mxu1 %v15794_v14  ;;  %22167 = vst [vmem:[#allocation106_spill] sm:$0xff] %v16255_v51  ;;  %22169 = vst [vmem:[#allocation108_spill] sm:$0xff] %v16262_v62  ;;  %v20450_v6 = vand.u32 4294901760, %v15810_v21  ;;  %v16304_v30 = vsub.f32 %v15804_v50, %v20444_v38  ;;  %v22179_v38 = vld [vmem:[#allocation223_spill] sm:$0xff]  ;;  %v22239_v50 = vld [vmem:[#allocation164_spill] sm:$0xff] }
 0x2f7   : > { %v16260_v2 = vsub.f32 %v15800_v46, %v22168_v61  ;;  %22170 = vst [vmem:[#allocation111_spill] sm:$0xff] %v16264_v43  ;;  %22171 = vst [vmem:[#allocation114_spill] sm:$0xff] %v16266_v16  ;;  %11409 = vmatpush1.bf16.msra.mxu0 %v21692_v34  ;;  %v22177_v34 = vand.u32 4294901760, %v15802_v31  ;;  %v22182_v61 = vld [vmem:[#allocation17_spill] sm:$0xff]  ;;  %v22261_v62 = vld [vmem:[#allocation172_spill] sm:$0xff] }
 0x2f8   : > { %3287 = vmatmul.mubr.f32.vlgmr.msra.gmra.mrb[8].mxu1 %v21951_v35  ;;  %22173 = vst [vmem:[#allocation118_spill] sm:$0xff] %v16274_v60  ;;  %22174 = vst [vmem:[#allocation120_spill] sm:$0xff] %v16276_v57  ;;  %11795 = vmatprep.subr.bf16.mxu0 %v15806_v33  ;;  %v22184_v35 = vld [vmem:[#allocation229_spill] sm:$0xff]  ;;  %v22188_v33 = vld [vmem:[#allocation248_spill] sm:$0xff] }
 0x2f9   : > { %22175 = vst [vmem:[#allocation123_spill] sm:$0xff] %v16280_v58  ;;  %22176 = vst [vmem:[#allocation126_spill] sm:$0xff] %v16282_v27  ;;  %3293 = vmatprep.mubr.f32.mxu1 %v21956_v48  ;;  %11413 = vmatpush1.bf16.msra.mxu1 %v15796_v1  ;;  %v16290_v19 = vsub.f32 %v15802_v31, %v22177_v34  ;;  %v22180_v48 = vld [vmem:[#allocation226_spill] sm:$0xff]  ;;  %v6491_v34 = vsub.f32 %v15808_v53, %v20447_v20  ;;  %v22186_v20 = vand.u32 4294901760, %v15816_v26  ;;  %v22259_v46 = vld [vmem:[#allocation165_spill] sm:$0xff] }
 0x2fa   : > { %11415 = vmatprep.subr.bf16.mxu1 %v15812_v56  ;;  %4765 = vmatmul.mubr.f32.vlgmr.msra.gmra.mrb[8].mxu0 %v21966_v44  ;;  %v20521_v59 = vand.u32 4294901760, %v22259_v46  ;;  %v22264_v51 = vld [vmem:[#allocation73_spill] sm:$0xff]  ;;  %v22312_v54 = vld [vmem:[#allocation124_spill] sm:$0xff] }
 0x2fb   : > { %4771 = vmatprep.mubr.f32.mxu0 %v21971_v41  ;;  %11797 = vmatpush1.bf16.msra.mxu0 %v22179_v38  ;;  %v4950_v9 = vand.u32 4294901760, %v16290_v19  ;;  %v4979_v56 = vsub.f32 %v15816_v26, %v22186_v20  ;;  %v22190_v19 = vand.u32 4294901760, %v15824_v32  ;;  %v22192_v20 = vand.u32 4294901760, %v15830_v4  ;;  %v22204_v41 = vld [vmem:[#allocation30_spill] sm:$0xff] }
 0x2fc   : > { %3295 = vmatmul.mubr.f32.gmra.mrb[10].mxu1 %v21967_v47  ;;  %v6503_v47 = vsub.f32 %v15810_v21, %v20450_v6  ;;  %11799 = vmatprep.subr.bf16.mxu0 %v22184_v35  ;;  %v22187_v6 = vand.u32 4294901760, %v15820_v8 }
 0x2fd   : > { %11417 = vmatpush1.bf16.msra.mxu1 %v22180_v48  ;;  %4912 = vmatprep.mubr.f32.mxu1 %v22183_v55  ;;  %v22185_v48 = vand.u32 4294901760, %v15814_v39  ;;  %v4962_v55 = vand.u32 4294901760, %v16304_v30  ;;  %v6509_v35 = vsub.f32 %v15824_v32, %v22190_v19  ;;  %v4985_v14 = vsub.f32 %v15830_v4, %v22192_v20  ;;  %v22197_v32 = vld [vmem:[#allocation16_spill] sm:$0xff]  ;;  %v22198_v20 = vld [vmem:[#allocation18_spill] sm:$0xff]  ;;  %v22206_v4 = vld [vmem:[#allocation45_spill] sm:$0xff] }
 0x2fe   : > { %v6497_v17 = vsub.f32 %v15820_v8, %v22187_v6  ;;  %4773 = vmatmul.mubr.f32.gmra.mrb[10].mxu0 %v22188_v33  ;;  %11419 = vmatprep.subr.bf16.mxu1 %v22189_v7  ;;  %v22193_v6 = vand.u32 4294901760, %v15834_v36  ;;  %v22194_v30 = vand.u32 4294901760, %v15836_v10  ;;  %v22195_v19 = vand.u32 4294901760, %v15842_v3  ;;  %v22202_v8 = vld [vmem:[#allocation20_spill] sm:$0xff] }
 0x2ff   : > { %v4967_v38 = vsub.f32 %v15814_v39, %v22185_v48  ;;  %v22191_v48 = vand.u32 4294901760, %v15828_v49  ;;  %6460 = vmatprep.mubr.f32.mxu0 %v16274_v60  ;;  %11801 = vmatpush1.bf16.msra.mxu0 %v22197_v32  ;;  %v22199_v60 = vand.u32 4294901760, %v22181_v22  ;;  %v6504_v32 = vand.u32 4294901760, %v6503_v47  ;;  %v22216_v47 = vld [vmem:[#allocation29_spill] sm:$0xff] }
 0x300   : > { %v6515_v7 = vsub.f32 %v15834_v36, %v22193_v6  ;;  %v6527_v37 = vsub.f32 %v15836_v10, %v22194_v30  ;;  %v4991_v33 = vsub.f32 %v15842_v3, %v22195_v19  ;;  %v22200_v36 = vand.u32 4294901760, %v22182_v61  ;;  %v22201_v10 = vld [vmem:[#allocation19_spill] sm:$0xff] }
 0x301   : > { %v4973_v1 = vsub.f32 %v15828_v49, %v22191_v48  ;;  %v22196_v48 = vand.u32 4294901760, %v22178_v25  ;;  %11421 = vmatpush1.bf16.msra.mxu1 %v22198_v20  ;;  %v6521_v6 = vsub.f32 %v22181_v22, %v22199_v60  ;;  %v22203_v3 = vld [vmem:[#allocation27_spill] sm:$0xff]  ;;  %v4980_v20 = vand.u32 4294901760, %v4979_v56 }
 0x302   : > { %v6533_v30 = vsub.f32 %v22182_v61, %v22200_v36  ;;  %11803 = vmatprep.subr.bf16.mxu0 %v22203_v3  ;;  %11423 = vmatprep.subr.bf16.mxu1 %v22204_v41  ;;  %v6498_v44 = vand.u32 4294901760, %v6497_v17  ;;  %v6510_v26 = vand.u32 4294901760, %v6509_v35  ;;  %v4986_v60 = vand.u32 4294901760, %v4985_v14  ;;  %v22205_v61 = vld [vmem:[#allocation42_spill] sm:$0xff]  ;;  %v22209_v14 = vld [vmem:[#allocation93_spill] sm:$0xff]  ;;  %v22215_v35 = vld [vmem:[#allocation28_spill] sm:$0xff] }
 0x303   : > { %v5003_v49 = vsub.f32 %v22178_v25, %v22196_v48  ;;  %v6492_v48 = vand.u32 4294901760, %v6491_v34  ;;  %v4968_v25 = vand.u32 4294901760, %v4967_v38  ;;  %v4974_v39 = vand.u32 4294901760, %v4973_v1  ;;  %11805 = vmatpush1.bf16.msra.mxu0 %v22205_v61 }
 0x304   : > { %v6516_v22 = vand.u32 4294901760, %v6515_v7  ;;  %v6528_v21 = vand.u32 4294901760, %v6527_v37  ;;  %v4992_v53 = vand.u32 4294901760, %v4991_v33  ;;  %v6522_v19 = vand.u32 4294901760, %v6521_v6  ;;  %11807 = vmatprep.subr.bf16.mxu0 %v22209_v14  ;;  %v22210_v37 = vld [vmem:[#allocation121_spill] sm:$0xff]  ;;  %v22218_v14 = vld [vmem:[#allocation134_spill] sm:$0xff] }
 0x305   : > { %v5004_v36 = vand.u32 4294901760, %v5003_v49  ;;  %11425 = vmatpush1.bf16.msra.mxu1 %v22206_v4  ;;  %v6534_v3 = vand.u32 4294901760, %v6533_v30  ;;  %v22207_v41 = vand.u32 4294901760, %v22201_v10  ;;  %v22208_v56 = vand.u32 4294901760, %v22202_v8  ;;  %v22219_v7 = vld [vmem:[#allocation153_spill] sm:$0xff]  ;;  %v22241_v4 = vld [vmem:[#allocation48_spill] sm:$0xff] }
 0x306   : > { %11427 = vmatprep.subr.bf16.mxu1 %v22210_v37  ;;  %v22211_v33 = vand.u32 4294901760, %v16247_v29  ;;  %v22212_v49 = vand.u32 4294901760, %v16260_v2  ;;  %v22213_v38 = vand.u32 4294901760, %v16222_v11  ;;  %v20488_v6 = vand.u32 4294901760, %v22216_v47 }
 0x307   : > { %v16379_v34 = vsub.f32 %v22201_v10, %v22207_v41  ;;  %v16384_v1 = vsub.f32 %v22202_v8, %v22208_v56  ;;  %v16401_v30 = vpack.c.bf16 %v4962_v55, %v4950_v9  ;;  %v16403_v56 = vpack.c.bf16 %v6504_v32, %v6492_v48  ;;  %11809 = vmatpush1.bf16.msra.mxu0 %v22218_v14  ;;  %v22224_v55 = vld [vmem:[#allocation43_spill] sm:$0xff]  ;;  %v22231_v14 = vld [vmem:[#allocation122_spill] sm:$0xff]  ;;  %v22238_v8 = vld [vmem:[#allocation160_spill] sm:$0xff] }
 0x308   : > { %v16392_v17 = vpack.c.bf16 %v22212_v49, %v22211_v33  ;;  %v16397_v41 = vsub.f32 %v16222_v11, %v22213_v38  ;;  %v16405_v37 = vpack.c.bf16 %v4980_v20, %v4968_v25  ;;  %v16407_v29 = vpack.c.bf16 %v6510_v26, %v6498_v44  ;;  %v22217_v11 = vld [vmem:[#allocation31_spill] sm:$0xff]  ;;  %v22220_v26 = vld [vmem:[#allocation32_spill] sm:$0xff]  ;;  %v22228_v44 = vld [vmem:[#allocation117_spill] sm:$0xff] }
 0x309   : > { %v16409_v2 = vpack.c.bf16 %v4986_v60, %v4974_v39  ;;  %v16411_v33 = vpack.c.bf16 %v6528_v21, %v6516_v22  ;;  %v16413_v49 = vpack.c.bf16 %v5004_v36, %v4992_v53  ;;  %11429 = vmatpush1.bf16.msra.mxu1 %v22219_v7  ;;  %v16418_v9 = vpack.c.bf16 %v6534_v3, %v6522_v19  ;;  %v22221_v39 = vld [vmem:[#allocation163_spill] sm:$0xff]  ;;  %v22222_v21 = vld [vmem:[#allocation170_spill] sm:$0xff]  ;;  %v22225_v19 = vld [vmem:[#allocation44_spill] sm:$0xff] }
 0x30a   : > { %22214 = vst [vmem:[#allocation130_spill] sm:$0xff] %v16397_v41  ;;  %11811 = vmatprep.subr.bf16.mxu0 %v22221_v39  ;;  %11431 = vmatprep.subr.bf16.mxu1 %v22222_v21  ;;  %v22223_v53 = vand.u32 4294901760, %v22215_v35  ;;  %v16433_v3 = vsub.f32 %v22216_v47, %v20488_v6  ;;  %v22226_v60 = vld [vmem:[#allocation46_spill] sm:$0xff]  ;;  %v22227_v25 = vld [vmem:[#allocation236_spill] sm:$0xff]  ;;  %v22229_v21 = vld [vmem:[#allocation119_spill] sm:$0xff]  ;;  %v22236_v32 = vand.u32 4294901760, %v22220_v26 }
 0x30b   : > { %v22232_v6 = vld [vmem:[#allocation127_spill] sm:$0xff]  ;;  %v22233_v47 = vld [vmem:[#allocation133_spill] sm:$0xff]  ;;  %v22244_v10 = vand.u32 4294901760, %v22226_v60  ;;  %v22248_v31 = vand.u32 4294901760, %v22231_v14 }
 0x30c   : > { %v16428_v22 = vsub.f32 %v22215_v35, %v22223_v53  ;;  %v22230_v53 = vand.u32 4294901760, %v22217_v11  ;;  %v22234_v35 = vld [vmem:[#allocation176_spill] sm:$0xff]  ;;  %v22235_v48 = vld [vmem:[#allocation235_spill] sm:$0xff]  ;;  %v5027_v38 = vsub.f32 %v22220_v26, %v22236_v32  ;;  %v22237_v36 = vld [vmem:[#allocation141_spill] sm:$0xff]  ;;  %v6552_v61 = vand.u32 4294901760, %v16433_v3 }
 0x30d   : > { %11813 = vmatpush1.bf16.msra.mxu0 %v22234_v35  ;;  %11433 = vmatpush1.bf16.msra.mxu1 %v22235_v48  ;;  %v22242_v48 = vand.u32 4294901760, %v22224_v55  ;;  %v22243_v32 = vand.u32 4294901760, %v22225_v19  ;;  %v22247_v26 = vand.u32 4294901760, %v22229_v21 }
 0x30e   : > { %v5015_v7 = vsub.f32 %v22217_v11, %v22230_v53  ;;  %v22240_v11 = vld [vmem:[#allocation194_spill] sm:$0xff]  ;;  %11435 = vmatprep.subr.bf16.mxu1 %v22241_v4  ;;  %v6540_v20 = vand.u32 4294901760, %v16428_v22  ;;  %v5021_v53 = vsub.f32 %v22226_v60, %v22244_v10  ;;  %v22246_v22 = vand.u32 4294901760, %v22228_v44 }
 0x30f   : > { %11815 = vmatprep.subr.bf16.mxu0 %v22240_v11  ;;  %v6545_v35 = vsub.f32 %v22224_v55, %v22242_v48  ;;  %v6557_v39 = vsub.f32 %v22225_v19, %v22243_v32  ;;  %v22245_v11 = vand.u32 4294901760, %v22227_v25  ;;  %v6575_v48 = vsub.f32 %v22229_v21, %v22247_v26 }
 0x310   : > { %v6563_v3 = vsub.f32 %v22228_v44, %v22246_v22  ;;  %v5016_v55 = vand.u32 4294901760, %v5015_v7  ;;  %v5039_v32 = vsub.f32 %v22231_v14, %v22248_v31  ;;  %v22249_v19 = vand.u32 4294901760, %v22232_v6  ;;  %v22252_v22 = vld [vmem:[#allocation55_spill] sm:$0xff] }
 0x311   : > { %v5033_v4 = vsub.f32 %v22227_v25, %v22245_v11  ;;  %v22250_v60 = vand.u32 4294901760, %v22233_v47  ;;  %v22251_v25 = vld [vmem:[#allocation51_spill] sm:$0xff]  ;;  %11437 = vmatpush1.bf16.msra.mxu1 %v22252_v22  ;;  %v5028_v44 = vand.u32 4294901760, %v5027_v38  ;;  %v22253_v26 = vand.u32 4294901760, %v22237_v36 }
 0x312   : > { %v5051_v10 = vsub.f32 %v22232_v6, %v22249_v19  ;;  %11817 = vmatpush1.bf16.msra.mxu0 %v22251_v25  ;;  %v22254_v21 = vand.u32 4294901760, %v22238_v8  ;;  %v22255_v14 = vand.u32 4294901760, %v22239_v50  ;;  %v22256_v6 = vld [vmem:[#allocation58_spill] sm:$0xff]  ;;  %v6546_v25 = vand.u32 4294901760, %v6545_v35  ;;  %v22258_v22 = vld [vmem:[#allocation167_spill] sm:$0xff] }
 0x313   : > { %v6569_v11 = vsub.f32 %v22233_v47, %v22250_v60  ;;  %v6581_v7 = vsub.f32 %v22237_v36, %v22253_v26  ;;  %11819 = vmatprep.subr.bf16.mxu0 %v22256_v6  ;;  %v22257_v60 = vld [vmem:[#allocation61_spill] sm:$0xff]  ;;  %v6558_v47 = vand.u32 4294901760, %v6557_v39  ;;  %v5022_v41 = vand.u32 4294901760, %v5021_v53  ;;  %v22263_v6 = vld [vmem:[#allocation68_spill] sm:$0xff] }
 0x314   : > { %v5045_v31 = vsub.f32 %v22238_v8, %v22254_v21  ;;  %v5057_v19 = vsub.f32 %v22239_v50, %v22255_v14  ;;  %11439 = vmatprep.subr.bf16.mxu1 %v22257_v60  ;;  %v5034_v26 = vand.u32 4294901760, %v5033_v4  ;;  %v6564_v36 = vand.u32 4294901760, %v6563_v3  ;;  %v22260_v8 = vld [vmem:[#allocation169_spill] sm:$0xff]  ;;  %v22262_v50 = vld [vmem:[#allocation64_spill] sm:$0xff] }
 0x315   : > { %v6576_v27 = vand.u32 4294901760, %v6575_v48  ;;  %v5040_v57 = vand.u32 4294901760, %v5039_v32  ;;  %v5052_v21 = vand.u32 4294901760, %v5051_v10  ;;  %11441 = vmatpush1.bf16.msra.mxu1 %v22263_v6  ;;  %v6570_v35 = vand.u32 4294901760, %v6569_v11  ;;  %v22265_v53 = vld [vmem:[#allocation77_spill] sm:$0xff]  ;;  %v22266_v4 = vld [vmem:[#allocation208_spill] sm:$0xff] }
 0x316   : > { %11821 = vmatpush1.bf16.msra.mxu0 %v22262_v50  ;;  %v6582_v39 = vand.u32 4294901760, %v6581_v7  ;;  %v5046_v60 = vand.u32 4294901760, %v5045_v31  ;;  %v5058_v38 = vand.u32 4294901760, %v5057_v19  ;;  %11443 = vmatprep.subr.bf16.mxu1 %v22265_v53  ;;  %v22267_v3 = vld [vmem:[#allocation177_spill] sm:$0xff]  ;;  %v22270_v10 = vand.u32 4294901760, %v16379_v34  ;;  %v22289_v50 = vld [vmem:[#allocation50_spill] sm:$0xff] }
 0x317   : > { %11823 = vmatprep.subr.bf16.mxu0 %v22264_v51  ;;  %v22268_v48 = vsub.f32 %v22266_v4, %v22267_v3  ;;  %v22271_v14 = vand.u32 4294901760, %v16384_v1  ;;  %v22272_v11 = vand.u32 4294901760, %v22258_v22  ;;  %v16526_v31 = vsub.f32 %v22259_v46, %v20521_v59  ;;  %v22284_v53 = vld [vmem:[#allocation245_spill] sm:$0xff]  ;;  %v22290_v4 = vld [vmem:[#allocation54_spill] sm:$0xff] }
 0x318   : > { %v16528_v19 = vpack.c.bf16 %v6552_v61, %v6540_v20  ;;  %v16532_v3 = vpack.c.bf16 %v6558_v47, %v6546_v25  ;;  %v16534_v34 = vpack.c.bf16 %v5034_v26, %v5022_v41  ;;  %v16536_v1 = vpack.c.bf16 %v6576_v27, %v6564_v36  ;;  %v22276_v47 = vld [vmem:[#allocation88_spill] sm:$0xff]  ;;  %v22281_v36 = vld [vmem:[#allocation91_spill] sm:$0xff]  ;;  %v22282_v26 = vld [vmem:[#allocation98_spill] sm:$0xff] }
 0x319   : > { %v16510_v32 = vand.u32 4294901760, %v22268_v48  ;;  %v16516_v16 = vpack.c.bf16 %v22271_v14, %v22270_v10  ;;  %v16521_v7 = vsub.f32 %v22258_v22, %v22272_v11  ;;  %v16530_v48 = vpack.c.bf16 %v5028_v44, %v5016_v55  ;;  %v22275_v44 = vld [vmem:[#allocation81_spill] sm:$0xff]  ;;  %11445 = vmatpush1.bf16.msra.mxu1 %v22276_v47  ;;  %v22295_v47 = vld [vmem:[#allocation56_spill] sm:$0xff]  ;;  %v22297_v46 = vld [vmem:[#allocation110_spill] sm:$0xff] }
 0x31a   : > { %v16538_v14 = vpack.c.bf16 %v5052_v21, %v5040_v57  ;;  %v22273_v10 = vand.u32 4294901760, %v22260_v8  ;;  %v22274_v59 = vand.u32 4294901760, %v22261_v62  ;;  %11825 = vmatpush1.bf16.msra.mxu0 %v22275_v44  ;;  %v16552_v41 = vpack.c.bf16 %v6582_v39, %v6570_v35  ;;  %v22279_v57 = vld [vmem:[#allocation175_spill] sm:$0xff]  ;;  %v22280_v55 = vld [vmem:[#allocation193_spill] sm:$0xff]  ;;  %11447 = vmatprep.subr.bf16.mxu1 %v22282_v26 }
 0x31b   : > { %22269 = vst [vmem:[#allocation132_spill] sm:$0xff] %v16510_v32  ;;  %v16554_v27 = vpack.c.bf16 %v5058_v38, %v5046_v60  ;;  %11827 = vmatprep.subr.bf16.mxu0 %v22281_v36  ;;  %v6588_v21 = vand.u32 4294901760, %v16521_v7  ;;  %v22285_v35 = vld [vmem:[#allocation201_spill] sm:$0xff]  ;;  %v22286_v60 = vld [vmem:[#allocation47_spill] sm:$0xff]  ;;  %v22293_v39 = vand.u32 4294901760, %v22279_v57  ;;  %v22294_v25 = vand.u32 4294901760, %v22280_v55 }
 0x31c   : > { %v16543_v11 = vsub.f32 %v22260_v8, %v22273_v10  ;;  %v16548_v61 = vsub.f32 %v22261_v62, %v22274_v59  ;;  %22277 = vst [vmem:[#allocation135_spill] sm:$0xff] %v16552_v41  ;;  %v6600_v59 = vand.u32 4294901760, %v16526_v31  ;;  %v22283_v10 = vld [vmem:[#allocation247_spill] sm:$0xff]  ;;  %v22287_v51 = vld [vmem:[#allocation49_spill] sm:$0xff]  ;;  %v22307_v22 = vand.u32 4294901760, %v22289_v50 }
 0x31d   : > { %22278 = vst [vmem:[#allocation138_spill] sm:$0xff] %v16554_v27  ;;  %v22288_v6 = vld [vmem:[#allocation233_spill] sm:$0xff]  ;;  %v22291_v62 = vld [vmem:[#allocation103_spill] sm:$0xff]  ;;  %v6593_v38 = vsub.f32 %v22279_v57, %v22293_v39  ;;  %v6605_v20 = vsub.f32 %v22280_v55, %v22294_v25  ;;  %v22299_v31 = vand.u32 4294901760, %v22283_v10  ;;  %v22302_v27 = vld [vmem:[#allocation60_spill] sm:$0xff]  ;;  %v22305_v55 = vand.u32 4294901760, %v22287_v51 }
 0x31e   : > { %v5064_v36 = vand.u32 4294901760, %v16543_v11  ;;  %v5076_v26 = vand.u32 4294901760, %v16548_v61  ;;  %11829 = vmatpush1.bf16.msra.mxu0 %v22291_v62  ;;  %v22292_v44 = vld [vmem:[#allocation105_spill] sm:$0xff]  ;;  %v22298_v7 = vld [vmem:[#allocation211_spill] sm:$0xff]  ;;  %v22300_v62 = vand.u32 4294901760, %v22284_v53  ;;  %v22303_v11 = vand.u32 4294901760, %v22285_v35 }
 0x31f   : > { %11449 = vmatpush1.bf16.msra.mxu1 %v22292_v44  ;;  %v22296_v8 = vld [vmem:[#allocation57_spill] sm:$0xff]  ;;  %11831 = vmatprep.subr.bf16.mxu0 %v22297_v46  ;;  %v5069_v44 = vsub.f32 %v22283_v10, %v22299_v31  ;;  %v22301_v57 = vld [vmem:[#allocation59_spill] sm:$0xff]  ;;  %v22304_v46 = vand.u32 4294901760, %v22286_v60  ;;  %v5087_v31 = vsub.f32 %v22287_v51, %v22305_v55  ;;  %v22306_v10 = vand.u32 4294901760, %v22288_v6 }
 0x320   : > { %11451 = vmatprep.subr.bf16.mxu1 %v22298_v7  ;;  %v5081_v39 = vsub.f32 %v22284_v53, %v22300_v62  ;;  %v6611_v61 = vsub.f32 %v22285_v35, %v22303_v11  ;;  %v6617_v25 = vsub.f32 %v22289_v50, %v22307_v22  ;;  %v22308_v53 = vand.u32 4294901760, %v22290_v4  ;;  %v22309_v35 = vld [vmem:[#allocation62_spill] sm:$0xff] }
 0x321   : > { %v6623_v7 = vsub.f32 %v22286_v60, %v22304_v46  ;;  %v5099_v62 = vsub.f32 %v22288_v6, %v22306_v10  ;;  %v22311_v60 = vld [vmem:[#allocation115_spill] sm:$0xff]  ;;  %v6594_v55 = vand.u32 4294901760, %v6593_v38  ;;  %v6606_v51 = vand.u32 4294901760, %v6605_v20 }
 0x322   : > { %v6629_v11 = vsub.f32 %v22290_v4, %v22308_v53  ;;  %11833 = vmatpush1.bf16.msra.mxu0 %v22311_v60  ;;  %v22313_v10 = vand.u32 4294901760, %v22295_v47  ;;  %v22314_v22 = vand.u32 4294901760, %v22296_v8  ;;  %v22316_v53 = vld [vmem:[#allocation137_spill] sm:$0xff]  ;;  %v5070_v41 = vand.u32 4294901760, %v5069_v44 }
 0x323   : > { %11453 = vmatpush1.bf16.msra.mxu1 %v22312_v54  ;;  %11835 = vmatprep.subr.bf16.mxu0 %v22315_v40  ;;  %v5082_v46 = vand.u32 4294901760, %v5081_v39  ;;  %v22317_v60 = vand.u32 4294901760, %v22301_v57  ;;  %v22318_v20 = vand.u32 4294901760, %v22302_v27  ;;  %v6612_v4 = vand.u32 4294901760, %v6611_v61  ;;  %v22323_v61 = vld [vmem:[#allocation65_spill] sm:$0xff] }
 0x324   : > { %v5093_v6 = vsub.f32 %v22295_v47, %v22313_v10  ;;  %v5105_v50 = vsub.f32 %v22296_v8, %v22314_v22  ;;  %11455 = vmatprep.subr.bf16.mxu1 %v22316_v53  ;;  %v6624_v10 = vand.u32 4294901760, %v6623_v7  ;;  %v5088_v47 = vand.u32 4294901760, %v5087_v31  ;;  %v22321_v8 = vld [vmem:[#allocation143_spill] sm:$0xff]  ;;  %v22454_v13 = vld [vmem:[#allocation138_spill] sm:$0xff] }
 0x325   : > { %v6635_v54 = vsub.f32 %v22301_v57, %v22317_v60  ;;  %v6647_v38 = vsub.f32 %v22302_v27, %v22318_v20  ;;  %v5100_v63 = vand.u32 4294901760, %v5099_v62  ;;  %v6618_v24 = vand.u32 4294901760, %v6617_v25  ;;  %v22322_v60 = vld [vmem:[#allocation149_spill] sm:$0xff]  ;;  %v22324_v31 = vld [vmem:[#allocation67_spill] sm:$0xff]  ;;  %v22325_v25 = vld [vmem:[#allocation152_spill] sm:$0xff] }
 0x326   : > { %v6630_v22 = vand.u32 4294901760, %v6629_v11  ;;  %v22319_v40 = vand.u32 4294901760, %v22309_v35  ;;  %v22320_v44 = vand.u32 4294901760, %v22310_v18  ;;  %11837 = vmatpush1.bf16.msra.mxu0 %v22321_v8  ;;  %v5094_v57 = vand.u32 4294901760, %v5093_v6  ;;  %v22326_v11 = vld [vmem:[#allocation158_spill] sm:$0xff] }
 0x327   : > { %11457 = vmatpush1.bf16.msra.mxu1 %v22322_v60  ;;  %v5106_v20 = vand.u32 4294901760, %v5105_v50  ;;  %11839 = vmatprep.subr.bf16.mxu0 %v22325_v25  ;;  %v16640_v27 = vpack.c.bf16 %v6600_v59, %v6588_v21  ;;  %v16646_v8 = vpack.c.bf16 %v5082_v46, %v5070_v41  ;;  %v16648_v6 = vpack.c.bf16 %v6624_v10, %v6612_v4  ;;  %v22330_v60 = vld [vmem:[#allocation69_spill] sm:$0xff]  ;;  %v22331_v21 = vld [vmem:[#allocation191_spill] sm:$0xff] }
 0x328   : > { %v5111_v53 = vsub.f32 %v22309_v35, %v22319_v40  ;;  %v5123_v39 = vsub.f32 %v22310_v18, %v22320_v44  ;;  %11459 = vmatprep.subr.bf16.mxu1 %v22326_v11  ;;  %v16642_v40 = vpack.c.bf16 %v5076_v26, %v5064_v36  ;;  %v6636_v35 = vand.u32 4294901760, %v6635_v54  ;;  %v22332_v36 = vld [vmem:[#allocation200_spill] sm:$0xff]  ;;  %v22336_v4 = vld [vmem:[#allocation71_spill] sm:$0xff] }
 0x329   : > { %v6648_v44 = vand.u32 4294901760, %v6647_v38  ;;  %v16644_v18 = vpack.c.bf16 %v6606_v51, %v6594_v55  ;;  %22327 = vst [vmem:[#allocation142_spill] sm:$0xff] %v16648_v6  ;;  %v16650_v50 = vpack.c.bf16 %v5100_v63, %v5088_v47  ;;  %v16652_v7 = vpack.c.bf16 %v6630_v22, %v6618_v24  ;;  %v22337_v26 = vld [vmem:[#allocation203_spill] sm:$0xff]  ;;  %v22355_v22 = vld [vmem:[#allocation100_spill] sm:$0xff] }
 0x32a   : > { %v5112_v62 = vand.u32 4294901760, %v5111_v53  ;;  %v5124_v25 = vand.u32 4294901760, %v5123_v39  ;;  %11841 = vmatpush1.bf16.msra.mxu0 %v22331_v21  ;;  %v16657_v54 = vpack.c.bf16 %v5106_v20, %v5094_v57  ;;  %v22334_v51 = vand.u32 4294901760, %v22323_v61  ;;  %v22338_v59 = vld [vmem:[#allocation23_spill] sm:$0xff]  ;;  %v22340_v57 = vld [vmem:[#allocation74_spill] sm:$0xff]  ;;  %v22341_v53 = vld [vmem:[#allocation76_spill] sm:$0xff] }
 0x32b   : > { %22328 = vst [vmem:[#allocation144_spill] sm:$0xff] %v16650_v50  ;;  %22329 = vst [vmem:[#allocation147_spill] sm:$0xff] %v16652_v7  ;;  %11461 = vmatpush1.bf16.msra.mxu1 %v22332_v36  ;;  %v22335_v63 = vand.u32 4294901760, %v22324_v31  ;;  %11843 = vmatprep.subr.bf16.mxu0 %v22337_v26  ;;  %v16672_v46 = vpack.c.bf16 %v6648_v44, %v6636_v35  ;;  %v22342_v10 = vld [vmem:[#allocation79_spill] sm:$0xff]  ;;  %v22343_v39 = vld [vmem:[#allocation80_spill] sm:$0xff]  ;;  %v22352_v11 = vand.u32 4294901760, %v22336_v4 }
 0x32c   : > { %22333 = vst [vmem:[#allocation150_spill] sm:$0xff] %v16657_v54  ;;  %v16662_v41 = vsub.f32 %v22323_v61, %v22334_v51  ;;  %11463 = vmatprep.subr.bf16.mxu1 %v22338_v59  ;;  %v22344_v51 = vld [vmem:[#allocation83_spill] sm:$0xff]  ;;  %v22346_v21 = vld [vmem:[#allocation86_spill] sm:$0xff]  ;;  %v22348_v59 = vand.u32 4294901760, %v22330_v60  ;;  %v22349_v44 = vld [vmem:[#allocation89_spill] sm:$0xff] }
 0x32d   : > { %v16667_v24 = vsub.f32 %v22324_v31, %v22335_v63  ;;  %22339 = vst [vmem:[#allocation154_spill] sm:$0xff] %v16672_v46  ;;  %v22345_v63 = vld [vmem:[#allocation85_spill] sm:$0xff]  ;;  %v16681_v31 = vpack.c.bf16 %v5124_v25, %v5112_v62  ;;  %v22350_v26 = vld [vmem:[#allocation92_spill] sm:$0xff]  ;;  %v5129_v36 = vsub.f32 %v22336_v4, %v22352_v11  ;;  %v22353_v20 = vld [vmem:[#allocation95_spill] sm:$0xff]  ;;  %v22361_v11 = vand.u32 4294901760, %v22341_v53 }
 0x32e   : > { %v5117_v35 = vsub.f32 %v22330_v60, %v22348_v59  ;;  %v22351_v61 = vld [vmem:[#allocation24_spill] sm:$0xff]  ;;  %v22354_v62 = vld [vmem:[#allocation97_spill] sm:$0xff]  ;;  %v22362_v25 = vand.u32 4294901760, %v22342_v10 }
 0x32f   : > { %22347 = vst [vmem:[#allocation156_spill] sm:$0xff] %v16681_v31  ;;  %11845 = vmatpush1.bf16.msra.mxu0 %v22351_v61  ;;  %11465 = vmatpush1.bf16.msra.mxu1 %v16183_v12  ;;  %v22356_v59 = vld [vmem:[#allocation173_spill] sm:$0xff]  ;;  %v22357_v38 = vld [vmem:[#allocation216_spill] sm:$0xff]  ;;  %v22360_v12 = vand.u32 4294901760, %v22340_v57  ;;  %v6671_v47 = vsub.f32 %v22341_v53, %v22361_v11  ;;  %v6642_v53 = vand.u32 4294901760, %v16662_v41  ;;  %v22370_v41 = vand.u32 4294901760, %v22354_v62 }
 0x330   : > { %11847 = vmatprep.subr.bf16.mxu0 %v16191_v42  ;;  %11467 = vmatprep.subr.bf16.mxu1 %v16198_v23  ;;  %v22358_v55 = vsub.f32 %v22356_v59, %v22357_v38  ;;  %v5135_v31 = vsub.f32 %v22342_v10, %v22362_v25  ;;  %v22363_v42 = vand.u32 4294901760, %v22343_v39  ;;  %v22364_v38 = vand.u32 4294901760, %v22344_v51  ;;  %v22372_v7 = vld [vmem:[#allocation101_spill] sm:$0xff]  ;;  %v22373_v50 = vld [vmem:[#allocation104_spill] sm:$0xff] }
 0x331   : > { %v6659_v60 = vsub.f32 %v22340_v57, %v22360_v12  ;;  %v22365_v59 = vand.u32 4294901760, %v22345_v63  ;;  %v22366_v57 = vand.u32 4294901760, %v22346_v21  ;;  %v6654_v25 = vand.u32 4294901760, %v16667_v24 }
 0x332   : > { %v16701_v61 = vand.u32 4294901760, %v22358_v55  ;;  %v5147_v23 = vsub.f32 %v22343_v39, %v22363_v42  ;;  %v6665_v55 = vsub.f32 %v22344_v51, %v22364_v38  ;;  %v22367_v10 = vand.u32 4294901760, %v22349_v44 }
 0x333   : > { %v6677_v12 = vsub.f32 %v22345_v63, %v22365_v59  ;;  %v5141_v11 = vsub.f32 %v22346_v21, %v22366_v57  ;;  %v22368_v39 = vand.u32 4294901760, %v22350_v26  ;;  %11849 = vmatpush1.bf16.msra.mxu0 %v16204_v52  ;;  %11469 = vmatpush1.bf16.msra.mxu1 %v16210_v0  ;;  %v5118_v59 = vand.u32 4294901760, %v5117_v35 }
 0x334   : > { %22359 = vst [vmem:[#allocation159_spill] sm:$0xff] %v16701_v61  ;;  %v5153_v42 = vsub.f32 %v22349_v44, %v22367_v10  ;;  %v22369_v63 = vand.u32 4294901760, %v22353_v20  ;;  %v5159_v24 = vsub.f32 %v22354_v62, %v22370_v41  ;;  %v22371_v21 = vand.u32 4294901760, %v22355_v22  ;;  %11851 = vmatprep.subr.bf16.mxu0 %v16219_v15  ;;  %11471 = vmatprep.subr.bf16.mxu1 %v16233_v5 }
 0x335   : > { %v6683_v38 = vsub.f32 %v22350_v26, %v22368_v39  ;;  %v5130_v39 = vand.u32 4294901760, %v5129_v36  ;;  %v6660_v52 = vand.u32 4294901760, %v6659_v60  ;;  %v6672_v0 = vand.u32 4294901760, %v6671_v47  ;;  %v22374_v60 = vld [vmem:[#allocation107_spill] sm:$0xff]  ;;  %v22380_v47 = vld [vmem:[#allocation253_spill] sm:$0xff]  ;;  %v22452_v26 = vld [vmem:[#allocation126_spill] sm:$0xff] }
 0x336   : > { %v6695_v57 = vsub.f32 %v22353_v20, %v22369_v63  ;;  %v5171_v10 = vsub.f32 %v22355_v22, %v22371_v21  ;;  %v5136_v35 = vand.u32 4294901760, %v5135_v31  ;;  %v5148_v44 = vand.u32 4294901760, %v5147_v23  ;;  %v22375_v31 = vld [vmem:[#allocation109_spill] sm:$0xff]  ;;  %v22450_v22 = vld [vmem:[#allocation114_spill] sm:$0xff] }
 0x337   : > { %v6666_v51 = vand.u32 4294901760, %v6665_v55  ;;  %v6678_v4 = vand.u32 4294901760, %v6677_v12  ;;  %v5142_v63 = vand.u32 4294901760, %v5141_v11  ;;  %v5154_v46 = vand.u32 4294901760, %v5153_v42  ;;  %11853 = vmatpush1.bf16.msra.mxu0 %v16240_v45  ;;  %11473 = vmatpush1.bf16.msra.mxu1 %v16253_v28  ;;  %v22376_v12 = vld [vmem:[#allocation209_spill] sm:$0xff]  ;;  %v22377_v42 = vld [vmem:[#allocation210_spill] sm:$0xff] }
 0x338   : > { %v6684_v54 = vand.u32 4294901760, %v6683_v38  ;;  %v6696_v21 = vand.u32 4294901760, %v6695_v57  ;;  %v5160_v5 = vand.u32 4294901760, %v5159_v24  ;;  %v5172_v36 = vand.u32 4294901760, %v5171_v10  ;;  %11855 = vmatprep.subr.bf16.mxu0 %v16264_v43  ;;  %11475 = vmatprep.subr.bf16.mxu1 %v16392_v17  ;;  %v22379_v24 = vld [vmem:[#allocation212_spill] sm:$0xff]  ;;  %v22401_v45 = vld [vmem:[#allocation139_spill] sm:$0xff] }
 0x339   : > { %v16752_v23 = vpack.c.bf16 %v6654_v25, %v6642_v53  ;;  %v20573_v55 = vand.u32 4294901760, %v22375_v31  ;;  %v20574_v11 = vand.u32 4294901760, %v22376_v12  ;;  %v20575_v38 = vand.u32 4294901760, %v22377_v42  ;;  %v22404_v28 = vld [vmem:[#allocation239_spill] sm:$0xff] }
 0x33a   : > { %v16757_v6 = vpack.c.bf16 %v5130_v39, %v5118_v59  ;;  %v16759_v41 = vpack.c.bf16 %v6672_v0, %v6660_v52  ;;  %v16761_v57 = vpack.c.bf16 %v5148_v44, %v5136_v35  ;;  %v20584_v10 = vand.u32 4294901760, %v22379_v24  ;;  %4918 = vmatmul.mubr.f32.vlgmr.msra.gmra.mrb[12].mxu1 %v22380_v47  ;;  %v22385_v52 = vld [vmem:[#allocation258_spill] sm:$0xff]  ;;  %v22389_v39 = vld [vmem:[#allocation112_spill] sm:$0xff]  ;;  %v22391_v47 = vld [vmem:[#allocation181_spill] sm:$0xff] }
 0x33b   : > { %v16765_v43 = vpack.c.bf16 %v6678_v4, %v6666_v51  ;;  %v16767_v17 = vpack.c.bf16 %v5154_v46, %v5142_v63  ;;  %v22383_v53 = vand.u32 4294901760, %v22372_v7  ;;  %v22384_v59 = vand.u32 4294901760, %v22373_v50  ;;  %11857 = vmatpush1.bf16.msra.mxu0 %v16280_v58  ;;  %4928 = vmatprep.mubr.f32.mxu1 %v22385_v52  ;;  %v22390_v63 = vld [vmem:[#allocation214_spill] sm:$0xff]  ;;  %v22395_v52 = vld [vmem:[#allocation116_spill] sm:$0xff] }
 0x33c   : > { %22378 = vst [vmem:[#allocation162_spill] sm:$0xff] %v16761_v57  ;;  %v16781_v44 = vpack.c.bf16 %v6696_v21, %v6684_v54  ;;  %v16783_v4 = vpack.c.bf16 %v5172_v36, %v5160_v5  ;;  %v22388_v46 = vand.u32 4294901760, %v22374_v60  ;;  %11477 = vmatpush1.bf16.msra.mxu1 %v16401_v30  ;;  %11859 = vmatprep.subr.bf16.mxu0 %v16403_v56  ;;  %v22394_v21 = vld [vmem:[#allocation113_spill] sm:$0xff]  ;;  %v22398_v35 = vld [vmem:[#allocation128_spill] sm:$0xff]  ;;  %v22406_v36 = vand.u32 4294901760, %v22395_v52 }
 0x33d   : > { %22381 = vst [vmem:[#allocation166_spill] sm:$0xff] %v16765_v43  ;;  %22382 = vst [vmem:[#allocation168_spill] sm:$0xff] %v16767_v17  ;;  %v16772_v25 = vsub.f32 %v22372_v7, %v22383_v53  ;;  %v16777_v0 = vsub.f32 %v22373_v50, %v22384_v59  ;;  %v22392_v53 = vsub.f32 %v22390_v63, %v22391_v47  ;;  %11479 = vmatprep.subr.bf16.mxu1 %v16405_v37  ;;  %v22399_v47 = vld [vmem:[#allocation131_spill] sm:$0xff]  ;;  %v22400_v37 = vld [vmem:[#allocation136_spill] sm:$0xff] }
 0x33e   : > { %22386 = vst [vmem:[#allocation171_spill] sm:$0xff] %v16781_v44  ;;  %22387 = vst [vmem:[#allocation174_spill] sm:$0xff] %v16783_v4  ;;  %v16788_v51 = vsub.f32 %v22374_v60, %v22388_v46  ;;  %v16801_v5 = vsub.f32 %v22375_v31, %v20573_v55  ;;  %v16806_v54 = vsub.f32 %v22376_v12, %v20574_v11  ;;  %6466 = vmatmul.mubr.f32.vlgmr.msra.gmra.mrb[12].mxu0 %v16510_v32  ;;  %v22397_v11 = vld [vmem:[#allocation257_spill] sm:$0xff]  ;;  %v22418_v12 = vld [vmem:[#allocation155_spill] sm:$0xff] }
 0x33f   : > { %v16796_v59 = vand.u32 4294901760, %v22392_v53  ;;  %v16811_v30 = vsub.f32 %v22377_v42, %v20575_v38  ;;  %v16817_v56 = vsub.f32 %v22379_v24, %v20584_v10  ;;  %v22396_v53 = vld [vmem:[#allocation125_spill] sm:$0xff]  ;;  %4934 = vmatmul.mubr.f32.gmra.mrb[14].mxu1 %v22397_v11  ;;  %6476 = vmatprep.mubr.f32.mxu0 %v16701_v61  ;;  %v22402_v46 = vand.u32 4294901760, %v22389_v39  ;;  %v22403_v38 = vld [vmem:[#allocation140_spill] sm:$0xff]  ;;  %v22428_v63 = vld [vmem:[#allocation243_spill] sm:$0xff] }
 0x340   : > { %11861 = vmatpush1.bf16.msra.mxu0 %v16407_v29  ;;  %11481 = vmatpush1.bf16.msra.mxu1 %v16409_v2  ;;  %v22405_v55 = vand.u32 4294901760, %v22394_v21  ;;  %v16855_v15 = vsub.f32 %v22395_v52, %v22406_v36  ;;  %v22407_v29 = vand.u32 4294901760, %v22396_v53  ;;  %v22410_v36 = vand.u32 4294901760, %v22400_v37  ;;  %v22432_v60 = vld [vmem:[#allocation33_spill] sm:$0xff]  ;;  %v22436_v50 = vld [vmem:[#allocation39_spill] sm:$0xff]  ;;  %v22443_v44 = vld [vmem:[#allocation84_spill] sm:$0xff] }
 0x341   : > { %22393 = vst [vmem:[#allocation178_spill] sm:$0xff] %v16796_v59  ;;  %v16835_v11 = vsub.f32 %v22389_v39, %v22402_v46  ;;  %5325 = vmatprep.mubr.f32.mxu1 %v22404_v28  ;;  %11863 = vmatprep.subr.bf16.mxu0 %v16411_v33  ;;  %v22408_v33 = vand.u32 4294901760, %v22398_v35  ;;  %v22413_v32 = vand.u32 4294901760, %v22403_v38  ;;  %v22419_v28 = vld [vmem:[#allocation157_spill] sm:$0xff]  ;;  %v22430_v39 = vld [vmem:[#allocation240_spill] sm:$0xff]  ;;  %v22444_v17 = vld [vmem:[#allocation90_spill] sm:$0xff] }
 0x342   : > { %11483 = vmatprep.subr.bf16.mxu1 %v16413_v49  ;;  %v16850_v2 = vsub.f32 %v22394_v21, %v22405_v55  ;;  %v16860_v10 = vsub.f32 %v22396_v53, %v22407_v29  ;;  %6482 = vmatmul.mubr.f32.gmra.mrb[14].mxu0 %v16796_v59  ;;  %v22409_v55 = vand.u32 4294901760, %v22399_v47  ;;  %v16876_v58 = vsub.f32 %v22400_v37, %v22410_v36  ;;  %v22412_v59 = vld [vmem:[#allocation205_spill] sm:$0xff]  ;;  %v22415_v36 = vld [vmem:[#allocation146_spill] sm:$0xff]  ;;  %v22421_v21 = vld [vmem:[#allocation179_spill] sm:$0xff] }
 0x343   : > { %v16866_v49 = vsub.f32 %v22398_v35, %v22408_v33  ;;  %v22411_v29 = vand.u32 4294901760, %v22401_v45  ;;  %6873 = vmatprep.mubr.f32.mxu0 %v22412_v59  ;;  %v22422_v53 = vld [vmem:[#allocation195_spill] sm:$0xff]  ;;  %v22423_v35 = vld [vmem:[#allocation197_spill] sm:$0xff]  ;;  %v22425_v37 = vld [vmem:[#allocation202_spill] sm:$0xff] }
 0x344   : > { %v16871_v46 = vsub.f32 %v22399_v47, %v22409_v55  ;;  %11865 = vmatpush1.bf16.msra.mxu0 %v16418_v9  ;;  %v16889_v55 = vsub.f32 %v22403_v38, %v22413_v32  ;;  %11485 = vmatpush1.bf16.msra.mxu1 %v16516_v16  ;;  %v22414_v9 = vld [vmem:[#allocation145_spill] sm:$0xff]  ;;  %v22424_v47 = vld [vmem:[#allocation198_spill] sm:$0xff]  ;;  %v22427_v38 = vld [vmem:[#allocation232_spill] sm:$0xff]  ;;  %v6714_v4 = vand.u32 4294901760, %v16850_v2  ;;  %v22458_v2 = vand.u32 4294901760, %v16777_v0 }
 0x345   : > { %v16881_v61 = vsub.f32 %v22401_v45, %v22411_v29  ;;  %11867 = vmatprep.subr.bf16.mxu0 %v16528_v19  ;;  %11487 = vmatprep.subr.bf16.mxu1 %v16530_v48  ;;  %v22416_v29 = vld [vmem:[#allocation148_spill] sm:$0xff]  ;;  %v22417_v48 = vld [vmem:[#allocation151_spill] sm:$0xff]  ;;  %v22420_v16 = vld [vmem:[#allocation161_spill] sm:$0xff]  ;;  %v22455_v57 = vand.u32 4294901760, %v22414_v9  ;;  %v5202_v20 = vand.u32 4294901760, %v16866_v49  ;;  %v22462_v0 = vand.u32 4294901760, %v22418_v12 }
 0x346   : > { %v22426_v45 = vld [vmem:[#allocation22_spill] sm:$0xff]  ;;  %v22431_v19 = vld [vmem:[#allocation25_spill] sm:$0xff]  ;;  %v22445_v43 = vld [vmem:[#allocation96_spill] sm:$0xff]  ;;  %v5220_v24 = vand.u32 4294901760, %v16889_v55 }
 0x347   : > { %v22447_v33 = vld [vmem:[#allocation106_spill] sm:$0xff]  ;;  %v22448_v32 = vld [vmem:[#allocation108_spill] sm:$0xff]  ;;  %v22449_v59 = vld [vmem:[#allocation135_spill] sm:$0xff]  ;;  %v6737_v7 = vsub.f32 %v22414_v9, %v22455_v57  ;;  %v6732_v57 = vand.u32 4294901760, %v16871_v46  ;;  %v6744_v9 = vand.u32 4294901760, %v16876_v58  ;;  %v22460_v46 = vand.u32 4294901760, %v22417_v48 }
 0x348   : > { %11869 = vmatpush1.bf16.msra.mxu0 %v16532_v3  ;;  %11489 = vmatpush1.bf16.msra.mxu1 %v16534_v34  ;;  %v22429_v3 = vld [vmem:[#allocation21_spill] sm:$0xff]  ;;  %v22437_v34 = vld [vmem:[#allocation40_spill] sm:$0xff]  ;;  %v22453_v42 = vld [vmem:[#allocation130_spill] sm:$0xff]  ;;  %v6755_v55 = vsub.f32 %v22418_v12, %v22462_v0  ;;  %v22470_v0 = vand.u32 4294901760, %v16835_v11 }
 0x349   : > { %11871 = vmatprep.subr.bf16.mxu0 %v16536_v1  ;;  %11491 = vmatprep.subr.bf16.mxu1 %v16538_v14  ;;  %v22438_v1 = vld [vmem:[#allocation52_spill] sm:$0xff]  ;;  %v22446_v14 = vld [vmem:[#allocation99_spill] sm:$0xff]  ;;  %v5225_v58 = vsub.f32 %v22417_v48, %v22460_v46  ;;  %v22461_v49 = vld [vmem:[#allocation142_spill] sm:$0xff]  ;;  %v22465_v46 = vand.u32 4294901760, %v16788_v51 }
 0x34a   : > { %v22451_v52 = vld [vmem:[#allocation120_spill] sm:$0xff] }
 0x34c   : > { %11873 = vmatpush1.bf16.msra.mxu0 %v22449_v59  ;;  %11493 = vmatpush1.bf16.msra.mxu1 %v22454_v13  ;;  %v22456_v59 = vand.u32 4294901760, %v22415_v36  ;;  %v6726_v13 = vand.u32 4294901760, %v16855_v15  ;;  %v22459_v15 = vand.u32 4294901760, %v22416_v29 }
 0x34d   : > { %11875 = vmatprep.subr.bf16.mxu0 %v16640_v27  ;;  %11495 = vmatprep.subr.bf16.mxu1 %v16642_v40  ;;  %v5190_v27 = vand.u32 4294901760, %v16860_v10  ;;  %v22457_v40 = vand.u32 4294901760, %v16772_v25 }
 0x34e   : > { %v6749_v31 = vsub.f32 %v22415_v36, %v22456_v59  ;;  %v5208_v59 = vand.u32 4294901760, %v16881_v61  ;;  %v5213_v10 = vsub.f32 %v22416_v29, %v22459_v15  ;;  %v22464_v15 = vld [vmem:[#allocation144_spill] sm:$0xff]  ;;  %v22466_v61 = vand.u32 4294901760, %v16801_v5 }
 0x34f   : > { %v16987_v62 = vpack.c.bf16 %v22458_v2, %v22457_v40  ;;  %v22463_v40 = vand.u32 4294901760, %v22419_v28  ;;  %v17026_v51 = vpack.c.bf16 %v5202_v20, %v5190_v27  ;;  %v17028_v5 = vpack.c.bf16 %v6744_v9, %v6732_v57  ;;  %v22475_v27 = vld [vmem:[#allocation156_spill] sm:$0xff] }
 0x350   : > { %11877 = vmatpush1.bf16.msra.mxu0 %v16644_v18  ;;  %11497 = vmatpush1.bf16.msra.mxu1 %v16646_v8  ;;  %v6738_v18 = vand.u32 4294901760, %v6737_v7  ;;  %v6750_v25 = vand.u32 4294901760, %v6749_v31  ;;  %v17009_v29 = vpack.c.bf16 %v22466_v61, %v22465_v46  ;;  %v22467_v8 = vand.u32 4294901760, %v16806_v54  ;;  %v22471_v54 = vld [vmem:[#allocation147_spill] sm:$0xff] }
 0x351   : > { %11879 = vmatprep.subr.bf16.mxu0 %v22461_v49  ;;  %v6767_v2 = vsub.f32 %v22419_v28, %v22463_v40  ;;  %11499 = vmatprep.subr.bf16.mxu1 %v22464_v15  ;;  %v22468_v7 = vand.u32 4294901760, %v16811_v30  ;;  %v22469_v49 = vand.u32 4294901760, %v16817_v56  ;;  %v20622_v40 = vand.u32 4294901760, %v22421_v21 }
 0x352   : > { %v17024_v15 = vpack.c.bf16 %v6726_v13, %v6714_v4  ;;  %v17030_v61 = vpack.c.bf16 %v5220_v24, %v5208_v59  ;;  %v5214_v30 = vand.u32 4294901760, %v5213_v10  ;;  %v5226_v46 = vand.u32 4294901760, %v5225_v58  ;;  %v22474_v4 = vld [vmem:[#allocation154_spill] sm:$0xff] }
 0x353   : > { %v17015_v31 = vpack.c.bf16 %v22468_v7, %v22467_v8  ;;  %v17021_v12 = vpack.c.bf16 %v22470_v0, %v22469_v49  ;;  %v22472_v56 = vand.u32 4294901760, %v22420_v16  ;;  %v20616_v8 = vand.u32 4294901760, %v22422_v53  ;;  %v22473_v7 = vld [vmem:[#allocation150_spill] sm:$0xff] }
 0x354   : > { %11881 = vmatpush1.bf16.msra.mxu0 %v22471_v54  ;;  %11501 = vmatpush1.bf16.msra.mxu1 %v22473_v7  ;;  %v17039_v20 = vpack.c.bf16 %v6750_v25, %v6738_v18  ;;  %v6756_v9 = vand.u32 4294901760, %v6755_v55  ;;  %v6768_v13 = vand.u32 4294901760, %v6767_v2  ;;  %v20621_v24 = vand.u32 4294901760, %v22423_v35 }
 0x355   : > { %v5231_v11 = vsub.f32 %v22420_v16, %v22472_v56  ;;  %11883 = vmatprep.subr.bf16.mxu0 %v22474_v4  ;;  %11503 = vmatprep.subr.bf16.mxu1 %v22475_v27  ;;  %v5243_v57 = vsub.f32 %v22421_v21, %v20622_v40  ;;  %v20618_v59 = vand.u32 4294901760, %v22424_v47  ;;  %v20617_v10 = vand.u32 4294901760, %v22425_v37  ;;  %v22480_v40 = vld [vmem:[#allocation37_spill] sm:$0xff] }
 0x356   : > { %v20619_v58 = vand.u32 4294901760, %v22426_v45  ;;  %v20620_v49 = vand.u32 4294901760, %v22427_v38  ;;  %v20623_v18 = vand.u32 4294901760, %v22428_v63  ;;  %v20624_v25 = vand.u32 4294901760, %v22429_v3 }
 0x357   : > { %v20626_v55 = vand.u32 4294901760, %v22430_v39  ;;  %v17054_v2 = vpack.c.bf16 %v5226_v46, %v5214_v30  ;;  %v5232_v0 = vand.u32 4294901760, %v5231_v11  ;;  %v6761_v54 = vsub.f32 %v22422_v53, %v20616_v8  ;;  %v22476_v30 = vld [vmem:[#allocation34_spill] sm:$0xff] }
 0x358   : > { %11885 = vmatpush1.bf16.msra.mxu0 %v16752_v23  ;;  %v20628_v56 = vand.u32 4294901760, %v22431_v19  ;;  %11505 = vmatpush1.bf16.msra.mxu1 %v16757_v6  ;;  %v17062_v7 = vpack.c.bf16 %v6768_v13, %v6756_v9  ;;  %v6773_v4 = vsub.f32 %v22423_v35, %v20621_v24  ;;  %v22477_v11 = vld [vmem:[#allocation162_spill] sm:$0xff]  ;;  %v5244_v27 = vand.u32 4294901760, %v5243_v57  ;;  %v22482_v23 = vld [vmem:[#allocation171_spill] sm:$0xff] }
 0x359   : > { %11887 = vmatprep.subr.bf16.mxu0 %v16759_v41  ;;  %11507 = vmatprep.subr.bf16.mxu1 %v22477_v11  ;;  %v5237_v8 = vsub.f32 %v22424_v47, %v20618_v59  ;;  %v5249_v6 = vsub.f32 %v22425_v37, %v20617_v10  ;;  %v6779_v41 = vsub.f32 %v22426_v45, %v20619_v58  ;;  %v22478_v10 = vld [vmem:[#allocation166_spill] sm:$0xff]  ;;  %v6762_v59 = vand.u32 4294901760, %v6761_v54 }
 0x35a   : > { %v6791_v9 = vsub.f32 %v22427_v38, %v20620_v49  ;;  %v5255_v13 = vsub.f32 %v22428_v63, %v20623_v18  ;;  %v5267_v57 = vsub.f32 %v22429_v3, %v20624_v25  ;;  %v6785_v11 = vsub.f32 %v22430_v39, %v20626_v55  ;;  %v22479_v49 = vld [vmem:[#allocation36_spill] sm:$0xff] }
 0x35b   : > { %v6797_v58 = vsub.f32 %v22431_v19, %v20628_v56  ;;  %v22481_v18 = vld [vmem:[#allocation168_spill] sm:$0xff]  ;;  %v6774_v25 = vand.u32 4294901760, %v6773_v4  ;;  %v22483_v63 = vand.u32 4294901760, %v22432_v60  ;;  %v22485_v56 = vld [vmem:[#allocation174_spill] sm:$0xff]  ;;  %v11522_v24 = vpack.c.bf16 %v5244_v27, %v5232_v0 }
 0x35c   : > { %11889 = vmatpush1.bf16.msra.mxu0 %v22478_v10  ;;  %11509 = vmatpush1.bf16.msra.mxu1 %v22481_v18  ;;  %v22484_v10 = vand.u32 4294901760, %v22476_v30  ;;  %v5238_v19 = vand.u32 4294901760, %v5237_v8  ;;  %v5250_v46 = vand.u32 4294901760, %v5249_v6  ;;  %v6780_v3 = vand.u32 4294901760, %v6779_v41 }
 0x35d   : > { %11891 = vmatprep.subr.bf16.mxu0 %v22482_v23  ;;  %v5261_v55 = vsub.f32 %v22432_v60, %v22483_v63  ;;  %11511 = vmatprep.subr.bf16.mxu1 %v22485_v56  ;;  %v6792_v18 = vand.u32 4294901760, %v6791_v9  ;;  %v5256_v45 = vand.u32 4294901760, %v5255_v13  ;;  %v5268_v23 = vand.u32 4294901760, %v5267_v57  ;;  %v22489_v9 = vld [vmem:[#allocation53_spill] sm:$0xff]  ;;  %v22490_v57 = vld [vmem:[#allocation70_spill] sm:$0xff] }
 0x35e   : > { %v5273_v54 = vsub.f32 %v22476_v30, %v22484_v10  ;;  %v6786_v4 = vand.u32 4294901760, %v6785_v11  ;;  %v6798_v38 = vand.u32 4294901760, %v6797_v58  ;;  %v22486_v63 = vand.u32 4294901760, %v22479_v49 }
 0x35f   : > { %v22487_v10 = vand.u32 4294901760, %v22480_v40  ;;  %v5262_v8 = vand.u32 4294901760, %v5261_v55  ;;  %v22488_v27 = vand.u32 4294901760, %v22436_v50  ;;  %v11904_v6 = vpack.c.bf16 %v6774_v25, %v6762_v59  ;;  %v22492_v55 = vld [vmem:[#allocation78_spill] sm:$0xff] }
 0x360   : > { %11893 = vmatpush1.bf16.msra.mxu0 %v16987_v62  ;;  %v6803_v60 = vsub.f32 %v22479_v49, %v22486_v63  ;;  %11513 = vmatpush1.bf16.msra.mxu1 %v17009_v29  ;;  %v5274_v56 = vand.u32 4294901760, %v5273_v54  ;;  %v11524_v41 = vpack.c.bf16 %v5250_v46, %v5238_v19  ;;  %v20649_v13 = vand.u32 4294901760, %v22489_v9  ;;  %v22491_v63 = vld [vmem:[#allocation72_spill] sm:$0xff] }
 0x361   : > { %v6815_v39 = vsub.f32 %v22480_v40, %v22487_v10  ;;  %11895 = vmatprep.subr.bf16.mxu0 %v17015_v31  ;;  %v17120_v62 = vsub.f32 %v22436_v50, %v22488_v27  ;;  %11515 = vmatprep.subr.bf16.mxu1 %v17021_v12  ;;  %v20648_v11 = vand.u32 4294901760, %v22490_v57  ;;  %v11906_v29 = vpack.c.bf16 %v6792_v18, %v6780_v3  ;;  %v22493_v10 = vld [vmem:[#allocation82_spill] sm:$0xff] }
 0x362   : > { %v20642_v31 = vand.u32 4294901760, %v22491_v63  ;;  %v20636_v54 = vand.u32 4294901760, %v22492_v55  ;;  %v20635_v0 = vand.u32 4294901760, %v22493_v10  ;;  %v11526_v27 = vpack.c.bf16 %v5268_v23, %v5256_v45 }
 0x363   : > { %v6804_v50 = vand.u32 4294901760, %v6803_v60  ;;  %v6816_v58 = vand.u32 4294901760, %v6815_v39  ;;  %v22494_v12 = vand.u32 4294901760, %v22437_v34  ;;  %v11908_v3 = vpack.c.bf16 %v6798_v38, %v6786_v4 }
 0x364   : > { %11897 = vmatpush1.bf16.msra.mxu0 %v17024_v15  ;;  %11517 = vmatpush1.bf16.msra.mxu1 %v17026_v51  ;;  %v11528_v59 = vpack.c.bf16 %v5274_v56, %v5262_v8  ;;  %v5280_v25 = vand.u32 4294901760, %v17120_v62  ;;  %v22495_v46 = vand.u32 4294901760, %v22438_v1  ;;  %v6821_v45 = vsub.f32 %v22489_v9, %v20649_v13 }
 0x365   : > { %v5291_v19 = vsub.f32 %v22437_v34, %v22494_v12  ;;  %11899 = vmatprep.subr.bf16.mxu0 %v17028_v5  ;;  %11519 = vmatprep.subr.bf16.mxu1 %v17030_v61  ;;  %v5285_v60 = vsub.f32 %v22490_v57, %v20648_v11  ;;  %v20641_v39 = vand.u32 4294901760, %v22443_v44  ;;  %v20637_v38 = vand.u32 4294901760, %v22444_v17  ;;  %v22523_v11 = vld [vmem:[#allocation29_spill] sm:$0xff] }
 0x366   : > { %v6809_v18 = vsub.f32 %v22438_v1, %v22495_v46  ;;  %v5297_v15 = vsub.f32 %v22491_v63, %v20642_v31  ;;  %v6827_v51 = vsub.f32 %v22492_v55, %v20636_v54  ;;  %v6839_v5 = vsub.f32 %v22493_v10, %v20635_v0 }
 0x367   : > { %v20640_v61 = vand.u32 4294901760, %v22445_v43  ;;  %v11910_v23 = vpack.c.bf16 %v6816_v58, %v6804_v50  ;;  %v5292_v4 = vand.u32 4294901760, %v5291_v19  ;;  %v20639_v8 = vand.u32 4294901760, %v22446_v14 }
 0x368   : > { %11901 = vmatpush1.bf16.msra.mxu0 %v17039_v20  ;;  %v20638_v56 = vand.u32 4294901760, %v22447_v33  ;;  %11521 = vmatpush1.bf16.msra.mxu1 %v17054_v2  ;;  %v6810_v62 = vand.u32 4294901760, %v6809_v18  ;;  %v20643_v12 = vand.u32 4294901760, %v22448_v32  ;;  %v20644_v46 = vand.u32 4294901760, %v22450_v22 }
 0x369   : > { %11903 = vmatprep.subr.bf16.mxu0 %v17062_v7  ;;  %v20647_v0 = vand.u32 4294901760, %v22451_v52  ;;  %11523 = vmatprep.subr.bf16.mxu1 %v11522_v24  ;;  %v6822_v54 = vand.u32 4294901760, %v6821_v45  ;;  %v5286_v20 = vand.u32 4294901760, %v5285_v60  ;;  %v5303_v50 = vsub.f32 %v22443_v44, %v20641_v39 }
 0x36a   : > { %v5315_v2 = vsub.f32 %v22444_v17, %v20637_v38  ;;  %v5298_v58 = vand.u32 4294901760, %v5297_v15  ;;  %v6828_v7 = vand.u32 4294901760, %v6827_v51  ;;  %v6840_v19 = vand.u32 4294901760, %v6839_v5 }
 0x36b   : > { %v6833_v18 = vsub.f32 %v22445_v43, %v20640_v61  ;;  %v6845_v24 = vsub.f32 %v22446_v14, %v20639_v8  ;;  %v5309_v45 = vsub.f32 %v22447_v33, %v20638_v56  ;;  %v20646_v60 = vand.u32 4294901760, %v22452_v26 }
 0x36c   : > { %11905 = vmatpush1.bf16.msra.mxu0 %v11904_v6  ;;  %v20645_v38 = vand.u32 4294901760, %v22453_v42  ;;  %11525 = vmatpush1.bf16.msra.mxu1 %v11524_v41  ;;  %v5321_v15 = vsub.f32 %v22448_v32, %v20643_v12  ;;  %v6851_v6 = vsub.f32 %v22450_v22, %v20644_v46  ;;  %v6863_v51 = vsub.f32 %v22451_v52, %v20647_v0  ;;  %v22522_v0 = vld [vmem:[#allocation28_spill] sm:$0xff] }
 0x36d   : > { %11907 = vmatprep.subr.bf16.mxu0 %v11906_v29  ;;  %11527 = vmatprep.subr.bf16.mxu1 %v11526_v27  ;;  %v11530_v5 = vpack.c.bf16 %v5292_v4, %v5280_v25  ;;  %v5304_v56 = vand.u32 4294901760, %v5303_v50  ;;  %v5316_v8 = vand.u32 4294901760, %v5315_v2  ;;  %v11912_v61 = vpack.c.bf16 %v6822_v54, %v6810_v62 }
 0x36e   : > { %v11532_v39 = vpack.c.bf16 %v5298_v58, %v5286_v20  ;;  %v11914_v41 = vpack.c.bf16 %v6840_v19, %v6828_v7  ;;  %v6834_v29 = vand.u32 4294901760, %v6833_v18  ;;  %v6846_v31 = vand.u32 4294901760, %v6845_v24  ;;  %v22496_v7 = vld [vmem:[#allocation185_spill] sm:$0xff]  ;;  %v22497_v19 = vld [vmem:[#allocation187_spill] sm:$0xff] }
 0x36f   : > { %v6857_v12 = vsub.f32 %v22452_v26, %v20646_v60  ;;  %v6869_v46 = vsub.f32 %v22453_v42, %v20645_v38  ;;  %v5310_v27 = vand.u32 4294901760, %v5309_v45  ;;  %v5322_v25 = vand.u32 4294901760, %v5321_v15  ;;  %v22499_v24 = vld [vmem:[#allocation217_spill] sm:$0xff]  ;;  %v22519_v38 = vld [vmem:[#allocation19_spill] sm:$0xff]  ;;  %v22521_v60 = vld [vmem:[#allocation244_spill] sm:$0xff] }
 0x370   : > { %11909 = vmatpush1.bf16.msra.mxu0 %v11908_v3  ;;  %11529 = vmatpush1.bf16.msra.mxu1 %v11528_v59  ;;  %v6852_v4 = vand.u32 4294901760, %v6851_v6  ;;  %v6864_v50 = vand.u32 4294901760, %v6863_v51  ;;  %v11534_v54 = vpack.c.bf16 %v5316_v8, %v5304_v56  ;;  %v11916_v3 = vpack.c.bf16 %v6846_v31, %v6834_v29  ;;  %v22501_v31 = vld [vmem:[#allocation219_spill] sm:$0xff]  ;;  %v22502_v56 = vld [vmem:[#allocation221_spill] sm:$0xff]  ;;  %v22506_v6 = vld [vmem:[#allocation224_spill] sm:$0xff] }
 0x371   : > { %11911 = vmatprep.subr.bf16.mxu0 %v11910_v23  ;;  %11531 = vmatprep.subr.bf16.mxu1 %v11530_v5  ;;  %v6858_v62 = vand.u32 4294901760, %v6857_v12  ;;  %v6870_v20 = vand.u32 4294901760, %v6869_v46  ;;  %v11536_v2 = vpack.c.bf16 %v5322_v25, %v5310_v27  ;;  %v11538_v18 = vpack.c.bf16 %v22497_v19, %v22496_v7  ;;  %v22498_v23 = vld [vmem:[#allocation188_spill] sm:$0xff]  ;;  %v22504_v46 = vld [vmem:[#allocation237_spill] sm:$0xff]  ;;  %v22510_v25 = vld [vmem:[#allocation230_spill] sm:$0xff] }
 0x372   : > { %v11918_v58 = vpack.c.bf16 %v6864_v50, %v6852_v4  ;;  %v11540_v45 = vpack.c.bf16 %v22499_v24, %v22498_v23  ;;  %v22505_v15 = vld [vmem:[#allocation249_spill] sm:$0xff]  ;;  %v22509_v29 = vld [vmem:[#allocation228_spill] sm:$0xff]  ;;  %v22511_v4 = vld [vmem:[#allocation231_spill] sm:$0xff]  ;;  %v11930_v13 = vpack.c.bf16 %v22523_v11, %v22522_v0 }
 0x373   : > { %v11920_v59 = vpack.c.bf16 %v6870_v20, %v6858_v62  ;;  %v22507_v51 = vld [vmem:[#allocation225_spill] sm:$0xff]  ;;  %v11926_v50 = vpack.c.bf16 %v22511_v4, %v22510_v25  ;;  %v22533_v11 = vld [vmem:[#allocation119_spill] sm:$0xff] }
 0x374   : > { %11913 = vmatpush1.bf16.msra.mxu0 %v11912_v61  ;;  %11533 = vmatpush1.bf16.msra.mxu1 %v11532_v39  ;;  %v22500_v61 = vld [vmem:[#allocation218_spill] sm:$0xff]  ;;  %v11924_v5 = vpack.c.bf16 %v22507_v51, %v22506_v6  ;;  %v22514_v62 = vld [vmem:[#allocation241_spill] sm:$0xff] }
 0x375   : > { %11915 = vmatprep.subr.bf16.mxu0 %v11914_v41  ;;  %11535 = vmatprep.subr.bf16.mxu1 %v11534_v54  ;;  %v11922_v8 = vpack.c.bf16 %v22501_v31, %v22500_v61  ;;  %v22503_v39 = vld [vmem:[#allocation222_spill] sm:$0xff]  ;;  %v22508_v41 = vld [vmem:[#allocation227_spill] sm:$0xff]  ;;  %v22512_v54 = vld [vmem:[#allocation204_spill] sm:$0xff] }
 0x376   : > { %v11542_v12 = vpack.c.bf16 %v22503_v39, %v22502_v56  ;;  %v11544_v27 = vpack.c.bf16 %v22509_v29, %v22508_v41 }
 0x378   : > { %11917 = vmatpush1.bf16.msra.mxu0 %v11916_v3  ;;  %11537 = vmatpush1.bf16.msra.mxu1 %v11536_v2  ;;  %v22513_v3 = vld [vmem:[#allocation238_spill] sm:$0xff]  ;;  %v22515_v2 = vld [vmem:[#allocation248_spill] sm:$0xff] }
 0x379   : > { %11919 = vmatprep.subr.bf16.mxu0 %v11918_v58  ;;  %11539 = vmatprep.subr.bf16.mxu1 %v11538_v18  ;;  %v11546_v20 = vpack.c.bf16 %v22514_v62, %v22513_v3  ;;  %v22516_v58 = vld [vmem:[#allocation207_spill] sm:$0xff] }
 0x37a   : > { %v22517_v18 = vld [vmem:[#allocation15_spill] sm:$0xff] }
 0x37b   : > { %5327 = vmatmul.mubr.f32.vlgmr.msra.gmra.mrb[12].mxu1 %v22504_v46 }
 0x37c   : > { %11921 = vmatpush1.bf16.msra.mxu0 %v11920_v59  ;;  %5333 = vmatprep.mubr.f32.mxu1 %v22505_v15  ;;  %v22518_v59 = vld [vmem:[#allocation17_spill] sm:$0xff]  ;;  %v22525_v15 = vld [vmem:[#allocation32_spill] sm:$0xff] }
 0x37d   : > { %11541 = vmatpush1.bf16.msra.mxu1 %v11540_v45  ;;  %11923 = vmatprep.subr.bf16.mxu0 %v11922_v8  ;;  %v11928_v45 = vpack.c.bf16 %v22518_v59, %v22517_v18  ;;  %v22520_v8 = vld [vmem:[#allocation20_spill] sm:$0xff]  ;;  %v22534_v18 = vld [vmem:[#allocation122_spill] sm:$0xff] }
 0x37e   : > { %11543 = vmatprep.subr.bf16.mxu1 %v11542_v12  ;;  %v11548_v12 = vpack.c.bf16 %v22520_v8, %v22519_v38  ;;  %v22530_v8 = vld [vmem:[#allocation46_spill] sm:$0xff]  ;;  %v22531_v38 = vld [vmem:[#allocation236_spill] sm:$0xff] }
 0x37f   : > { %6875 = vmatmul.mubr.f32.vlgmr.msra.gmra.mrb[12].mxu0 %v22512_v54  ;;  %5335 = vmatmul.mubr.f32.gmra.mrb[14].mxu1 %v22515_v2  ;;  %v22524_v54 = vld [vmem:[#allocation31_spill] sm:$0xff]  ;;  %v22526_v2 = vld [vmem:[#allocation206_spill] sm:$0xff] }
 0x380   : > { %6881 = vmatprep.mubr.f32.mxu0 %v22516_v58  ;;  %11925 = vmatpush1.bf16.msra.mxu0 %v11924_v5  ;;  %v11550_v46 = vpack.c.bf16 %v22525_v15, %v22524_v54  ;;  %v22527_v5 = vld [vmem:[#allocation213_spill] sm:$0xff]  ;;  %v22529_v58 = vld [vmem:[#allocation44_spill] sm:$0xff]  ;;  %v22535_v15 = vld [vmem:[#allocation127_spill] sm:$0xff] }
 0x381   : > { %11545 = vmatpush1.bf16.msra.mxu1 %v11544_v27  ;;  %5535 = vmatprep.mubr.f32.mxu1 %v22521_v60  ;;  %v22528_v27 = vld [vmem:[#allocation43_spill] sm:$0xff]  ;;  %v11552_v60 = vpack.c.bf16 %v22531_v38, %v22530_v8  ;;  %v11554_v54 = vpack.c.bf16 %v22535_v15, %v22534_v18  ;;  %v22541_v38 = vld [vmem:[#allocation165_spill] sm:$0xff]  ;;  %v22543_v8 = vld [vmem:[#allocation172_spill] sm:$0xff] }
 0x382   : > { %11927 = vmatprep.subr.bf16.mxu0 %v11926_v50  ;;  %11547 = vmatprep.subr.bf16.mxu1 %v11546_v20  ;;  %v11932_v59 = vpack.c.bf16 %v22529_v58, %v22528_v27  ;;  %v22532_v50 = vld [vmem:[#allocation117_spill] sm:$0xff]  ;;  %v22540_v58 = vld [vmem:[#allocation167_spill] sm:$0xff] }
 0x383   : > { %6883 = vmatmul.mubr.f32.gmra.mrb[14].mxu0 %v22526_v2  ;;  %v11934_v0 = vpack.c.bf16 %v22533_v11, %v22532_v50  ;;  %v22536_v20 = vld [vmem:[#allocation133_spill] sm:$0xff]  ;;  %v22539_v2 = vld [vmem:[#allocation164_spill] sm:$0xff]  ;;  %v22544_v11 = vld [vmem:[#allocation175_spill] sm:$0xff] }
 0x384   : > { %7083 = vmatprep.mubr.f32.mxu0 %v22527_v5  ;;  %11929 = vmatpush1.bf16.msra.mxu0 %v11928_v45  ;;  %v22537_v5 = vld [vmem:[#allocation141_spill] sm:$0xff] }
 0x385   : > { %11549 = vmatpush1.bf16.msra.mxu1 %v11548_v12  ;;  %11931 = vmatprep.subr.bf16.mxu0 %v11930_v13  ;;  %v11936_v45 = vpack.c.bf16 %v22537_v5, %v22536_v20  ;;  %v22538_v12 = vld [vmem:[#allocation160_spill] sm:$0xff]  ;;  %v11938_v13 = vpack.c.bf16 %v22541_v38, %v22540_v58  ;;  %v22545_v15 = vld [vmem:[#allocation193_spill] sm:$0xff]  ;;  %v22552_v38 = vld [vmem:[#allocation50_spill] sm:$0xff] }
 0x386   : > { %11551 = vmatprep.subr.bf16.mxu1 %v11550_v46  ;;  %v11556_v62 = vpack.c.bf16 %v22539_v2, %v22538_v12  ;;  %v22542_v46 = vld [vmem:[#allocation169_spill] sm:$0xff]  ;;  %v22549_v2 = vld [vmem:[#allocation47_spill] sm:$0xff] }
 0x387   : > { %v11558_v27 = vpack.c.bf16 %v22543_v8, %v22542_v46  ;;  %v22547_v18 = vld [vmem:[#allocation245_spill] sm:$0xff]  ;;  %v22553_v8 = vld [vmem:[#allocation54_spill] sm:$0xff] }
 0x388   : > { %11933 = vmatpush1.bf16.msra.mxu0 %v11932_v59  ;;  %v11940_v59 = vpack.c.bf16 %v22545_v15, %v22544_v11  ;;  %v22548_v5 = vld [vmem:[#allocation201_spill] sm:$0xff]  ;;  %v22556_v15 = vld [vmem:[#allocation59_spill] sm:$0xff] }
 0x389   : > { %11553 = vmatpush1.bf16.msra.mxu1 %v11552_v60  ;;  %11935 = vmatprep.subr.bf16.mxu0 %v11934_v0  ;;  %v22546_v60 = vld [vmem:[#allocation247_spill] sm:$0xff]  ;;  %v11942_v0 = vpack.c.bf16 %v22549_v2, %v22548_v5  ;;  %v22551_v12 = vld [vmem:[#allocation233_spill] sm:$0xff] }
 0x38a   : > { %11555 = vmatprep.subr.bf16.mxu1 %v11554_v54  ;;  %v11560_v50 = vpack.c.bf16 %v22547_v18, %v22546_v60  ;;  %v22550_v54 = vld [vmem:[#allocation49_spill] sm:$0xff]  ;;  %v22557_v18 = vld [vmem:[#allocation60_spill] sm:$0xff]  ;;  %v22559_v60 = vld [vmem:[#allocation63_spill] sm:$0xff] }
 0x38b   : > { %v11562_v20 = vpack.c.bf16 %v22551_v12, %v22550_v54  ;;  %v22555_v46 = vld [vmem:[#allocation57_spill] sm:$0xff]  ;;  %v22561_v12 = vld [vmem:[#allocation67_spill] sm:$0xff] }
 0x38c   : > { %11937 = vmatpush1.bf16.msra.mxu0 %v11936_v45  ;;  %v11944_v45 = vpack.c.bf16 %v22553_v8, %v22552_v38  ;;  %v22560_v2 = vld [vmem:[#allocation65_spill] sm:$0xff]  ;;  %v22563_v54 = vld [vmem:[#allocation71_spill] sm:$0xff]  ;;  %v22564_v8 = vld [vmem:[#allocation74_spill] sm:$0xff] }
 0x38d   : > { %11557 = vmatpush1.bf16.msra.mxu1 %v11556_v62  ;;  %11939 = vmatprep.subr.bf16.mxu0 %v11938_v13  ;;  %v22554_v62 = vld [vmem:[#allocation56_spill] sm:$0xff]  ;;  %v11946_v13 = vpack.c.bf16 %v22557_v18, %v22556_v15  ;;  %v22568_v18 = vld [vmem:[#allocation83_spill] sm:$0xff] }
 0x38e   : > { %11559 = vmatprep.subr.bf16.mxu1 %v11558_v27  ;;  %v11564_v58 = vpack.c.bf16 %v22555_v46, %v22554_v62  ;;  %v22558_v27 = vld [vmem:[#allocation62_spill] sm:$0xff]  ;;  %v22565_v46 = vld [vmem:[#allocation76_spill] sm:$0xff] }
 0x38f   : > { %v11566_v11 = vpack.c.bf16 %v22559_v60, %v22558_v27  ;;  %v22567_v62 = vld [vmem:[#allocation80_spill] sm:$0xff]  ;;  %v22569_v60 = vld [vmem:[#allocation85_spill] sm:$0xff] }
 0x390   : > { %11941 = vmatpush1.bf16.msra.mxu0 %v11940_v59  ;;  %v11948_v59 = vpack.c.bf16 %v22561_v12, %v22560_v2  ;;  %v22571_v27 = vld [vmem:[#allocation89_spill] sm:$0xff] }
 0x391   : > { %11561 = vmatpush1.bf16.msra.mxu1 %v11560_v50  ;;  %11943 = vmatprep.subr.bf16.mxu0 %v11942_v0  ;;  %v22562_v50 = vld [vmem:[#allocation69_spill] sm:$0xff]  ;;  %v11950_v0 = vpack.c.bf16 %v22565_v46, %v22564_v8  ;;  %v22575_v46 = vld [vmem:[#allocation100_spill] sm:$0xff] }
 0x392   : > { %11563 = vmatprep.subr.bf16.mxu1 %v11562_v20  ;;  %v11568_v5 = vpack.c.bf16 %v22563_v54, %v22562_v50  ;;  %v22566_v20 = vld [vmem:[#allocation79_spill] sm:$0xff]  ;;  %v22576_v8 = vld [vmem:[#allocation97_spill] sm:$0xff] }
 0x393   : > { %v11570_v38 = vpack.c.bf16 %v22567_v62, %v22566_v20  ;;  %v22577_v50 = vpack.c.bf16 %v22575_v46, %v22576_v8  ;;  %v22594_v8 = vld [vmem:[#allocation125_spill] sm:$0xff] }
 0x394   : > { %11945 = vmatpush1.bf16.msra.mxu0 %v11944_v45  ;;  %v11952_v45 = vpack.c.bf16 %v22569_v60, %v22568_v18  ;;  %v22581_v60 = vld [vmem:[#allocation109_spill] sm:$0xff]  ;;  %v22582_v18 = vld [vmem:[#allocation107_spill] sm:$0xff] }
 0x395   : > { %11565 = vmatpush1.bf16.msra.mxu1 %v11564_v58  ;;  %11947 = vmatprep.subr.bf16.mxu0 %v11946_v13  ;;  %v22570_v58 = vld [vmem:[#allocation86_spill] sm:$0xff]  ;;  %v22572_v13 = vld [vmem:[#allocation95_spill] sm:$0xff]  ;;  %v22583_v20 = vpack.c.bf16 %v22581_v60, %v22582_v18 }
 0x396   : > { %11567 = vmatprep.subr.bf16.mxu1 %v11566_v11  ;;  %v11572_v15 = vpack.c.bf16 %v22571_v27, %v22570_v58  ;;  %v22573_v11 = vld [vmem:[#allocation92_spill] sm:$0xff]  ;;  %v22600_v18 = vld [vmem:[#allocation139_spill] sm:$0xff] }
 0x397   : > { %v22574_v54 = vpack.c.bf16 %v22572_v13, %v22573_v11  ;;  %v22588_v27 = vld [vmem:[#allocation212_spill] sm:$0xff]  ;;  %v22591_v11 = vld [vmem:[#allocation113_spill] sm:$0xff] }
 0x398   : > { %11949 = vmatpush1.bf16.msra.mxu0 %v11948_v59  ;;  %v22578_v59 = vld [vmem:[#allocation104_spill] sm:$0xff] }
 0x399   : > { %11569 = vmatpush1.bf16.msra.mxu1 %v11568_v5  ;;  %11951 = vmatprep.subr.bf16.mxu0 %v11950_v0  ;;  %v22579_v5 = vld [vmem:[#allocation101_spill] sm:$0xff]  ;;  %v22584_v0 = vld [vmem:[#allocation210_spill] sm:$0xff] }
 0x39a   : > { %11571 = vmatprep.subr.bf16.mxu1 %v11570_v38  ;;  %v22580_v62 = vpack.c.bf16 %v22578_v59, %v22579_v5  ;;  %v22585_v38 = vld [vmem:[#allocation209_spill] sm:$0xff]  ;;  %v22597_v5 = vld [vmem:[#allocation131_spill] sm:$0xff] }
 0x39c   : > { %11953 = vmatpush1.bf16.msra.mxu0 %v11952_v45  ;;  %v22586_v45 = vpack.c.bf16 %v22584_v0, %v22585_v38 }
 0x39d   : > { %11573 = vmatpush1.bf16.msra.mxu1 %v11572_v15  ;;  %11955 = vmatprep.subr.bf16.mxu0 %v22574_v54  ;;  %v22587_v15 = vld [vmem:[#allocation112_spill] sm:$0xff] }
 0x39e   : > { %11575 = vmatprep.subr.bf16.mxu1 %v22577_v50  ;;  %v22589_v13 = vpack.c.bf16 %v22587_v15, %v22588_v27  ;;  %v22590_v54 = vld [vmem:[#allocation116_spill] sm:$0xff] }
 0x39f   : > { %v22592_v46 = vpack.c.bf16 %v22590_v54, %v22591_v11  ;;  %v22593_v50 = vld [vmem:[#allocation128_spill] sm:$0xff] }
 0x3a0   : > { %11957 = vmatpush1.bf16.msra.mxu0 %v22580_v62  ;;  %v22595_v59 = vpack.c.bf16 %v22593_v50, %v22594_v8  ;;  %v22596_v62 = vld [vmem:[#allocation136_spill] sm:$0xff] }
 0x3a1   : > { %11577 = vmatpush1.bf16.msra.mxu1 %v22583_v20  ;;  %11959 = vmatprep.subr.bf16.mxu0 %v22586_v45  ;;  %v22598_v60 = vpack.c.bf16 %v22596_v62, %v22597_v5  ;;  %v22599_v20 = vld [vmem:[#allocation140_spill] sm:$0xff]  ;;  %v22602_v45 = vld [vmem:[#allocation145_spill] sm:$0xff] }
 0x3a2   : > { %11579 = vmatprep.subr.bf16.mxu1 %v22589_v13  ;;  %v22601_v0 = vpack.c.bf16 %v22599_v20, %v22600_v18  ;;  %v22603_v15 = vpack.c.bf16 %v22415_v36, %v22602_v45  ;;  %v22604_v13 = vld [vmem:[#allocation148_spill] sm:$0xff]  ;;  %v22612_v36 = vld [vmem:[#allocation22_spill] sm:$0xff] }
 0x3a3   : > { %v22605_v54 = vpack.c.bf16 %v22417_v48, %v22604_v13  ;;  %v22615_v13 = vld [vmem:[#allocation243_spill] sm:$0xff] }
 0x3a4   : > { %11961 = vmatpush1.bf16.msra.mxu0 %v22592_v46  ;;  %v22606_v46 = vld [vmem:[#allocation155_spill] sm:$0xff] }
 0x3a5   : > { %11581 = vmatpush1.bf16.msra.mxu1 %v22595_v59  ;;  %11963 = vmatprep.subr.bf16.mxu0 %v22598_v60  ;;  %v22607_v50 = vpack.c.bf16 %v22419_v28, %v22606_v46  ;;  %v22608_v59 = vpack.c.bf16 %v22421_v21, %v22420_v16  ;;  %v22609_v60 = vpack.c.bf16 %v22423_v35, %v22422_v53  ;;  %v22618_v46 = vld [vmem:[#allocation240_spill] sm:$0xff] }
 0x3a6   : > { %11583 = vmatprep.subr.bf16.mxu1 %v22601_v0  ;;  %v22610_v0 = vpack.c.bf16 %v22425_v37, %v22424_v47 }
 0x3a8   : > { %11965 = vmatpush1.bf16.msra.mxu0 %v22603_v15  ;;  %v22611_v15 = vld [vmem:[#allocation232_spill] sm:$0xff] }
 0x3a9   : > { %11585 = vmatpush1.bf16.msra.mxu1 %v22605_v54  ;;  %11967 = vmatprep.subr.bf16.mxu0 %v22607_v50  ;;  %v22613_v48 = vpack.c.bf16 %v22611_v15, %v22612_v36  ;;  %v22614_v54 = vld [vmem:[#allocation21_spill] sm:$0xff] }
 0x3aa   : > { %11587 = vmatprep.subr.bf16.mxu1 %v22608_v59  ;;  %v22616_v28 = vpack.c.bf16 %v22614_v54, %v22615_v13  ;;  %v22617_v50 = vld [vmem:[#allocation25_spill] sm:$0xff] }
 0x3ab   : > { %v22619_v21 = vpack.c.bf16 %v22617_v50, %v22618_v46  ;;  %v22620_v59 = vld [vmem:[#allocation33_spill] sm:$0xff] }
 0x3ac   : > { %11969 = vmatpush1.bf16.msra.mxu0 %v22609_v60  ;;  %v22621_v35 = vpack.c.bf16 %v22476_v30, %v22620_v59  ;;  %v22622_v60 = vpack.c.bf16 %v22480_v40, %v22479_v49 }
 0x3ad   : > { %11589 = vmatpush1.bf16.msra.mxu1 %v22610_v0  ;;  %11971 = vmatprep.subr.bf16.mxu0 %v22613_v48  ;;  %v22623_v0 = vld [vmem:[#allocation39_spill] sm:$0xff]  ;;  %v22625_v48 = vpack.c.bf16 %v22489_v9, %v22438_v1 }
 0x3ae   : > { %11591 = vmatprep.subr.bf16.mxu1 %v22616_v28  ;;  %v22624_v15 = vpack.c.bf16 %v22437_v34, %v22623_v0  ;;  %v22626_v28 = vpack.c.bf16 %v22491_v63, %v22490_v57 }
 0x3b0   : > { %11973 = vmatpush1.bf16.msra.mxu0 %v22619_v21  ;;  %v22627_v21 = vpack.c.bf16 %v22493_v10, %v22492_v55  ;;  %v22633_v10 = vld [vmem:[#allocation242_spill] sm:$0xff] }
 0x3b1   : > { %11593 = vmatpush1.bf16.msra.mxu1 %v22621_v35  ;;  %11975 = vmatprep.subr.bf16.mxu0 %v22622_v60  ;;  %v22628_v35 = vpack.c.bf16 %v22444_v17, %v22443_v44  ;;  %v22629_v60 = vpack.c.bf16 %v22446_v14, %v22445_v43  ;;  %v22636_v14 = vld [vmem:[#allocation184_spill] sm:$0xff] }
 0x3b2   : > { %11595 = vmatprep.subr.bf16.mxu1 %v22624_v15  ;;  %v22630_v15 = vpack.c.bf16 %v22448_v32, %v22447_v33  ;;  %v22638_v32 = vld [vmem:[#allocation220_spill] sm:$0xff] }
 0x3b4   : > { %11977 = vmatpush1.bf16.msra.mxu0 %v22625_v48  ;;  %v22631_v48 = vpack.c.bf16 %v22451_v52, %v22450_v22  ;;  %v22643_v52 = vld [vmem:[#allocation226_spill] sm:$0xff] }
 0x3b5   : > { %11597 = vmatpush1.bf16.msra.mxu1 %v22626_v28  ;;  %11979 = vmatprep.subr.bf16.mxu0 %v22627_v21  ;;  %v22632_v28 = vld [vmem:[#allocation182_spill] sm:$0xff]  ;;  %v22634_v21 = vpack.c.bf16 %v22453_v42, %v22452_v26  ;;  %v22648_v42 = vld [vmem:[#allocation16_spill] sm:$0xff] }
 0x3b6   : > { %11599 = vmatprep.subr.bf16.mxu1 %v22628_v35  ;;  %v22635_v35 = vld [vmem:[#allocation252_spill] sm:$0xff] }
 0x3b7   : > { %v22669_v26 = vld [vmem:[#allocation64_spill] sm:$0xff] }
 0x3b8   : > { %11981 = vmatpush1.bf16.msra.mxu0 %v22629_v60  ;;  %v22637_v60 = vld [vmem:[#allocation189_spill] sm:$0xff] }
 0x3b9   : > { %11601 = vmatpush1.bf16.msra.mxu1 %v22630_v15  ;;  %11983 = vmatprep.subr.bf16.mxu0 %v22631_v48  ;;  %v22639_v15 = vld [vmem:[#allocation208_spill] sm:$0xff]  ;;  %v22640_v48 = vld [vmem:[#allocation251_spill] sm:$0xff] }
 0x3ba   : > { %11603 = vmatprep.subr.bf16.mxu1 %v22632_v28  ;;  %v22641_v28 = vld [vmem:[#allocation173_spill] sm:$0xff] }
 0x3bc   : > { %5538 = vmatmul.mubr.f32.vlgmr.msra.gmra.mrb[12].mxu1 %v22633_v10  ;;  %11985 = vmatpush1.bf16.msra.mxu0 %v22634_v21  ;;  %v22642_v10 = vld [vmem:[#allocation223_spill] sm:$0xff]  ;;  %v22644_v21 = vld [vmem:[#allocation250_spill] sm:$0xff] }
 0x3bd   : > { %5545 = vmatprep.mubr.f32.mxu1 %v22635_v35  ;;  %11605 = vmatpush1.bf16.msra.mxu1 %v22636_v14  ;;  %v22645_v35 = vld [vmem:[#allocation229_spill] sm:$0xff]  ;;  %v22646_v14 = vld [vmem:[#allocation234_spill] sm:$0xff] }
 0x3be   : > { %11987 = vmatprep.subr.bf16.mxu0 %v22637_v60  ;;  %11607 = vmatprep.subr.bf16.mxu1 %v22638_v32  ;;  %v22647_v60 = vld [vmem:[#allocation214_spill] sm:$0xff]  ;;  %v22649_v32 = vld [vmem:[#allocation215_spill] sm:$0xff] }
 0x3bf   : > { %7086 = vmatmul.mubr.f32.vlgmr.msra.gmra.mrb[12].mxu0 %v22639_v15  ;;  %v22650_v15 = vld [vmem:[#allocation18_spill] sm:$0xff] }
 0x3c0   : > { %5548 = vmatmul.mubr.f32.gmra.mrb[14].mxu1 %v22640_v48  ;;  %7093 = vmatprep.mubr.f32.mxu0 %v22641_v28  ;;  %v22651_v48 = vld [vmem:[#allocation27_spill] sm:$0xff]  ;;  %v22652_v28 = vld [vmem:[#allocation30_spill] sm:$0xff] }
 0x3c1   : > { %11989 = vmatpush1.bf16.msra.mxu0 %v22642_v10  ;;  %11609 = vmatpush1.bf16.msra.mxu1 %v22643_v52  ;;  %v22653_v52 = vld [vmem:[#allocation42_spill] sm:$0xff]  ;;  %v22659_v10 = vld [vmem:[#allocation163_spill] sm:$0xff] }
 0x3c2   : > { %5685 = vmatprep.mubr.f32.mxu1 %v22644_v21  ;;  %11991 = vmatprep.subr.bf16.mxu0 %v22645_v35  ;;  %v22654_v21 = vld [vmem:[#allocation45_spill] sm:$0xff] }
 0x3c3   : > { %11611 = vmatprep.subr.bf16.mxu1 %v22646_v14  ;;  %7096 = vmatmul.mubr.f32.gmra.mrb[14].mxu0 %v22647_v60  ;;  %v22655_v35 = vld [vmem:[#allocation93_spill] sm:$0xff]  ;;  %v22657_v60 = vld [vmem:[#allocation134_spill] sm:$0xff] }
 0x3c4   : > { %7233 = vmatprep.mubr.f32.mxu0 %v22649_v32  ;;  %v22656_v14 = vld [vmem:[#allocation121_spill] sm:$0xff] }
 0x3c5   : > { %11993 = vmatpush1.bf16.msra.mxu0 %v22648_v42  ;;  %11613 = vmatpush1.bf16.msra.mxu1 %v22650_v15  ;;  %v22658_v42 = vld [vmem:[#allocation153_spill] sm:$0xff]  ;;  %v22666_v15 = vld [vmem:[#allocation55_spill] sm:$0xff] }
 0x3c6   : > { %11995 = vmatprep.subr.bf16.mxu0 %v22651_v48  ;;  %11615 = vmatprep.subr.bf16.mxu1 %v22652_v28  ;;  %v22663_v28 = vld [vmem:[#allocation194_spill] sm:$0xff] }
 0x3c9   : > { %11997 = vmatpush1.bf16.msra.mxu0 %v22653_v52  ;;  %11617 = vmatpush1.bf16.msra.mxu1 %v22654_v21 }
 0x3ca   : > { %11999 = vmatprep.subr.bf16.mxu0 %v22655_v35  ;;  %11619 = vmatprep.subr.bf16.mxu1 %v22656_v14  ;;  %v22660_v35 = vld [vmem:[#allocation170_spill] sm:$0xff]  ;;  %v22661_v14 = vld [vmem:[#allocation176_spill] sm:$0xff] }
 0x3cb   : > { %v3288_v32 = vpop.f32.mrb[8].mxu1 }
 0x3cc   : > { %3301 = vst [vmem:[%s17392_s21] sm:$0xff] %v3288_v32  ;;  %v3290_v21 = vpop.f32.mrb[9].mxu1  ;;  %v22664_v32 = vld [vmem:[#allocation48_spill] sm:$0xff] }
 0x3cd   : > { %12001 = vmatpush1.bf16.msra.mxu0 %v22657_v60  ;;  %11621 = vmatpush1.bf16.msra.mxu1 %v22658_v42  ;;  %3302 = vst [vmem:[%s17392_s21 + $0x8] sm:$0xff] %v3290_v21  ;;  %v4766_v42 = vpop.f32.mrb[8].mxu0  ;;  %v22662_v60 = vld [vmem:[#allocation235_spill] sm:$0xff] }
 0x3ce   : > { %12003 = vmatprep.subr.bf16.mxu0 %v22659_v10  ;;  %11623 = vmatprep.subr.bf16.mxu1 %v22660_v35  ;;  %10544 = vst [vmem:[%s17392_s21 + $0x20] sm:$0xff] %v4766_v42  ;;  %v4768_v52 = vpop.f32.mrb[9].mxu0  ;;  %v22665_v35 = vld [vmem:[#allocation51_spill] sm:$0xff]  ;;  %v22668_v42 = vld [vmem:[#allocation61_spill] sm:$0xff] }
 0x3cf   : > { %v3296_v10 = vpop.f32.mrb[10].mxu1  ;;  %10545 = vst [vmem:[%s17392_s21 + $0x28] sm:$0xff] %v4768_v52  ;;  %v22671_v52 = vld [vmem:[#allocation73_spill] sm:$0xff] }
 0x3d0   : > { %3303 = vst [vmem:[%s17392_s21 + $0x10] sm:$0xff] %v3296_v10  ;;  %v3298_v48 = vpop.f32.mrb[11].mxu1  ;;  %v22670_v10 = vld [vmem:[#allocation68_spill] sm:$0xff] }
 0x3d1   : > { %12005 = vmatpush1.bf16.msra.mxu0 %v22661_v14  ;;  %11625 = vmatpush1.bf16.msra.mxu1 %v22662_v60  ;;  %3304 = vst [vmem:[%s17392_s21 + $0x18] sm:$0xff] %v3298_v48  ;;  %v4774_v21 = vpop.f32.mrb[10].mxu0  ;;  %v22667_v60 = vld [vmem:[#allocation58_spill] sm:$0xff]  ;;  %v22673_v48 = vld [vmem:[#allocation81_spill] sm:$0xff] }
 0x3d2   : > { %12007 = vmatprep.subr.bf16.mxu0 %v22663_v28  ;;  %11627 = vmatprep.subr.bf16.mxu1 %v22664_v32  ;;  %10546 = vst [vmem:[%s17392_s21 + $0x30] sm:$0xff] %v4774_v21  ;;  %v4776_v14 = vpop.f32.mrb[11].mxu0  ;;  %v22672_v32 = vld [vmem:[#allocation77_spill] sm:$0xff]  ;;  %v22676_v21 = vld [vmem:[#allocation98_spill] sm:$0xff] }
 0x3d3   : > { %10547 = vst [vmem:[%s17392_s21 + $0x38] sm:$0xff] %v4776_v14  ;;  %v22678_v14 = vld [vmem:[#allocation105_spill] sm:$0xff] }
 0x3d5   : > { %12009 = vmatpush1.bf16.msra.mxu0 %v22665_v35  ;;  %11629 = vmatpush1.bf16.msra.mxu1 %v22666_v15  ;;  %v22674_v35 = vld [vmem:[#allocation88_spill] sm:$0xff]  ;;  %v22675_v15 = vld [vmem:[#allocation91_spill] sm:$0xff] }
 0x3d6   : > { %12011 = vmatprep.subr.bf16.mxu0 %v22667_v60  ;;  %11631 = vmatprep.subr.bf16.mxu1 %v22668_v42  ;;  %v22677_v60 = vld [vmem:[#allocation103_spill] sm:$0xff]  ;;  %v22679_v42 = vld [vmem:[#allocation110_spill] sm:$0xff] }
 0x3d9   : > { %12013 = vmatpush1.bf16.msra.mxu0 %v22669_v26  ;;  %11633 = vmatpush1.bf16.msra.mxu1 %v22670_v10  ;;  %v22680_v26 = vld [vmem:[#allocation211_spill] sm:$0xff] }
 0x3da   : > { %12015 = vmatprep.subr.bf16.mxu0 %v22671_v52  ;;  %11635 = vmatprep.subr.bf16.mxu1 %v22672_v32  ;;  %v22681_v10 = vld [vmem:[#allocation115_spill] sm:$0xff]  ;;  %v22682_v52 = vld [vmem:[#allocation124_spill] sm:$0xff]  ;;  %v22683_v32 = vld [vmem:[#allocation129_spill] sm:$0xff] }
 0x3dd   : > { %12017 = vmatpush1.bf16.msra.mxu0 %v22673_v48  ;;  %11637 = vmatpush1.bf16.msra.mxu1 %v22674_v35  ;;  %v22684_v48 = vld [vmem:[#allocation137_spill] sm:$0xff]  ;;  %v22685_v35 = vld [vmem:[#allocation143_spill] sm:$0xff] }
 0x3de   : > { %12019 = vmatprep.subr.bf16.mxu0 %v22675_v15  ;;  %11639 = vmatprep.subr.bf16.mxu1 %v22676_v21  ;;  %v22686_v15 = vld [vmem:[#allocation149_spill] sm:$0xff]  ;;  %v22687_v21 = vld [vmem:[#allocation152_spill] sm:$0xff] }
 0x3e1   : > { %12021 = vmatpush1.bf16.msra.mxu0 %v22677_v60  ;;  %11641 = vmatpush1.bf16.msra.mxu1 %v22678_v14  ;;  %v22688_v60 = vld [vmem:[#allocation158_spill] sm:$0xff]  ;;  %v22689_v14 = vld [vmem:[#allocation191_spill] sm:$0xff] }
 0x3e2   : > { %12023 = vmatprep.subr.bf16.mxu0 %v22679_v42  ;;  %11643 = vmatprep.subr.bf16.mxu1 %v22680_v26  ;;  %v22690_v42 = vld [vmem:[#allocation200_spill] sm:$0xff]  ;;  %v22691_v26 = vld [vmem:[#allocation203_spill] sm:$0xff] }
 0x3e5   : > { %12025 = vmatpush1.bf16.msra.mxu0 %v22681_v10  ;;  %11645 = vmatpush1.bf16.msra.mxu1 %v22682_v52  ;;  %v22692_v10 = vld [vmem:[#allocation23_spill] sm:$0xff]  ;;  %v22693_v52 = vld [vmem:[#allocation24_spill] sm:$0xff] }
 0x3e6   : > { %12027 = vmatprep.subr.bf16.mxu0 %v22683_v32  ;;  %11647 = vmatprep.subr.bf16.mxu1 %v22684_v48  ;;  %v22694_v32 = vld [vmem:[#allocation26_spill] sm:$0xff]  ;;  %v22695_v48 = vld [vmem:[#allocation35_spill] sm:$0xff] }
 0x3e9   : > { %12029 = vmatpush1.bf16.msra.mxu0 %v22685_v35  ;;  %11649 = vmatpush1.bf16.msra.mxu1 %v22686_v15  ;;  %v22696_v35 = vld [vmem:[#allocation38_spill] sm:$0xff]  ;;  %v22697_v15 = vld [vmem:[#allocation41_spill] sm:$0xff] }
 0x3ea   : > { %12031 = vmatprep.subr.bf16.mxu0 %v22687_v21  ;;  %11651 = vmatprep.subr.bf16.mxu1 %v22688_v60  ;;  %v22698_v21 = vld [vmem:[#allocation66_spill] sm:$0xff]  ;;  %v22699_v60 = vld [vmem:[#allocation75_spill] sm:$0xff] }
 0x3ed   : > { %12033 = vmatpush1.bf16.msra.mxu0 %v22689_v14  ;;  %11653 = vmatpush1.bf16.msra.mxu1 %v22690_v42  ;;  %v22700_v14 = vld [vmem:[#allocation87_spill] sm:$0xff] }
 0x3ee   : > { %12035 = vmatprep.subr.bf16.mxu0 %v22691_v26  ;;  %11655 = vmatprep.subr.bf16.mxu1 %v22692_v10  ;;  %v22701_v26 = vand.u32 4294901760, %v22496_v7  ;;  %v22702_v10 = vand.u32 4294901760, %v22497_v19  ;;  %v22710_v19 = vand.u32 4294901760, %v22502_v56 }
 0x3f0   : > { %v11666_v42 = vpack.c.bf16 %v22702_v10, %v22701_v26  ;;  %v22711_v26 = vand.u32 4294901760, %v22503_v39  ;;  %v22719_v39 = vand.u32 4294901760, %v22510_v25 }
 0x3f1   : > { %12037 = vmatpush1.bf16.msra.mxu0 %v22693_v52  ;;  %11657 = vmatpush1.bf16.msra.mxu1 %v22694_v32  ;;  %v22703_v52 = vld [vmem:[#allocation94_spill] sm:$0xff] }
 0x3f2   : > { %12039 = vmatprep.subr.bf16.mxu0 %v22695_v48  ;;  %11659 = vmatprep.subr.bf16.mxu1 %v22696_v35  ;;  %v22704_v32 = vld [vmem:[#allocation102_spill] sm:$0xff]  ;;  %v22705_v48 = vld [vmem:[#allocation111_spill] sm:$0xff]  ;;  %v22706_v35 = vand.u32 4294901760, %v22498_v23  ;;  %v11670_v10 = vpack.c.bf16 %v22711_v26, %v22710_v19  ;;  %v22715_v23 = vand.u32 4294901760, %v22506_v6  ;;  %v22723_v6 = vld [vmem:[#allocation241_spill] sm:$0xff] }
 0x3f5   : > { %12041 = vmatpush1.bf16.msra.mxu0 %v22697_v15  ;;  %11661 = vmatpush1.bf16.msra.mxu1 %v22698_v21  ;;  %v22707_v15 = vand.u32 4294901760, %v22499_v24  ;;  %v22716_v24 = vand.u32 4294901760, %v22507_v51 }
 0x3f6   : > { %12043 = vmatprep.subr.bf16.mxu0 %v22699_v60  ;;  %11663 = vmatprep.subr.bf16.mxu1 %v22700_v14  ;;  %v22708_v60 = vand.u32 4294901760, %v22500_v61  ;;  %v22709_v14 = vand.u32 4294901760, %v22501_v31  ;;  %v22717_v31 = vand.u32 4294901760, %v22508_v41  ;;  %v22726_v41 = vld [vmem:[#allocation216_spill] sm:$0xff] }
 0x3f7   : > { %v11668_v21 = vpack.c.bf16 %v22707_v15, %v22706_v35  ;;  %v12052_v61 = vpack.c.bf16 %v22716_v24, %v22715_v23  ;;  %v22720_v15 = vand.u32 4294901760, %v22511_v4  ;;  %v22731_v4 = vld [vmem:[#allocation19_spill] sm:$0xff] }
 0x3f8   : > { %v12050_v7 = vpack.c.bf16 %v22709_v14, %v22708_v60  ;;  %v22718_v60 = vand.u32 4294901760, %v22509_v29  ;;  %v22727_v29 = vld [vmem:[#allocation15_spill] sm:$0xff]  ;;  %v22732_v26 = vand.u32 4294901760, %v22731_v4 }
 0x3f9   : > { %12045 = vmatpush1.bf16.msra.mxu0 %v22703_v52  ;;  %11665 = vmatpush1.bf16.msra.mxu1 %v22704_v32  ;;  %v22712_v52 = vld [vmem:[#allocation246_spill] sm:$0xff]  ;;  %v22713_v32 = vld [vmem:[#allocation123_spill] sm:$0xff]  ;;  %v12054_v35 = vpack.c.bf16 %v22720_v15, %v22719_v39  ;;  %v22728_v14 = vand.u32 4294901760, %v22727_v29  ;;  %v22738_v39 = vld [vmem:[#allocation29_spill] sm:$0xff] }
 0x3fa   : > { %12047 = vmatprep.subr.bf16.mxu0 %v22705_v48  ;;  %11667 = vmatprep.subr.bf16.mxu1 %v11666_v42  ;;  %v22714_v48 = vld [vmem:[#allocation256_spill] sm:$0xff]  ;;  %v11672_v56 = vpack.c.bf16 %v22718_v60, %v22717_v31  ;;  %v22721_v42 = vld [vmem:[#allocation177_spill] sm:$0xff]  ;;  %v22739_v15 = vand.u32 4294901760, %v22738_v39 }
 0x3fb   : > { %v22736_v31 = vld [vmem:[#allocation28_spill] sm:$0xff]  ;;  %v22744_v29 = vld [vmem:[#allocation181_spill] sm:$0xff] }
 0x3fc   : > { %5689 = vmatmul.mubr.f32.vlgmr.msra.gmra.mrb[12].mxu1 %v22712_v52  ;;  %v22722_v52 = vand.u32 4294901760, %v22513_v3  ;;  %v22735_v3 = vld [vmem:[#allocation239_spill] sm:$0xff]  ;;  %v22737_v60 = vand.u32 4294901760, %v22736_v31  ;;  %v22752_v31 = vld [vmem:[#allocation236_spill] sm:$0xff] }
 0x3fd   : > { %12049 = vmatpush1.bf16.msra.mxu0 %v22713_v32  ;;  %5697 = vmatprep.mubr.f32.mxu1 %v22714_v48  ;;  %v22724_v48 = vand.u32 4294901760, %v22723_v6  ;;  %v22742_v6 = vld [vmem:[#allocation32_spill] sm:$0xff] }
 0x3fe   : > { %11669 = vmatpush1.bf16.msra.mxu1 %v11668_v21  ;;  %12051 = vmatprep.subr.bf16.mxu0 %v12050_v7  ;;  %v22725_v21 = vld [vmem:[#allocation254_spill] sm:$0xff]  ;;  %v22729_v7 = vld [vmem:[#allocation17_spill] sm:$0xff] }
 0x3ff   : > { %11671 = vmatprep.subr.bf16.mxu1 %v11670_v10  ;;  %v11674_v51 = vpack.c.bf16 %v22724_v48, %v22722_v52  ;;  %v22730_v25 = vand.u32 4294901760, %v22729_v7  ;;  %v22733_v10 = vld [vmem:[#allocation20_spill] sm:$0xff]  ;;  %v12058_v52 = vpack.c.bf16 %v22739_v15, %v22737_v60  ;;  %v22743_v48 = vand.u32 4294901760, %v22742_v6  ;;  %v22746_v7 = vld [vmem:[#allocation43_spill] sm:$0xff]  ;;  %v22754_v15 = vld [vmem:[#allocation117_spill] sm:$0xff] }
 0x400   : > { %7237 = vmatmul.mubr.f32.vlgmr.msra.gmra.mrb[12].mxu0 %v22721_v42  ;;  %5701 = vmatmul.mubr.f32.gmra.mrb[14].mxu1 %v22725_v21  ;;  %v22734_v23 = vand.u32 4294901760, %v22733_v10  ;;  %v22750_v10 = vld [vmem:[#allocation46_spill] sm:$0xff]  ;;  %v22753_v60 = vand.u32 4294901760, %v22752_v31 }
 0x401   : > { %7245 = vmatprep.mubr.f32.mxu0 %v22726_v41  ;;  %12053 = vmatpush1.bf16.msra.mxu0 %v12052_v61  ;;  %v12056_v19 = vpack.c.bf16 %v22730_v25, %v22728_v14  ;;  %v22740_v61 = vld [vmem:[#allocation31_spill] sm:$0xff]  ;;  %v22745_v14 = vld [vmem:[#allocation205_spill] sm:$0xff]  ;;  %v22747_v25 = vand.u32 4294901760, %v22746_v7  ;;  %v6192_v41 = vld [vmem:[#allocation5 + $0x3a8] sm:$0xff] }
 0x402   : > { %11673 = vmatpush1.bf16.msra.mxu1 %v11672_v56  ;;  %v11676_v24 = vpack.c.bf16 %v22734_v23, %v22732_v26  ;;  %5964 = vmatprep.mubr.f32.mxu1 %v22735_v3  ;;  %v22741_v56 = vand.u32 4294901760, %v22740_v61  ;;  %v22751_v23 = vand.u32 4294901760, %v22750_v10  ;;  %v22755_v61 = vand.u32 4294901760, %v22754_v15 }
 0x403   : > { %12055 = vmatprep.subr.bf16.mxu0 %v12054_v35  ;;  %11675 = vmatprep.subr.bf16.mxu1 %v11674_v51  ;;  %v22748_v35 = vld [vmem:[#allocation44_spill] sm:$0xff] }
 0x404   : > { %v11678_v21 = vpack.c.bf16 %v22743_v48, %v22741_v56  ;;  %7249 = vmatmul.mubr.f32.gmra.mrb[14].mxu0 %v22744_v29  ;;  %v22749_v4 = vand.u32 4294901760, %v22748_v35  ;;  %v11680_v39 = vpack.c.bf16 %v22753_v60, %v22751_v23  ;;  %v22756_v56 = vld [vmem:[#allocation119_spill] sm:$0xff]  ;;  %v22758_v48 = vld [vmem:[#allocation122_spill] sm:$0xff]  ;;  %v22766_v23 = vld [vmem:[#allocation160_spill] sm:$0xff] }
 0x405   : > { %7512 = vmatprep.mubr.f32.mxu0 %v22745_v14  ;;  %12057 = vmatpush1.bf16.msra.mxu0 %v12056_v19  ;;  %v22757_v51 = vand.u32 4294901760, %v22756_v56  ;;  %v22759_v19 = vand.u32 4294901760, %v22758_v48 }
 0x406   : > { %11677 = vmatpush1.bf16.msra.mxu1 %v11676_v24  ;;  %v12060_v26 = vpack.c.bf16 %v22749_v4, %v22747_v25  ;;  %12059 = vmatprep.subr.bf16.mxu0 %v12058_v52  ;;  %v22760_v24 = vld [vmem:[#allocation127_spill] sm:$0xff]  ;;  %v22762_v25 = vld [vmem:[#allocation133_spill] sm:$0xff]  ;;  %v22767_v52 = vand.u32 4294901760, %v22766_v23 }
 0x407   : > { %11679 = vmatprep.subr.bf16.mxu1 %v11678_v21  ;;  %v12062_v6 = vpack.c.bf16 %v22757_v51, %v22755_v61  ;;  %v22761_v29 = vand.u32 4294901760, %v22760_v24  ;;  %v22763_v35 = vand.u32 4294901760, %v22762_v25  ;;  %v22764_v4 = vld [vmem:[#allocation141_spill] sm:$0xff]  ;;  %v22768_v21 = vld [vmem:[#allocation164_spill] sm:$0xff]  ;;  %v22770_v61 = vld [vmem:[#allocation167_spill] sm:$0xff] }
 0x408   : > { %v22765_v10 = vand.u32 4294901760, %v22764_v4  ;;  %v22769_v60 = vand.u32 4294901760, %v22768_v21  ;;  %v22771_v56 = vand.u32 4294901760, %v22770_v61  ;;  %v22772_v51 = vld [vmem:[#allocation165_spill] sm:$0xff] }
 0x409   : > { %v11682_v7 = vpack.c.bf16 %v22761_v29, %v22759_v19  ;;  %12061 = vmatpush1.bf16.msra.mxu0 %v12060_v26  ;;  %v22773_v48 = vand.u32 4294901760, %v22772_v51  ;;  %v22774_v29 = vld [vmem:[#allocation169_spill] sm:$0xff] }
 0x40a   : > { %11681 = vmatpush1.bf16.msra.mxu1 %v11680_v39  ;;  %v12064_v31 = vpack.c.bf16 %v22765_v10, %v22763_v35  ;;  %v11684_v15 = vpack.c.bf16 %v22769_v60, %v22767_v52  ;;  %12063 = vmatprep.subr.bf16.mxu0 %v12062_v6  ;;  %v22775_v26 = vand.u32 4294901760, %v22774_v29  ;;  %v22776_v39 = vld [vmem:[#allocation172_spill] sm:$0xff]  ;;  %v22778_v35 = vld [vmem:[#allocation175_spill] sm:$0xff]  ;;  %v22780_v10 = vld [vmem:[#allocation193_spill] sm:$0xff] }
 0x40b   : > { %11683 = vmatprep.subr.bf16.mxu1 %v11682_v7  ;;  %v12066_v24 = vpack.c.bf16 %v22773_v48, %v22771_v56  ;;  %v22777_v19 = vand.u32 4294901760, %v22776_v39  ;;  %v22779_v4 = vand.u32 4294901760, %v22778_v35  ;;  %v22781_v23 = vand.u32 4294901760, %v22780_v10  ;;  %v22782_v52 = vld [vmem:[#allocation247_spill] sm:$0xff]  ;;  %v22784_v7 = vld [vmem:[#allocation245_spill] sm:$0xff] }
 0x40c   : > { %v22783_v6 = vand.u32 4294901760, %v22782_v52  ;;  %v22785_v60 = vand.u32 4294901760, %v22784_v7  ;;  %v22786_v56 = vld [vmem:[#allocation201_spill] sm:$0xff]  ;;  %v22788_v48 = vld [vmem:[#allocation47_spill] sm:$0xff] }
 0x40d   : > { %v11686_v25 = vpack.c.bf16 %v22777_v19, %v22775_v26  ;;  %12065 = vmatpush1.bf16.msra.mxu0 %v12064_v31  ;;  %v12068_v21 = vpack.c.bf16 %v22781_v23, %v22779_v4  ;;  %v22787_v51 = vand.u32 4294901760, %v22786_v56  ;;  %v22789_v29 = vand.u32 4294901760, %v22788_v48  ;;  %v22790_v26 = vld [vmem:[#allocation49_spill] sm:$0xff]  ;;  %v22794_v4 = vld [vmem:[#allocation50_spill] sm:$0xff] }
 0x40e   : > { %11685 = vmatpush1.bf16.msra.mxu1 %v11684_v15  ;;  %v11688_v61 = vpack.c.bf16 %v22785_v60, %v22783_v6  ;;  %12067 = vmatprep.subr.bf16.mxu0 %v12066_v24  ;;  %v22791_v31 = vand.u32 4294901760, %v22790_v26  ;;  %v22792_v15 = vld [vmem:[#allocation233_spill] sm:$0xff]  ;;  %v22795_v10 = vand.u32 4294901760, %v22794_v4  ;;  %v22796_v23 = vld [vmem:[#allocation54_spill] sm:$0xff]  ;;  %v22798_v6 = vld [vmem:[#allocation56_spill] sm:$0xff] }
 0x40f   : > { %11687 = vmatprep.subr.bf16.mxu1 %v11686_v25  ;;  %v12070_v39 = vpack.c.bf16 %v22789_v29, %v22787_v51  ;;  %v22793_v19 = vand.u32 4294901760, %v22792_v15  ;;  %v22797_v52 = vand.u32 4294901760, %v22796_v23  ;;  %v22799_v24 = vand.u32 4294901760, %v22798_v6  ;;  %v22800_v25 = vld [vmem:[#allocation57_spill] sm:$0xff]  ;;  %v22802_v51 = vld [vmem:[#allocation59_spill] sm:$0xff]  ;;  %v22804_v29 = vld [vmem:[#allocation60_spill] sm:$0xff] }
 0x410   : > { %v22801_v60 = vand.u32 4294901760, %v22800_v25  ;;  %v22803_v48 = vand.u32 4294901760, %v22802_v51  ;;  %v22805_v26 = vand.u32 4294901760, %v22804_v29  ;;  %v22811_v23 = vand.u32 4294901760, %v22561_v12  ;;  %v22812_v6 = vld [vmem:[#allocation69_spill] sm:$0xff]  ;;  %v22824_v12 = vld [vmem:[#allocation83_spill] sm:$0xff] }
 0x411   : > { %v11690_v35 = vpack.c.bf16 %v22793_v19, %v22791_v31  ;;  %12069 = vmatpush1.bf16.msra.mxu0 %v12068_v21  ;;  %v12072_v7 = vpack.c.bf16 %v22797_v52, %v22795_v10  ;;  %v22806_v31 = vld [vmem:[#allocation62_spill] sm:$0xff]  ;;  %v22810_v10 = vand.u32 4294901760, %v22560_v2 }
 0x412   : > { %11689 = vmatpush1.bf16.msra.mxu1 %v11688_v61  ;;  %v11692_v56 = vpack.c.bf16 %v22801_v60, %v22799_v24  ;;  %12071 = vmatprep.subr.bf16.mxu0 %v12070_v39  ;;  %v12074_v15 = vpack.c.bf16 %v22805_v26, %v22803_v48  ;;  %v22807_v21 = vand.u32 4294901760, %v22806_v31  ;;  %v22808_v61 = vld [vmem:[#allocation63_spill] sm:$0xff]  ;;  %v22813_v39 = vand.u32 4294901760, %v22812_v6  ;;  %v22816_v60 = vld [vmem:[#allocation74_spill] sm:$0xff]  ;;  %v22818_v48 = vld [vmem:[#allocation76_spill] sm:$0xff] }
 0x413   : > { %11691 = vmatprep.subr.bf16.mxu1 %v11690_v35  ;;  %v22809_v19 = vand.u32 4294901760, %v22808_v61  ;;  %v12076_v52 = vpack.c.bf16 %v22811_v23, %v22810_v10  ;;  %v22814_v35 = vld [vmem:[#allocation71_spill] sm:$0xff]  ;;  %v22817_v51 = vand.u32 4294901760, %v22816_v60  ;;  %v22819_v29 = vand.u32 4294901760, %v22818_v48 }
 0x414   : > { %v22815_v24 = vand.u32 4294901760, %v22814_v35  ;;  %v22820_v31 = vld [vmem:[#allocation79_spill] sm:$0xff]  ;;  %v22825_v61 = vand.u32 4294901760, %v22824_v12  ;;  %v22831_v35 = vld [vmem:[#allocation92_spill] sm:$0xff] }
 0x415   : > { %v11694_v4 = vpack.c.bf16 %v22809_v19, %v22807_v21  ;;  %12073 = vmatpush1.bf16.msra.mxu0 %v12072_v7  ;;  %v12078_v26 = vpack.c.bf16 %v22819_v29, %v22817_v51  ;;  %v22821_v7 = vand.u32 4294901760, %v22820_v31  ;;  %v22826_v19 = vld [vmem:[#allocation85_spill] sm:$0xff]  ;;  %v22833_v60 = vld [vmem:[#allocation95_spill] sm:$0xff] }
 0x416   : > { %11693 = vmatpush1.bf16.msra.mxu1 %v11692_v56  ;;  %v11696_v25 = vpack.c.bf16 %v22815_v24, %v22813_v39  ;;  %12075 = vmatprep.subr.bf16.mxu0 %v12074_v15  ;;  %v22822_v56 = vld [vmem:[#allocation80_spill] sm:$0xff]  ;;  %v22827_v10 = vand.u32 4294901760, %v22826_v19  ;;  %v22828_v15 = vand.u32 4294901760, %v22570_v58  ;;  %v22832_v24 = vand.u32 4294901760, %v22831_v35  ;;  %v22835_v29 = vld [vmem:[#allocation97_spill] sm:$0xff]  ;;  %v22843_v19 = vld [vmem:[#allocation107_spill] sm:$0xff] }
 0x417   : > { %11695 = vmatprep.subr.bf16.mxu1 %v11694_v4  ;;  %v22823_v21 = vand.u32 4294901760, %v22822_v56  ;;  %v22829_v4 = vld [vmem:[#allocation89_spill] sm:$0xff]  ;;  %v22834_v51 = vand.u32 4294901760, %v22833_v60  ;;  %v22841_v58 = vld [vmem:[#allocation104_spill] sm:$0xff] }
 0x418   : > { %v12080_v23 = vpack.c.bf16 %v22827_v10, %v22825_v61  ;;  %v22830_v6 = vand.u32 4294901760, %v22829_v4  ;;  %v22839_v56 = vld [vmem:[#allocation101_spill] sm:$0xff]  ;;  %v22842_v12 = vand.u32 4294901760, %v22841_v58  ;;  %v22847_v4 = vand.u32 4294901760, %v22585_v38 }
 0x419   : > { %v11698_v2 = vpack.c.bf16 %v22823_v21, %v22821_v7  ;;  %12077 = vmatpush1.bf16.msra.mxu0 %v12076_v52  ;;  %v12082_v48 = vpack.c.bf16 %v22834_v51, %v22832_v24  ;;  %v22836_v52 = vand.u32 4294901760, %v22835_v29  ;;  %v22840_v21 = vand.u32 4294901760, %v22839_v56 }
 0x41a   : > { %11697 = vmatpush1.bf16.msra.mxu1 %v11696_v25  ;;  %v11700_v39 = vpack.c.bf16 %v22830_v6, %v22828_v15  ;;  %12079 = vmatprep.subr.bf16.mxu0 %v12078_v26  ;;  %v22837_v25 = vld [vmem:[#allocation100_spill] sm:$0xff]  ;;  %v22844_v26 = vand.u32 4294901760, %v22843_v19  ;;  %v22848_v6 = vld [vmem:[#allocation210_spill] sm:$0xff]  ;;  %v22853_v29 = vand.u32 4294901760, %v22591_v11  ;;  %v22863_v19 = vand.u32 4294901760, %v22602_v45 }
 0x41b   : > { %11699 = vmatprep.subr.bf16.mxu1 %v11698_v2  ;;  %v22838_v31 = vand.u32 4294901760, %v22837_v25  ;;  %v12084_v61 = vpack.c.bf16 %v22842_v12, %v22840_v21  ;;  %v22845_v2 = vld [vmem:[#allocation109_spill] sm:$0xff]  ;;  %v22849_v35 = vand.u32 4294901760, %v22848_v6  ;;  %v22859_v21 = vand.u32 4294901760, %v22597_v5 }
 0x41c   : > { %v22846_v10 = vand.u32 4294901760, %v22845_v2  ;;  %v22861_v12 = vand.u32 4294901760, %v22600_v18 }
 0x41d   : > { %v11702_v7 = vpack.c.bf16 %v22838_v31, %v22836_v52  ;;  %12081 = vmatpush1.bf16.msra.mxu0 %v12080_v23  ;;  %v12086_v24 = vpack.c.bf16 %v22849_v35, %v22847_v4  ;;  %v22850_v23 = vand.u32 4294901760, %v22588_v27  ;;  %v22854_v52 = vld [vmem:[#allocation116_spill] sm:$0xff]  ;;  %v22860_v27 = vand.u32 4294901760, %v22596_v62  ;;  %v22868_v4 = vld [vmem:[#allocation151_spill] sm:$0xff] }
 0x41e   : > { %11701 = vmatpush1.bf16.msra.mxu1 %v11700_v39  ;;  %v11704_v15 = vpack.c.bf16 %v22846_v10, %v22844_v26  ;;  %12083 = vmatprep.subr.bf16.mxu0 %v12082_v48  ;;  %v22851_v39 = vld [vmem:[#allocation112_spill] sm:$0xff]  ;;  %v22855_v25 = vand.u32 4294901760, %v22854_v52  ;;  %v22856_v48 = vand.u32 4294901760, %v22594_v8  ;;  %v22864_v26 = vld [vmem:[#allocation146_spill] sm:$0xff]  ;;  %v22869_v6 = vand.u32 4294901760, %v22868_v4  ;;  %v22870_v35 = vld [vmem:[#allocation155_spill] sm:$0xff] }
 0x41f   : > { %11703 = vmatprep.subr.bf16.mxu1 %v11702_v7  ;;  %v22852_v60 = vand.u32 4294901760, %v22851_v39  ;;  %v22857_v7 = vld [vmem:[#allocation128_spill] sm:$0xff]  ;;  %v12090_v58 = vpack.c.bf16 %v22860_v27, %v22859_v21  ;;  %v22865_v2 = vand.u32 4294901760, %v22864_v26  ;;  %v22871_v62 = vand.u32 4294901760, %v22870_v35  ;;  %v22875_v39 = vld [vmem:[#allocation179_spill] sm:$0xff] }
 0x420   : > { %v12088_v31 = vpack.c.bf16 %v22855_v25, %v22853_v29  ;;  %v22858_v56 = vand.u32 4294901760, %v22857_v7  ;;  %v22866_v10 = vld [vmem:[#allocation148_spill] sm:$0xff]  ;;  %v22877_v52 = vand.u32 4294901760, %v22422_v53  ;;  %v22878_v25 = vld [vmem:[#allocation197_spill] sm:$0xff]  ;;  %v22880_v7 = vand.u32 4294901760, %v22424_v47 }
 0x421   : > { %v11706_v51 = vpack.c.bf16 %v22852_v60, %v22850_v23  ;;  %12085 = vmatpush1.bf16.msra.mxu0 %v12084_v61  ;;  %v22862_v61 = vand.u32 4294901760, %v22599_v20  ;;  %v12092_v8 = vpack.c.bf16 %v22865_v2, %v22863_v19  ;;  %v22874_v20 = vand.u32 4294901760, %v22420_v16  ;;  %v6144_v29 = vld [vmem:[#allocation5 + $0xa8] sm:$0xff]  ;;  %v6143_v19 = vld [vmem:[#allocation5 + $0xa0] sm:$0xff] }
 0x422   : > { %11705 = vmatpush1.bf16.msra.mxu1 %v11704_v15  ;;  %v11708_v38 = vpack.c.bf16 %v22858_v56, %v22856_v48  ;;  %12087 = vmatprep.subr.bf16.mxu0 %v12086_v24  ;;  %v22867_v15 = vand.u32 4294901760, %v22866_v10  ;;  %v22872_v24 = vld [vmem:[#allocation157_spill] sm:$0xff]  ;;  %v22876_v60 = vand.u32 4294901760, %v22875_v39  ;;  %v22881_v56 = vand.u32 4294901760, %v22425_v37  ;;  %v22883_v16 = vld [vmem:[#allocation232_spill] sm:$0xff] }
 0x423   : > { %11707 = vmatprep.subr.bf16.mxu1 %v11706_v51  ;;  %v11710_v11 = vpack.c.bf16 %v22862_v61, %v22861_v12  ;;  %v22873_v23 = vand.u32 4294901760, %v22872_v24  ;;  %v6138_v51 = vld [vmem:[#allocation5 + $0x48] sm:$0xff]  ;;  %v22882_v21 = vand.u32 4294901760, %v22612_v36  ;;  %v22884_v27 = vand.u32 4294901760, %v22883_v16  ;;  %v6137_v61 = vld [vmem:[#allocation5 + $0x40] sm:$0xff]  ;;  %v6140_v24 = vld [vmem:[#allocation5 + $0x58] sm:$0xff] }
 0x424   : > { %v11712_v5 = vpack.c.bf16 %v22869_v6, %v22867_v15  ;;  %v11714_v45 = vpack.c.bf16 %v22876_v60, %v22874_v20  ;;  %v22887_v26 = vand.u32 4294901760, %v22618_v46  ;;  %v22888_v2 = vand.u32 4294901760, %v22617_v50  ;;  %v22900_v20 = vld [vmem:[#allocation82_spill] sm:$0xff] }
 0x425   : > { %12089 = vmatpush1.bf16.msra.mxu0 %v12088_v31  ;;  %v12094_v18 = vpack.c.bf16 %v22873_v23, %v22871_v62  ;;  %v22879_v31 = vand.u32 4294901760, %v22878_v25  ;;  %v12098_v12 = vpack.c.bf16 %v22884_v27, %v22882_v21  ;;  %v22889_v37 = vand.u32 4294901760, %v22620_v59  ;;  %v6156_v25 = vld [vmem:[#allocation5 + $0x168] sm:$0xff] }
 0x426   : > { %11709 = vmatpush1.bf16.msra.mxu1 %v11708_v38  ;;  %12091 = vmatprep.subr.bf16.mxu0 %v12090_v58  ;;  %v11716_v38 = vpack.c.bf16 %v22881_v56, %v22880_v7  ;;  %v22885_v58 = vand.u32 4294901760, %v22615_v13  ;;  %v12100_v47 = vpack.c.bf16 %v22888_v2, %v22887_v26  ;;  %v22890_v10 = vand.u32 4294901760, %v22476_v30  ;;  %v22908_v21 = vld [vmem:[#allocation108_spill] sm:$0xff]  ;;  %v22913_v26 = vld [vmem:[#allocation126_spill] sm:$0xff] }
 0x427   : > { %11711 = vmatprep.subr.bf16.mxu1 %v11710_v11  ;;  %v12096_v48 = vpack.c.bf16 %v22879_v31, %v22877_v52  ;;  %v22886_v11 = vand.u32 4294901760, %v22614_v54  ;;  %v22891_v15 = vand.u32 4294901760, %v22479_v49  ;;  %v22892_v4 = vand.u32 4294901760, %v22480_v40  ;;  %v6146_v49 = vld [vmem:[#allocation5 + $0xb8] sm:$0xff]  ;;  %v6150_v52 = vld [vmem:[#allocation5 + $0x108] sm:$0xff]  ;;  %v22905_v31 = vld [vmem:[#allocation99_spill] sm:$0xff] }
 0x428   : > { %v11720_v36 = vpack.c.bf16 %v22890_v10, %v22889_v37  ;;  %v22893_v13 = vand.u32 4294901760, %v22623_v0  ;;  %v22894_v54 = vand.u32 4294901760, %v22437_v34  ;;  %v22895_v46 = vand.u32 4294901760, %v22438_v1  ;;  %v22915_v2 = vld [vmem:[#allocation130_spill] sm:$0xff] }
 0x429   : > { %v11718_v53 = vpack.c.bf16 %v22886_v11, %v22885_v58  ;;  %v17675_v6 = vpack.c.bf16 %v22892_v4, %v22891_v15  ;;  %v22896_v50 = vand.u32 4294901760, %v22489_v9  ;;  %v7673_v30 = vand.u32 4294901760, %v6138_v51  ;;  %12093 = vmatpush1.bf16.msra.mxu0 %v12092_v8  ;;  %v22911_v58 = vld [vmem:[#allocation120_spill] sm:$0xff] }
 0x42a   : > { %v17681_v35 = vpack.c.bf16 %v22894_v54, %v22893_v13  ;;  %v7677_v62 = vand.u32 4294901760, %v6144_v29  ;;  %11713 = vmatpush1.bf16.msra.mxu1 %v11712_v5  ;;  %v22897_v40 = vand.u32 4294901760, %v22490_v57  ;;  %v22898_v0 = vand.u32 4294901760, %v22491_v63  ;;  %12095 = vmatprep.subr.bf16.mxu0 %v12094_v18  ;;  %v6139_v18 = vld [vmem:[#allocation5 + $0x50] sm:$0xff] }
 0x42b   : > { %v17687_v59 = vpack.c.bf16 %v22896_v50, %v22895_v46  ;;  %v22899_v34 = vand.u32 4294901760, %v22492_v55  ;;  %v22901_v1 = vand.u32 4294901760, %v22900_v20  ;;  %v7675_v9 = vand.u32 4294901760, %v6137_v61  ;;  %11715 = vmatprep.subr.bf16.mxu1 %v11714_v45  ;;  %v6145_v45 = vld [vmem:[#allocation5 + $0xb0] sm:$0xff]  ;;  %v6149_v50 = vld [vmem:[#allocation5 + $0x100] sm:$0xff] }
 0x42c   : > { %v17693_v23 = vpack.c.bf16 %v22898_v0, %v22897_v40  ;;  %v7679_v60 = vand.u32 4294901760, %v6143_v19  ;;  %v22902_v8 = vand.u32 4294901760, %v22443_v44  ;;  %v22903_v57 = vand.u32 4294901760, %v22444_v17 }
 0x42d   : > { %v17699_v39 = vpack.c.bf16 %v22901_v1, %v22899_v34  ;;  %v22904_v63 = vand.u32 4294901760, %v22445_v43  ;;  %v22906_v55 = vand.u32 4294901760, %v22905_v31  ;;  %v22907_v56 = vand.u32 4294901760, %v22447_v33  ;;  %12097 = vmatpush1.bf16.msra.mxu0 %v12096_v48  ;;  %v6152_v1 = vld [vmem:[#allocation5 + $0x118] sm:$0xff]  ;;  %v6168_v31 = vld [vmem:[#allocation5 + $0x228] sm:$0xff] }
 0x42e   : > { %v17705_v5 = vpack.c.bf16 %v22903_v57, %v22902_v8  ;;  %v22909_v16 = vand.u32 4294901760, %v22908_v21  ;;  %v22910_v44 = vand.u32 4294901760, %v22450_v22  ;;  %v22912_v17 = vand.u32 4294901760, %v22911_v58  ;;  %v6155_v22 = vld [vmem:[#allocation5 + $0x160] sm:$0xff]  ;;  %11717 = vmatpush1.bf16.msra.mxu1 %v11716_v38  ;;  %v6158_v8 = vld [vmem:[#allocation5 + $0x178] sm:$0xff]  ;;  %12099 = vmatprep.subr.bf16.mxu0 %v12098_v12 }
 0x42f   : > { %v17711_v7 = vpack.c.bf16 %v22906_v55, %v22904_v63  ;;  %v22914_v43 = vand.u32 4294901760, %v22913_v26  ;;  %v22916_v37 = vand.u32 4294901760, %v22915_v2  ;;  %v9019_v15 = vand.u32 4294901760, %v6140_v24  ;;  %11719 = vmatprep.subr.bf16.mxu1 %v11718_v53  ;;  %v6162_v63 = vld [vmem:[#allocation5 + $0x1c8] sm:$0xff]  ;;  %v6164_v26 = vld [vmem:[#allocation5 + $0x1d8] sm:$0xff] }
 0x430   : > { %v17717_v27 = vpack.c.bf16 %v22909_v16, %v22907_v56  ;;  %v17723_v11 = vpack.c.bf16 %v22912_v17, %v22910_v44  ;;  %v9023_v33 = vand.u32 4294901760, %v6146_v49  ;;  %v17731_v4 = vpack.c.bf16 %v7677_v62, %v7673_v30  ;;  %v6167_v16 = vld [vmem:[#allocation5 + $0x220] sm:$0xff] }
 0x431   : > { %v17729_v10 = vpack.c.bf16 %v22916_v37, %v22914_v43  ;;  %v17733_v13 = vsub.f32 %v6138_v51, %v7673_v30  ;;  %v7681_v54 = vand.u32 4294901760, %v6150_v52  ;;  %v7685_v46 = vand.u32 4294901760, %v6156_v25  ;;  %12101 = vmatpush1.bf16.msra.mxu0 %v12100_v47  ;;  %v6170_v43 = vld [vmem:[#allocation5 + $0x238] sm:$0xff] }
 0x432   : > { %22917 = vst [vmem:[#allocation180_spill] sm:$0xff] %v17731_v4  ;;  %v17735_v40 = vsub.f32 %v6144_v29, %v7677_v62  ;;  %v17737_v0 = vpack.c.bf16 %v7679_v60, %v7675_v9  ;;  %v9021_v34 = vand.u32 4294901760, %v6139_v18  ;;  %v9025_v20 = vand.u32 4294901760, %v6145_v45  ;;  %11721 = vmatpush1.bf16.msra.mxu1 %v11720_v36  ;;  %12103 = vmatprep.subr.bf16.mxu0 %v17675_v6 }
 0x433   : > { %22918 = vst [vmem:[#allocation183_spill] sm:$0xff] %v17733_v13  ;;  %v17739_v57 = vsub.f32 %v6137_v61, %v7675_v9  ;;  %v17741_v51 = vsub.f32 %v6143_v19, %v7679_v60  ;;  %v17743_v30 = vsub.f32 %v6140_v24, %v9019_v15  ;;  %v17745_v48 = vpack.c.bf16 %v9023_v33, %v9019_v15  ;;  %v6151_v61 = vld [vmem:[#allocation5 + $0x110] sm:$0xff]  ;;  %v6180_v15 = vld [vmem:[#allocation5 + $0x2e8] sm:$0xff] }
 0x434   : > { %22919 = vst [vmem:[#allocation186_spill] sm:$0xff] %v17735_v40  ;;  %22920 = vst [vmem:[#allocation190_spill] sm:$0xff] %v17737_v0  ;;  %v17747_v29 = vsub.f32 %v6146_v49, %v9023_v33  ;;  %v7683_v38 = vand.u32 4294901760, %v6149_v50  ;;  %v7687_v62 = vand.u32 4294901760, %v6155_v22  ;;  %v17749_v55 = vpack.c.bf16 %v7685_v46, %v7681_v54  ;;  %v6157_v9 = vld [vmem:[#allocation5 + $0x170] sm:$0xff]  ;;  %v6161_v49 = vld [vmem:[#allocation5 + $0x1c0] sm:$0xff]  ;;  %11723 = vmatprep.subr.bf16.mxu1 %v17681_v35 }
 0x435   : > { %22921 = vst [vmem:[#allocation192_spill] sm:$0xff] %v17739_v57  ;;  %22922 = vst [vmem:[#allocation196_spill] sm:$0xff] %v17741_v51  ;;  %v17751_v56 = vsub.f32 %v6150_v52, %v7681_v54  ;;  %v9027_v12 = vand.u32 4294901760, %v6152_v1  ;;  %v9031_v53 = vand.u32 4294901760, %v6158_v8  ;;  %v17753_v19 = vsub.f32 %v6156_v25, %v7685_v46  ;;  %12105 = vmatpush1.bf16.msra.mxu0 %v17687_v59  ;;  %v6163_v46 = vld [vmem:[#allocation5 + $0x1d0] sm:$0xff] }
 0x436   : > { %22923 = vst [vmem:[#allocation199_spill] sm:$0xff] %v17743_v30  ;;  %22924 = vst [vmem:[#allocation255_spill] sm:$0xff] %v17745_v48  ;;  %v17755_v24 = vpack.c.bf16 %v9025_v20, %v9021_v34  ;;  %v7689_v60 = vand.u32 4294901760, %v6162_v63  ;;  %v7693_v21 = vand.u32 4294901760, %v6168_v31  ;;  %v17759_v52 = vsub.f32 %v6139_v18, %v9021_v34  ;;  %v6174_v18 = vld [vmem:[#allocation5 + $0x288] sm:$0xff]  ;;  %11725 = vmatpush1.bf16.msra.mxu1 %v17693_v23  ;;  %v6179_v23 = vld [vmem:[#allocation5 + $0x2e0] sm:$0xff] }
 0x437   : > { %22925 = vst [vmem:[#allocation253_spill] sm:$0xff] %v17747_v29  ;;  %22926 = vst [vmem:[#allocation258_spill] sm:$0xff] %v17749_v55  ;;  %v17761_v44 = vsub.f32 %v6145_v45, %v9025_v20  ;;  %v17763_v58 = vsub.f32 %v6149_v50, %v7683_v38  ;;  %v17765_v47 = vpack.c.bf16 %v7687_v62, %v7683_v38  ;;  %v9029_v25 = vand.u32 4294901760, %v6151_v61  ;;  %v6169_v50 = vld [vmem:[#allocation5 + $0x230] sm:$0xff] }
 0x438   : > { %22927 = vst [vmem:[#allocation257_spill] sm:$0xff] %v17751_v56  ;;  %22928 = vst [vmem:[#allocation161_spill] sm:$0xff] %v17753_v19  ;;  %v17767_v36 = vsub.f32 %v6155_v22, %v7687_v62  ;;  %v9033_v17 = vand.u32 4294901760, %v6157_v9  ;;  %v17769_v2 = vpack.c.bf16 %v9031_v53, %v9027_v12  ;;  %v17771_v37 = vsub.f32 %v6152_v1, %v9027_v12  ;;  %v6173_v1 = vld [vmem:[#allocation5 + $0x280] sm:$0xff] }
 0x439   : > { %22929 = vst [vmem:[#allocation195_spill] sm:$0xff] %v17755_v24  ;;  %22930 = vst [vmem:[#allocation198_spill] sm:$0xff] %v17759_v52  ;;  %v7691_v6 = vand.u32 4294901760, %v6161_v49  ;;  %v7695_v35 = vand.u32 4294901760, %v6167_v16  ;;  %v17775_v45 = vsub.f32 %v6158_v8, %v9031_v53  ;;  %v17777_v33 = vpack.c.bf16 %v7693_v21, %v7689_v60  ;;  %12107 = vmatprep.subr.bf16.mxu0 %v17699_v39 }
 0x43a   : > { %22931 = vst [vmem:[#allocation202_spill] sm:$0xff] %v17761_v44  ;;  %22932 = vst [vmem:[#allocation40_spill] sm:$0xff] %v17763_v58  ;;  %v17779_v54 = vsub.f32 %v6162_v63, %v7689_v60  ;;  %11727 = vmatprep.subr.bf16.mxu1 %v17705_v5  ;;  %v17783_v22 = vsub.f32 %v6168_v31, %v7693_v21  ;;  %v17785_v34 = vsub.f32 %v6151_v61, %v9029_v25  ;;  %v6176_v31 = vld [vmem:[#allocation5 + $0x298] sm:$0xff] }
 0x43b   : > { %22933 = vst [vmem:[#allocation52_spill] sm:$0xff] %v17765_v47  ;;  %22934 = vst [vmem:[#allocation84_spill] sm:$0xff] %v17767_v36  ;;  %v9035_v20 = vand.u32 4294901760, %v6164_v26  ;;  %v9039_v59 = vand.u32 4294901760, %v6170_v43  ;;  %v17787_v8 = vpack.c.bf16 %v9033_v17, %v9029_v25  ;;  %v17789_v38 = vsub.f32 %v6157_v9, %v9033_v17  ;;  %v6182_v60 = vld [vmem:[#allocation5 + $0x2f8] sm:$0xff]  ;;  %12109 = vmatpush1.bf16.msra.mxu0 %v17711_v7  ;;  %v6186_v17 = vld [vmem:[#allocation5 + $0x348] sm:$0xff] }
 0x43c   : > { %22935 = vst [vmem:[#allocation90_spill] sm:$0xff] %v17769_v2  ;;  %22936 = vst [vmem:[#allocation96_spill] sm:$0xff] %v17771_v37  ;;  %v7697_v63 = vand.u32 4294901760, %v6174_v18  ;;  %v7701_v62 = vand.u32 4294901760, %v6180_v15  ;;  %v17791_v12 = vpack.c.bf16 %v7695_v35, %v7691_v6  ;;  %v17793_v53 = vsub.f32 %v6161_v49, %v7691_v6  ;;  %11729 = vmatpush1.bf16.msra.mxu1 %v17717_v27  ;;  %v22948_v49 = vld [vmem:[#allocation182_spill] sm:$0xff]  ;;  %v6175_v7 = vld [vmem:[#allocation5 + $0x290] sm:$0xff] }
 0x43d   : > { %22937 = vst [vmem:[#allocation106_spill] sm:$0xff] %v17775_v45  ;;  %22938 = vst [vmem:[#allocation135_spill] sm:$0xff] %v17777_v33  ;;  %v9037_v39 = vand.u32 4294901760, %v6163_v46  ;;  %v9041_v5 = vand.u32 4294901760, %v6169_v50  ;;  %v17797_v61 = vsub.f32 %v6167_v16, %v7695_v35  ;;  %v17799_v21 = vsub.f32 %v6164_v26, %v9035_v20  ;;  %12111 = vmatprep.subr.bf16.mxu0 %v17723_v11  ;;  %v6223_v33 = vld [vmem:[#allocation5 + $0x590] sm:$0xff] }
 0x43e   : > { %22939 = vst [vmem:[#allocation114_spill] sm:$0xff] %v17779_v54  ;;  %22940 = vst [vmem:[#allocation138_spill] sm:$0xff] %v17783_v22  ;;  %v7699_v9 = vand.u32 4294901760, %v6173_v1  ;;  %v7703_v25 = vand.u32 4294901760, %v6179_v23  ;;  %11731 = vmatprep.subr.bf16.mxu1 %v22948_v49  ;;  %v17803_v6 = vpack.c.bf16 %v9039_v59, %v9035_v20  ;;  %v17805_v42 = vsub.f32 %v6170_v43, %v9039_v59  ;;  %v6188_v49 = vld [vmem:[#allocation5 + $0x358] sm:$0xff] }
 0x43f   : > { %22941 = vst [vmem:[#allocation142_spill] sm:$0xff] %v17785_v34  ;;  %22942 = vst [vmem:[#allocation144_spill] sm:$0xff] %v17787_v8  ;;  %v17809_v27 = vpack.c.bf16 %v7701_v62, %v7697_v63  ;;  %v17811_v16 = vsub.f32 %v6180_v15, %v7701_v62  ;;  %v9043_v26 = vand.u32 4294901760, %v6176_v31  ;;  %v9047_v35 = vand.u32 4294901760, %v6182_v60  ;;  %12113 = vmatpush1.bf16.msra.mxu0 %v17729_v10  ;;  %v6204_v10 = vld [vmem:[#allocation5 + $0x468] sm:$0xff]  ;;  %v6187_v34 = vld [vmem:[#allocation5 + $0x350] sm:$0xff] }
 0x440   : > { %22943 = vst [vmem:[#allocation147_spill] sm:$0xff] %v17789_v38  ;;  %22944 = vst [vmem:[#allocation150_spill] sm:$0xff] %v17791_v12  ;;  %v6191_v38 = vld [vmem:[#allocation5 + $0x3a0] sm:$0xff]  ;;  %v22954_v12 = vld [vmem:[#allocation237_spill] sm:$0xff]  ;;  %v17814_v11 = vpack.c.bf16 %v9041_v5, %v9037_v39  ;;  %v17816_v20 = vsub.f32 %v6163_v46, %v9037_v39  ;;  %v7705_v43 = vand.u32 4294901760, %v6186_v17  ;;  %v7709_v59 = vand.u32 4294901760, %v6192_v41 }
 0x441   : > { %22945 = vst [vmem:[#allocation154_spill] sm:$0xff] %v17793_v53  ;;  %22946 = vst [vmem:[#allocation156_spill] sm:$0xff] %v17797_v61  ;;  %v17807_v53 = vsub.f32 %v6174_v18, %v7697_v63  ;;  %v6185_v61 = vld [vmem:[#allocation5 + $0x340] sm:$0xff]  ;;  %5966 = vmatmul.mubr.f32.vlgmr.msra.gmra.mrb[12].mxu1 %v22954_v12  ;;  %v22957_v18 = vld [vmem:[#allocation249_spill] sm:$0xff]  ;;  %v17820_v63 = vsub.f32 %v6169_v50, %v9041_v5  ;;  %v17822_v15 = vpack.c.bf16 %v7703_v25, %v7699_v9 }
 0x442   : > { %22947 = vst [vmem:[#allocation34_spill] sm:$0xff] %v17799_v21  ;;  %22949 = vst [vmem:[#allocation162_spill] sm:$0xff] %v17803_v6  ;;  %v6181_v21 = vld [vmem:[#allocation5 + $0x2f0] sm:$0xff]  ;;  %5972 = vmatprep.mubr.f32.mxu1 %v22957_v18  ;;  %v17824_v62 = vsub.f32 %v6173_v1, %v7699_v9  ;;  %v9045_v46 = vand.u32 4294901760, %v6175_v7  ;;  %v22963_v6 = vld [vmem:[#allocation220_spill] sm:$0xff]  ;;  %v17829_v50 = vsub.f32 %v6179_v23, %v7703_v25 }
 0x443   : > { %22950 = vst [vmem:[#allocation166_spill] sm:$0xff] %v17805_v42  ;;  %22951 = vst [vmem:[#allocation36_spill] sm:$0xff] %v17807_v53  ;;  %v22961_v53 = vld [vmem:[#allocation184_spill] sm:$0xff]  ;;  %v22962_v42 = vld [vmem:[#allocation189_spill] sm:$0xff]  ;;  %v9049_v39 = vand.u32 4294901760, %v6181_v21  ;;  %v17831_v5 = vpack.c.bf16 %v9047_v35, %v9043_v26  ;;  %v17833_v1 = vsub.f32 %v6176_v31, %v9043_v26  ;;  %v17835_v9 = vsub.f32 %v6182_v60, %v9047_v35 }
 0x444   : > { %22952 = vst [vmem:[#allocation37_spill] sm:$0xff] %v17809_v27  ;;  %22953 = vst [vmem:[#allocation168_spill] sm:$0xff] %v17811_v16  ;;  %v6194_v16 = vld [vmem:[#allocation5 + $0x3b8] sm:$0xff]  ;;  %11733 = vmatpush1.bf16.msra.mxu1 %v22961_v53  ;;  %12115 = vmatprep.subr.bf16.mxu0 %v22962_v42  ;;  %v6198_v27 = vld [vmem:[#allocation5 + $0x408] sm:$0xff]  ;;  %v17839_v42 = vpack.c.bf16 %v7709_v59, %v7705_v43  ;;  %v17845_v31 = vsub.f32 %v6192_v41, %v7709_v59  ;;  %v7717_v35 = vand.u32 4294901760, %v6204_v10 }
 0x445   : > { %22955 = vst [vmem:[#allocation171_spill] sm:$0xff] %v17814_v11  ;;  %22956 = vst [vmem:[#allocation174_spill] sm:$0xff] %v17816_v20  ;;  %v7707_v20 = vand.u32 4294901760, %v6185_v61  ;;  %v7711_v11 = vand.u32 4294901760, %v6191_v38  ;;  %11735 = vmatprep.subr.bf16.mxu1 %v22963_v6  ;;  %v22969_v53 = vld [vmem:[#allocation248_spill] sm:$0xff]  ;;  %v9055_v8 = vand.u32 4294901760, %v6194_v16  ;;  %v17847_v60 = vsub.f32 %v6175_v7, %v9045_v46 }
 0x446   : > { %22958 = vst [vmem:[#allocation53_spill] sm:$0xff] %v17820_v63  ;;  %22959 = vst [vmem:[#allocation70_spill] sm:$0xff] %v17822_v15  ;;  %5974 = vmatmul.mubr.f32.gmra.mrb[14].mxu1 %v22969_v53  ;;  %v17841_v63 = vsub.f32 %v6186_v17, %v7705_v43  ;;  %v9051_v15 = vand.u32 4294901760, %v6188_v49  ;;  %v6193_v6 = vld [vmem:[#allocation5 + $0x3b0] sm:$0xff]  ;;  %v22972_v23 = vld [vmem:[#allocation207_spill] sm:$0xff]  ;;  %v7713_v26 = vand.u32 4294901760, %v6198_v27  ;;  %v17851_v17 = vpack.c.bf16 %v9049_v39, %v9045_v46 }
 0x447   : > { %22960 = vst [vmem:[#allocation72_spill] sm:$0xff] %v17824_v62  ;;  %22964 = vst [vmem:[#allocation78_spill] sm:$0xff] %v17829_v50  ;;  %v22968_v62 = vld [vmem:[#allocation204_spill] sm:$0xff]  ;;  %v22973_v25 = vld [vmem:[#allocation223_spill] sm:$0xff]  ;;  %6109 = vmatprep.mubr.f32.mxu1 %v22735_v3  ;;  %v17853_v43 = vsub.f32 %v6181_v21, %v9049_v39  ;;  %v17859_v7 = vsub.f32 %v6185_v61, %v7707_v20  ;;  %v17861_v59 = vsub.f32 %v6191_v38, %v7711_v11 }
 0x448   : > { %22965 = vst [vmem:[#allocation185_spill] sm:$0xff] %v17831_v5  ;;  %22966 = vst [vmem:[#allocation187_spill] sm:$0xff] %v17833_v1  ;;  %7514 = vmatmul.mubr.f32.vlgmr.msra.gmra.mrb[12].mxu0 %v22968_v62  ;;  %v6203_v1 = vld [vmem:[#allocation5 + $0x460] sm:$0xff]  ;;  %v22976_v50 = vld [vmem:[#allocation226_spill] sm:$0xff]  ;;  %v17864_v3 = vpack.c.bf16 %v9055_v8, %v9051_v15  ;;  %v17866_v21 = vsub.f32 %v6188_v49, %v9051_v15  ;;  %v17870_v38 = vsub.f32 %v6194_v16, %v9055_v8 }
 0x449   : > { %22967 = vst [vmem:[#allocation188_spill] sm:$0xff] %v17835_v9  ;;  %22970 = vst [vmem:[#allocation217_spill] sm:$0xff] %v17839_v42  ;;  %7520 = vmatprep.mubr.f32.mxu0 %v22972_v23  ;;  %12117 = vmatpush1.bf16.msra.mxu0 %v22973_v25  ;;  %v6197_v9 = vld [vmem:[#allocation5 + $0x400] sm:$0xff]  ;;  %v22980_v42 = vld [vmem:[#allocation229_spill] sm:$0xff]  ;;  %v9053_v25 = vand.u32 4294901760, %v6187_v34  ;;  %v7719_v39 = vand.u32 4294901760, %v6203_v1  ;;  %v17872_v61 = vpack.c.bf16 %v7717_v35, %v7713_v26 }
 0x44a   : > { %22971 = vst [vmem:[#allocation218_spill] sm:$0xff] %v17841_v63  ;;  %22974 = vst [vmem:[#allocation219_spill] sm:$0xff] %v17845_v31  ;;  %11737 = vmatpush1.bf16.msra.mxu1 %v22976_v50  ;;  %v17855_v63 = vpack.c.bf16 %v7711_v11, %v7707_v20  ;;  %12119 = vmatprep.subr.bf16.mxu0 %v22980_v42  ;;  %v22981_v41 = vld [vmem:[#allocation234_spill] sm:$0xff]  ;;  %v7715_v46 = vand.u32 4294901760, %v6197_v9  ;;  %v6216_v42 = vld [vmem:[#allocation5 + $0x528] sm:$0xff]  ;;  %v17874_v11 = vsub.f32 %v6198_v27, %v7713_v26 }
 0x44b   : > { %22975 = vst [vmem:[#allocation221_spill] sm:$0xff] %v17847_v60  ;;  %22977 = vst [vmem:[#allocation222_spill] sm:$0xff] %v17851_v17  ;;  %11739 = vmatprep.subr.bf16.mxu1 %v22981_v41  ;;  %v9057_v60 = vand.u32 4294901760, %v6193_v6  ;;  %v6200_v31 = vld [vmem:[#allocation5 + $0x418] sm:$0xff]  ;;  %v6199_v20 = vld [vmem:[#allocation5 + $0x410] sm:$0xff]  ;;  %v17878_v49 = vsub.f32 %v6204_v10, %v7717_v35 }
 0x44c   : > { %22978 = vst [vmem:[#allocation224_spill] sm:$0xff] %v17853_v43  ;;  %22979 = vst [vmem:[#allocation225_spill] sm:$0xff] %v17855_v63  ;;  %v6206_v50 = vld [vmem:[#allocation5 + $0x478] sm:$0xff]  ;;  %v6210_v43 = vld [vmem:[#allocation5 + $0x4c8] sm:$0xff]  ;;  %v9061_v10 = vand.u32 4294901760, %v6199_v20 }
 0x44d   : > { %22982 = vst [vmem:[#allocation227_spill] sm:$0xff] %v17859_v7  ;;  %22983 = vst [vmem:[#allocation228_spill] sm:$0xff] %v17861_v59  ;;  %v22984_v5 = vld [vmem:[#allocation206_spill] sm:$0xff]  ;;  %v22987_v63 = vld [vmem:[#allocation16_spill] sm:$0xff]  ;;  %v9059_v7 = vand.u32 4294901760, %v6200_v31  ;;  %v17883_v16 = vpack.c.bf16 %v9057_v60, %v9053_v25  ;;  %v17885_v27 = vsub.f32 %v6193_v6, %v9057_v60  ;;  %v7721_v26 = vand.u32 4294901760, %v6210_v43 }
 0x44e   : > { %7522 = vmatmul.mubr.f32.gmra.mrb[14].mxu0 %v22984_v5  ;;  %22985 = vst [vmem:[#allocation230_spill] sm:$0xff] %v17864_v3  ;;  %22986 = vst [vmem:[#allocation231_spill] sm:$0xff] %v17866_v21  ;;  %v6205_v41 = vld [vmem:[#allocation5 + $0x470] sm:$0xff]  ;;  %v22991_v59 = vld [vmem:[#allocation18_spill] sm:$0xff]  ;;  %v17880_v21 = vsub.f32 %v6187_v34, %v9053_v25 }
 0x44f   : > { %12121 = vmatpush1.bf16.msra.mxu0 %v22987_v63  ;;  %7657 = vmatprep.mubr.f32.mxu0 %v22745_v14  ;;  %22988 = vst [vmem:[#allocation238_spill] sm:$0xff] %v17870_v38  ;;  %22989 = vst [vmem:[#allocation244_spill] sm:$0xff] %v17872_v61  ;;  %v22992_v15 = vld [vmem:[#allocation27_spill] sm:$0xff]  ;;  %v9063_v63 = vand.u32 4294901760, %v6206_v50  ;;  %v22995_v8 = vld [vmem:[#allocation30_spill] sm:$0xff]  ;;  %v17887_v38 = vpack.c.bf16 %v7719_v39, %v7715_v46  ;;  %v9065_v35 = vand.u32 4294901760, %v6205_v41 }
 0x450   : > { %22990 = vst [vmem:[#allocation65_spill] sm:$0xff] %v17874_v11  ;;  %11741 = vmatpush1.bf16.msra.mxu1 %v22991_v59  ;;  %12123 = vmatprep.subr.bf16.mxu0 %v22992_v15  ;;  %22993 = vst [vmem:[#allocation67_spill] sm:$0xff] %v17878_v49  ;;  %v6209_v3 = vld [vmem:[#allocation5 + $0x4c0] sm:$0xff]  ;;  %v7725_v11 = vand.u32 4294901760, %v6216_v42  ;;  %v17889_v59 = vsub.f32 %v6197_v9, %v7715_v46  ;;  %v6212_v34 = vld [vmem:[#allocation5 + $0x4d8] sm:$0xff]  ;;  %v17892_v49 = vsub.f32 %v6203_v1, %v7719_v39 }
 0x451   : > { %22994 = vst [vmem:[#allocation86_spill] sm:$0xff] %v17880_v21  ;;  %v6215_v14 = vld [vmem:[#allocation5 + $0x520] sm:$0xff]  ;;  %11743 = vmatprep.subr.bf16.mxu1 %v22995_v8  ;;  %22996 = vst [vmem:[#allocation209_spill] sm:$0xff] %v17883_v16  ;;  %v6218_v15 = vld [vmem:[#allocation5 + $0x538] sm:$0xff]  ;;  %v17894_v61 = vsub.f32 %v6200_v31, %v9059_v7  ;;  %v7723_v25 = vand.u32 4294901760, %v6209_v3  ;;  %v17898_v9 = vpack.c.bf16 %v9063_v63, %v9059_v7 }
 0x452   : > { %22997 = vst [vmem:[#allocation212_spill] sm:$0xff] %v17885_v27  ;;  %22998 = vst [vmem:[#allocation113_spill] sm:$0xff] %v17887_v38  ;;  %v23000_v21 = vld [vmem:[#allocation42_spill] sm:$0xff]  ;;  %v7727_v8 = vand.u32 4294901760, %v6215_v14  ;;  %v6222_v6 = vld [vmem:[#allocation5 + $0x588] sm:$0xff]  ;;  %v17900_v46 = vsub.f32 %v6206_v50, %v9063_v63  ;;  %v17905_v31 = vpack.c.bf16 %v7725_v11, %v7721_v26  ;;  %v17907_v39 = vsub.f32 %v6216_v42, %v7725_v11 }
 0x453   : > { %22999 = vst [vmem:[#allocation125_spill] sm:$0xff] %v17889_v59  ;;  %12125 = vmatpush1.bf16.msra.mxu0 %v23000_v21  ;;  %23001 = vst [vmem:[#allocation136_spill] sm:$0xff] %v17892_v49  ;;  %v6228_v60 = vld [vmem:[#allocation5 + $0x5e8] sm:$0xff]  ;;  %v23003_v27 = vld [vmem:[#allocation45_spill] sm:$0xff]  ;;  %v17902_v59 = vsub.f32 %v6210_v43, %v7721_v26  ;;  %v9071_v49 = vand.u32 4294901760, %v6218_v15  ;;  %v17909_v17 = vpack.c.bf16 %v9065_v35, %v9061_v10  ;;  %v7729_v7 = vand.u32 4294901760, %v6222_v6 }
 0x454   : > { %23002 = vst [vmem:[#allocation131_spill] sm:$0xff] %v17894_v61  ;;  %11745 = vmatpush1.bf16.msra.mxu1 %v23003_v27  ;;  %v23004_v16 = vld [vmem:[#allocation93_spill] sm:$0xff]  ;;  %23005 = vst [vmem:[#allocation140_spill] sm:$0xff] %v17898_v9  ;;  %v9067_v61 = vand.u32 4294901760, %v6212_v34  ;;  %v17911_v27 = vsub.f32 %v6199_v20, %v9061_v10  ;;  %v6221_v50 = vld [vmem:[#allocation5 + $0x580] sm:$0xff]  ;;  %v17920_v20 = vsub.f32 %v6209_v3, %v7723_v25 }
 0x455   : > { %12127 = vmatprep.subr.bf16.mxu0 %v23004_v16  ;;  %23006 = vst [vmem:[#allocation139_spill] sm:$0xff] %v17900_v46  ;;  %23007 = vst [vmem:[#allocation145_spill] sm:$0xff] %v17902_v59  ;;  %v6211_v38 = vld [vmem:[#allocation5 + $0x4d0] sm:$0xff]  ;;  %v7733_v16 = vand.u32 4294901760, %v6228_v60  ;;  %v6227_v63 = vld [vmem:[#allocation5 + $0x5e0] sm:$0xff]  ;;  %v17914_v59 = vsub.f32 %v6205_v41, %v9065_v35  ;;  %v17916_v46 = vpack.c.bf16 %v7727_v8, %v7723_v25 }
 0x456   : > { %v6217_v21 = vld [vmem:[#allocation5 + $0x530] sm:$0xff]  ;;  %23009 = vst [vmem:[#allocation22_spill] sm:$0xff] %v17905_v31  ;;  %23010 = vst [vmem:[#allocation21_spill] sm:$0xff] %v17907_v39  ;;  %v23013_v43 = vld [vmem:[#allocation134_spill] sm:$0xff]  ;;  %v9069_v26 = vand.u32 4294901760, %v6211_v38  ;;  %v17922_v10 = vsub.f32 %v6215_v14, %v7727_v8  ;;  %v17927_v35 = vpack.c.bf16 %v9071_v49, %v9067_v61  ;;  %v7735_v9 = vand.u32 4294901760, %v6227_v63 }
 0x457   : > { %v23008_v1 = vld [vmem:[#allocation121_spill] sm:$0xff]  ;;  %23011 = vst [vmem:[#allocation243_spill] sm:$0xff] %v17909_v17  ;;  %23012 = vst [vmem:[#allocation25_spill] sm:$0xff] %v17911_v27  ;;  %12129 = vmatpush1.bf16.msra.mxu0 %v23013_v43  ;;  %v6224_v42 = vld [vmem:[#allocation5 + $0x598] sm:$0xff]  ;;  %v17924_v27 = vsub.f32 %v6212_v34, %v9067_v61  ;;  %v17931_v5 = vpack.c.bf16 %v7733_v16, %v7729_v7  ;;  %v17933_v3 = vsub.f32 %v6222_v6, %v7729_v7 }
 0x458   : > { %11747 = vmatprep.subr.bf16.mxu1 %v23008_v1  ;;  %23014 = vst [vmem:[#allocation240_spill] sm:$0xff] %v17914_v59  ;;  %23015 = vst [vmem:[#allocation33_spill] sm:$0xff] %v17916_v46  ;;  %v9073_v1 = vand.u32 4294901760, %v6217_v21  ;;  %v6230_v11 = vld [vmem:[#allocation5 + $0x5f8] sm:$0xff]  ;;  %v23016_v39 = vld [vmem:[#allocation153_spill] sm:$0xff]  ;;  %v17929_v59 = vsub.f32 %v6218_v15, %v9071_v49  ;;  %v7731_v46 = vand.u32 4294901760, %v6221_v50 }
 0x459   : > { %11749 = vmatpush1.bf16.msra.mxu1 %v23016_v39  ;;  %v23017_v31 = vld [vmem:[#allocation163_spill] sm:$0xff]  ;;  %23018 = vst [vmem:[#allocation39_spill] sm:$0xff] %v17920_v20  ;;  %23019 = vst [vmem:[#allocation242_spill] sm:$0xff] %v17922_v10  ;;  %v6234_v17 = vld [vmem:[#allocation5 + $0x648] sm:$0xff]  ;;  %v9075_v14 = vand.u32 4294901760, %v6224_v42  ;;  %v9079_v25 = vand.u32 4294901760, %v6230_v11 }
 0x45a   : > { %12131 = vmatprep.subr.bf16.mxu0 %v23017_v31  ;;  %23020 = vst [vmem:[#allocation252_spill] sm:$0xff] %v17924_v27  ;;  %v6240_v43 = vld [vmem:[#allocation5 + $0x6a8] sm:$0xff]  ;;  %v23021_v41 = vld [vmem:[#allocation170_spill] sm:$0xff]  ;;  %23022 = vst [vmem:[#allocation251_spill] sm:$0xff] %v17927_v35  ;;  %v17936_v31 = vsub.f32 %v6228_v60, %v7733_v16  ;;  %v7737_v61 = vand.u32 4294901760, %v6234_v17  ;;  %v17942_v27 = vsub.f32 %v6211_v38, %v9069_v26  ;;  %v9077_v7 = vand.u32 4294901760, %v6223_v33 }
 0x45b   : > { %11751 = vmatprep.subr.bf16.mxu1 %v23021_v41  ;;  %23023 = vst [vmem:[#allocation250_spill] sm:$0xff] %v17929_v59  ;;  %v6229_v39 = vld [vmem:[#allocation5 + $0x5f0] sm:$0xff]  ;;  %23024 = vst [vmem:[#allocation194_spill] sm:$0xff] %v17931_v5  ;;  %v6233_v34 = vld [vmem:[#allocation5 + $0x640] sm:$0xff]  ;;  %v17938_v41 = vpack.c.bf16 %v9073_v1, %v9069_v26  ;;  %v7741_v49 = vand.u32 4294901760, %v6240_v43  ;;  %v17944_v6 = vsub.f32 %v6217_v21, %v9073_v1 }
 0x45c   : > { %23025 = vst [vmem:[#allocation246_spill] sm:$0xff] %v17933_v3  ;;  %v23026_v8 = vld [vmem:[#allocation176_spill] sm:$0xff]  ;;  %23027 = vst [vmem:[#allocation123_spill] sm:$0xff] %v17936_v31  ;;  %v6239_v15 = vld [vmem:[#allocation5 + $0x6a0] sm:$0xff]  ;;  %v9081_v3 = vand.u32 4294901760, %v6229_v39  ;;  %v17947_v60 = vpack.c.bf16 %v7735_v9, %v7731_v46  ;;  %v17949_v16 = vsub.f32 %v6221_v50, %v7731_v46  ;;  %v17951_v31 = vsub.f32 %v6227_v63, %v7735_v9 }
 0x45d   : > { %12133 = vmatpush1.bf16.msra.mxu0 %v23026_v8  ;;  %23028 = vst [vmem:[#allocation256_spill] sm:$0xff] %v17938_v41  ;;  %v23029_v59 = vld [vmem:[#allocation235_spill] sm:$0xff]  ;;  %23030 = vst [vmem:[#allocation241_spill] sm:$0xff] %v17942_v27  ;;  %v6236_v10 = vld [vmem:[#allocation5 + $0x658] sm:$0xff]  ;;  %v7739_v41 = vand.u32 4294901760, %v6233_v34  ;;  %v17955_v38 = vsub.f32 %v6224_v42, %v9075_v14  ;;  %v17957_v21 = vsub.f32 %v6230_v11, %v9079_v25  ;;  %v7743_v26 = vand.u32 4294901760, %v6239_v15 }
 0x45e   : > { %11753 = vmatpush1.bf16.msra.mxu1 %v23029_v59  ;;  %12135 = vmatprep.subr.bf16.mxu0 %v22663_v28  ;;  %23031 = vst [vmem:[#allocation254_spill] sm:$0xff] %v17944_v6  ;;  %v6242_v20 = vld [vmem:[#allocation5 + $0x6b8] sm:$0xff]  ;;  %v23032_v8 = vld [vmem:[#allocation48_spill] sm:$0xff]  ;;  %23033 = vst [vmem:[#allocation15_spill] sm:$0xff] %v17947_v60  ;;  %v17953_v28 = vpack.c.bf16 %v9079_v25, %v9075_v14  ;;  %v17962_v46 = vsub.f32 %v6234_v17, %v7737_v61  ;;  %v9083_v9 = vand.u32 4294901760, %v6236_v10 }
 0x45f   : > { %11755 = vmatprep.subr.bf16.mxu1 %v23032_v8  ;;  %23034 = vst [vmem:[#allocation17_spill] sm:$0xff] %v17949_v16  ;;  %23035 = vst [vmem:[#allocation19_spill] sm:$0xff] %v17951_v31  ;;  %v6246_v59 = vld [vmem:[#allocation5 + $0x708] sm:$0xff]  ;;  %v6235_v1 = vld [vmem:[#allocation5 + $0x650] sm:$0xff]  ;;  %v17960_v8 = vpack.c.bf16 %v7741_v49, %v7737_v61  ;;  %v9087_v50 = vand.u32 4294901760, %v6242_v20  ;;  %v17966_v16 = vsub.f32 %v6240_v43, %v7741_v49 }
 0x460   : > { %v6252_v5 = vld [vmem:[#allocation5 + $0x768] sm:$0xff]  ;;  %23036 = vst [vmem:[#allocation20_spill] sm:$0xff] %v17953_v28  ;;  %23037 = vst [vmem:[#allocation239_spill] sm:$0xff] %v17955_v38  ;;  %v6241_v6 = vld [vmem:[#allocation5 + $0x6b0] sm:$0xff]  ;;  %v17968_v42 = vpack.c.bf16 %v9081_v3, %v9077_v7  ;;  %v7745_v11 = vand.u32 4294901760, %v6246_v59  ;;  %v17973_v17 = vsub.f32 %v6229_v39, %v9081_v3  ;;  %v9085_v61 = vand.u32 4294901760, %v6235_v1 }
 0x461   : > { %23038 = vst [vmem:[#allocation28_spill] sm:$0xff] %v17957_v21  ;;  %v23039_v27 = vld [vmem:[#allocation51_spill] sm:$0xff]  ;;  %23040 = vst [vmem:[#allocation29_spill] sm:$0xff] %v17960_v8  ;;  %v23043_v31 = vld [vmem:[#allocation58_spill] sm:$0xff]  ;;  %v7749_v14 = vand.u32 4294901760, %v6252_v5  ;;  %v17975_v28 = vpack.c.bf16 %v7743_v26, %v7739_v41  ;;  %v17977_v43 = vsub.f32 %v6233_v34, %v7739_v41  ;;  %v17981_v49 = vsub.f32 %v6236_v10, %v9083_v9 }
 0x462   : > { %12137 = vmatpush1.bf16.msra.mxu0 %v23039_v27  ;;  %23041 = vst [vmem:[#allocation31_spill] sm:$0xff] %v17962_v46  ;;  %v23042_v63 = vld [vmem:[#allocation55_spill] sm:$0xff]  ;;  %23044 = vst [vmem:[#allocation32_spill] sm:$0xff] %v17966_v16  ;;  %v23046_v38 = vld [vmem:[#allocation61_spill] sm:$0xff]  ;;  %v17971_v27 = vsub.f32 %v6223_v33, %v9077_v7  ;;  %v9089_v46 = vand.u32 4294901760, %v6241_v6  ;;  %v17984_v33 = vpack.c.bf16 %v9087_v50, %v9083_v9 }
 0x463   : > { %11757 = vmatpush1.bf16.msra.mxu1 %v23042_v63  ;;  %12139 = vmatprep.subr.bf16.mxu0 %v23043_v31  ;;  %23045 = vst [vmem:[#allocation43_spill] sm:$0xff] %v17968_v42  ;;  %v6245_v25 = vld [vmem:[#allocation5 + $0x700] sm:$0xff]  ;;  %23048 = vst [vmem:[#allocation46_spill] sm:$0xff] %v17973_v17  ;;  %v6248_v8 = vld [vmem:[#allocation5 + $0x718] sm:$0xff]  ;;  %v17979_v31 = vsub.f32 %v6239_v15, %v7743_v26  ;;  %v17986_v39 = vsub.f32 %v6242_v20, %v9087_v50 }
 0x464   : > { %v6251_v21 = vld [vmem:[#allocation5 + $0x760] sm:$0xff]  ;;  %11759 = vmatprep.subr.bf16.mxu1 %v23046_v38  ;;  %23047 = vst [vmem:[#allocation44_spill] sm:$0xff] %v17971_v27  ;;  %v6254_v63 = vld [vmem:[#allocation5 + $0x778] sm:$0xff]  ;;  %23049 = vst [vmem:[#allocation236_spill] sm:$0xff] %v17975_v28  ;;  %v7747_v3 = vand.u32 4294901760, %v6245_v25  ;;  %v17990_v41 = vpack.c.bf16 %v7749_v14, %v7745_v11  ;;  %v17992_v10 = vsub.f32 %v6246_v59, %v7745_v11  ;;  %v9091_v15 = vand.u32 4294901760, %v6248_v8 }
 0x465   : > { %23050 = vst [vmem:[#allocation117_spill] sm:$0xff] %v17977_v43  ;;  %23051 = vst [vmem:[#allocation119_spill] sm:$0xff] %v17979_v31  ;;  %v6258_v16 = vld [vmem:[#allocation5 + $0x7c8] sm:$0xff]  ;;  %v7751_v7 = vand.u32 4294901760, %v6251_v21  ;;  %v6247_v38 = vld [vmem:[#allocation5 + $0x710] sm:$0xff]  ;;  %v9095_v26 = vand.u32 4294901760, %v6254_v63  ;;  %v17995_v20 = vsub.f32 %v6252_v5, %v7749_v14  ;;  %v17997_v50 = vpack.c.bf16 %v9089_v46, %v9085_v61 }
 0x466   : > { %23052 = vst [vmem:[#allocation122_spill] sm:$0xff] %v17981_v49  ;;  %v6264_v42 = vld [vmem:[#allocation5 + $0x828] sm:$0xff]  ;;  %23054 = vst [vmem:[#allocation127_spill] sm:$0xff] %v17984_v33  ;;  %v6253_v17 = vld [vmem:[#allocation5 + $0x770] sm:$0xff]  ;;  %v17999_v43 = vsub.f32 %v6235_v1, %v9085_v61  ;;  %v18006_v28 = vsub.f32 %v6245_v25, %v7747_v3 }
 0x467   : > { %v23053_v60 = vld [vmem:[#allocation64_spill] sm:$0xff]  ;;  %23055 = vst [vmem:[#allocation133_spill] sm:$0xff] %v17986_v39  ;;  %v23057_v34 = vld [vmem:[#allocation73_spill] sm:$0xff]  ;;  %23058 = vst [vmem:[#allocation141_spill] sm:$0xff] %v17990_v41  ;;  %v7753_v39 = vand.u32 4294901760, %v6258_v16  ;;  %v7757_v31 = vand.u32 4294901760, %v6264_v42  ;;  %v18004_v33 = vpack.c.bf16 %v7751_v7, %v7747_v3  ;;  %v18010_v1 = vsub.f32 %v6251_v21, %v7751_v7 }
 0x468   : > { %12141 = vmatpush1.bf16.msra.mxu0 %v23053_v60  ;;  %v23056_v27 = vld [vmem:[#allocation68_spill] sm:$0xff]  ;;  %23059 = vst [vmem:[#allocation160_spill] sm:$0xff] %v17992_v10  ;;  %v6257_v49 = vld [vmem:[#allocation5 + $0x7c0] sm:$0xff]  ;;  %v23060_v9 = vld [vmem:[#allocation77_spill] sm:$0xff]  ;;  %v9097_v41 = vand.u32 4294901760, %v6253_v17 }
 0x469   : > { %11761 = vmatpush1.bf16.msra.mxu1 %v23056_v27  ;;  %12143 = vmatprep.subr.bf16.mxu0 %v23057_v34  ;;  %v6263_v60 = vld [vmem:[#allocation5 + $0x820] sm:$0xff]  ;;  %23061 = vst [vmem:[#allocation164_spill] sm:$0xff] %v17995_v20  ;;  %23062 = vst [vmem:[#allocation167_spill] sm:$0xff] %v17997_v50  ;;  %v18001_v27 = vsub.f32 %v6241_v6, %v9089_v46  ;;  %v9093_v34 = vand.u32 4294901760, %v6247_v38  ;;  %v6260_v59 = vld [vmem:[#allocation5 + $0x7d8] sm:$0xff]  ;;  %v7755_v5 = vand.u32 4294901760, %v6257_v49 }
 0x46a   : > { %11763 = vmatprep.subr.bf16.mxu1 %v23060_v9  ;;  %23063 = vst [vmem:[#allocation165_spill] sm:$0xff] %v17999_v43  ;;  %v6266_v11 = vld [vmem:[#allocation5 + $0x838] sm:$0xff]  ;;  %v23065_v10 = vld [vmem:[#allocation81_spill] sm:$0xff]  ;;  %23066 = vst [vmem:[#allocation172_spill] sm:$0xff] %v18004_v33  ;;  %v7759_v14 = vand.u32 4294901760, %v6263_v60  ;;  %v18012_v6 = vpack.c.bf16 %v9095_v26, %v9091_v15  ;;  %v18014_v46 = vsub.f32 %v6248_v8, %v9091_v15  ;;  %v9099_v3 = vand.u32 4294901760, %v6260_v59 }
 0x46b   : > { %23064 = vst [vmem:[#allocation169_spill] sm:$0xff] %v18001_v27  ;;  %23067 = vst [vmem:[#allocation175_spill] sm:$0xff] %v18006_v28  ;;  %v23068_v9 = vld [vmem:[#allocation88_spill] sm:$0xff]  ;;  %v23069_v20 = vld [vmem:[#allocation91_spill] sm:$0xff]  ;;  %v18019_v25 = vpack.c.bf16 %v7757_v31, %v7753_v39  ;;  %v9103_v28 = vand.u32 4294901760, %v6266_v11  ;;  %v18021_v50 = vsub.f32 %v6258_v16, %v7753_v39  ;;  %v18023_v21 = vsub.f32 %v6264_v42, %v7757_v31 }
 0x46c   : > { %12145 = vmatpush1.bf16.msra.mxu0 %v23065_v10  ;;  %23070 = vst [vmem:[#allocation193_spill] sm:$0xff] %v18010_v1  ;;  %23071 = vst [vmem:[#allocation247_spill] sm:$0xff] %v18012_v6  ;;  %v6270_v61 = vld [vmem:[#allocation5 + $0x888] sm:$0xff]  ;;  %v23073_v43 = vld [vmem:[#allocation98_spill] sm:$0xff]  ;;  %v18017_v10 = vsub.f32 %v6254_v63, %v9095_v26  ;;  %v18025_v7 = vpack.c.bf16 %v9097_v41, %v9093_v34  ;;  %v18027_v8 = vsub.f32 %v6247_v38, %v9093_v34 }
 0x46d   : > { %11765 = vmatpush1.bf16.msra.mxu1 %v23068_v9  ;;  %12147 = vmatprep.subr.bf16.mxu0 %v23069_v20  ;;  %23072 = vst [vmem:[#allocation245_spill] sm:$0xff] %v18014_v46  ;;  %v6276_v27 = vld [vmem:[#allocation5 + $0x8e8] sm:$0xff]  ;;  %23075 = vst [vmem:[#allocation47_spill] sm:$0xff] %v18019_v25  ;;  %v6259_v33 = vld [vmem:[#allocation5 + $0x7d0] sm:$0xff]  ;;  %v18030_v63 = vsub.f32 %v6253_v17, %v9097_v41  ;;  %v7761_v26 = vand.u32 4294901760, %v6270_v61  ;;  %v18036_v31 = vsub.f32 %v6257_v49, %v7755_v5 }
 0x46e   : > { %11767 = vmatprep.subr.bf16.mxu1 %v23073_v43  ;;  %23074 = vst [vmem:[#allocation201_spill] sm:$0xff] %v18017_v10  ;;  %v6265_v9 = vld [vmem:[#allocation5 + $0x830] sm:$0xff]  ;;  %23076 = vst [vmem:[#allocation49_spill] sm:$0xff] %v18021_v50  ;;  %v6269_v15 = vld [vmem:[#allocation5 + $0x880] sm:$0xff]  ;;  %v18032_v43 = vpack.c.bf16 %v7759_v14, %v7755_v5  ;;  %v7765_v10 = vand.u32 4294901760, %v6276_v27  ;;  %v18038_v39 = vsub.f32 %v6263_v60, %v7759_v14  ;;  %v9101_v38 = vand.u32 4294901760, %v6259_v33 }
 0x46f   : > { %23077 = vst [vmem:[#allocation233_spill] sm:$0xff] %v18023_v21  ;;  %23078 = vst [vmem:[#allocation50_spill] sm:$0xff] %v18025_v7  ;;  %v6275_v20 = vld [vmem:[#allocation5 + $0x8e0] sm:$0xff]  ;;  %v6272_v1 = vld [vmem:[#allocation5 + $0x898] sm:$0xff]  ;;  %v9105_v34 = vand.u32 4294901760, %v6265_v9  ;;  %v18041_v41 = vpack.c.bf16 %v9103_v28, %v9099_v3  ;;  %v7763_v21 = vand.u32 4294901760, %v6269_v15 }
 0x470   : > { %23079 = vst [vmem:[#allocation54_spill] sm:$0xff] %v18027_v8  ;;  %v23080_v46 = vld [vmem:[#allocation103_spill] sm:$0xff]  ;;  %23081 = vst [vmem:[#allocation56_spill] sm:$0xff] %v18030_v63  ;;  %v6278_v25 = vld [vmem:[#allocation5 + $0x8f8] sm:$0xff]  ;;  %v18043_v63 = vsub.f32 %v6260_v59, %v9099_v3  ;;  %v7767_v50 = vand.u32 4294901760, %v6275_v20  ;;  %v9107_v49 = vand.u32 4294901760, %v6272_v1 }
 0x471   : > { %12149 = vmatpush1.bf16.msra.mxu0 %v23080_v46  ;;  %23082 = vst [vmem:[#allocation57_spill] sm:$0xff] %v18032_v43  ;;  %v23083_v16 = vld [vmem:[#allocation105_spill] sm:$0xff]  ;;  %v23084_v42 = vld [vmem:[#allocation110_spill] sm:$0xff]  ;;  %23085 = vst [vmem:[#allocation59_spill] sm:$0xff] %v18036_v31  ;;  %v18045_v43 = vsub.f32 %v6266_v11, %v9103_v28  ;;  %v9111_v5 = vand.u32 4294901760, %v6278_v25  ;;  %v18052_v31 = vsub.f32 %v6276_v27, %v7765_v10 }
 0x472   : > { %11769 = vmatpush1.bf16.msra.mxu1 %v23083_v16  ;;  %12151 = vmatprep.subr.bf16.mxu0 %v23084_v42  ;;  %23086 = vst [vmem:[#allocation60_spill] sm:$0xff] %v18038_v39  ;;  %v6282_v8 = vld [vmem:[#allocation5 + $0x948] sm:$0xff]  ;;  %v23087_v17 = vld [vmem:[#allocation211_spill] sm:$0xff]  ;;  %23088 = vst [vmem:[#allocation62_spill] sm:$0xff] %v18041_v41  ;;  %v18047_v16 = vsub.f32 %v6270_v61, %v7761_v26  ;;  %v18050_v39 = vpack.c.bf16 %v7765_v10, %v7761_v26 }
 0x473   : > { %v6288_v46 = vld [vmem:[#allocation5 + $0x9a8] sm:$0xff]  ;;  %11771 = vmatprep.subr.bf16.mxu1 %v23087_v17  ;;  %23089 = vst [vmem:[#allocation63_spill] sm:$0xff] %v18043_v63  ;;  %23090 = vst [vmem:[#allocation69_spill] sm:$0xff] %v18045_v43  ;;  %v6271_v60 = vld [vmem:[#allocation5 + $0x890] sm:$0xff]  ;;  %v7769_v17 = vand.u32 4294901760, %v6282_v8  ;;  %v18056_v11 = vpack.c.bf16 %v9105_v34, %v9101_v38  ;;  %v18058_v61 = vsub.f32 %v6259_v33, %v9101_v38 }
 0x474   : > { %23091 = vst [vmem:[#allocation71_spill] sm:$0xff] %v18047_v16  ;;  %v6277_v14 = vld [vmem:[#allocation5 + $0x8f0] sm:$0xff]  ;;  %v23092_v42 = vld [vmem:[#allocation115_spill] sm:$0xff]  ;;  %23093 = vst [vmem:[#allocation74_spill] sm:$0xff] %v18050_v39  ;;  %v7773_v41 = vand.u32 4294901760, %v6288_v46  ;;  %v18060_v16 = vsub.f32 %v6265_v9, %v9105_v34  ;;  %v18063_v26 = vpack.c.bf16 %v7767_v50, %v7763_v21  ;;  %v18065_v27 = vsub.f32 %v6269_v15, %v7763_v21 }
 0x475   : > { %12153 = vmatpush1.bf16.msra.mxu0 %v23092_v42  ;;  %23094 = vst [vmem:[#allocation76_spill] sm:$0xff] %v18052_v31  ;;  %v6281_v59 = vld [vmem:[#allocation5 + $0x940] sm:$0xff]  ;;  %v23095_v63 = vld [vmem:[#allocation124_spill] sm:$0xff]  ;;  %v23096_v28 = vld [vmem:[#allocation129_spill] sm:$0xff]  ;;  %v9109_v10 = vand.u32 4294901760, %v6271_v60  ;;  %v9113_v42 = vand.u32 4294901760, %v6277_v14  ;;  %v18067_v7 = vsub.f32 %v6275_v20, %v7767_v50  ;;  %v18072_v34 = vsub.f32 %v6272_v1, %v9107_v49 }
 0x476   : > { %v6287_v3 = vld [vmem:[#allocation5 + $0x9a0] sm:$0xff]  ;;  %11773 = vmatpush1.bf16.msra.mxu1 %v23095_v63  ;;  %12155 = vmatprep.subr.bf16.mxu0 %v23096_v28  ;;  %23097 = vst [vmem:[#allocation79_spill] sm:$0xff] %v18056_v11  ;;  %23098 = vst [vmem:[#allocation80_spill] sm:$0xff] %v18058_v61  ;;  %v23100_v43 = vld [vmem:[#allocation137_spill] sm:$0xff]  ;;  %v18069_v63 = vpack.c.bf16 %v9111_v5, %v9107_v49  ;;  %v7771_v28 = vand.u32 4294901760, %v6281_v59  ;;  %v18076_v21 = vpack.c.bf16 %v7773_v41, %v7769_v17 }
 0x477   : > { %23099 = vst [vmem:[#allocation83_spill] sm:$0xff] %v18060_v16  ;;  %11775 = vmatprep.subr.bf16.mxu1 %v23100_v43  ;;  %23101 = vst [vmem:[#allocation85_spill] sm:$0xff] %v18063_v26  ;;  %v6284_v31 = vld [vmem:[#allocation5 + $0x958] sm:$0xff]  ;;  %v7775_v11 = vand.u32 4294901760, %v6287_v3  ;;  %v6294_v33 = vld [vmem:[#allocation5 + $0xa08] sm:$0xff]  ;;  %v18074_v43 = vsub.f32 %v6278_v25, %v9111_v5  ;;  %v18078_v15 = vsub.f32 %v6282_v8, %v7769_v17 }
 0x478   : > { %23102 = vst [vmem:[#allocation89_spill] sm:$0xff] %v18065_v27  ;;  %v6290_v39 = vld [vmem:[#allocation5 + $0x9b8] sm:$0xff]  ;;  %23103 = vst [vmem:[#allocation92_spill] sm:$0xff] %v18067_v7  ;;  %v6300_v38 = vld [vmem:[#allocation5 + $0xa68] sm:$0xff]  ;;  %v18082_v7 = vsub.f32 %v6288_v46, %v7773_v41  ;;  %v18084_v61 = vsub.f32 %v6271_v60, %v9109_v10  ;;  %v18087_v5 = vpack.c.bf16 %v9113_v42, %v9109_v10  ;;  %v7777_v17 = vand.u32 4294901760, %v6294_v33 }
 0x479   : > { %23104 = vst [vmem:[#allocation95_spill] sm:$0xff] %v18069_v63  ;;  %v23105_v9 = vld [vmem:[#allocation143_spill] sm:$0xff]  ;;  %23106 = vst [vmem:[#allocation97_spill] sm:$0xff] %v18072_v34  ;;  %v6283_v27 = vld [vmem:[#allocation5 + $0x950] sm:$0xff]  ;;  %v9115_v63 = vand.u32 4294901760, %v6284_v31  ;;  %v18089_v8 = vsub.f32 %v6277_v14, %v9113_v42  ;;  %v18091_v34 = vpack.c.bf16 %v7775_v11, %v7771_v28  ;;  %v18093_v46 = vsub.f32 %v6281_v59, %v7771_v28 }
 0x47a   : > { %12157 = vmatpush1.bf16.msra.mxu0 %v23105_v9  ;;  %23107 = vst [vmem:[#allocation100_spill] sm:$0xff] %v18074_v43  ;;  %23108 = vst [vmem:[#allocation101_spill] sm:$0xff] %v18076_v21  ;;  %v6289_v16 = vld [vmem:[#allocation5 + $0x9b0] sm:$0xff]  ;;  %v23111_v20 = vld [vmem:[#allocation152_spill] sm:$0xff]  ;;  %v9119_v9 = vand.u32 4294901760, %v6290_v39  ;;  %v9117_v41 = vand.u32 4294901760, %v6283_v27  ;;  %v18096_v21 = vsub.f32 %v6287_v3, %v7775_v11 }
 0x47b   : > { %23109 = vst [vmem:[#allocation104_spill] sm:$0xff] %v18078_v15  ;;  %v23110_v50 = vld [vmem:[#allocation149_spill] sm:$0xff]  ;;  %12159 = vmatprep.subr.bf16.mxu0 %v23111_v20  ;;  %23112 = vst [vmem:[#allocation107_spill] sm:$0xff] %v18082_v7  ;;  %v6293_v1 = vld [vmem:[#allocation5 + $0xa00] sm:$0xff]  ;;  %v7781_v15 = vand.u32 4294901760, %v6300_v38  ;;  %v9121_v60 = vand.u32 4294901760, %v6289_v16  ;;  %v18098_v10 = vsub.f32 %v6284_v31, %v9115_v63 }
 0x47c   : > { %11777 = vmatpush1.bf16.msra.mxu1 %v23110_v50  ;;  %23113 = vst [vmem:[#allocation109_spill] sm:$0xff] %v18084_v61  ;;  %v6299_v49 = vld [vmem:[#allocation5 + $0xa60] sm:$0xff]  ;;  %v23114_v25 = vld [vmem:[#allocation158_spill] sm:$0xff]  ;;  %23115 = vst [vmem:[#allocation210_spill] sm:$0xff] %v18087_v5  ;;  %v7779_v14 = vand.u32 4294901760, %v6293_v1  ;;  %v18102_v5 = vpack.c.bf16 %v9119_v9, %v9115_v63  ;;  %v18104_v59 = vsub.f32 %v6290_v39, %v9119_v9 }
 0x47d   : > { %11779 = vmatprep.subr.bf16.mxu1 %v23114_v25  ;;  %23116 = vst [vmem:[#allocation112_spill] sm:$0xff] %v18089_v8  ;;  %v6296_v43 = vld [vmem:[#allocation5 + $0xa18] sm:$0xff]  ;;  %23117 = vst [vmem:[#allocation116_spill] sm:$0xff] %v18091_v34  ;;  %v6306_v20 = vld [vmem:[#allocation5 + $0xac8] sm:$0xff]  ;;  %v7783_v42 = vand.u32 4294901760, %v6299_v49  ;;  %v18107_v26 = vpack.c.bf16 %v7781_v15, %v7777_v17  ;;  %v18115_v63 = vsub.f32 %v6283_v27, %v9117_v41 }
 0x47e   : > { %v6302_v50 = vld [vmem:[#allocation5 + $0xa78] sm:$0xff]  ;;  %23118 = vst [vmem:[#allocation128_spill] sm:$0xff] %v18093_v46  ;;  %v6312_v61 = vld [vmem:[#allocation5 + $0xb28] sm:$0xff]  ;;  %v23119_v7 = vld [vmem:[#allocation191_spill] sm:$0xff]  ;;  %v9123_v28 = vand.u32 4294901760, %v6296_v43  ;;  %v7785_v31 = vand.u32 4294901760, %v6306_v20  ;;  %v18117_v39 = vsub.f32 %v6289_v16, %v9121_v60 }
 0x47f   : > { %12161 = vmatpush1.bf16.msra.mxu0 %v23119_v7  ;;  %23120 = vst [vmem:[#allocation146_spill] sm:$0xff] %v18096_v21  ;;  %23121 = vst [vmem:[#allocation148_spill] sm:$0xff] %v18098_v10  ;;  %v23122_v25 = vld [vmem:[#allocation200_spill] sm:$0xff]  ;;  %v23123_v8 = vld [vmem:[#allocation203_spill] sm:$0xff]  ;;  %v9127_v46 = vand.u32 4294901760, %v6302_v50  ;;  %v18109_v7 = vsub.f32 %v6294_v33, %v7777_v17  ;;  %v7789_v3 = vand.u32 4294901760, %v6312_v61  ;;  %v18111_v21 = vsub.f32 %v6300_v38, %v7781_v15 }
 0x480   : > { %11781 = vmatpush1.bf16.msra.mxu1 %v23122_v25  ;;  %12163 = vmatprep.subr.bf16.mxu0 %v23123_v8  ;;  %23124 = vst [vmem:[#allocation151_spill] sm:$0xff] %v18102_v5  ;;  %23125 = vst [vmem:[#allocation155_spill] sm:$0xff] %v18104_v59  ;;  %v23126_v34 = vld [vmem:[#allocation23_spill] sm:$0xff]  ;;  %v6295_v11 = vld [vmem:[#allocation5 + $0xa10] sm:$0xff]  ;;  %v18113_v25 = vpack.c.bf16 %v9121_v60, %v9117_v41  ;;  %v18122_v33 = vsub.f32 %v6293_v1, %v7779_v14 }
 0x481   : > { %11783 = vmatprep.subr.bf16.mxu1 %v23126_v34  ;;  %23127 = vst [vmem:[#allocation157_spill] sm:$0xff] %v18107_v26  ;;  %23128 = vst [vmem:[#allocation179_spill] sm:$0xff] %v18109_v7  ;;  %v6301_v10 = vld [vmem:[#allocation5 + $0xa70] sm:$0xff]  ;;  %v6305_v9 = vld [vmem:[#allocation5 + $0xac0] sm:$0xff]  ;;  %v18120_v34 = vpack.c.bf16 %v7783_v42, %v7779_v14  ;;  %v18124_v17 = vsub.f32 %v6299_v49, %v7783_v42  ;;  %v18126_v7 = vsub.f32 %v6296_v43, %v9123_v28 }
 0x482   : > { %23129 = vst [vmem:[#allocation197_spill] sm:$0xff] %v18111_v21  ;;  %23130 = vst [vmem:[#allocation232_spill] sm:$0xff] %v18113_v25  ;;  %v6311_v8 = vld [vmem:[#allocation5 + $0xb20] sm:$0xff]  ;;  %v23133_v59 = vld [vmem:[#allocation24_spill] sm:$0xff]  ;;  %v18130_v16 = vpack.c.bf16 %v9127_v46, %v9123_v28  ;;  %v18132_v41 = vsub.f32 %v6302_v50, %v9127_v46  ;;  %v9125_v60 = vand.u32 4294901760, %v6295_v11  ;;  %v18135_v43 = vpack.c.bf16 %v7789_v3, %v7785_v31 }
 0x483   : > { %23131 = vst [vmem:[#allocation82_spill] sm:$0xff] %v18115_v63  ;;  %23132 = vst [vmem:[#allocation99_spill] sm:$0xff] %v18117_v39  ;;  %12165 = vmatpush1.bf16.msra.mxu0 %v23133_v59  ;;  %v6308_v38 = vld [vmem:[#allocation5 + $0xad8] sm:$0xff]  ;;  %v6318_v21 = vld [vmem:[#allocation5 + $0xb88] sm:$0xff]  ;;  %v9129_v59 = vand.u32 4294901760, %v6301_v10  ;;  %v18137_v42 = vsub.f32 %v6306_v20, %v7785_v31 }
 0x484   : > { %23134 = vst [vmem:[#allocation108_spill] sm:$0xff] %v18120_v34  ;;  %23135 = vst [vmem:[#allocation120_spill] sm:$0xff] %v18122_v33  ;;  %v6314_v15 = vld [vmem:[#allocation5 + $0xb38] sm:$0xff]  ;;  %v23139_v27 = vld [vmem:[#allocation35_spill] sm:$0xff]  ;;  %v18141_v28 = vsub.f32 %v6295_v11, %v9125_v60  ;;  %v9131_v50 = vand.u32 4294901760, %v6308_v38  ;;  %v7793_v63 = vand.u32 4294901760, %v6318_v21 }
 0x485   : > { %23136 = vst [vmem:[#allocation126_spill] sm:$0xff] %v18124_v17  ;;  %23137 = vst [vmem:[#allocation130_spill] sm:$0xff] %v18126_v7  ;;  %v23138_v25 = vld [vmem:[#allocation26_spill] sm:$0xff]  ;;  %12167 = vmatprep.subr.bf16.mxu0 %v23139_v27  ;;  %v6324_v39 = vld [vmem:[#allocation5 + $0xbe8] sm:$0xff]  ;;  %v7787_v7 = vand.u32 4294901760, %v6305_v9  ;;  %v7791_v17 = vand.u32 4294901760, %v6311_v8  ;;  %v18139_v27 = vsub.f32 %v6312_v61, %v7789_v3  ;;  %v18148_v61 = vsub.f32 %v6301_v10, %v9129_v59 }
 0x486   : > { %11785 = vmatpush1.bf16.msra.mxu1 %v23138_v25  ;;  %23140 = vst [vmem:[#allocation182_spill] sm:$0xff] %v18130_v16  ;;  %23141 = vst [vmem:[#allocation237_spill] sm:$0xff] %v18132_v41  ;;  %v6307_v1 = vld [vmem:[#allocation5 + $0xad0] sm:$0xff]  ;;  %v23142_v49 = vld [vmem:[#allocation38_spill] sm:$0xff]  ;;  %v9135_v46 = vand.u32 4294901760, %v6314_v15  ;;  %v7797_v16 = vand.u32 4294901760, %v6324_v39  ;;  %v18157_v6 = vsub.f32 %v6308_v38, %v9131_v50 }
 0x487   : > { %v6313_v14 = vld [vmem:[#allocation5 + $0xb30] sm:$0xff]  ;;  %11787 = vmatprep.subr.bf16.mxu1 %v23142_v49  ;;  %23143 = vst [vmem:[#allocation249_spill] sm:$0xff] %v18135_v43  ;;  %23144 = vst [vmem:[#allocation184_spill] sm:$0xff] %v18137_v42  ;;  %v6317_v25 = vld [vmem:[#allocation5 + $0xb80] sm:$0xff]  ;;  %v9133_v34 = vand.u32 4294901760, %v6307_v1  ;;  %v18146_v42 = vpack.c.bf16 %v9129_v59, %v9125_v60  ;;  %v18155_v5 = vsub.f32 %v6311_v8, %v7791_v17 }
 0x488   : > { %v6323_v33 = vld [vmem:[#allocation5 + $0xbe0] sm:$0xff]  ;;  %23145 = vst [vmem:[#allocation189_spill] sm:$0xff] %v18139_v27  ;;  %23146 = vst [vmem:[#allocation220_spill] sm:$0xff] %v18141_v28  ;;  %v23147_v41 = vld [vmem:[#allocation41_spill] sm:$0xff]  ;;  %v9137_v49 = vand.u32 4294901760, %v6313_v14  ;;  %v7795_v3 = vand.u32 4294901760, %v6317_v25  ;;  %v18151_v27 = vpack.c.bf16 %v7791_v17, %v7787_v7  ;;  %v18159_v35 = vpack.c.bf16 %v9135_v46, %v9131_v50 }
 0x489   : > { %12169 = vmatpush1.bf16.msra.mxu0 %v23147_v41  ;;  %v6320_v26 = vld [vmem:[#allocation5 + $0xb98] sm:$0xff]  ;;  %v23149_v31 = vld [vmem:[#allocation75_spill] sm:$0xff]  ;;  %23150 = vst [vmem:[#allocation248_spill] sm:$0xff] %v18146_v42  ;;  %23151 = vst [vmem:[#allocation223_spill] sm:$0xff] %v18148_v61  ;;  %v7799_v11 = vand.u32 4294901760, %v6323_v33  ;;  %v18153_v41 = vsub.f32 %v6305_v9, %v7787_v7  ;;  %v18166_v61 = vpack.c.bf16 %v7797_v16, %v7793_v63 }
 0x48a   : > { %v6326_v43 = vld [vmem:[#allocation5 + $0xbf8] sm:$0xff]  ;;  %12171 = vmatprep.subr.bf16.mxu0 %v23149_v31  ;;  %v23152_v28 = vld [vmem:[#allocation87_spill] sm:$0xff]  ;;  %23153 = vst [vmem:[#allocation226_spill] sm:$0xff] %v18151_v27  ;;  %23154 = vst [vmem:[#allocation229_spill] sm:$0xff] %v18155_v5  ;;  %v9139_v60 = vand.u32 4294901760, %v6320_v26  ;;  %v18170_v7 = vsub.f32 %v6324_v39, %v7797_v16  ;;  %v18172_v9 = vpack.c.bf16 %v9137_v49, %v9133_v34  ;;  %v20810_v39 = vand.u32 4294901760, %v17735_v40 }
 0x48b   : > { %v23148_v20 = vld [vmem:[#allocation66_spill] sm:$0xff]  ;;  %23155 = vst [vmem:[#allocation234_spill] sm:$0xff] %v18157_v6  ;;  %23156 = vst [vmem:[#allocation16_spill] sm:$0xff] %v18159_v35  ;;  %v9143_v31 = vand.u32 4294901760, %v6326_v43  ;;  %v18163_v10 = vld [vmem:[#allocation5 + $0xb90] sm:$0xff]  ;;  %v18176_v38 = vsub.f32 %v6307_v1, %v9133_v34  ;;  %v18180_v50 = vpack.c.bf16 %v7799_v11, %v7795_v3  ;;  %v20811_v34 = vand.u32 4294901760, %v17739_v57 }
 0x48c   : > { %11789 = vmatpush1.bf16.msra.mxu1 %v23148_v20  ;;  %v18161_v20 = vsub.f32 %v6314_v15, %v9135_v46  ;;  %v23158_v59 = vld [vmem:[#allocation94_spill] sm:$0xff]  ;;  %23159 = vst [vmem:[#allocation27_spill] sm:$0xff] %v18166_v61  ;;  %23161 = vst [vmem:[#allocation42_spill] sm:$0xff] %v18170_v7  ;;  %v23164_v17 = vld [vmem:[#allocation111_spill] sm:$0xff]  ;;  %v18178_v15 = vsub.f32 %v6313_v14, %v9137_v49  ;;  %v20809_v46 = vand.u32 4294901760, %v17733_v13  ;;  %v20812_v1 = vand.u32 4294901760, %v17741_v51 }
 0x48d   : > { %11791 = vmatprep.subr.bf16.mxu1 %v23152_v28  ;;  %12173 = vmatpush1.bf16.msra.mxu0 %v23158_v59  ;;  %v18168_v28 = vsub.f32 %v6318_v21, %v7793_v63  ;;  %23162 = vst [vmem:[#allocation45_spill] sm:$0xff] %v18172_v9  ;;  %v23163_v8 = vld [vmem:[#allocation102_spill] sm:$0xff]  ;;  %23165 = vst [vmem:[#allocation93_spill] sm:$0xff] %v18176_v38  ;;  %v18184_v21 = vsub.f32 %v6317_v25, %v7795_v3  ;;  %v20813_v14 = vand.u32 4294901760, %v17743_v30 }
 0x48e   : > { %23157 = vst [vmem:[#allocation18_spill] sm:$0xff] %v18161_v20  ;;  %12175 = vmatprep.subr.bf16.mxu0 %v23164_v17  ;;  %23166 = vst [vmem:[#allocation121_spill] sm:$0xff] %v18178_v15  ;;  %v18186_v63 = vsub.f32 %v6323_v33, %v7799_v11  ;;  %v18190_v59 = vpack.c.bf16 %v9143_v31, %v9139_v60  ;;  %v18197_v25 = vsub.f32 %v6320_v26, %v9139_v60  ;;  %v23174_v17 = vld [vmem:[#allocation118_spill] sm:$0xff]  ;;  %v23344_v20 = vld [vmem:[#allocation164_spill] sm:$0xff] }
 0x48f   : > { %23160 = vst [vmem:[#allocation30_spill] sm:$0xff] %v18168_v28  ;;  %23167 = vst [vmem:[#allocation134_spill] sm:$0xff] %v18180_v50  ;;  %v20814_v33 = vand.u32 4294901760, %v17747_v29  ;;  %v20815_v49 = vand.u32 4294901760, %v17751_v56  ;;  %v20816_v3 = vand.u32 4294901760, %v17753_v19  ;;  %v7837_v11 = vsub.f32 %v17733_v13, %v20809_v46  ;;  %v23293_v7 = vld [vmem:[#allocation62_spill] sm:$0xff] }
 0x490   : > { %11793 = vmatpush1.bf16.msra.mxu1 %v23163_v8  ;;  %23168 = vst [vmem:[#allocation153_spill] sm:$0xff] %v18184_v21  ;;  %23169 = vst [vmem:[#allocation163_spill] sm:$0xff] %v18186_v63  ;;  %v18207_v8 = vld [vmem:[#allocation5 + $0xbf0] sm:$0xff]  ;;  %v18214_v60 = vsub.f32 %v6326_v43, %v9143_v31  ;;  %v7843_v16 = vsub.f32 %v17739_v57, %v20811_v34  ;;  %v7855_v26 = vsub.f32 %v17741_v51, %v20812_v1  ;;  %v23237_v57 = vld [vmem:[#allocation228_spill] sm:$0xff] }
 0x491   : > { %12179 = vmatprep.subr.bf16.mxu1 %v17731_v4  ;;  %23170 = vst [vmem:[#allocation170_spill] sm:$0xff] %v18190_v59  ;;  %12177 = vmatpush1.bf16.msra.mxu0 %v22713_v32  ;;  %23171 = vst [vmem:[#allocation176_spill] sm:$0xff] %v18197_v25  ;;  %v20819_v32 = vand.u32 4294901760, %v17759_v52  ;;  %v9183_v43 = vsub.f32 %v17743_v30, %v20813_v14  ;;  %v9195_v34 = vsub.f32 %v17747_v29, %v20814_v33  ;;  %v23235_v29 = vld [vmem:[#allocation224_spill] sm:$0xff]  ;;  %v23290_v21 = vld [vmem:[#allocation50_spill] sm:$0xff] }
 0x492   : > { %12563 = vmatprep.subr.bf16.mxu0 %v17745_v48  ;;  %23172 = vst [vmem:[#allocation235_spill] sm:$0xff] %v18214_v60  ;;  %v7861_v1 = vsub.f32 %v17751_v56, %v20815_v49  ;;  %v7873_v14 = vsub.f32 %v17753_v19, %v20816_v3  ;;  %v23173_v46 = vand.u32 4294901760, %v17763_v58  ;;  %v23175_v3 = vand.u32 4294901760, %v17767_v36  ;;  %v23178_v48 = vld [vmem:[#allocation135_spill] sm:$0xff]  ;;  %v23334_v28 = vld [vmem:[#allocation232_spill] sm:$0xff] }
 0x493   : > { %6111 = vmatmul.mubr.f32.vlgmr.msra.gmra.mrb[12].mxu1 %v22954_v12  ;;  %v20822_v12 = vand.u32 4294901760, %v17761_v44  ;;  %v9189_v31 = vsub.f32 %v17759_v52, %v20819_v32  ;;  %v23183_v52 = vld [vmem:[#allocation162_spill] sm:$0xff]  ;;  %v23217_v19 = vld [vmem:[#allocation219_spill] sm:$0xff] }
 0x494   : > { %6117 = vmatprep.mubr.f32.mxu1 %v22957_v18  ;;  %12181 = vmatpush1.bf16.msra.mxu1 %v17737_v0  ;;  %v7849_v18 = vsub.f32 %v17735_v40, %v20810_v39  ;;  %v9145_v39 = vand.u32 4294901760, %v18207_v8  ;;  %v7867_v49 = vsub.f32 %v17763_v58, %v23173_v46  ;;  %v7844_v0 = vand.u32 4294901760, %v7843_v16  ;;  %v23180_v58 = vld [vmem:[#allocation142_spill] sm:$0xff] }
 0x495   : > { %12183 = vmatprep.subr.bf16.mxu1 %v17749_v55  ;;  %7659 = vmatmul.mubr.f32.vlgmr.msra.gmra.mrb[12].mxu0 %v22968_v62  ;;  %v9201_v33 = vsub.f32 %v17761_v44, %v20822_v12  ;;  %v23177_v55 = vld [vmem:[#allocation206_spill] sm:$0xff]  ;;  %v23181_v44 = vld [vmem:[#allocation144_spill] sm:$0xff] }
 0x496   : > { %7665 = vmatprep.mubr.f32.mxu0 %v22972_v23  ;;  %12565 = vmatpush1.bf16.msra.mxu0 %v17755_v24  ;;  %v7850_v46 = vand.u32 4294901760, %v7849_v18  ;;  %v7862_v24 = vand.u32 4294901760, %v7861_v1  ;;  %v23182_v12 = vld [vmem:[#allocation150_spill] sm:$0xff]  ;;  %v7868_v16 = vand.u32 4294901760, %v7867_v49  ;;  %v23184_v23 = vld [vmem:[#allocation37_spill] sm:$0xff]  ;;  %v23188_v49 = vld [vmem:[#allocation147_spill] sm:$0xff] }
 0x497   : > { %6119 = vmatmul.mubr.f32.gmra.mrb[14].mxu1 %v22969_v53  ;;  %v7838_v53 = vand.u32 4294901760, %v7837_v11  ;;  %12567 = vmatprep.subr.bf16.mxu0 %v17769_v2  ;;  %v7879_v11 = vsub.f32 %v17767_v36, %v23175_v3  ;;  %v23179_v2 = vand.u32 4294901760, %v17775_v45  ;;  %v7856_v36 = vand.u32 4294901760, %v7855_v26 }
 0x498   : > { %12185 = vmatpush1.bf16.msra.mxu1 %v17765_v47  ;;  %7806 = vmatprep.mubr.f32.mxu1 %v23174_v17  ;;  %v23176_v47 = vand.u32 4294901760, %v17771_v37  ;;  %v9202_v18 = vand.u32 4294901760, %v9201_v33 }
 0x499   : > { %7667 = vmatmul.mubr.f32.gmra.mrb[14].mxu0 %v23177_v55  ;;  %12187 = vmatprep.subr.bf16.mxu1 %v23178_v48  ;;  %v9219_v4 = vsub.f32 %v17775_v45, %v23179_v2  ;;  %v7874_v55 = vand.u32 4294901760, %v7873_v14  ;;  %v9190_v48 = vand.u32 4294901760, %v9189_v31  ;;  %v7880_v2 = vand.u32 4294901760, %v7879_v11  ;;  %v23215_v45 = vld [vmem:[#allocation188_spill] sm:$0xff] }
 0x49a   : > { %v9207_v32 = vsub.f32 %v17771_v37, %v23176_v47  ;;  %9152 = vmatprep.mubr.f32.mxu0 %v23174_v17  ;;  %v9184_v47 = vand.u32 4294901760, %v9183_v43  ;;  %v9196_v37 = vand.u32 4294901760, %v9195_v34  ;;  %12569 = vmatpush1.bf16.msra.mxu0 %v23181_v44  ;;  %v23185_v17 = vand.u32 4294901760, %v17779_v54  ;;  %v23196_v44 = vld [vmem:[#allocation70_spill] sm:$0xff] }
 0x49b   : > { %12571 = vmatprep.subr.bf16.mxu0 %v23183_v52  ;;  %v23186_v34 = vand.u32 4294901760, %v17783_v22  ;;  %v9220_v43 = vand.u32 4294901760, %v9219_v4  ;;  %v23187_v14 = vand.u32 4294901760, %v23180_v58  ;;  %v23189_v52 = vld [vmem:[#allocation154_spill] sm:$0xff]  ;;  %v18289_v11 = vpack.c.bf16 %v7850_v46, %v7838_v53 }
 0x49c   : > { %12189 = vmatpush1.bf16.msra.mxu1 %v23182_v12  ;;  %v9208_v3 = vand.u32 4294901760, %v9207_v32  ;;  %v7885_v26 = vsub.f32 %v17779_v54, %v23185_v17  ;;  %v23190_v32 = vand.u32 4294901760, %v18163_v10  ;;  %v18301_v4 = vsub.f32 %v18207_v8, %v9145_v39  ;;  %v23214_v54 = vld [vmem:[#allocation187_spill] sm:$0xff] }
 0x49d   : > { %12191 = vmatprep.subr.bf16.mxu1 %v23184_v23  ;;  %v7897_v1 = vsub.f32 %v17783_v22, %v23186_v34  ;;  %v18285_v33 = vsub.f32 %v23180_v58, %v23187_v14  ;;  %v23195_v14 = vld [vmem:[#allocation171_spill] sm:$0xff]  ;;  %v18305_v31 = vpack.c.bf16 %v7856_v36, %v7844_v0  ;;  %v18307_v53 = vpack.c.bf16 %v9196_v37, %v9184_v47  ;;  %v23198_v58 = vld [vmem:[#allocation185_spill] sm:$0xff] }
 0x49e   : > { %v18293_v12 = vpack.c.bf16 %v9145_v39, %v23190_v32  ;;  %v23192_v17 = vmov %v23190_v32  ;;  %23194 = vst [vmem:[#allocation55_spill] sm:$0xff] %v18301_v4  ;;  %12573 = vmatpush1.bf16.msra.mxu0 %v23195_v14  ;;  %v18309_v46 = vpack.c.bf16 %v7874_v55, %v7862_v24  ;;  %v23197_v32 = vld [vmem:[#allocation156_spill] sm:$0xff]  ;;  %v23199_v22 = vld [vmem:[#allocation217_spill] sm:$0xff]  ;;  %v18316_v39 = vpack.c.bf16 %v7880_v2, %v7868_v16  ;;  %v23240_v4 = vld [vmem:[#allocation251_spill] sm:$0xff] }
 0x49f   : > { %v18298_v34 = vsub.f32 %v18163_v10, %v23192_v17  ;;  %v20854_v23 = vand.u32 4294901760, %v23197_v32  ;;  %12575 = vmatprep.subr.bf16.mxu0 %v23198_v58  ;;  %v18314_v10 = vpack.c.bf16 %v9202_v18, %v9190_v48  ;;  %v7886_v8 = vand.u32 4294901760, %v7885_v26  ;;  %v23202_v48 = vld [vmem:[#allocation34_spill] sm:$0xff]  ;;  %v23204_v2 = vld [vmem:[#allocation36_spill] sm:$0xff]  ;;  %v23207_v0 = vld [vmem:[#allocation225_spill] sm:$0xff] }
 0x4a0   : > { %23191 = vst [vmem:[#allocation48_spill] sm:$0xff] %v18293_v12  ;;  %12193 = vmatpush1.bf16.msra.mxu1 %v23196_v44  ;;  %v7898_v17 = vand.u32 4294901760, %v7897_v1  ;;  %v18318_v14 = vpack.c.bf16 %v9220_v43, %v9208_v3  ;;  %v23200_v36 = vand.u32 4294901760, %v23188_v49  ;;  %v23201_v24 = vand.u32 4294901760, %v23189_v52  ;;  %v23203_v18 = vld [vmem:[#allocation166_spill] sm:$0xff]  ;;  %v23205_v3 = vld [vmem:[#allocation168_spill] sm:$0xff] }
 0x4a1   : > { %23193 = vst [vmem:[#allocation51_spill] sm:$0xff] %v18298_v34  ;;  %12195 = vmatprep.subr.bf16.mxu1 %v23199_v22  ;;  %v23206_v43 = vld [vmem:[#allocation222_spill] sm:$0xff]  ;;  %v23212_v16 = vld [vmem:[#allocation244_spill] sm:$0xff]  ;;  %v23223_v44 = vld [vmem:[#allocation113_spill] sm:$0xff] }
 0x4a2   : > { %v18324_v55 = vsub.f32 %v23188_v49, %v23200_v36  ;;  %v18329_v37 = vsub.f32 %v23189_v52, %v23201_v24  ;;  %12577 = vmatpush1.bf16.msra.mxu0 %v23206_v43  ;;  %v7903_v36 = vsub.f32 %v23197_v32, %v20854_v23  ;;  %v23208_v22 = vld [vmem:[#allocation174_spill] sm:$0xff]  ;;  %v23209_v24 = vld [vmem:[#allocation53_spill] sm:$0xff]  ;;  %v23210_v52 = vld [vmem:[#allocation72_spill] sm:$0xff]  ;;  %v18345_v26 = vpack.c.bf16 %v7898_v17, %v7886_v8 }
 0x4a3   : > { %v23211_v49 = vld [vmem:[#allocation230_spill] sm:$0xff]  ;;  %v23219_v8 = vand.u32 4294901760, %v23203_v18  ;;  %v23222_v43 = vld [vmem:[#allocation209_spill] sm:$0xff]  ;;  %v23224_v56 = vand.u32 4294901760, %v23208_v22  ;;  %v23272_v34 = vld [vmem:[#allocation240_spill] sm:$0xff] }
 0x4a4   : > { %12197 = vmatpush1.bf16.msra.mxu1 %v23207_v0  ;;  %12579 = vmatprep.subr.bf16.mxu0 %v23211_v49  ;;  %v23213_v1 = vld [vmem:[#allocation78_spill] sm:$0xff]  ;;  %v9226_v23 = vand.u32 4294901760, %v18324_v55  ;;  %v7892_v58 = vand.u32 4294901760, %v18329_v37  ;;  %v23218_v49 = vand.u32 4294901760, %v23202_v48  ;;  %v23220_v0 = vand.u32 4294901760, %v23204_v2 }
 0x4a5   : > { %12199 = vmatprep.subr.bf16.mxu1 %v23212_v16  ;;  %v23216_v32 = vld [vmem:[#allocation218_spill] sm:$0xff]  ;;  %v9243_v17 = vsub.f32 %v23203_v18, %v23219_v8  ;;  %v23221_v55 = vand.u32 4294901760, %v23205_v3  ;;  %v7904_v47 = vand.u32 4294901760, %v7903_v36  ;;  %v23226_v18 = vand.u32 4294901760, %v23210_v52 }
 0x4a6   : > { %v9231_v16 = vsub.f32 %v23202_v48, %v23218_v49  ;;  %v7909_v62 = vsub.f32 %v23204_v2, %v23220_v0  ;;  %12581 = vmatpush1.bf16.msra.mxu0 %v23222_v43  ;;  %v9237_v49 = vsub.f32 %v23208_v22, %v23224_v56  ;;  %v23225_v48 = vand.u32 4294901760, %v23209_v24  ;;  %v23227_v2 = vld [vmem:[#allocation140_spill] sm:$0xff] }
 0x4a7   : > { %v7921_v37 = vsub.f32 %v23205_v3, %v23221_v55  ;;  %v7915_v0 = vsub.f32 %v23210_v52, %v23226_v18  ;;  %12583 = vmatprep.subr.bf16.mxu0 %v23227_v2  ;;  %v23228_v55 = vld [vmem:[#allocation22_spill] sm:$0xff]  ;;  %v23229_v43 = vand.u32 4294901760, %v23213_v1  ;;  %v23231_v22 = vand.u32 4294901760, %v23215_v45  ;;  %v23239_v3 = vld [vmem:[#allocation33_spill] sm:$0xff] }
 0x4a8   : > { %12201 = vmatpush1.bf16.msra.mxu1 %v23223_v44  ;;  %v9249_v8 = vsub.f32 %v23209_v24, %v23225_v48  ;;  %v23230_v44 = vand.u32 4294901760, %v23214_v54  ;;  %v23232_v24 = vld [vmem:[#allocation221_spill] sm:$0xff]  ;;  %v23233_v18 = vand.u32 4294901760, %v23216_v32  ;;  %v9232_v51 = vand.u32 4294901760, %v9231_v16 }
 0x4a9   : > { %12203 = vmatprep.subr.bf16.mxu1 %v23228_v55  ;;  %v7927_v36 = vsub.f32 %v23213_v1, %v23229_v43  ;;  %v9267_v48 = vsub.f32 %v23215_v45, %v23231_v22  ;;  %v23234_v55 = vand.u32 4294901760, %v23217_v19  ;;  %v23236_v1 = vld [vmem:[#allocation227_spill] sm:$0xff]  ;;  %v7922_v45 = vand.u32 4294901760, %v7921_v37 }
 0x4aa   : > { %v9255_v56 = vsub.f32 %v23214_v54, %v23230_v44  ;;  %v7933_v2 = vsub.f32 %v23216_v32, %v23233_v18  ;;  %v9244_v44 = vand.u32 4294901760, %v9243_v17  ;;  %v7910_v54 = vand.u32 4294901760, %v7909_v62  ;;  %v23238_v22 = vld [vmem:[#allocation243_spill] sm:$0xff] }
 0x4ab   : > { %v7945_v52 = vsub.f32 %v23217_v19, %v23234_v55  ;;  %12585 = vmatpush1.bf16.msra.mxu0 %v23238_v22  ;;  %v9238_v13 = vand.u32 4294901760, %v9237_v49  ;;  %v9250_v18 = vand.u32 4294901760, %v9249_v8  ;;  %v7916_v32 = vand.u32 4294901760, %v7915_v0  ;;  %v23241_v55 = vld [vmem:[#allocation194_spill] sm:$0xff] }
 0x4ac   : > { %12205 = vmatpush1.bf16.msra.mxu1 %v23239_v3  ;;  %12587 = vmatprep.subr.bf16.mxu0 %v23240_v4  ;;  %v7928_v43 = vand.u32 4294901760, %v7927_v36  ;;  %v9256_v19 = vand.u32 4294901760, %v9255_v56  ;;  %v9268_v30 = vand.u32 4294901760, %v9267_v48  ;;  %v23242_v16 = vand.u32 4294901760, %v23232_v24  ;;  %v23249_v4 = vld [vmem:[#allocation15_spill] sm:$0xff] }
 0x4ad   : > { %12207 = vmatprep.subr.bf16.mxu1 %v23241_v55  ;;  %v7934_v17 = vand.u32 4294901760, %v7933_v2  ;;  %v7946_v40 = vand.u32 4294901760, %v7945_v52  ;;  %v23243_v22 = vand.u32 4294901760, %v23235_v29  ;;  %v23244_v49 = vand.u32 4294901760, %v23236_v1  ;;  %v23247_v2 = vld [vmem:[#allocation231_spill] sm:$0xff] }
 0x4ae   : > { %v9261_v62 = vsub.f32 %v23232_v24, %v23242_v16  ;;  %v23245_v0 = vand.u32 4294901760, %v18285_v33  ;;  %v18415_v36 = vpack.c.bf16 %v7904_v47, %v7892_v58  ;;  %v23246_v56 = vand.u32 4294901760, %v23237_v57  ;;  %v23248_v16 = vld [vmem:[#allocation256_spill] sm:$0xff]  ;;  %v23252_v47 = vld [vmem:[#allocation29_spill] sm:$0xff] }
 0x4af   : > { %v9273_v37 = vsub.f32 %v23235_v29, %v23243_v22  ;;  %v7939_v8 = vsub.f32 %v23236_v1, %v23244_v49  ;;  %12589 = vmatpush1.bf16.msra.mxu0 %v23248_v16  ;;  %v18423_v22 = vpack.c.bf16 %v9244_v44, %v9232_v51  ;;  %v18425_v3 = vpack.c.bf16 %v7922_v45, %v7910_v54  ;;  %v23251_v58 = vld [vmem:[#allocation20_spill] sm:$0xff]  ;;  %v23253_v16 = vld [vmem:[#allocation65_spill] sm:$0xff]  ;;  %v23254_v54 = vld [vmem:[#allocation67_spill] sm:$0xff] }
 0x4b0   : > { %v18413_v55 = vpack.c.bf16 %v9226_v23, %v23245_v0  ;;  %v7951_v48 = vsub.f32 %v23237_v57, %v23246_v56  ;;  %12209 = vmatpush1.bf16.msra.mxu1 %v23249_v4  ;;  %v18427_v49 = vpack.c.bf16 %v9250_v18, %v9238_v13  ;;  %v23250_v23 = vld [vmem:[#allocation238_spill] sm:$0xff]  ;;  %12591 = vmatprep.subr.bf16.mxu0 %v23251_v58  ;;  %v9262_v52 = vand.u32 4294901760, %v9261_v62  ;;  %v23263_v13 = vld [vmem:[#allocation131_spill] sm:$0xff]  ;;  %v23269_v24 = vld [vmem:[#allocation21_spill] sm:$0xff] }
 0x4b1   : > { %12211 = vmatprep.subr.bf16.mxu1 %v23252_v47  ;;  %v18432_v0 = vpack.c.bf16 %v7928_v43, %v7916_v32  ;;  %v18434_v56 = vpack.c.bf16 %v9268_v30, %v9256_v19  ;;  %v18437_v4 = vpack.c.bf16 %v7946_v40, %v7934_v17  ;;  %v9274_v51 = vand.u32 4294901760, %v9273_v37  ;;  %v23256_v58 = vld [vmem:[#allocation86_spill] sm:$0xff]  ;;  %v23257_v32 = vld [vmem:[#allocation212_spill] sm:$0xff]  ;;  %v23258_v30 = vld [vmem:[#allocation43_spill] sm:$0xff] }
 0x4b2   : > { %v7940_v45 = vand.u32 4294901760, %v7939_v8  ;;  %v7952_v44 = vand.u32 4294901760, %v7951_v48  ;;  %v23255_v18 = vand.u32 4294901760, %v23247_v2  ;;  %v23259_v19 = vld [vmem:[#allocation236_spill] sm:$0xff]  ;;  %v23260_v40 = vand.u32 4294901760, %v23250_v23  ;;  %v23261_v17 = vld [vmem:[#allocation125_spill] sm:$0xff] }
 0x4b3   : > { %12593 = vmatpush1.bf16.msra.mxu0 %v23258_v30  ;;  %v23262_v8 = vld [vmem:[#allocation136_spill] sm:$0xff]  ;;  %v23264_v1 = vld [vmem:[#allocation127_spill] sm:$0xff]  ;;  %v23266_v43 = vand.u32 4294901760, %v23253_v16  ;;  %v23270_v48 = vand.u32 4294901760, %v23254_v54  ;;  %v23271_v37 = vld [vmem:[#allocation25_spill] sm:$0xff]  ;;  %v23274_v29 = vand.u32 4294901760, %v23257_v32 }
 0x4b4   : > { %v9279_v33 = vsub.f32 %v23247_v2, %v23255_v18  ;;  %12213 = vmatpush1.bf16.msra.mxu1 %v23259_v19  ;;  %v9291_v62 = vsub.f32 %v23250_v23, %v23260_v40  ;;  %12595 = vmatprep.subr.bf16.mxu0 %v23264_v1  ;;  %v23265_v18 = vld [vmem:[#allocation141_spill] sm:$0xff]  ;;  %v23267_v30 = vld [vmem:[#allocation139_spill] sm:$0xff]  ;;  %v18461_v23 = vpack.c.bf16 %v9274_v51, %v9262_v52  ;;  %v23276_v40 = vld [vmem:[#allocation172_spill] sm:$0xff]  ;;  %v23277_v1 = vand.u32 4294901760, %v23261_v17 }
 0x4b5   : > { %12215 = vmatprep.subr.bf16.mxu1 %v23265_v18  ;;  %v7957_v47 = vsub.f32 %v23253_v16, %v23266_v43  ;;  %v23268_v2 = vld [vmem:[#allocation145_spill] sm:$0xff]  ;;  %v7969_v57 = vsub.f32 %v23254_v54, %v23270_v48  ;;  %v18468_v60 = vpack.c.bf16 %v7952_v44, %v7940_v45  ;;  %v23273_v43 = vand.u32 4294901760, %v23256_v58  ;;  %v23275_v51 = vld [vmem:[#allocation167_spill] sm:$0xff]  ;;  %v23288_v54 = vld [vmem:[#allocation242_spill] sm:$0xff] }
 0x4b6   : > { %v9280_v25 = vand.u32 4294901760, %v9279_v33  ;;  %v9297_v52 = vsub.f32 %v23257_v32, %v23274_v29  ;;  %v9292_v48 = vand.u32 4294901760, %v9291_v62  ;;  %v7963_v18 = vsub.f32 %v23261_v17, %v23277_v1  ;;  %v23281_v29 = vld [vmem:[#allocation47_spill] sm:$0xff] }
 0x4b7   : > { %v9285_v19 = vsub.f32 %v23256_v58, %v23273_v43  ;;  %12597 = vmatpush1.bf16.msra.mxu0 %v23275_v51  ;;  %v23278_v45 = vand.u32 4294901760, %v23262_v8  ;;  %v23279_v44 = vand.u32 4294901760, %v23263_v13  ;;  %v23280_v58 = vld [vmem:[#allocation247_spill] sm:$0xff]  ;;  %v7958_v51 = vand.u32 4294901760, %v7957_v47 }
 0x4b8   : > { %12217 = vmatpush1.bf16.msra.mxu1 %v23276_v40  ;;  %12599 = vmatprep.subr.bf16.mxu0 %v23280_v58  ;;  %v23282_v40 = vand.u32 4294901760, %v23267_v30  ;;  %v23283_v32 = vand.u32 4294901760, %v23268_v2  ;;  %v23284_v17 = vand.u32 4294901760, %v23269_v24  ;;  %v23286_v58 = vand.u32 4294901760, %v23272_v34 }
 0x4b9   : > { %v7975_v33 = vsub.f32 %v23262_v8, %v23278_v45  ;;  %v9303_v43 = vsub.f32 %v23263_v13, %v23279_v44  ;;  %12219 = vmatprep.subr.bf16.mxu1 %v23281_v29  ;;  %v23285_v8 = vand.u32 4294901760, %v23271_v37  ;;  %v23287_v29 = vld [vmem:[#allocation39_spill] sm:$0xff]  ;;  %v9286_v16 = vand.u32 4294901760, %v9285_v19  ;;  %v23295_v19 = vld [vmem:[#allocation246_spill] sm:$0xff] }
 0x4ba   : > { %v9315_v62 = vsub.f32 %v23267_v30, %v23282_v40  ;;  %v7981_v1 = vsub.f32 %v23268_v2, %v23283_v32  ;;  %v7993_v45 = vsub.f32 %v23269_v24, %v23284_v17  ;;  %v9321_v47 = vsub.f32 %v23272_v34, %v23286_v58  ;;  %v23289_v32 = vld [vmem:[#allocation252_spill] sm:$0xff]  ;;  %v23291_v17 = vld [vmem:[#allocation57_spill] sm:$0xff]  ;;  %v23294_v58 = vld [vmem:[#allocation74_spill] sm:$0xff] }
 0x4bb   : > { %v9309_v44 = vsub.f32 %v23271_v37, %v23285_v8  ;;  %v7970_v30 = vand.u32 4294901760, %v7969_v57  ;;  %v9298_v63 = vand.u32 4294901760, %v9297_v52  ;;  %12601 = vmatpush1.bf16.msra.mxu0 %v23290_v21  ;;  %v7964_v24 = vand.u32 4294901760, %v7963_v18  ;;  %v23292_v37 = vld [vmem:[#allocation250_spill] sm:$0xff] }
 0x4bc   : > { %12221 = vmatpush1.bf16.msra.mxu1 %v23291_v17  ;;  %v7976_v15 = vand.u32 4294901760, %v7975_v33  ;;  %v9304_v8 = vand.u32 4294901760, %v9303_v43  ;;  %12603 = vmatprep.subr.bf16.mxu0 %v23293_v7  ;;  %v9316_v13 = vand.u32 4294901760, %v9315_v62  ;;  %v7982_v40 = vand.u32 4294901760, %v7981_v1 }
 0x4bd   : > { %12223 = vmatprep.subr.bf16.mxu1 %v23294_v58  ;;  %v7994_v57 = vand.u32 4294901760, %v7993_v45  ;;  %v9310_v34 = vand.u32 4294901760, %v9309_v44  ;;  %v9322_v2 = vand.u32 4294901760, %v9321_v47  ;;  %v23296_v21 = vand.u32 4294901760, %v23287_v29  ;;  %v23299_v45 = vld [vmem:[#allocation123_spill] sm:$0xff] }
 0x4be   : > { %v23297_v18 = vand.u32 4294901760, %v23288_v54  ;;  %v18523_v43 = vpack.c.bf16 %v9292_v48, %v9280_v25  ;;  %v18525_v38 = vpack.c.bf16 %v7970_v30, %v7958_v51  ;;  %v23298_v62 = vand.u32 4294901760, %v23289_v32  ;;  %v23300_v47 = vld [vmem:[#allocation79_spill] sm:$0xff]  ;;  %v23306_v48 = vld [vmem:[#allocation101_spill] sm:$0xff] }
 0x4bf   : > { %v18516_v17 = vsub.f32 %v23287_v29, %v23296_v21  ;;  %12605 = vmatpush1.bf16.msra.mxu0 %v23300_v47  ;;  %v23301_v21 = vld [vmem:[#allocation85_spill] sm:$0xff]  ;;  %v18535_v52 = vpack.c.bf16 %v9298_v63, %v9286_v16  ;;  %v18537_v58 = vpack.c.bf16 %v7976_v15, %v7964_v24  ;;  %v23304_v25 = vand.u32 4294901760, %v23292_v37  ;;  %v23305_v51 = vld [vmem:[#allocation95_spill] sm:$0xff]  ;;  %v23316_v24 = vld [vmem:[#allocation210_spill] sm:$0xff] }
 0x4c0   : > { %v18521_v33 = vsub.f32 %v23288_v54, %v23297_v18  ;;  %v18530_v1 = vsub.f32 %v23289_v32, %v23298_v62  ;;  %12225 = vmatpush1.bf16.msra.mxu1 %v23301_v21  ;;  %12607 = vmatprep.subr.bf16.mxu0 %v23305_v51  ;;  %v18546_v18 = vpack.c.bf16 %v9316_v13, %v9304_v8  ;;  %v23309_v44 = vand.u32 4294901760, %v23295_v19  ;;  %v23310_v15 = vld [vmem:[#allocation241_spill] sm:$0xff]  ;;  %v23312_v51 = vld [vmem:[#allocation254_spill] sm:$0xff]  ;;  %v23319_v47 = vld [vmem:[#allocation28_spill] sm:$0xff] }
 0x4c1   : > { %23302 = vst [vmem:[#allocation58_spill] sm:$0xff] %v18535_v52  ;;  %23303 = vst [vmem:[#allocation61_spill] sm:$0xff] %v18537_v58  ;;  %v18542_v30 = vsub.f32 %v23292_v37, %v23304_v25  ;;  %12227 = vmatprep.subr.bf16.mxu1 %v23306_v48  ;;  %v18548_v62 = vpack.c.bf16 %v7994_v57, %v7982_v40  ;;  %v18556_v16 = vpack.c.bf16 %v9322_v2, %v9310_v34  ;;  %v23314_v57 = vld [vmem:[#allocation17_spill] sm:$0xff]  ;;  %v23315_v48 = vld [vmem:[#allocation19_spill] sm:$0xff] }
 0x4c2   : > { %23307 = vst [vmem:[#allocation64_spill] sm:$0xff] %v18546_v18  ;;  %v18553_v63 = vsub.f32 %v23295_v19, %v23309_v44  ;;  %v8000_v21 = vand.u32 4294901760, %v18521_v33  ;;  %v9328_v13 = vand.u32 4294901760, %v18530_v1  ;;  %v23313_v40 = vand.u32 4294901760, %v23299_v45  ;;  %v23317_v34 = vld [vmem:[#allocation116_spill] sm:$0xff]  ;;  %v23318_v33 = vld [vmem:[#allocation239_spill] sm:$0xff] }
 0x4c3   : > { %23308 = vst [vmem:[#allocation68_spill] sm:$0xff] %v18548_v62  ;;  %23311 = vst [vmem:[#allocation73_spill] sm:$0xff] %v18556_v16  ;;  %12609 = vmatpush1.bf16.msra.mxu0 %v23316_v24  ;;  %v9340_v2 = vand.u32 4294901760, %v18542_v30  ;;  %v23320_v1 = vld [vmem:[#allocation31_spill] sm:$0xff]  ;;  %v23323_v7 = vand.u32 4294901760, %v23310_v15  ;;  %v23325_v54 = vld [vmem:[#allocation44_spill] sm:$0xff] }
 0x4c4   : > { %v18565_v8 = vsub.f32 %v23299_v45, %v23313_v40  ;;  %12229 = vmatpush1.bf16.msra.mxu1 %v23317_v34  ;;  %v23321_v32 = vld [vmem:[#allocation151_spill] sm:$0xff]  ;;  %v23322_v40 = vld [vmem:[#allocation157_spill] sm:$0xff]  ;;  %v8006_v44 = vand.u32 4294901760, %v18553_v63  ;;  %v23324_v45 = vld [vmem:[#allocation32_spill] sm:$0xff]  ;;  %v23326_v25 = vand.u32 4294901760, %v23312_v51  ;;  %v23330_v63 = vand.u32 4294901760, %v23314_v57 }
 0x4c5   : > { %12611 = vmatprep.subr.bf16.mxu0 %v23321_v32  ;;  %12231 = vmatprep.subr.bf16.mxu1 %v23322_v40  ;;  %v9333_v24 = vsub.f32 %v23310_v15, %v23323_v7  ;;  %v23327_v29 = vld [vmem:[#allocation46_spill] sm:$0xff]  ;;  %v23328_v16 = vld [vmem:[#allocation117_spill] sm:$0xff]  ;;  %v23329_v62 = vld [vmem:[#allocation119_spill] sm:$0xff]  ;;  %v23331_v7 = vand.u32 4294901760, %v23315_v48  ;;  %v23336_v40 = vand.u32 4294901760, %v23318_v33 }
 0x4c6   : > { %v9345_v19 = vsub.f32 %v23312_v51, %v23326_v25  ;;  %v8011_v18 = vsub.f32 %v23314_v57, %v23330_v63  ;;  %v23332_v15 = vld [vmem:[#allocation122_spill] sm:$0xff]  ;;  %v23333_v58 = vld [vmem:[#allocation133_spill] sm:$0xff]  ;;  %v23335_v25 = vld [vmem:[#allocation108_spill] sm:$0xff]  ;;  %v8018_v32 = vand.u32 4294901760, %v18565_v8  ;;  %v23337_v63 = vand.u32 4294901760, %v23319_v47 }
 0x4c7   : > { %v8023_v34 = vsub.f32 %v23315_v48, %v23331_v7  ;;  %12613 = vmatpush1.bf16.msra.mxu0 %v23334_v28  ;;  %v9351_v37 = vsub.f32 %v23318_v33, %v23336_v40  ;;  %v23338_v7 = vand.u32 4294901760, %v23320_v1  ;;  %v23339_v48 = vld [vmem:[#allocation182_spill] sm:$0xff]  ;;  %v23340_v52 = vld [vmem:[#allocation249_spill] sm:$0xff]  ;;  %v23342_v28 = vand.u32 4294901760, %v23325_v54  ;;  %v23343_v33 = vld [vmem:[#allocation160_spill] sm:$0xff] }
 0x4c8   : > { %12233 = vmatpush1.bf16.msra.mxu1 %v23335_v25  ;;  %v9363_v57 = vsub.f32 %v23319_v47, %v23337_v63  ;;  %12615 = vmatprep.subr.bf16.mxu0 %v23339_v48  ;;  %v23341_v25 = vand.u32 4294901760, %v23324_v45  ;;  %v9334_v47 = vand.u32 4294901760, %v9333_v24  ;;  %v23345_v6 = vand.u32 4294901760, %v23327_v29 }
 0x4c9   : > { %v8029_v30 = vsub.f32 %v23320_v1, %v23338_v7  ;;  %12235 = vmatprep.subr.bf16.mxu1 %v23340_v52  ;;  %v9357_v40 = vsub.f32 %v23325_v54, %v23342_v28  ;;  %v23346_v48 = vand.u32 4294901760, %v23328_v16  ;;  %v23347_v1 = vand.u32 4294901760, %v23329_v62 }
 0x4ca   : > { %v8041_v8 = vsub.f32 %v23324_v45, %v23341_v25  ;;  %v9369_v7 = vsub.f32 %v23327_v29, %v23345_v6  ;;  %v9346_v45 = vand.u32 4294901760, %v9345_v19  ;;  %v8012_v5 = vand.u32 4294901760, %v8011_v18 }
 0x4cb   : > { %v8035_v52 = vsub.f32 %v23328_v16, %v23346_v48  ;;  %v8047_v25 = vsub.f32 %v23329_v62, %v23347_v1  ;;  %v23348_v28 = vand.u32 4294901760, %v23332_v15  ;;  %v23349_v24 = vand.u32 4294901760, %v23333_v58  ;;  %12617 = vmatpush1.bf16.msra.mxu0 %v18146_v42 }
 0x4cc   : > { %12237 = vmatpush1.bf16.msra.mxu1 %v18151_v27  ;;  %v8024_v6 = vand.u32 4294901760, %v8023_v34  ;;  %v9352_v48 = vand.u32 4294901760, %v9351_v37  ;;  %v9364_v16 = vand.u32 4294901760, %v9363_v57  ;;  %v8030_v29 = vand.u32 4294901760, %v8029_v30  ;;  %12619 = vmatprep.subr.bf16.mxu0 %v18159_v35  ;;  %v23352_v37 = vld [vmem:[#allocation165_spill] sm:$0xff] }
 0x4cd   : > { %v9375_v51 = vsub.f32 %v23332_v15, %v23348_v28  ;;  %v9387_v63 = vsub.f32 %v23333_v58, %v23349_v24  ;;  %12239 = vmatprep.subr.bf16.mxu1 %v18166_v61  ;;  %v8042_v19 = vand.u32 4294901760, %v8041_v8  ;;  %v9358_v18 = vand.u32 4294901760, %v9357_v40  ;;  %v23436_v58 = vld [vmem:[#allocation61_spill] sm:$0xff] }
 0x4ce   : > { %v23350_v1 = vand.u32 4294901760, %v23343_v33  ;;  %v23351_v24 = vand.u32 4294901760, %v23344_v20  ;;  %v9370_v62 = vand.u32 4294901760, %v9369_v7  ;;  %v8036_v27 = vand.u32 4294901760, %v8035_v52  ;;  %v23354_v7 = vld [vmem:[#allocation169_spill] sm:$0xff] }
 0x4cf   : > { %v8048_v34 = vand.u32 4294901760, %v8047_v25  ;;  %v20940_v57 = vand.u32 4294901760, %v23352_v37  ;;  %v23353_v30 = vand.u32 4294901760, %v18516_v17  ;;  %v18649_v61 = vpack.c.bf16 %v9340_v2, %v9328_v13  ;;  %12621 = vmatpush1.bf16.msra.mxu0 %v18172_v9 }
 0x4d0   : > { %v8053_v28 = vsub.f32 %v23343_v33, %v23350_v1  ;;  %v8065_v42 = vsub.f32 %v23344_v20, %v23351_v24  ;;  %v9376_v8 = vand.u32 4294901760, %v9375_v51  ;;  %v9388_v40 = vand.u32 4294901760, %v9387_v63  ;;  %12241 = vmatpush1.bf16.msra.mxu1 %v18180_v50  ;;  %12623 = vmatprep.subr.bf16.mxu0 %v18190_v59  ;;  %v23363_v63 = vld [vmem:[#allocation245_spill] sm:$0xff] }
 0x4d1   : > { %v18647_v35 = vpack.c.bf16 %v8000_v21, %v23353_v30  ;;  %v18653_v1 = vpack.c.bf16 %v8018_v32, %v8006_v44  ;;  %v18655_v24 = vpack.c.bf16 %v9346_v45, %v9334_v47  ;;  %v18657_v52 = vpack.c.bf16 %v8024_v6, %v8012_v5  ;;  %12243 = vmatprep.subr.bf16.mxu1 %v18289_v11  ;;  %v23359_v45 = vld [vmem:[#allocation175_spill] sm:$0xff]  ;;  %v23360_v44 = vld [vmem:[#allocation132_spill] sm:$0xff]  ;;  %v23368_v30 = vld [vmem:[#allocation54_spill] sm:$0xff] }
 0x4d2   : > { %v20943_v25 = vand.u32 4294901760, %v23354_v7  ;;  %v18662_v17 = vpack.c.bf16 %v9364_v16, %v9352_v48  ;;  %v18664_v21 = vpack.c.bf16 %v8042_v19, %v8030_v29  ;;  %v8054_v51 = vand.u32 4294901760, %v8053_v28  ;;  %v23362_v16 = vld [vmem:[#allocation193_spill] sm:$0xff]  ;;  %v23371_v6 = vld [vmem:[#allocation59_spill] sm:$0xff]  ;;  %v23372_v47 = vld [vmem:[#allocation60_spill] sm:$0xff] }
 0x4d3   : > { %v8066_v13 = vand.u32 4294901760, %v8065_v42  ;;  %v18666_v2 = vpack.c.bf16 %v9370_v62, %v9358_v18  ;;  %v18668_v32 = vpack.c.bf16 %v8048_v34, %v8036_v27  ;;  %v18673_v5 = vsub.f32 %v23352_v37, %v20940_v57  ;;  %7812 = vmatmul.mubr.f32.vlgmr.msra.gmra.mrb[16].mxu1 %v23360_v44  ;;  %v23364_v42 = vld [vmem:[#allocation201_spill] sm:$0xff]  ;;  %12625 = vmatpush1.bf16.msra.mxu0 %v18293_v12  ;;  %v23365_v27 = vld [vmem:[#allocation159_spill] sm:$0xff]  ;;  %v23370_v57 = vld [vmem:[#allocation56_spill] sm:$0xff] }
 0x4d4   : > { %23355 = vst [vmem:[#allocation77_spill] sm:$0xff] %v18662_v17  ;;  %23356 = vst [vmem:[#allocation81_spill] sm:$0xff] %v18664_v21  ;;  %v18677_v11 = vpack.c.bf16 %v9388_v40, %v9376_v8  ;;  %7822 = vmatprep.mubr.f32.mxu1 %v23365_v27  ;;  %v18687_v48 = vsub.f32 %v23354_v7, %v20943_v25  ;;  %v23366_v19 = vld [vmem:[#allocation49_spill] sm:$0xff]  ;;  %12245 = vmatpush1.bf16.msra.mxu1 %v18305_v31  ;;  %v23373_v25 = vand.u32 4294901760, %v23359_v45  ;;  %v23374_v8 = vld [vmem:[#allocation63_spill] sm:$0xff] }
 0x4d5   : > { %23357 = vst [vmem:[#allocation88_spill] sm:$0xff] %v18666_v2  ;;  %23358 = vst [vmem:[#allocation91_spill] sm:$0xff] %v18668_v32  ;;  %v23367_v28 = vld [vmem:[#allocation233_spill] sm:$0xff]  ;;  %12627 = vmatprep.subr.bf16.mxu0 %v18307_v53  ;;  %v18694_v40 = vpack.c.bf16 %v8066_v13, %v8054_v51  ;;  %12247 = vmatprep.subr.bf16.mxu1 %v18309_v46  ;;  %v23376_v53 = vld [vmem:[#allocation71_spill] sm:$0xff]  ;;  %v23378_v12 = vand.u32 4294901760, %v23362_v16  ;;  %v23380_v59 = vand.u32 4294901760, %v23364_v42 }
 0x4d6   : > { %23361 = vst [vmem:[#allocation98_spill] sm:$0xff] %v18677_v11  ;;  %v18703_v34 = vsub.f32 %v23359_v45, %v23373_v25  ;;  %v23375_v31 = vld [vmem:[#allocation69_spill] sm:$0xff]  ;;  %9158 = vmatmul.mubr.f32.vlgmr.msra.gmra.mrb[16].mxu0 %v23360_v44  ;;  %v23377_v13 = vld [vmem:[#allocation178_spill] sm:$0xff]  ;;  %v23379_v25 = vand.u32 4294901760, %v23363_v63  ;;  %v23381_v29 = vand.u32 4294901760, %v23366_v19  ;;  %v23382_v18 = vand.u32 4294901760, %v23367_v28 }
 0x4d7   : > { %23369 = vst [vmem:[#allocation103_spill] sm:$0xff] %v18694_v40  ;;  %7828 = vmatmul.mubr.f32.gmra.mrb[18].mxu1 %v23377_v13  ;;  %v18714_v46 = vsub.f32 %v23362_v16, %v23378_v12  ;;  %v18724_v51 = vsub.f32 %v23364_v42, %v23380_v59  ;;  %9168 = vmatprep.mubr.f32.mxu0 %v23365_v27  ;;  %v23383_v50 = vand.u32 4294901760, %v23368_v30  ;;  %v23385_v27 = vand.u32 4294901760, %v23370_v57  ;;  %v23392_v40 = vld [vmem:[#allocation80_spill] sm:$0xff]  ;;  %v23393_v21 = vld [vmem:[#allocation83_spill] sm:$0xff]  ;;  %v23421_v16 = vld [vmem:[#allocation234_spill] sm:$0xff] }
 0x4d8   : > { %v18719_v62 = vsub.f32 %v23363_v63, %v23379_v25  ;;  %12629 = vmatpush1.bf16.msra.mxu0 %v18314_v10  ;;  %v18732_v12 = vsub.f32 %v23366_v19, %v23381_v29  ;;  %v18737_v25 = vsub.f32 %v23367_v28, %v23382_v18  ;;  %12249 = vmatpush1.bf16.msra.mxu1 %v18316_v39  ;;  %v23384_v10 = vld [vmem:[#allocation205_spill] sm:$0xff]  ;;  %v23386_v29 = vand.u32 4294901760, %v23371_v6  ;;  %v23400_v2 = vld [vmem:[#allocation104_spill] sm:$0xff] }
 0x4d9   : > { %v18742_v59 = vsub.f32 %v23368_v30, %v23383_v50  ;;  %8219 = vmatprep.mubr.f32.mxu1 %v23384_v10  ;;  %v18749_v44 = vsub.f32 %v23370_v57, %v23385_v27  ;;  %v23387_v18 = vand.u32 4294901760, %v23372_v47  ;;  %v23388_v50 = vld [vmem:[#allocation76_spill] sm:$0xff]  ;;  %12631 = vmatprep.subr.bf16.mxu0 %v18318_v14  ;;  %v23389_v39 = vand.u32 4294901760, %v23374_v8  ;;  %v23413_v57 = vld [vmem:[#allocation126_spill] sm:$0xff]  ;;  %v23425_v33 = vld [vmem:[#allocation93_spill] sm:$0xff] }
 0x4da   : > { %v18754_v9 = vsub.f32 %v23371_v6, %v23386_v29  ;;  %12251 = vmatprep.subr.bf16.mxu1 %v18345_v26  ;;  %v23390_v11 = vand.u32 4294901760, %v23375_v31  ;;  %v23391_v32 = vand.u32 4294901760, %v23376_v53  ;;  %9174 = vmatmul.mubr.f32.gmra.mrb[18].mxu0 %v23377_v13  ;;  %v20951_v17 = vand.u32 4294901760, %v23393_v21  ;;  %v23399_v13 = vld [vmem:[#allocation100_spill] sm:$0xff]  ;;  %v23401_v26 = vld [vmem:[#allocation107_spill] sm:$0xff]  ;;  %v23414_v6 = vld [vmem:[#allocation130_spill] sm:$0xff] }
 0x4db   : > { %v18759_v54 = vsub.f32 %v23372_v47, %v23387_v18  ;;  %v18767_v27 = vsub.f32 %v23374_v8, %v23389_v39  ;;  %9565 = vmatprep.mubr.f32.mxu0 %v23384_v10  ;;  %v23394_v14 = vand.u32 4294901760, %v23388_v50  ;;  %v23402_v10 = vld [vmem:[#allocation109_spill] sm:$0xff]  ;;  %v23404_v47 = vld [vmem:[#allocation128_spill] sm:$0xff]  ;;  %v23439_v28 = vand.u32 4294901760, %v23399_v13 }
 0x4dc   : > { %v18772_v29 = vsub.f32 %v23375_v31, %v23390_v11  ;;  %v18777_v18 = vsub.f32 %v23376_v53, %v23391_v32  ;;  %12633 = vmatpush1.bf16.msra.mxu0 %v18413_v55  ;;  %12253 = vmatpush1.bf16.msra.mxu1 %v18415_v36  ;;  %v18813_v55 = vsub.f32 %v23393_v21, %v20951_v17  ;;  %v23397_v32 = vld [vmem:[#allocation92_spill] sm:$0xff]  ;;  %v23405_v17 = vld [vmem:[#allocation146_spill] sm:$0xff]  ;;  %v23407_v53 = vld [vmem:[#allocation155_spill] sm:$0xff] }
 0x4dd   : > { %12635 = vmatprep.subr.bf16.mxu0 %v18423_v22  ;;  %v18799_v11 = vsub.f32 %v23388_v50, %v23394_v14  ;;  %12255 = vmatprep.subr.bf16.mxu1 %v18425_v3  ;;  %v23395_v22 = vand.u32 4294901760, %v23392_v40  ;;  %v23396_v14 = vld [vmem:[#allocation89_spill] sm:$0xff]  ;;  %v23410_v50 = vld [vmem:[#allocation82_spill] sm:$0xff]  ;;  %v23411_v31 = vld [vmem:[#allocation99_spill] sm:$0xff]  ;;  %v23435_v19 = vand.u32 4294901760, %v23397_v32 }
 0x4de   : > { %v23398_v3 = vld [vmem:[#allocation97_spill] sm:$0xff]  ;;  %v23412_v30 = vld [vmem:[#allocation120_spill] sm:$0xff]  ;;  %v23433_v36 = vld [vmem:[#allocation58_spill] sm:$0xff]  ;;  %v23434_v8 = vand.u32 4294901760, %v23396_v14 }
 0x4df   : > { %v18808_v39 = vsub.f32 %v23392_v40, %v23395_v22  ;;  %v23408_v40 = vld [vmem:[#allocation179_spill] sm:$0xff]  ;;  %v23409_v21 = vld [vmem:[#allocation197_spill] sm:$0xff]  ;;  %v8114_v15 = vand.u32 4294901760, %v18799_v11  ;;  %v23429_v45 = vld [vmem:[#allocation176_spill] sm:$0xff]  ;;  %v8119_v11 = vsub.f32 %v23397_v32, %v23435_v19  ;;  %v9442_v22 = vand.u32 4294901760, %v18813_v55 }
 0x4e0   : > { %12637 = vmatpush1.bf16.msra.mxu0 %v18427_v49  ;;  %12257 = vmatpush1.bf16.msra.mxu1 %v18432_v0  ;;  %v23406_v0 = vld [vmem:[#allocation148_spill] sm:$0xff]  ;;  %v23426_v20 = vld [vmem:[#allocation121_spill] sm:$0xff]  ;;  %v23430_v49 = vld [vmem:[#allocation235_spill] sm:$0xff]  ;;  %v8107_v7 = vsub.f32 %v23396_v14, %v23434_v8  ;;  %v9459_v8 = vsub.f32 %v23399_v13, %v23439_v28  ;;  %v23441_v19 = vand.u32 4294901760, %v18673_v5  ;;  %v23443_v55 = vand.u32 4294901760, %v18703_v34 }
 0x4e1   : > { %12639 = vmatprep.subr.bf16.mxu0 %v18434_v56  ;;  %12259 = vmatprep.subr.bf16.mxu1 %v18437_v4  ;;  %v23403_v4 = vld [vmem:[#allocation112_spill] sm:$0xff]  ;;  %v23427_v63 = vld [vmem:[#allocation153_spill] sm:$0xff]  ;;  %v9430_v37 = vand.u32 4294901760, %v18808_v39  ;;  %v23446_v28 = vand.u32 4294901760, %v18724_v51  ;;  %v23448_v5 = vand.u32 4294901760, %v18737_v25  ;;  %v23450_v34 = vand.u32 4294901760, %v18749_v44 }
 0x4e2   : > { %v23440_v42 = vld [vmem:[#allocation68_spill] sm:$0xff]  ;;  %v23453_v51 = vand.u32 4294901760, %v18767_v27  ;;  %v23455_v25 = vand.u32 4294901760, %v18777_v18  ;;  %v8108_v44 = vand.u32 4294901760, %v8107_v7  ;;  %v9460_v18 = vand.u32 4294901760, %v9459_v8 }
 0x4e3   : > { %v18961_v27 = vpack.c.bf16 %v9442_v22, %v9430_v37  ;;  %v20986_v7 = vand.u32 4294901760, %v23403_v4  ;;  %v20979_v37 = vand.u32 4294901760, %v23408_v40  ;;  %v20981_v22 = vand.u32 4294901760, %v23409_v21 }
 0x4e4   : > { %12641 = vmatpush1.bf16.msra.mxu0 %v18461_v23  ;;  %12261 = vmatpush1.bf16.msra.mxu1 %v18468_v60  ;;  %v23415_v23 = vld [vmem:[#allocation237_spill] sm:$0xff]  ;;  %v23422_v60 = vld [vmem:[#allocation18_spill] sm:$0xff] }
 0x4e5   : > { %12643 = vmatprep.subr.bf16.mxu0 %v18523_v43  ;;  %12263 = vmatprep.subr.bf16.mxu1 %v18525_v38  ;;  %v23423_v43 = vld [vmem:[#allocation30_spill] sm:$0xff]  ;;  %v23437_v38 = vld [vmem:[#allocation64_spill] sm:$0xff] }
 0x4e8   : > { %12645 = vmatpush1.bf16.msra.mxu0 %v23433_v36  ;;  %12265 = vmatpush1.bf16.msra.mxu1 %v23436_v58  ;;  %v23438_v36 = vand.u32 4294901760, %v23398_v3  ;;  %v23442_v58 = vand.u32 4294901760, %v18687_v48  ;;  %v23449_v48 = vand.u32 4294901760, %v18742_v59  ;;  %v23456_v59 = vld [vmem:[#allocation73_spill] sm:$0xff] }
 0x4e9   : > { %12647 = vmatprep.subr.bf16.mxu0 %v23437_v38  ;;  %12267 = vmatprep.subr.bf16.mxu1 %v23440_v42  ;;  %v23444_v38 = vand.u32 4294901760, %v18714_v46  ;;  %v23447_v42 = vand.u32 4294901760, %v18732_v12  ;;  %v23451_v46 = vand.u32 4294901760, %v18754_v9  ;;  %v23454_v12 = vand.u32 4294901760, %v18772_v29 }
 0x4ea   : > { %v9447_v39 = vsub.f32 %v23398_v3, %v23438_v36  ;;  %v18912_v56 = vpack.c.bf16 %v23442_v58, %v23441_v19  ;;  %v23445_v36 = vand.u32 4294901760, %v18719_v62  ;;  %v18936_v19 = vpack.c.bf16 %v23450_v34, %v23449_v48 }
 0x4eb   : > { %v18918_v32 = vpack.c.bf16 %v23444_v38, %v23443_v55  ;;  %v18930_v14 = vpack.c.bf16 %v23448_v5, %v23447_v42  ;;  %v23452_v62 = vand.u32 4294901760, %v18759_v54  ;;  %v18948_v55 = vpack.c.bf16 %v23454_v12, %v23453_v51 }
 0x4ec   : > { %v18924_v3 = vpack.c.bf16 %v23446_v28, %v23445_v36  ;;  %v18952_v38 = vpack.c.bf16 %v8114_v15, %v23455_v25  ;;  %12649 = vmatpush1.bf16.msra.mxu0 %v23456_v59  ;;  %v8120_v36 = vand.u32 4294901760, %v8119_v11  ;;  %v23457_v9 = vand.u32 4294901760, %v23400_v2  ;;  %12269 = vmatpush1.bf16.msra.mxu1 %v18647_v35  ;;  %v23460_v25 = vld [vmem:[#allocation81_spill] sm:$0xff] }
 0x4ed   : > { %v18942_v58 = vpack.c.bf16 %v23452_v62, %v23451_v46  ;;  %v20987_v28 = vand.u32 4294901760, %v23402_v10  ;;  %12651 = vmatprep.subr.bf16.mxu0 %v18649_v61  ;;  %v9448_v29 = vand.u32 4294901760, %v9447_v39  ;;  %v23458_v15 = vand.u32 4294901760, %v23401_v26  ;;  %12271 = vmatprep.subr.bf16.mxu1 %v18653_v1  ;;  %v23459_v46 = vld [vmem:[#allocation77_spill] sm:$0xff] }
 0x4ee   : > { %v8125_v54 = vsub.f32 %v23400_v2, %v23457_v9  ;;  %v20985_v11 = vand.u32 4294901760, %v23404_v47  ;;  %v20984_v5 = vand.u32 4294901760, %v23405_v17  ;;  %v20980_v35 = vand.u32 4294901760, %v23406_v0 }
 0x4ef   : > { %v8137_v42 = vsub.f32 %v23401_v26, %v23458_v15  ;;  %v20978_v61 = vand.u32 4294901760, %v23407_v53  ;;  %v20982_v39 = vand.u32 4294901760, %v23410_v50  ;;  %v18976_v8 = vpack.c.bf16 %v8120_v36, %v8108_v44  ;;  %v23461_v15 = vld [vmem:[#allocation88_spill] sm:$0xff] }
 0x4f0   : > { %12653 = vmatpush1.bf16.msra.mxu0 %v18655_v24  ;;  %v8126_v1 = vand.u32 4294901760, %v8125_v54  ;;  %v9453_v48 = vsub.f32 %v23402_v10, %v20987_v28  ;;  %v20983_v34 = vand.u32 4294901760, %v23411_v31  ;;  %12273 = vmatpush1.bf16.msra.mxu1 %v18657_v52  ;;  %v18984_v62 = vpack.c.bf16 %v9460_v18, %v9448_v29 }
 0x4f1   : > { %12655 = vmatprep.subr.bf16.mxu0 %v23459_v46  ;;  %v8138_v51 = vand.u32 4294901760, %v8137_v42  ;;  %v20988_v12 = vand.u32 4294901760, %v23412_v30  ;;  %v20990_v24 = vand.u32 4294901760, %v23413_v57  ;;  %12275 = vmatprep.subr.bf16.mxu1 %v23460_v25  ;;  %v9465_v59 = vsub.f32 %v23403_v4, %v20986_v7 }
 0x4f2   : > { %v8131_v44 = vsub.f32 %v23404_v47, %v20985_v11  ;;  %v8143_v52 = vsub.f32 %v23405_v17, %v20984_v5  ;;  %v9471_v36 = vsub.f32 %v23406_v0, %v20980_v35  ;;  %v9483_v9 = vsub.f32 %v23407_v53, %v20978_v61  ;;  %v23463_v35 = vld [vmem:[#allocation98_spill] sm:$0xff]  ;;  %v23465_v5 = vld [vmem:[#allocation103_spill] sm:$0xff] }
 0x4f3   : > { %v8149_v54 = vsub.f32 %v23408_v40, %v20979_v37  ;;  %v8161_v29 = vsub.f32 %v23409_v21, %v20981_v22  ;;  %v9477_v18 = vsub.f32 %v23410_v50, %v20982_v39  ;;  %v9454_v42 = vand.u32 4294901760, %v9453_v48  ;;  %v23462_v37 = vld [vmem:[#allocation91_spill] sm:$0xff] }
 0x4f4   : > { %12657 = vmatpush1.bf16.msra.mxu0 %v23461_v15  ;;  %v9489_v46 = vsub.f32 %v23411_v31, %v20983_v34  ;;  %12277 = vmatpush1.bf16.msra.mxu1 %v23462_v37  ;;  %v19021_v22 = vpack.c.bf16 %v8138_v51, %v8126_v1  ;;  %v8155_v39 = vsub.f32 %v23412_v30, %v20988_v12  ;;  %v23464_v15 = vld [vmem:[#allocation184_spill] sm:$0xff]  ;;  %v9466_v11 = vand.u32 4294901760, %v9465_v59  ;;  %v23472_v59 = vld [vmem:[#allocation229_spill] sm:$0xff] }
 0x4f5   : > { %12659 = vmatprep.subr.bf16.mxu0 %v23463_v35  ;;  %v8167_v48 = vsub.f32 %v23413_v57, %v20990_v24  ;;  %12279 = vmatprep.subr.bf16.mxu1 %v23465_v5  ;;  %v8132_v7 = vand.u32 4294901760, %v8131_v44  ;;  %v8144_v28 = vand.u32 4294901760, %v8143_v52  ;;  %v9472_v37 = vand.u32 4294901760, %v9471_v36  ;;  %v23468_v5 = vld [vmem:[#allocation189_spill] sm:$0xff] }
 0x4f6   : > { %v9484_v61 = vand.u32 4294901760, %v9483_v9  ;;  %v8150_v35 = vand.u32 4294901760, %v8149_v54  ;;  %v8162_v1 = vand.u32 4294901760, %v8161_v29  ;;  %v9478_v51 = vand.u32 4294901760, %v9477_v18  ;;  %v23470_v9 = vld [vmem:[#allocation220_spill] sm:$0xff] }
 0x4f7   : > { %v9490_v25 = vand.u32 4294901760, %v9489_v46  ;;  %v23466_v12 = vand.u32 4294901760, %v23414_v6  ;;  %v23467_v24 = vand.u32 4294901760, %v23415_v23  ;;  %v8156_v44 = vand.u32 4294901760, %v8155_v39 }
 0x4f8   : > { %12661 = vmatpush1.bf16.msra.mxu0 %v18912_v56  ;;  %12281 = vmatpush1.bf16.msra.mxu1 %v18918_v32  ;;  %v8168_v52 = vand.u32 4294901760, %v8167_v48  ;;  %v23469_v36 = vand.u32 4294901760, %v23464_v15  ;;  %v12292_v29 = vpack.c.bf16 %v8144_v28, %v8132_v7  ;;  %v20995_v46 = vand.u32 4294901760, %v18153_v41 }
 0x4f9   : > { %v9495_v30 = vsub.f32 %v23414_v6, %v23466_v12  ;;  %v9507_v34 = vsub.f32 %v23415_v23, %v23467_v24  ;;  %12663 = vmatprep.subr.bf16.mxu0 %v18924_v3  ;;  %12283 = vmatprep.subr.bf16.mxu1 %v18930_v14  ;;  %v12672_v12 = vpack.c.bf16 %v9466_v11, %v9454_v42  ;;  %v23471_v24 = vld [vmem:[#allocation223_spill] sm:$0xff]  ;;  %v20993_v3 = vand.u32 4294901760, %v23472_v59 }
 0x4fa   : > { %v19044_v56 = vsub.f32 %v23464_v15, %v23469_v36  ;;  %v20997_v18 = vand.u32 4294901760, %v23471_v24  ;;  %v12674_v32 = vpack.c.bf16 %v9484_v61, %v9472_v37  ;;  %v20992_v39 = vand.u32 4294901760, %v23421_v16 }
 0x4fb   : > { %v20994_v48 = vand.u32 4294901760, %v23422_v60  ;;  %v12294_v36 = vpack.c.bf16 %v8162_v1, %v8150_v35  ;;  %v9496_v15 = vand.u32 4294901760, %v9495_v30  ;;  %v9508_v54 = vand.u32 4294901760, %v9507_v34 }
 0x4fc   : > { %12665 = vmatpush1.bf16.msra.mxu0 %v18936_v19  ;;  %v23473_v14 = vand.u32 4294901760, %v23468_v5  ;;  %12285 = vmatpush1.bf16.msra.mxu1 %v18942_v58  ;;  %v12676_v7 = vpack.c.bf16 %v9490_v25, %v9478_v51  ;;  %v12296_v11 = vpack.c.bf16 %v8168_v52, %v8156_v44  ;;  %v8174_v61 = vand.u32 4294901760, %v19044_v56 }
 0x4fd   : > { %12667 = vmatprep.subr.bf16.mxu0 %v18948_v55  ;;  %v23474_v42 = vand.u32 4294901760, %v23470_v9  ;;  %12287 = vmatprep.subr.bf16.mxu1 %v18952_v38  ;;  %v9513_v30 = vsub.f32 %v23471_v24, %v20997_v18  ;;  %v8179_v19 = vsub.f32 %v18153_v41, %v20995_v46  ;;  %v20996_v58 = vand.u32 4294901760, %v23423_v43  ;;  %v23475_v55 = vld [vmem:[#allocation42_spill] sm:$0xff]  ;;  %v23478_v18 = vld [vmem:[#allocation55_spill] sm:$0xff] }
 0x4fe   : > { %v8185_v28 = vsub.f32 %v23468_v5, %v23473_v14  ;;  %v20998_v34 = vand.u32 4294901760, %v23475_v55  ;;  %v8191_v25 = vsub.f32 %v23472_v59, %v20993_v3  ;;  %v9519_v38 = vsub.f32 %v23421_v16, %v20992_v39 }
 0x4ff   : > { %v9501_v37 = vsub.f32 %v23470_v9, %v23474_v42  ;;  %v9531_v35 = vsub.f32 %v23422_v60, %v20994_v48  ;;  %v21001_v1 = vand.u32 4294901760, %v23425_v33  ;;  %v12678_v51 = vpack.c.bf16 %v9508_v54, %v9496_v15  ;;  %v23476_v42 = vld [vmem:[#allocation163_spill] sm:$0xff] }
 0x500   : > { %12669 = vmatpush1.bf16.msra.mxu0 %v18961_v27  ;;  %v8186_v44 = vand.u32 4294901760, %v8185_v28  ;;  %v21000_v52 = vand.u32 4294901760, %v23426_v20  ;;  %v20999_v56 = vand.u32 4294901760, %v23427_v63  ;;  %12289 = vmatpush1.bf16.msra.mxu1 %v18976_v8  ;;  %v21002_v39 = vand.u32 4294901760, %v23476_v42 }
 0x501   : > { %12671 = vmatprep.subr.bf16.mxu0 %v18984_v62  ;;  %v9502_v14 = vand.u32 4294901760, %v9501_v37  ;;  %v21004_v3 = vand.u32 4294901760, %v23429_v45  ;;  %v21006_v48 = vand.u32 4294901760, %v23430_v49  ;;  %12291 = vmatprep.subr.bf16.mxu1 %v19021_v22  ;;  %v9514_v27 = vand.u32 4294901760, %v9513_v30 }
 0x502   : > { %v8180_v15 = vand.u32 4294901760, %v8179_v19  ;;  %v8197_v54 = vsub.f32 %v23423_v43, %v20996_v58  ;;  %v8209_v8 = vsub.f32 %v23475_v55, %v20998_v34  ;;  %v8192_v62 = vand.u32 4294901760, %v8191_v25  ;;  %v23477_v19 = vld [vmem:[#allocation51_spill] sm:$0xff] }
 0x503   : > { %v9520_v28 = vand.u32 4294901760, %v9519_v38  ;;  %v9532_v37 = vand.u32 4294901760, %v9531_v35  ;;  %v9525_v46 = vsub.f32 %v23425_v33, %v21001_v1  ;;  %v9537_v22 = vsub.f32 %v23426_v20, %v21000_v52 }
 0x504   : > { %12673 = vmatpush1.bf16.msra.mxu0 %v12672_v12  ;;  %v8203_v30 = vsub.f32 %v23427_v63, %v20999_v56  ;;  %12293 = vmatpush1.bf16.msra.mxu1 %v12292_v29  ;;  %v8215_v25 = vsub.f32 %v23476_v42, %v21002_v39  ;;  %v9543_v12 = vsub.f32 %v23429_v45, %v21004_v3  ;;  %v8198_v56 = vand.u32 4294901760, %v8197_v54 }
 0x505   : > { %12675 = vmatprep.subr.bf16.mxu0 %v12674_v32  ;;  %v9555_v38 = vsub.f32 %v23430_v49, %v21006_v48  ;;  %12295 = vmatprep.subr.bf16.mxu1 %v12294_v36  ;;  %v12298_v35 = vpack.c.bf16 %v8186_v44, %v8174_v61  ;;  %v8210_v52 = vand.u32 4294901760, %v8209_v8  ;;  %v12680_v1 = vpack.c.bf16 %v9514_v27, %v9502_v14  ;;  %v23481_v8 = vld [vmem:[#allocation183_spill] sm:$0xff] }
 0x506   : > { %v12300_v34 = vpack.c.bf16 %v8192_v62, %v8180_v15  ;;  %v12682_v29 = vpack.c.bf16 %v9532_v37, %v9520_v28  ;;  %v9526_v32 = vand.u32 4294901760, %v9525_v46  ;;  %v9538_v58 = vand.u32 4294901760, %v9537_v22  ;;  %v23482_v62 = vld [vmem:[#allocation186_spill] sm:$0xff]  ;;  %v23484_v28 = vld [vmem:[#allocation196_spill] sm:$0xff]  ;;  %v23490_v22 = vld [vmem:[#allocation207_spill] sm:$0xff] }
 0x507   : > { %v23479_v39 = vand.u32 4294901760, %v23477_v19  ;;  %v23480_v3 = vand.u32 4294901760, %v23478_v18  ;;  %v8204_v36 = vand.u32 4294901760, %v8203_v30  ;;  %v8216_v61 = vand.u32 4294901760, %v8215_v25  ;;  %v23491_v30 = vld [vmem:[#allocation198_spill] sm:$0xff] }
 0x508   : > { %12677 = vmatpush1.bf16.msra.mxu0 %v12676_v7  ;;  %12297 = vmatpush1.bf16.msra.mxu1 %v12296_v11  ;;  %v9544_v44 = vand.u32 4294901760, %v9543_v12  ;;  %v9556_v54 = vand.u32 4294901760, %v9555_v38  ;;  %v12302_v14 = vpack.c.bf16 %v8210_v52, %v8198_v56  ;;  %v12684_v7 = vpack.c.bf16 %v9538_v58, %v9526_v32  ;;  %v23486_v58 = vld [vmem:[#allocation253_spill] sm:$0xff]  ;;  %v23489_v56 = vld [vmem:[#allocation204_spill] sm:$0xff]  ;;  %v23492_v25 = vld [vmem:[#allocation202_spill] sm:$0xff] }
 0x509   : > { %v9549_v63 = vsub.f32 %v23477_v19, %v23479_v39  ;;  %v9561_v45 = vsub.f32 %v23478_v18, %v23480_v3  ;;  %12679 = vmatprep.subr.bf16.mxu0 %v12678_v51  ;;  %12299 = vmatprep.subr.bf16.mxu1 %v12298_v35  ;;  %v12304_v15 = vpack.c.bf16 %v8216_v61, %v8204_v36  ;;  %v23483_v51 = vld [vmem:[#allocation192_spill] sm:$0xff]  ;;  %v23496_v36 = vld [vmem:[#allocation106_spill] sm:$0xff] }
 0x50a   : > { %v12686_v39 = vpack.c.bf16 %v9556_v54, %v9544_v44  ;;  %v12306_v3 = vpack.c.bf16 %v23482_v62, %v23481_v8  ;;  %v12308_v37 = vpack.c.bf16 %v23484_v28, %v23483_v51  ;;  %v12692_v12 = vpack.c.bf16 %v23492_v25, %v23491_v30  ;;  %v23493_v38 = vld [vmem:[#allocation40_spill] sm:$0xff]  ;;  %v23497_v44 = vld [vmem:[#allocation114_spill] sm:$0xff] }
 0x50b   : > { %v9550_v46 = vand.u32 4294901760, %v9549_v63  ;;  %v9562_v27 = vand.u32 4294901760, %v9561_v45  ;;  %v23487_v45 = vld [vmem:[#allocation257_spill] sm:$0xff]  ;;  %v23494_v35 = vld [vmem:[#allocation84_spill] sm:$0xff]  ;;  %v23498_v54 = vld [vmem:[#allocation138_spill] sm:$0xff] }
 0x50c   : > { %12681 = vmatpush1.bf16.msra.mxu0 %v12680_v1  ;;  %12301 = vmatpush1.bf16.msra.mxu1 %v12300_v34  ;;  %v23485_v1 = vld [vmem:[#allocation199_spill] sm:$0xff]  ;;  %v23488_v34 = vld [vmem:[#allocation161_spill] sm:$0xff]  ;;  %v23495_v32 = vld [vmem:[#allocation96_spill] sm:$0xff] }
 0x50d   : > { %12683 = vmatprep.subr.bf16.mxu0 %v12682_v29  ;;  %12303 = vmatprep.subr.bf16.mxu1 %v12302_v14  ;;  %v12688_v11 = vpack.c.bf16 %v9562_v27, %v9550_v46  ;;  %v12690_v63 = vpack.c.bf16 %v23486_v58, %v23485_v1  ;;  %v12310_v52 = vpack.c.bf16 %v23488_v34, %v23487_v45  ;;  %v23500_v46 = vld [vmem:[#allocation142_spill] sm:$0xff]  ;;  %v23501_v27 = vld [vmem:[#allocation147_spill] sm:$0xff] }
 0x50e   : > { %v12312_v29 = vpack.c.bf16 %v23494_v35, %v23493_v38  ;;  %v12694_v61 = vpack.c.bf16 %v23496_v36, %v23495_v32  ;;  %v12314_v14 = vpack.c.bf16 %v23498_v54, %v23497_v44  ;;  %v23508_v54 = vld [vmem:[#allocation168_spill] sm:$0xff] }
 0x510   : > { %12685 = vmatpush1.bf16.msra.mxu0 %v12684_v7  ;;  %12305 = vmatpush1.bf16.msra.mxu1 %v12304_v15  ;;  %v23499_v7 = vld [vmem:[#allocation206_spill] sm:$0xff]  ;;  %v12696_v15 = vpack.c.bf16 %v23501_v27, %v23500_v46 }
 0x511   : > { %12687 = vmatprep.subr.bf16.mxu0 %v12686_v39  ;;  %12307 = vmatprep.subr.bf16.mxu1 %v12306_v3  ;;  %v23502_v39 = vld [vmem:[#allocation154_spill] sm:$0xff]  ;;  %v23503_v3 = vld [vmem:[#allocation156_spill] sm:$0xff] }
 0x512   : > { %v23515_v46 = vld [vmem:[#allocation218_spill] sm:$0xff] }
 0x513   : > { %8221 = vmatmul.mubr.f32.vlgmr.msra.gmra.mrb[16].mxu1 %v23489_v56 }
 0x514   : > { %12689 = vmatpush1.bf16.msra.mxu0 %v12688_v11  ;;  %8227 = vmatprep.mubr.f32.mxu1 %v23490_v22  ;;  %v12316_v11 = vpack.c.bf16 %v23503_v3, %v23502_v39  ;;  %v23511_v3 = vld [vmem:[#allocation72_spill] sm:$0xff]  ;;  %v23512_v39 = vld [vmem:[#allocation78_spill] sm:$0xff] }
 0x515   : > { %12309 = vmatpush1.bf16.msra.mxu1 %v12308_v37  ;;  %12691 = vmatprep.subr.bf16.mxu0 %v12690_v63  ;;  %v23504_v37 = vld [vmem:[#allocation213_spill] sm:$0xff]  ;;  %v23505_v63 = vld [vmem:[#allocation34_spill] sm:$0xff]  ;;  %v12320_v27 = vpack.c.bf16 %v23512_v39, %v23511_v3  ;;  %v23524_v3 = vld [vmem:[#allocation67_spill] sm:$0xff] }
 0x516   : > { %12311 = vmatprep.subr.bf16.mxu1 %v12310_v52  ;;  %v23506_v52 = vld [vmem:[#allocation166_spill] sm:$0xff] }
 0x517   : > { %9567 = vmatmul.mubr.f32.vlgmr.msra.gmra.mrb[16].mxu0 %v23489_v56  ;;  %8229 = vmatmul.mubr.f32.gmra.mrb[18].mxu1 %v23499_v7  ;;  %v12698_v48 = vpack.c.bf16 %v23506_v52, %v23505_v63  ;;  %v23507_v56 = vld [vmem:[#allocation36_spill] sm:$0xff]  ;;  %v23522_v39 = vld [vmem:[#allocation238_spill] sm:$0xff] }
 0x518   : > { %9573 = vmatprep.mubr.f32.mxu0 %v23490_v22  ;;  %12693 = vmatpush1.bf16.msra.mxu0 %v12692_v12  ;;  %v12318_v44 = vpack.c.bf16 %v23508_v54, %v23507_v56  ;;  %v23509_v12 = vld [vmem:[#allocation174_spill] sm:$0xff]  ;;  %v23514_v52 = vld [vmem:[#allocation188_spill] sm:$0xff]  ;;  %v23516_v54 = vld [vmem:[#allocation219_spill] sm:$0xff] }
 0x519   : > { %12313 = vmatpush1.bf16.msra.mxu1 %v12312_v29  ;;  %8429 = vmatprep.mubr.f32.mxu1 %v23504_v37  ;;  %v23510_v29 = vld [vmem:[#allocation53_spill] sm:$0xff]  ;;  %v12322_v56 = vpack.c.bf16 %v23516_v54, %v23515_v46  ;;  %v23526_v54 = vld [vmem:[#allocation212_spill] sm:$0xff] }
 0x51a   : > { %12695 = vmatprep.subr.bf16.mxu0 %v12694_v61  ;;  %12315 = vmatprep.subr.bf16.mxu1 %v12314_v14  ;;  %v12700_v22 = vpack.c.bf16 %v23510_v29, %v23509_v12  ;;  %v23513_v61 = vld [vmem:[#allocation187_spill] sm:$0xff]  ;;  %v23517_v14 = vld [vmem:[#allocation221_spill] sm:$0xff]  ;;  %v23528_v46 = vld [vmem:[#allocation136_spill] sm:$0xff] }
 0x51b   : > { %9575 = vmatmul.mubr.f32.gmra.mrb[18].mxu0 %v23499_v7  ;;  %v12702_v63 = vpack.c.bf16 %v23514_v52, %v23513_v61  ;;  %v23520_v7 = vld [vmem:[#allocation228_spill] sm:$0xff]  ;;  %v23521_v29 = vld [vmem:[#allocation231_spill] sm:$0xff]  ;;  %v23525_v52 = vld [vmem:[#allocation86_spill] sm:$0xff] }
 0x51c   : > { %9775 = vmatprep.mubr.f32.mxu0 %v23504_v37  ;;  %12697 = vmatpush1.bf16.msra.mxu0 %v12696_v15  ;;  %v23518_v37 = vld [vmem:[#allocation224_spill] sm:$0xff] }
 0x51d   : > { %12317 = vmatpush1.bf16.msra.mxu1 %v12316_v11  ;;  %12699 = vmatprep.subr.bf16.mxu0 %v12698_v48  ;;  %v12704_v15 = vpack.c.bf16 %v23518_v37, %v23517_v14  ;;  %v23519_v11 = vld [vmem:[#allocation227_spill] sm:$0xff]  ;;  %v12706_v48 = vpack.c.bf16 %v23522_v39, %v23521_v29  ;;  %v23533_v39 = vld [vmem:[#allocation25_spill] sm:$0xff] }
 0x51e   : > { %12319 = vmatprep.subr.bf16.mxu1 %v12318_v44  ;;  %v12324_v36 = vpack.c.bf16 %v23520_v7, %v23519_v11  ;;  %v23523_v44 = vld [vmem:[#allocation65_spill] sm:$0xff]  ;;  %v23529_v37 = vld [vmem:[#allocation131_spill] sm:$0xff] }
 0x51f   : > { %v12326_v12 = vpack.c.bf16 %v23524_v3, %v23523_v44  ;;  %v23530_v7 = vld [vmem:[#allocation139_spill] sm:$0xff]  ;;  %v23532_v11 = vld [vmem:[#allocation21_spill] sm:$0xff]  ;;  %v23534_v3 = vld [vmem:[#allocation240_spill] sm:$0xff] }
 0x520   : > { %12701 = vmatpush1.bf16.msra.mxu0 %v12700_v22  ;;  %v12708_v22 = vpack.c.bf16 %v23526_v54, %v23525_v52  ;;  %v23536_v44 = vld [vmem:[#allocation242_spill] sm:$0xff]  ;;  %v23537_v54 = vld [vmem:[#allocation252_spill] sm:$0xff] }
 0x521   : > { %12321 = vmatpush1.bf16.msra.mxu1 %v12320_v27  ;;  %12703 = vmatprep.subr.bf16.mxu0 %v12702_v63  ;;  %v23527_v27 = vld [vmem:[#allocation125_spill] sm:$0xff]  ;;  %v12710_v63 = vpack.c.bf16 %v23530_v7, %v23529_v37 }
 0x522   : > { %12323 = vmatprep.subr.bf16.mxu1 %v12322_v56  ;;  %v12328_v61 = vpack.c.bf16 %v23528_v46, %v23527_v27  ;;  %v23531_v56 = vld [vmem:[#allocation145_spill] sm:$0xff]  ;;  %v23538_v46 = vld [vmem:[#allocation250_spill] sm:$0xff]  ;;  %v23540_v27 = vld [vmem:[#allocation123_spill] sm:$0xff] }
 0x523   : > { %v12330_v14 = vpack.c.bf16 %v23532_v11, %v23531_v56  ;;  %v23541_v7 = vld [vmem:[#allocation241_spill] sm:$0xff]  ;;  %v23542_v11 = vld [vmem:[#allocation254_spill] sm:$0xff]  ;;  %v23544_v56 = vld [vmem:[#allocation19_spill] sm:$0xff] }
 0x524   : > { %12705 = vmatpush1.bf16.msra.mxu0 %v12704_v15  ;;  %v12712_v15 = vpack.c.bf16 %v23534_v3, %v23533_v39  ;;  %v23545_v3 = vld [vmem:[#allocation239_spill] sm:$0xff] }
 0x525   : > { %12325 = vmatpush1.bf16.msra.mxu1 %v12324_v36  ;;  %12707 = vmatprep.subr.bf16.mxu0 %v12706_v48  ;;  %v23535_v36 = vld [vmem:[#allocation39_spill] sm:$0xff]  ;;  %v12714_v48 = vpack.c.bf16 %v23538_v46, %v23537_v54  ;;  %v23549_v46 = vld [vmem:[#allocation44_spill] sm:$0xff] }
 0x526   : > { %12327 = vmatprep.subr.bf16.mxu1 %v12326_v12  ;;  %v12332_v29 = vpack.c.bf16 %v23536_v44, %v23535_v36  ;;  %v23539_v12 = vld [vmem:[#allocation246_spill] sm:$0xff]  ;;  %v23546_v44 = vld [vmem:[#allocation28_spill] sm:$0xff] }
 0x527   : > { %v12334_v52 = vpack.c.bf16 %v23540_v27, %v23539_v12  ;;  %v23548_v36 = vld [vmem:[#allocation32_spill] sm:$0xff]  ;;  %v23550_v27 = vld [vmem:[#allocation46_spill] sm:$0xff]  ;;  %v23552_v12 = vld [vmem:[#allocation119_spill] sm:$0xff] }
 0x528   : > { %12709 = vmatpush1.bf16.msra.mxu0 %v12708_v22  ;;  %v12716_v22 = vpack.c.bf16 %v23542_v11, %v23541_v7 }
 0x529   : > { %12329 = vmatpush1.bf16.msra.mxu1 %v12328_v61  ;;  %12711 = vmatprep.subr.bf16.mxu0 %v12710_v63  ;;  %v23543_v61 = vld [vmem:[#allocation17_spill] sm:$0xff]  ;;  %v12718_v63 = vpack.c.bf16 %v23546_v44, %v23545_v3  ;;  %v23556_v44 = vld [vmem:[#allocation164_spill] sm:$0xff] }
 0x52a   : > { %12331 = vmatprep.subr.bf16.mxu1 %v12330_v14  ;;  %v12336_v37 = vpack.c.bf16 %v23544_v56, %v23543_v61  ;;  %v23547_v14 = vld [vmem:[#allocation31_spill] sm:$0xff]  ;;  %v23557_v3 = vld [vmem:[#allocation160_spill] sm:$0xff] }
 0x52b   : > { %v12338_v39 = vpack.c.bf16 %v23548_v36, %v23547_v14  ;;  %v23558_v61 = vpack.c.bf16 %v23556_v44, %v23557_v3  ;;  %v23575_v3 = vld [vmem:[#allocation59_spill] sm:$0xff] }
 0x52c   : > { %12713 = vmatpush1.bf16.msra.mxu0 %v12712_v15  ;;  %v12720_v15 = vpack.c.bf16 %v23550_v27, %v23549_v46  ;;  %v23562_v27 = vld [vmem:[#allocation193_spill] sm:$0xff]  ;;  %v23563_v46 = vld [vmem:[#allocation175_spill] sm:$0xff] }
 0x52d   : > { %12333 = vmatpush1.bf16.msra.mxu1 %v12332_v29  ;;  %12715 = vmatprep.subr.bf16.mxu0 %v12714_v48  ;;  %v23551_v29 = vld [vmem:[#allocation117_spill] sm:$0xff]  ;;  %v23564_v14 = vpack.c.bf16 %v23562_v27, %v23563_v46  ;;  %v23581_v46 = vld [vmem:[#allocation71_spill] sm:$0xff] }
 0x52e   : > { %12335 = vmatprep.subr.bf16.mxu1 %v12334_v52  ;;  %v12340_v54 = vpack.c.bf16 %v23552_v12, %v23551_v29  ;;  %v23553_v48 = vld [vmem:[#allocation133_spill] sm:$0xff]  ;;  %v23554_v52 = vld [vmem:[#allocation122_spill] sm:$0xff] }
 0x52f   : > { %v23555_v56 = vpack.c.bf16 %v23553_v48, %v23554_v52  ;;  %v23569_v12 = vld [vmem:[#allocation49_spill] sm:$0xff]  ;;  %v23572_v52 = vld [vmem:[#allocation54_spill] sm:$0xff] }
 0x530   : > { %12717 = vmatpush1.bf16.msra.mxu0 %v12716_v22  ;;  %v23559_v22 = vld [vmem:[#allocation169_spill] sm:$0xff] }
 0x531   : > { %12337 = vmatpush1.bf16.msra.mxu1 %v12336_v37  ;;  %12719 = vmatprep.subr.bf16.mxu0 %v12718_v63  ;;  %v23560_v37 = vld [vmem:[#allocation165_spill] sm:$0xff] }
 0x532   : > { %12339 = vmatprep.subr.bf16.mxu1 %v12338_v39  ;;  %v23561_v36 = vpack.c.bf16 %v23559_v22, %v23560_v37  ;;  %v23565_v63 = vld [vmem:[#allocation201_spill] sm:$0xff]  ;;  %v23578_v37 = vld [vmem:[#allocation63_spill] sm:$0xff] }
 0x533   : > { %v23566_v39 = vld [vmem:[#allocation245_spill] sm:$0xff] }
 0x534   : > { %12721 = vmatpush1.bf16.msra.mxu0 %v12720_v15  ;;  %v23567_v15 = vpack.c.bf16 %v23565_v63, %v23566_v39  ;;  %v23584_v39 = vld [vmem:[#allocation80_spill] sm:$0xff] }
 0x535   : > { %12341 = vmatpush1.bf16.msra.mxu1 %v12340_v54  ;;  %12723 = vmatprep.subr.bf16.mxu0 %v23555_v56  ;;  %v23568_v54 = vld [vmem:[#allocation233_spill] sm:$0xff]  ;;  %v23571_v56 = vld [vmem:[#allocation56_spill] sm:$0xff] }
 0x536   : > { %12343 = vmatprep.subr.bf16.mxu1 %v23558_v61  ;;  %v23570_v48 = vpack.c.bf16 %v23568_v54, %v23569_v12  ;;  %v23573_v44 = vpack.c.bf16 %v23571_v56, %v23572_v52  ;;  %v23574_v61 = vld [vmem:[#allocation60_spill] sm:$0xff]  ;;  %v23587_v12 = vld [vmem:[#allocation89_spill] sm:$0xff] }
 0x537   : > { %v23576_v22 = vpack.c.bf16 %v23574_v61, %v23575_v3 }
 0x538   : > { %12725 = vmatpush1.bf16.msra.mxu0 %v23561_v36  ;;  %v23577_v36 = vld [vmem:[#allocation69_spill] sm:$0xff] }
 0x539   : > { %12345 = vmatpush1.bf16.msra.mxu1 %v23564_v14  ;;  %12727 = vmatprep.subr.bf16.mxu0 %v23567_v15  ;;  %v23579_v27 = vpack.c.bf16 %v23577_v36, %v23578_v37  ;;  %v23580_v14 = vld [vmem:[#allocation76_spill] sm:$0xff]  ;;  %v23583_v15 = vld [vmem:[#allocation83_spill] sm:$0xff] }
 0x53a   : > { %12347 = vmatprep.subr.bf16.mxu1 %v23570_v48  ;;  %v23582_v63 = vpack.c.bf16 %v23580_v14, %v23581_v46  ;;  %v23585_v54 = vpack.c.bf16 %v23583_v15, %v23584_v39  ;;  %v23586_v48 = vld [vmem:[#allocation92_spill] sm:$0xff] }
 0x53b   : > { %v23588_v56 = vpack.c.bf16 %v23586_v48, %v23587_v12 }
 0x53c   : > { %12729 = vmatpush1.bf16.msra.mxu0 %v23573_v44  ;;  %v23589_v44 = vld [vmem:[#allocation97_spill] sm:$0xff] }
 0x53d   : > { %12349 = vmatpush1.bf16.msra.mxu1 %v23576_v22  ;;  %12731 = vmatprep.subr.bf16.mxu0 %v23579_v27  ;;  %v23590_v61 = vpack.c.bf16 %v23399_v13, %v23589_v44  ;;  %v23591_v22 = vpack.c.bf16 %v23401_v26, %v23400_v2  ;;  %v23592_v27 = vpack.c.bf16 %v23403_v4, %v23402_v10 }
 0x53e   : > { %12351 = vmatprep.subr.bf16.mxu1 %v23582_v63  ;;  %v23593_v63 = vpack.c.bf16 %v23405_v17, %v23404_v47 }
 0x540   : > { %12733 = vmatpush1.bf16.msra.mxu0 %v23585_v54  ;;  %v23594_v54 = vpack.c.bf16 %v23407_v53, %v23406_v0 }
 0x541   : > { %12353 = vmatpush1.bf16.msra.mxu1 %v23588_v56  ;;  %12735 = vmatprep.subr.bf16.mxu0 %v23590_v61  ;;  %v23595_v56 = vpack.c.bf16 %v23409_v21, %v23408_v40  ;;  %v23596_v61 = vpack.c.bf16 %v23411_v31, %v23410_v50 }
 0x542   : > { %12355 = vmatprep.subr.bf16.mxu1 %v23591_v22  ;;  %v23597_v22 = vld [vmem:[#allocation120_spill] sm:$0xff] }
 0x543   : > { %v23598_v4 = vpack.c.bf16 %v23413_v57, %v23597_v22 }
 0x544   : > { %12737 = vmatpush1.bf16.msra.mxu0 %v23592_v27  ;;  %v23599_v27 = vpack.c.bf16 %v23415_v23, %v23414_v6 }
 0x545   : > { %12357 = vmatpush1.bf16.msra.mxu1 %v23593_v63  ;;  %12739 = vmatprep.subr.bf16.mxu0 %v23594_v54  ;;  %v23600_v63 = vld [vmem:[#allocation184_spill] sm:$0xff]  ;;  %v23602_v54 = vpack.c.bf16 %v23471_v24, %v23470_v9 }
 0x546   : > { %12359 = vmatprep.subr.bf16.mxu1 %v23595_v56  ;;  %v23601_v53 = vpack.c.bf16 %v23468_v5, %v23600_v63  ;;  %v23603_v56 = vpack.c.bf16 %v23472_v59, %v18153_v41 }
 0x548   : > { %12741 = vmatpush1.bf16.msra.mxu0 %v23596_v61  ;;  %v23604_v61 = vpack.c.bf16 %v23422_v60, %v23421_v16  ;;  %v23612_v60 = vld [vmem:[#allocation208_spill] sm:$0xff] }
 0x549   : > { %12361 = vmatpush1.bf16.msra.mxu1 %v23598_v4  ;;  %12743 = vmatprep.subr.bf16.mxu0 %v23599_v27  ;;  %v23605_v4 = vpack.c.bf16 %v23475_v55, %v23423_v43  ;;  %v23606_v27 = vpack.c.bf16 %v23426_v20, %v23425_v33  ;;  %v23615_v20 = vld [vmem:[#allocation190_spill] sm:$0xff] }
 0x54a   : > { %12363 = vmatprep.subr.bf16.mxu1 %v23601_v53  ;;  %v23607_v53 = vld [vmem:[#allocation153_spill] sm:$0xff] }
 0x54b   : > { %v23608_v24 = vpack.c.bf16 %v23476_v42, %v23607_v53  ;;  %v23617_v42 = vld [vmem:[#allocation258_spill] sm:$0xff] }
 0x54c   : > { %12745 = vmatpush1.bf16.msra.mxu0 %v23602_v54  ;;  %v23609_v54 = vld [vmem:[#allocation176_spill] sm:$0xff] }
 0x54d   : > { %12365 = vmatpush1.bf16.msra.mxu1 %v23603_v56  ;;  %12747 = vmatprep.subr.bf16.mxu0 %v23604_v61  ;;  %v23610_v59 = vpack.c.bf16 %v23430_v49, %v23609_v54  ;;  %v23611_v56 = vld [vmem:[#allocation180_spill] sm:$0xff]  ;;  %v23613_v61 = vpack.c.bf16 %v23478_v18, %v23477_v19  ;;  %v23621_v18 = vld [vmem:[#allocation215_spill] sm:$0xff] }
 0x54e   : > { %12367 = vmatprep.subr.bf16.mxu1 %v23605_v4  ;;  %v23614_v4 = vld [vmem:[#allocation173_spill] sm:$0xff]  ;;  %v23623_v19 = vld [vmem:[#allocation135_spill] sm:$0xff]  ;;  %v23644_v49 = vld [vmem:[#allocation256_spill] sm:$0xff] }
 0x550   : > { %12749 = vmatpush1.bf16.msra.mxu0 %v23606_v27  ;;  %v23616_v27 = vld [vmem:[#allocation255_spill] sm:$0xff] }
 0x551   : > { %12369 = vmatpush1.bf16.msra.mxu1 %v23608_v24  ;;  %12751 = vmatprep.subr.bf16.mxu0 %v23610_v59  ;;  %v23618_v24 = vld [vmem:[#allocation214_spill] sm:$0xff]  ;;  %v23619_v59 = vld [vmem:[#allocation195_spill] sm:$0xff] }
 0x552   : > { %12371 = vmatprep.subr.bf16.mxu1 %v23611_v56  ;;  %v23620_v56 = vld [vmem:[#allocation52_spill] sm:$0xff] }
 0x554   : > { %8432 = vmatmul.mubr.f32.vlgmr.msra.gmra.mrb[16].mxu1 %v23612_v60  ;;  %12753 = vmatpush1.bf16.msra.mxu0 %v23613_v61  ;;  %v23622_v61 = vld [vmem:[#allocation90_spill] sm:$0xff] }
 0x555   : > { %8439 = vmatprep.mubr.f32.mxu1 %v23614_v4  ;;  %12373 = vmatpush1.bf16.msra.mxu1 %v23615_v20  ;;  %v23641_v20 = vld [vmem:[#allocation33_spill] sm:$0xff] }
 0x556   : > { %12755 = vmatprep.subr.bf16.mxu0 %v23616_v27  ;;  %12375 = vmatprep.subr.bf16.mxu1 %v23617_v42  ;;  %v23624_v42 = vld [vmem:[#allocation144_spill] sm:$0xff]  ;;  %v23630_v27 = vld [vmem:[#allocation185_spill] sm:$0xff] }
 0x557   : > { %9778 = vmatmul.mubr.f32.vlgmr.msra.gmra.mrb[16].mxu0 %v23612_v60  ;;  %v23625_v60 = vld [vmem:[#allocation150_spill] sm:$0xff] }
 0x558   : > { %8442 = vmatmul.mubr.f32.gmra.mrb[18].mxu1 %v23618_v24  ;;  %9785 = vmatprep.mubr.f32.mxu0 %v23614_v4  ;;  %v23626_v4 = vld [vmem:[#allocation162_spill] sm:$0xff] }
 0x559   : > { %12757 = vmatpush1.bf16.msra.mxu0 %v23619_v59  ;;  %12377 = vmatpush1.bf16.msra.mxu1 %v23620_v56  ;;  %v23627_v59 = vld [vmem:[#allocation37_spill] sm:$0xff]  ;;  %v23628_v56 = vld [vmem:[#allocation171_spill] sm:$0xff] }
 0x55a   : > { %8579 = vmatprep.mubr.f32.mxu1 %v23621_v18  ;;  %12759 = vmatprep.subr.bf16.mxu0 %v23622_v61  ;;  %v23629_v61 = vld [vmem:[#allocation70_spill] sm:$0xff] }
 0x55b   : > { %12379 = vmatprep.subr.bf16.mxu1 %v23623_v19  ;;  %9788 = vmatmul.mubr.f32.gmra.mrb[18].mxu0 %v23618_v24  ;;  %v23631_v19 = vld [vmem:[#allocation217_spill] sm:$0xff]  ;;  %v23632_v24 = vld [vmem:[#allocation222_spill] sm:$0xff] }
 0x55c   : > { %9925 = vmatprep.mubr.f32.mxu0 %v23621_v18 }
 0x55d   : > { %12761 = vmatpush1.bf16.msra.mxu0 %v23624_v42  ;;  %12381 = vmatpush1.bf16.msra.mxu1 %v23625_v60  ;;  %v23633_v42 = vld [vmem:[#allocation225_spill] sm:$0xff]  ;;  %v23634_v60 = vld [vmem:[#allocation230_spill] sm:$0xff] }
 0x55e   : > { %12763 = vmatprep.subr.bf16.mxu0 %v23626_v4  ;;  %12383 = vmatprep.subr.bf16.mxu1 %v23627_v59  ;;  %v23635_v4 = vld [vmem:[#allocation244_spill] sm:$0xff] }
 0x561   : > { %12765 = vmatpush1.bf16.msra.mxu0 %v23628_v56  ;;  %12385 = vmatpush1.bf16.msra.mxu1 %v23629_v61  ;;  %v23636_v61 = vld [vmem:[#allocation209_spill] sm:$0xff] }
 0x562   : > { %12767 = vmatprep.subr.bf16.mxu0 %v23630_v27  ;;  %12387 = vmatprep.subr.bf16.mxu1 %v23631_v19  ;;  %v23637_v19 = vld [vmem:[#allocation113_spill] sm:$0xff] }
 0x565   : > { %12769 = vmatpush1.bf16.msra.mxu0 %v23632_v24  ;;  %12389 = vmatpush1.bf16.msra.mxu1 %v23633_v42  ;;  %v23638_v42 = vld [vmem:[#allocation140_spill] sm:$0xff] }
 0x566   : > { %v6112_v18 = vpop.f32.mrb[12].mxu1  ;;  %12771 = vmatprep.subr.bf16.mxu0 %v23634_v60  ;;  %12391 = vmatprep.subr.bf16.mxu1 %v23635_v4  ;;  %v23640_v4 = vld [vmem:[#allocation243_spill] sm:$0xff] }
 0x567   : > { %10548 = vst [vmem:[%s17392_s21 + $0x40] sm:$0xff] %v6112_v18  ;;  %v6114_v59 = vpop.f32.mrb[13].mxu1  ;;  %v23639_v18 = vld [vmem:[#allocation22_spill] sm:$0xff] }
 0x568   : > { %10549 = vst [vmem:[%s17392_s21 + $0x48] sm:$0xff] %v6114_v59  ;;  %v7660_v27 = vpop.f32.mrb[12].mxu0 }
 0x569   : > { %12773 = vmatpush1.bf16.msra.mxu0 %v23636_v61  ;;  %12393 = vmatpush1.bf16.msra.mxu1 %v23637_v19  ;;  %10552 = vst [vmem:[%s17392_s21 + $0x60] sm:$0xff] %v7660_v27  ;;  %v7662_v56 = vpop.f32.mrb[13].mxu0  ;;  %v23642_v19 = vld [vmem:[#allocation251_spill] sm:$0xff]  ;;  %v23643_v27 = vld [vmem:[#allocation194_spill] sm:$0xff] }
 0x56a   : > { %v6120_v24 = vpop.f32.mrb[14].mxu1  ;;  %12775 = vmatprep.subr.bf16.mxu0 %v23638_v42  ;;  %10553 = vst [vmem:[%s17392_s21 + $0x68] sm:$0xff] %v7662_v56  ;;  %12395 = vmatprep.subr.bf16.mxu1 %v23639_v18  ;;  %v23646_v56 = vld [vmem:[#allocation20_spill] sm:$0xff]  ;;  %v23647_v18 = vld [vmem:[#allocation29_spill] sm:$0xff] }
 0x56b   : > { %10550 = vst [vmem:[%s17392_s21 + $0x50] sm:$0xff] %v6120_v24  ;;  %v6122_v60 = vpop.f32.mrb[15].mxu1  ;;  %v23645_v24 = vld [vmem:[#allocation15_spill] sm:$0xff] }
 0x56c   : > { %10551 = vst [vmem:[%s17392_s21 + $0x58] sm:$0xff] %v6122_v60  ;;  %v7668_v59 = vpop.f32.mrb[14].mxu0  ;;  %v23648_v60 = vld [vmem:[#allocation43_spill] sm:$0xff] }
 0x56d   : > { %12777 = vmatpush1.bf16.msra.mxu0 %v23640_v4  ;;  %12397 = vmatpush1.bf16.msra.mxu1 %v23641_v20  ;;  %10554 = vst [vmem:[%s17392_s21 + $0x70] sm:$0xff] %v7668_v59  ;;  %v7670_v61 = vpop.f32.mrb[15].mxu0  ;;  %v23649_v4 = vld [vmem:[#allocation236_spill] sm:$0xff]  ;;  %v23650_v20 = vld [vmem:[#allocation127_spill] sm:$0xff]  ;;  %v23651_v59 = vld [vmem:[#allocation141_spill] sm:$0xff] }
 0x56e   : > { %12779 = vmatprep.subr.bf16.mxu0 %v23642_v19  ;;  %10555 = vst [vmem:[%s17392_s21 + $0x78] sm:$0xff] %v7670_v61  ;;  %12399 = vmatprep.subr.bf16.mxu1 %v23643_v27  ;;  %v23652_v19 = vld [vmem:[#allocation167_spill] sm:$0xff]  ;;  %v23653_v61 = vld [vmem:[#allocation172_spill] sm:$0xff] }
 0x56f   : > { %v23654_v27 = vld [vmem:[#allocation247_spill] sm:$0xff] }
 0x571   : > { %12781 = vmatpush1.bf16.msra.mxu0 %v23644_v49  ;;  %12401 = vmatpush1.bf16.msra.mxu1 %v23645_v24  ;;  %v23655_v49 = vld [vmem:[#allocation47_spill] sm:$0xff]  ;;  %v23656_v24 = vld [vmem:[#allocation50_spill] sm:$0xff] }
 0x572   : > { %12783 = vmatprep.subr.bf16.mxu0 %v23646_v56  ;;  %12403 = vmatprep.subr.bf16.mxu1 %v23647_v18  ;;  %v23657_v56 = vld [vmem:[#allocation57_spill] sm:$0xff]  ;;  %v23658_v18 = vld [vmem:[#allocation62_spill] sm:$0xff] }
 0x575   : > { %12785 = vmatpush1.bf16.msra.mxu0 %v23648_v60  ;;  %12405 = vmatpush1.bf16.msra.mxu1 %v23649_v4  ;;  %v23659_v60 = vld [vmem:[#allocation74_spill] sm:$0xff]  ;;  %v23660_v4 = vld [vmem:[#allocation79_spill] sm:$0xff] }
 0x576   : > { %12787 = vmatprep.subr.bf16.mxu0 %v23650_v20  ;;  %12407 = vmatprep.subr.bf16.mxu1 %v23651_v59  ;;  %v23661_v20 = vld [vmem:[#allocation85_spill] sm:$0xff]  ;;  %v23662_v59 = vld [vmem:[#allocation95_spill] sm:$0xff] }
 0x579   : > { %12789 = vmatpush1.bf16.msra.mxu0 %v23652_v19  ;;  %12409 = vmatpush1.bf16.msra.mxu1 %v23653_v61  ;;  %v23663_v19 = vld [vmem:[#allocation101_spill] sm:$0xff]  ;;  %v23664_v61 = vld [vmem:[#allocation210_spill] sm:$0xff] }
 0x57a   : > { %12791 = vmatprep.subr.bf16.mxu0 %v23654_v27  ;;  %12411 = vmatprep.subr.bf16.mxu1 %v23655_v49  ;;  %v23665_v27 = vld [vmem:[#allocation116_spill] sm:$0xff]  ;;  %v23666_v49 = vld [vmem:[#allocation151_spill] sm:$0xff] }
 0x57d   : > { %12793 = vmatpush1.bf16.msra.mxu0 %v23656_v24  ;;  %12413 = vmatpush1.bf16.msra.mxu1 %v23657_v56  ;;  %v23667_v24 = vld [vmem:[#allocation157_spill] sm:$0xff]  ;;  %v23668_v56 = vld [vmem:[#allocation232_spill] sm:$0xff] }
 0x57e   : > { %12795 = vmatprep.subr.bf16.mxu0 %v23658_v18  ;;  %12415 = vmatprep.subr.bf16.mxu1 %v23659_v60  ;;  %v23669_v18 = vld [vmem:[#allocation108_spill] sm:$0xff]  ;;  %v23670_v60 = vld [vmem:[#allocation182_spill] sm:$0xff] }
 0x581   : > { %12797 = vmatpush1.bf16.msra.mxu0 %v23660_v4  ;;  %12417 = vmatpush1.bf16.msra.mxu1 %v23661_v20  ;;  %v23671_v4 = vld [vmem:[#allocation249_spill] sm:$0xff]  ;;  %v23672_v20 = vld [vmem:[#allocation248_spill] sm:$0xff] }
 0x582   : > { %12799 = vmatprep.subr.bf16.mxu0 %v23662_v59  ;;  %12419 = vmatprep.subr.bf16.mxu1 %v23663_v19  ;;  %v23673_v59 = vld [vmem:[#allocation226_spill] sm:$0xff]  ;;  %v23674_v19 = vld [vmem:[#allocation16_spill] sm:$0xff] }
 0x585   : > { %12801 = vmatpush1.bf16.msra.mxu0 %v23664_v61  ;;  %12421 = vmatpush1.bf16.msra.mxu1 %v23665_v27  ;;  %v23675_v61 = vld [vmem:[#allocation27_spill] sm:$0xff] }
 0x586   : > { %12803 = vmatprep.subr.bf16.mxu0 %v23666_v49  ;;  %12423 = vmatprep.subr.bf16.mxu1 %v23667_v24  ;;  %v23676_v49 = vand.u32 4294901760, %v23481_v8  ;;  %v23677_v24 = vand.u32 4294901760, %v23482_v62  ;;  %v23685_v62 = vand.u32 4294901760, %v23487_v45  ;;  %v23694_v45 = vand.u32 4294901760, %v23495_v32 }
 0x588   : > { %v12434_v27 = vpack.c.bf16 %v23677_v24, %v23676_v49  ;;  %v23686_v49 = vand.u32 4294901760, %v23488_v34  ;;  %v23695_v34 = vld [vmem:[#allocation106_spill] sm:$0xff] }
 0x589   : > { %12805 = vmatpush1.bf16.msra.mxu0 %v23668_v56  ;;  %12425 = vmatpush1.bf16.msra.mxu1 %v23669_v18  ;;  %v23678_v56 = vld [vmem:[#allocation45_spill] sm:$0xff]  ;;  %v23679_v18 = vld [vmem:[#allocation134_spill] sm:$0xff] }
 0x58a   : > { %12807 = vmatprep.subr.bf16.mxu0 %v23670_v60  ;;  %12427 = vmatprep.subr.bf16.mxu1 %v23671_v4  ;;  %v23680_v60 = vld [vmem:[#allocation170_spill] sm:$0xff]  ;;  %v23681_v4 = vand.u32 4294901760, %v23483_v51  ;;  %v12438_v24 = vpack.c.bf16 %v23686_v49, %v23685_v62  ;;  %v23691_v51 = vand.u32 4294901760, %v23492_v25  ;;  %v23701_v49 = vld [vmem:[#allocation181_spill] sm:$0xff] }
 0x58d   : > { %12809 = vmatpush1.bf16.msra.mxu0 %v23672_v20  ;;  %12429 = vmatpush1.bf16.msra.mxu1 %v23673_v59  ;;  %v23682_v20 = vand.u32 4294901760, %v23484_v28 }
 0x58e   : > { %12811 = vmatprep.subr.bf16.mxu0 %v23674_v19  ;;  %12431 = vmatprep.subr.bf16.mxu1 %v23675_v61  ;;  %v23683_v19 = vand.u32 4294901760, %v23485_v1  ;;  %v23684_v61 = vand.u32 4294901760, %v23486_v58  ;;  %v23692_v1 = vand.u32 4294901760, %v23493_v38  ;;  %v23702_v38 = vld [vmem:[#allocation142_spill] sm:$0xff] }
 0x58f   : > { %v12436_v59 = vpack.c.bf16 %v23682_v20, %v23681_v4  ;;  %v23690_v20 = vand.u32 4294901760, %v23491_v30  ;;  %v23696_v4 = vand.u32 4294901760, %v23695_v34  ;;  %v23699_v30 = vld [vmem:[#allocation138_spill] sm:$0xff] }
 0x590   : > { %v12818_v8 = vpack.c.bf16 %v23684_v61, %v23683_v19  ;;  %v23693_v19 = vand.u32 4294901760, %v23494_v35  ;;  %v23700_v62 = vand.u32 4294901760, %v23699_v30  ;;  %v23703_v35 = vand.u32 4294901760, %v23702_v38  ;;  %v23711_v34 = vld [vmem:[#allocation34_spill] sm:$0xff]  ;;  %v23717_v30 = vld [vmem:[#allocation168_spill] sm:$0xff] }
 0x591   : > { %12813 = vmatpush1.bf16.msra.mxu0 %v23678_v56  ;;  %12433 = vmatpush1.bf16.msra.mxu1 %v23679_v18  ;;  %v23687_v56 = vld [vmem:[#allocation177_spill] sm:$0xff]  ;;  %v23688_v18 = vld [vmem:[#allocation48_spill] sm:$0xff]  ;;  %v12820_v28 = vpack.c.bf16 %v23691_v51, %v23690_v20  ;;  %v23706_v20 = vld [vmem:[#allocation154_spill] sm:$0xff] }
 0x592   : > { %12815 = vmatprep.subr.bf16.mxu0 %v23680_v60  ;;  %12435 = vmatprep.subr.bf16.mxu1 %v12434_v27  ;;  %v23689_v60 = vld [vmem:[#allocation216_spill] sm:$0xff]  ;;  %v12440_v58 = vpack.c.bf16 %v23693_v19, %v23692_v1  ;;  %v12822_v27 = vpack.c.bf16 %v23696_v4, %v23694_v45  ;;  %v23707_v51 = vand.u32 4294901760, %v23706_v20  ;;  %v23710_v45 = vld [vmem:[#allocation205_spill] sm:$0xff]  ;;  %v23712_v4 = vand.u32 4294901760, %v23711_v34 }
 0x593   : > { %v23708_v1 = vld [vmem:[#allocation156_spill] sm:$0xff] }
 0x594   : > { %8583 = vmatmul.mubr.f32.vlgmr.msra.gmra.mrb[16].mxu1 %v23687_v56 }
 0x595   : > { %12817 = vmatpush1.bf16.msra.mxu0 %v23688_v18  ;;  %8591 = vmatprep.mubr.f32.mxu1 %v23689_v60 }
 0x596   : > { %12437 = vmatpush1.bf16.msra.mxu1 %v12436_v59  ;;  %12819 = vmatprep.subr.bf16.mxu0 %v12818_v8  ;;  %v23697_v59 = vld [vmem:[#allocation114_spill] sm:$0xff]  ;;  %v23704_v8 = vld [vmem:[#allocation147_spill] sm:$0xff] }
 0x597   : > { %12439 = vmatprep.subr.bf16.mxu1 %v12438_v24  ;;  %v23698_v61 = vand.u32 4294901760, %v23697_v59  ;;  %v23705_v32 = vand.u32 4294901760, %v23704_v8  ;;  %v23713_v59 = vld [vmem:[#allocation166_spill] sm:$0xff] }
 0x598   : > { %9929 = vmatmul.mubr.f32.vlgmr.msra.gmra.mrb[16].mxu0 %v23687_v56  ;;  %8595 = vmatmul.mubr.f32.gmra.mrb[18].mxu1 %v23701_v49  ;;  %v23709_v56 = vand.u32 4294901760, %v23708_v1 }
 0x599   : > { %v12442_v25 = vpack.c.bf16 %v23700_v62, %v23698_v61  ;;  %9937 = vmatprep.mubr.f32.mxu0 %v23689_v60  ;;  %12821 = vmatpush1.bf16.msra.mxu0 %v12820_v28  ;;  %v12824_v24 = vpack.c.bf16 %v23705_v32, %v23703_v35  ;;  %v23714_v61 = vand.u32 4294901760, %v23713_v59  ;;  %v23715_v28 = vld [vmem:[#allocation36_spill] sm:$0xff]  ;;  %v23718_v62 = vand.u32 4294901760, %v23717_v30  ;;  %v23719_v35 = vld [vmem:[#allocation174_spill] sm:$0xff]  ;;  %v23727_v59 = vld [vmem:[#allocation187_spill] sm:$0xff] }
 0x59a   : > { %12441 = vmatpush1.bf16.msra.mxu1 %v12440_v58  ;;  %v12444_v19 = vpack.c.bf16 %v23709_v56, %v23707_v51  ;;  %8858 = vmatprep.mubr.f32.mxu1 %v23710_v45  ;;  %v23716_v58 = vand.u32 4294901760, %v23715_v28  ;;  %v23720_v8 = vand.u32 4294901760, %v23719_v35  ;;  %v23723_v51 = vld [vmem:[#allocation72_spill] sm:$0xff]  ;;  %v23725_v56 = vld [vmem:[#allocation78_spill] sm:$0xff]  ;;  %v23735_v35 = vld [vmem:[#allocation221_spill] sm:$0xff] }
 0x59b   : > { %12823 = vmatprep.subr.bf16.mxu0 %v12822_v27  ;;  %v12826_v60 = vpack.c.bf16 %v23714_v61, %v23712_v4  ;;  %12443 = vmatprep.subr.bf16.mxu1 %v12442_v25  ;;  %v23721_v27 = vld [vmem:[#allocation53_spill] sm:$0xff]  ;;  %v23724_v1 = vand.u32 4294901760, %v23723_v51  ;;  %v23726_v34 = vand.u32 4294901760, %v23725_v56  ;;  %v23728_v61 = vand.u32 4294901760, %v23727_v59  ;;  %v23743_v59 = vld [vmem:[#allocation231_spill] sm:$0xff] }
 0x59c   : > { %v12446_v38 = vpack.c.bf16 %v23718_v62, %v23716_v58  ;;  %9941 = vmatmul.mubr.f32.gmra.mrb[18].mxu0 %v23701_v49  ;;  %v23722_v32 = vand.u32 4294901760, %v23721_v27  ;;  %v23729_v49 = vld [vmem:[#allocation188_spill] sm:$0xff]  ;;  %v23731_v58 = vld [vmem:[#allocation218_spill] sm:$0xff] }
 0x59d   : > { %10204 = vmatprep.mubr.f32.mxu0 %v23710_v45  ;;  %12825 = vmatpush1.bf16.msra.mxu0 %v12824_v24  ;;  %v12448_v4 = vpack.c.bf16 %v23726_v34, %v23724_v1  ;;  %v23730_v25 = vand.u32 4294901760, %v23729_v49  ;;  %v23732_v24 = vand.u32 4294901760, %v23731_v58  ;;  %v23737_v27 = vld [vmem:[#allocation224_spill] sm:$0xff]  ;;  %v23739_v1 = vld [vmem:[#allocation227_spill] sm:$0xff]  ;;  %v23745_v49 = vld [vmem:[#allocation238_spill] sm:$0xff] }
 0x59e   : > { %12445 = vmatpush1.bf16.msra.mxu1 %v12444_v19  ;;  %v12828_v20 = vpack.c.bf16 %v23722_v32, %v23720_v8  ;;  %12827 = vmatprep.subr.bf16.mxu0 %v12826_v60  ;;  %v23733_v19 = vld [vmem:[#allocation219_spill] sm:$0xff]  ;;  %v23736_v8 = vand.u32 4294901760, %v23735_v35  ;;  %v23738_v32 = vand.u32 4294901760, %v23737_v27  ;;  %v23740_v60 = vand.u32 4294901760, %v23739_v1  ;;  %v23751_v35 = vld [vmem:[#allocation86_spill] sm:$0xff]  ;;  %v23753_v27 = vld [vmem:[#allocation212_spill] sm:$0xff] }
 0x59f   : > { %12447 = vmatprep.subr.bf16.mxu1 %v12446_v38  ;;  %v12830_v28 = vpack.c.bf16 %v23730_v25, %v23728_v61  ;;  %v23734_v30 = vand.u32 4294901760, %v23733_v19  ;;  %v23741_v38 = vld [vmem:[#allocation228_spill] sm:$0xff]  ;;  %v23744_v61 = vand.u32 4294901760, %v23743_v59  ;;  %v23746_v25 = vand.u32 4294901760, %v23745_v49  ;;  %v23759_v59 = vld [vmem:[#allocation131_spill] sm:$0xff] }
 0x5a0   : > { %v12832_v51 = vpack.c.bf16 %v23738_v32, %v23736_v8  ;;  %v23742_v56 = vand.u32 4294901760, %v23741_v38  ;;  %v23752_v8 = vand.u32 4294901760, %v23751_v35  ;;  %v23754_v32 = vand.u32 4294901760, %v23753_v27  ;;  %v23761_v49 = vld [vmem:[#allocation139_spill] sm:$0xff]  ;;  %v23767_v35 = vld [vmem:[#allocation25_spill] sm:$0xff]  ;;  %v23769_v27 = vld [vmem:[#allocation240_spill] sm:$0xff] }
 0x5a1   : > { %v12450_v62 = vpack.c.bf16 %v23734_v30, %v23732_v24  ;;  %12829 = vmatpush1.bf16.msra.mxu0 %v12828_v20  ;;  %v12834_v58 = vpack.c.bf16 %v23746_v25, %v23744_v61  ;;  %v23747_v24 = vld [vmem:[#allocation65_spill] sm:$0xff]  ;;  %v23760_v61 = vand.u32 4294901760, %v23759_v59  ;;  %v23762_v25 = vand.u32 4294901760, %v23761_v49  ;;  %v23775_v59 = vld [vmem:[#allocation252_spill] sm:$0xff]  ;;  %v23777_v49 = vld [vmem:[#allocation250_spill] sm:$0xff] }
 0x5a2   : > { %12449 = vmatpush1.bf16.msra.mxu1 %v12448_v4  ;;  %v12452_v34 = vpack.c.bf16 %v23742_v56, %v23740_v60  ;;  %12831 = vmatprep.subr.bf16.mxu0 %v12830_v28  ;;  %v23748_v20 = vand.u32 4294901760, %v23747_v24  ;;  %v23749_v4 = vld [vmem:[#allocation67_spill] sm:$0xff]  ;;  %v12836_v1 = vpack.c.bf16 %v23754_v32, %v23752_v8  ;;  %v23755_v60 = vld [vmem:[#allocation125_spill] sm:$0xff]  ;;  %v23768_v8 = vand.u32 4294901760, %v23767_v35 }
 0x5a3   : > { %12451 = vmatprep.subr.bf16.mxu1 %v12450_v62  ;;  %v23750_v19 = vand.u32 4294901760, %v23749_v4  ;;  %v23756_v28 = vand.u32 4294901760, %v23755_v60  ;;  %v23757_v62 = vld [vmem:[#allocation136_spill] sm:$0xff]  ;;  %v12838_v24 = vpack.c.bf16 %v23762_v25, %v23760_v61  ;;  %v23770_v32 = vand.u32 4294901760, %v23769_v27 }
 0x5a4   : > { %v23758_v38 = vand.u32 4294901760, %v23757_v62  ;;  %v23776_v61 = vand.u32 4294901760, %v23775_v59  ;;  %v23778_v25 = vand.u32 4294901760, %v23777_v49  ;;  %v23783_v35 = vand.u32 4294901760, %v23541_v7  ;;  %v23791_v59 = vld [vmem:[#allocation28_spill] sm:$0xff] }
 0x5a5   : > { %v12454_v30 = vpack.c.bf16 %v23750_v19, %v23748_v20  ;;  %12833 = vmatpush1.bf16.msra.mxu0 %v12832_v51  ;;  %v23763_v20 = vld [vmem:[#allocation145_spill] sm:$0xff]  ;;  %v12840_v60 = vpack.c.bf16 %v23770_v32, %v23768_v8  ;;  %v23784_v8 = vand.u32 4294901760, %v23542_v11  ;;  %v23797_v11 = vld [vmem:[#allocation44_spill] sm:$0xff] }
 0x5a6   : > { %12453 = vmatpush1.bf16.msra.mxu1 %v12452_v34  ;;  %v12456_v56 = vpack.c.bf16 %v23758_v38, %v23756_v28  ;;  %12835 = vmatprep.subr.bf16.mxu0 %v12834_v58  ;;  %v23764_v51 = vand.u32 4294901760, %v23763_v20  ;;  %v23765_v34 = vld [vmem:[#allocation21_spill] sm:$0xff]  ;;  %v23771_v28 = vld [vmem:[#allocation39_spill] sm:$0xff]  ;;  %v12842_v20 = vpack.c.bf16 %v23778_v25, %v23776_v61  ;;  %v23792_v61 = vand.u32 4294901760, %v23791_v59  ;;  %v23808_v59 = vld [vmem:[#allocation160_spill] sm:$0xff] }
 0x5a7   : > { %12455 = vmatprep.subr.bf16.mxu1 %v12454_v30  ;;  %v23766_v4 = vand.u32 4294901760, %v23765_v34  ;;  %v23772_v58 = vand.u32 4294901760, %v23771_v28  ;;  %v23773_v30 = vld [vmem:[#allocation242_spill] sm:$0xff]  ;;  %v12844_v27 = vpack.c.bf16 %v23784_v8, %v23783_v35  ;;  %v23785_v32 = vld [vmem:[#allocation17_spill] sm:$0xff]  ;;  %v23793_v25 = vld [vmem:[#allocation31_spill] sm:$0xff] }
 0x5a8   : > { %v23774_v62 = vand.u32 4294901760, %v23773_v30  ;;  %v23789_v30 = vld [vmem:[#allocation239_spill] sm:$0xff] }
 0x5a9   : > { %v12458_v19 = vpack.c.bf16 %v23766_v4, %v23764_v51  ;;  %12837 = vmatpush1.bf16.msra.mxu0 %v12836_v1  ;;  %v23779_v51 = vld [vmem:[#allocation246_spill] sm:$0xff] }
 0x5aa   : > { %12457 = vmatpush1.bf16.msra.mxu1 %v12456_v56  ;;  %v12460_v38 = vpack.c.bf16 %v23774_v62, %v23772_v58  ;;  %12839 = vmatprep.subr.bf16.mxu0 %v12838_v24  ;;  %v23780_v1 = vand.u32 4294901760, %v23779_v51  ;;  %v23781_v56 = vld [vmem:[#allocation123_spill] sm:$0xff]  ;;  %v23786_v24 = vand.u32 4294901760, %v23785_v32  ;;  %v23790_v62 = vand.u32 4294901760, %v23789_v30 }
 0x5ab   : > { %12459 = vmatprep.subr.bf16.mxu1 %v12458_v19  ;;  %v23782_v34 = vand.u32 4294901760, %v23781_v56  ;;  %v23787_v19 = vld [vmem:[#allocation19_spill] sm:$0xff]  ;;  %v23799_v56 = vld [vmem:[#allocation46_spill] sm:$0xff] }
 0x5ac   : > { %v23788_v28 = vand.u32 4294901760, %v23787_v19  ;;  %v12846_v49 = vpack.c.bf16 %v23792_v61, %v23790_v62 }
 0x5ad   : > { %v12462_v4 = vpack.c.bf16 %v23782_v34, %v23780_v1  ;;  %12841 = vmatpush1.bf16.msra.mxu0 %v12840_v60  ;;  %v23794_v60 = vand.u32 4294901760, %v23793_v25  ;;  %v23798_v1 = vand.u32 4294901760, %v23797_v11  ;;  %v23800_v34 = vand.u32 4294901760, %v23799_v56 }
 0x5ae   : > { %12461 = vmatpush1.bf16.msra.mxu1 %v12460_v38  ;;  %v12464_v58 = vpack.c.bf16 %v23788_v28, %v23786_v24  ;;  %12843 = vmatprep.subr.bf16.mxu0 %v12842_v20  ;;  %v23795_v38 = vld [vmem:[#allocation32_spill] sm:$0xff]  ;;  %v23801_v20 = vand.u32 4294901760, %v23551_v29  ;;  %v23804_v24 = vld [vmem:[#allocation122_spill] sm:$0xff]  ;;  %v23806_v28 = vld [vmem:[#allocation133_spill] sm:$0xff] }
 0x5af   : > { %12463 = vmatprep.subr.bf16.mxu1 %v12462_v4  ;;  %v23796_v51 = vand.u32 4294901760, %v23795_v38  ;;  %v12848_v35 = vpack.c.bf16 %v23800_v34, %v23798_v1  ;;  %v23802_v4 = vld [vmem:[#allocation119_spill] sm:$0xff]  ;;  %v23805_v19 = vand.u32 4294901760, %v23804_v24  ;;  %v23807_v30 = vand.u32 4294901760, %v23806_v28  ;;  %v23814_v29 = vld [vmem:[#allocation169_spill] sm:$0xff] }
 0x5b0   : > { %v23803_v8 = vand.u32 4294901760, %v23802_v4  ;;  %v23816_v1 = vld [vmem:[#allocation175_spill] sm:$0xff]  ;;  %v23824_v28 = vld [vmem:[#allocation49_spill] sm:$0xff] }
 0x5b1   : > { %v12466_v7 = vpack.c.bf16 %v23796_v51, %v23794_v60  ;;  %12845 = vmatpush1.bf16.msra.mxu0 %v12844_v27  ;;  %v12850_v62 = vpack.c.bf16 %v23807_v30, %v23805_v19  ;;  %v23809_v27 = vand.u32 4294901760, %v23808_v59  ;;  %v23812_v60 = vld [vmem:[#allocation165_spill] sm:$0xff]  ;;  %v23815_v51 = vand.u32 4294901760, %v23814_v29 }
 0x5b2   : > { %12465 = vmatpush1.bf16.msra.mxu1 %v12464_v58  ;;  %v12468_v32 = vpack.c.bf16 %v23803_v8, %v23801_v20  ;;  %12847 = vmatprep.subr.bf16.mxu0 %v12846_v49  ;;  %v23810_v58 = vld [vmem:[#allocation164_spill] sm:$0xff]  ;;  %v23813_v38 = vand.u32 4294901760, %v23812_v60  ;;  %v23817_v49 = vand.u32 4294901760, %v23816_v1  ;;  %v23820_v20 = vld [vmem:[#allocation245_spill] sm:$0xff]  ;;  %v23835_v1 = vand.u32 4294901760, %v23577_v36 }
 0x5b3   : > { %12467 = vmatprep.subr.bf16.mxu1 %v12466_v7  ;;  %v23811_v61 = vand.u32 4294901760, %v23810_v58  ;;  %v23818_v7 = vld [vmem:[#allocation193_spill] sm:$0xff]  ;;  %v23821_v4 = vand.u32 4294901760, %v23820_v20  ;;  %v23829_v58 = vld [vmem:[#allocation56_spill] sm:$0xff]  ;;  %v23840_v20 = vand.u32 4294901760, %v23587_v12  ;;  %v23842_v36 = vand.u32 4294901760, %v23589_v44 }
 0x5b4   : > { %v12852_v11 = vpack.c.bf16 %v23815_v51, %v23813_v38  ;;  %v23819_v56 = vand.u32 4294901760, %v23818_v7  ;;  %v23822_v8 = vld [vmem:[#allocation201_spill] sm:$0xff]  ;;  %v23834_v51 = vand.u32 4294901760, %v23578_v37  ;;  %v23837_v7 = vand.u32 4294901760, %v23580_v14  ;;  %v23847_v12 = vld [vmem:[#allocation112_spill] sm:$0xff] }
 0x5b5   : > { %v12470_v25 = vpack.c.bf16 %v23811_v61, %v23809_v27  ;;  %12849 = vmatpush1.bf16.msra.mxu0 %v12848_v35  ;;  %v23823_v24 = vand.u32 4294901760, %v23822_v8  ;;  %v23825_v35 = vand.u32 4294901760, %v23824_v28  ;;  %v23828_v27 = vand.u32 4294901760, %v23572_v52 }
 0x5b6   : > { %12469 = vmatpush1.bf16.msra.mxu1 %v12468_v32  ;;  %v12472_v34 = vpack.c.bf16 %v23819_v56, %v23817_v49  ;;  %12851 = vmatprep.subr.bf16.mxu0 %v12850_v62  ;;  %v23826_v32 = vld [vmem:[#allocation233_spill] sm:$0xff]  ;;  %v23830_v61 = vand.u32 4294901760, %v23829_v58  ;;  %v23831_v62 = vand.u32 4294901760, %v23575_v3  ;;  %v12858_v49 = vpack.c.bf16 %v23835_v1, %v23834_v51 }
 0x5b7   : > { %12471 = vmatprep.subr.bf16.mxu1 %v12470_v25  ;;  %v12854_v19 = vpack.c.bf16 %v23823_v24, %v23821_v4  ;;  %v23827_v30 = vand.u32 4294901760, %v23826_v32  ;;  %v23832_v25 = vld [vmem:[#allocation60_spill] sm:$0xff]  ;;  %v23838_v56 = vand.u32 4294901760, %v23584_v39  ;;  %v23839_v3 = vand.u32 4294901760, %v23583_v15  ;;  %v23868_v51 = vld [vmem:[#allocation229_spill] sm:$0xff] }
 0x5b8   : > { %v12856_v60 = vpack.c.bf16 %v23830_v61, %v23828_v27  ;;  %v23833_v38 = vand.u32 4294901760, %v23832_v25  ;;  %v23841_v4 = vand.u32 4294901760, %v23586_v48  ;;  %v23844_v8 = vand.u32 4294901760, %v23400_v2  ;;  %v23852_v2 = vld [vmem:[#allocation155_spill] sm:$0xff] }
 0x5b9   : > { %v12474_v59 = vpack.c.bf16 %v23827_v30, %v23825_v35  ;;  %12853 = vmatpush1.bf16.msra.mxu0 %v12852_v11  ;;  %v23836_v11 = vand.u32 4294901760, %v23581_v46  ;;  %v23843_v46 = vand.u32 4294901760, %v23399_v13  ;;  %v23845_v24 = vand.u32 4294901760, %v23401_v26 }
 0x5ba   : > { %12473 = vmatpush1.bf16.msra.mxu1 %v12472_v34  ;;  %v12476_v29 = vpack.c.bf16 %v23833_v38, %v23831_v62  ;;  %12855 = vmatprep.subr.bf16.mxu0 %v12854_v19  ;;  %v12860_v34 = vpack.c.bf16 %v23839_v3, %v23838_v56  ;;  %v12480_v37 = vpack.c.bf16 %v23841_v4, %v23840_v20  ;;  %v23846_v15 = vand.u32 4294901760, %v23402_v10  ;;  %v23879_v20 = vld [vmem:[#allocation163_spill] sm:$0xff] }
 0x5bb   : > { %12475 = vmatprep.subr.bf16.mxu1 %v12474_v59  ;;  %v12478_v52 = vpack.c.bf16 %v23837_v7, %v23836_v11  ;;  %v12862_v14 = vpack.c.bf16 %v23843_v46, %v23842_v36  ;;  %v12482_v39 = vpack.c.bf16 %v23845_v24, %v23844_v8  ;;  %v23848_v19 = vand.u32 4294901760, %v23847_v12  ;;  %v23884_v46 = vld [vmem:[#allocation51_spill] sm:$0xff]  ;;  %v23891_v12 = vld [vmem:[#allocation190_spill] sm:$0xff] }
 0x5bc   : > { %v23849_v28 = vand.u32 4294901760, %v23404_v47  ;;  %v23850_v35 = vand.u32 4294901760, %v23405_v17  ;;  %v23851_v13 = vand.u32 4294901760, %v23406_v0  ;;  %v23853_v32 = vand.u32 4294901760, %v23852_v2  ;;  %v23899_v2 = vld [vmem:[#allocation144_spill] sm:$0xff] }
 0x5bd   : > { %12857 = vmatpush1.bf16.msra.mxu0 %v12856_v60  ;;  %v12864_v48 = vpack.c.bf16 %v23848_v19, %v23846_v15  ;;  %v23854_v30 = vand.u32 4294901760, %v23408_v40  ;;  %v23855_v59 = vand.u32 4294901760, %v23409_v21  ;;  %v23856_v27 = vand.u32 4294901760, %v23410_v50  ;;  %v23890_v15 = vld [vmem:[#allocation207_spill] sm:$0xff]  ;;  %v23893_v19 = vld [vmem:[#allocation258_spill] sm:$0xff] }
 0x5be   : > { %12477 = vmatpush1.bf16.msra.mxu1 %v12476_v29  ;;  %12859 = vmatprep.subr.bf16.mxu0 %v12858_v49  ;;  %v12484_v44 = vpack.c.bf16 %v23850_v35, %v23849_v28  ;;  %v12866_v26 = vpack.c.bf16 %v23853_v32, %v23851_v13  ;;  %v23857_v47 = vand.u32 4294901760, %v23411_v31  ;;  %v23858_v58 = vand.u32 4294901760, %v23597_v22  ;;  %v23865_v22 = vld [vmem:[#allocation223_spill] sm:$0xff]  ;;  %v23896_v35 = vld [vmem:[#allocation52_spill] sm:$0xff]  ;;  %v23900_v32 = vld [vmem:[#allocation150_spill] sm:$0xff] }
 0x5bf   : > { %12479 = vmatprep.subr.bf16.mxu1 %v12478_v52  ;;  %v12486_v10 = vpack.c.bf16 %v23855_v59, %v23854_v30  ;;  %v23859_v61 = vand.u32 4294901760, %v23413_v57  ;;  %v23860_v60 = vand.u32 4294901760, %v23414_v6  ;;  %v23861_v40 = vand.u32 4294901760, %v23415_v23  ;;  %v23895_v28 = vld [vmem:[#allocation195_spill] sm:$0xff]  ;;  %v23902_v30 = vld [vmem:[#allocation37_spill] sm:$0xff] }
 0x5c0   : > { %v12868_v17 = vpack.c.bf16 %v23857_v47, %v23856_v27  ;;  %v23862_v62 = vand.u32 4294901760, %v23600_v63  ;;  %v23863_v25 = vand.u32 4294901760, %v23468_v5  ;;  %v23864_v31 = vand.u32 4294901760, %v23470_v9  ;;  %v23871_v63 = vld [vmem:[#allocation18_spill] sm:$0xff]  ;;  %v23898_v13 = vld [vmem:[#allocation135_spill] sm:$0xff]  ;;  %v23905_v27 = vld [vmem:[#allocation185_spill] sm:$0xff] }
 0x5c1   : > { %12861 = vmatpush1.bf16.msra.mxu0 %v12860_v34  ;;  %v12488_v0 = vpack.c.bf16 %v23859_v61, %v23858_v58  ;;  %v12870_v21 = vpack.c.bf16 %v23861_v40, %v23860_v60  ;;  %v23866_v38 = vand.u32 4294901760, %v23865_v22  ;;  %v23867_v29 = vand.u32 4294901760, %v18153_v41  ;;  %v23876_v41 = vld [vmem:[#allocation121_spill] sm:$0xff]  ;;  %v23903_v59 = vld [vmem:[#allocation171_spill] sm:$0xff]  ;;  %v23909_v61 = vld [vmem:[#allocation230_spill] sm:$0xff] }
 0x5c2   : > { %12481 = vmatpush1.bf16.msra.mxu1 %v12480_v37  ;;  %12863 = vmatprep.subr.bf16.mxu0 %v12862_v14  ;;  %v12490_v50 = vpack.c.bf16 %v23863_v25, %v23862_v62  ;;  %v23869_v1 = vand.u32 4294901760, %v23868_v51  ;;  %v23870_v23 = vand.u32 4294901760, %v23421_v16  ;;  %v23872_v49 = vand.u32 4294901760, %v23871_v63  ;;  %v23906_v47 = vld [vmem:[#allocation217_spill] sm:$0xff]  ;;  %v23913_v40 = vld [vmem:[#allocation22_spill] sm:$0xff]  ;;  %v23916_v25 = vld [vmem:[#allocation251_spill] sm:$0xff] }
 0x5c3   : > { %12483 = vmatprep.subr.bf16.mxu1 %v12482_v39  ;;  %v12872_v57 = vpack.c.bf16 %v23866_v38, %v23864_v31  ;;  %v23873_v11 = vand.u32 4294901760, %v23423_v43  ;;  %v23874_v7 = vand.u32 4294901760, %v23475_v55  ;;  %v23875_v52 = vand.u32 4294901760, %v23425_v33  ;;  %v23882_v43 = vld [vmem:[#allocation235_spill] sm:$0xff]  ;;  %v23888_v39 = vld [vmem:[#allocation180_spill] sm:$0xff]  ;;  %v23908_v58 = vld [vmem:[#allocation225_spill] sm:$0xff] }
 0x5c4   : > { %v12492_v6 = vpack.c.bf16 %v23869_v1, %v23867_v29  ;;  %v12874_v5 = vpack.c.bf16 %v23872_v49, %v23870_v23  ;;  %v23877_v56 = vand.u32 4294901760, %v23876_v41  ;;  %v23878_v34 = vand.u32 4294901760, %v23607_v53  ;;  %v23886_v33 = vld [vmem:[#allocation55_spill] sm:$0xff]  ;;  %v23889_v53 = vld [vmem:[#allocation204_spill] sm:$0xff]  ;;  %v23912_v60 = vld [vmem:[#allocation113_spill] sm:$0xff] }
 0x5c5   : > { %12865 = vmatpush1.bf16.msra.mxu0 %v12864_v48  ;;  %v12494_v9 = vpack.c.bf16 %v23874_v7, %v23873_v11  ;;  %v23880_v4 = vand.u32 4294901760, %v23879_v20  ;;  %v23881_v37 = vand.u32 4294901760, %v23609_v54  ;;  %v23883_v36 = vand.u32 4294901760, %v23882_v43  ;;  %v23892_v54 = vld [vmem:[#allocation255_spill] sm:$0xff]  ;;  %v23894_v48 = vld [vmem:[#allocation206_spill] sm:$0xff]  ;;  %v23915_v62 = vld [vmem:[#allocation33_spill] sm:$0xff] }
 0x5c6   : > { %12485 = vmatpush1.bf16.msra.mxu1 %v12484_v44  ;;  %12867 = vmatprep.subr.bf16.mxu0 %v12866_v26  ;;  %v12876_v3 = vpack.c.bf16 %v23877_v56, %v23875_v52  ;;  %v23885_v14 = vand.u32 4294901760, %v23884_v46  ;;  %v23887_v8 = vand.u32 4294901760, %v23886_v33  ;;  %v23897_v44 = vld [vmem:[#allocation90_spill] sm:$0xff]  ;;  %v23918_v31 = vld [vmem:[#allocation256_spill] sm:$0xff]  ;;  %v23919_v22 = vld [vmem:[#allocation15_spill] sm:$0xff] }
 0x5c7   : > { %12487 = vmatprep.subr.bf16.mxu1 %v12486_v10  ;;  %v12496_v16 = vpack.c.bf16 %v23880_v4, %v23878_v34  ;;  %v12878_v55 = vpack.c.bf16 %v23883_v36, %v23881_v37  ;;  %v23901_v26 = vld [vmem:[#allocation162_spill] sm:$0xff]  ;;  %v23920_v38 = vld [vmem:[#allocation20_spill] sm:$0xff]  ;;  %v23922_v29 = vld [vmem:[#allocation43_spill] sm:$0xff] }
 0x5c8   : > { %v12880_v24 = vpack.c.bf16 %v23887_v8, %v23885_v14  ;;  %v23904_v10 = vld [vmem:[#allocation70_spill] sm:$0xff]  ;;  %v23924_v51 = vld [vmem:[#allocation127_spill] sm:$0xff]  ;;  %v23925_v1 = vld [vmem:[#allocation141_spill] sm:$0xff] }
 0x5c9   : > { %12869 = vmatpush1.bf16.msra.mxu0 %v12868_v17  ;;  %v23907_v17 = vld [vmem:[#allocation222_spill] sm:$0xff]  ;;  %v23927_v23 = vld [vmem:[#allocation172_spill] sm:$0xff]  ;;  %v23928_v63 = vld [vmem:[#allocation247_spill] sm:$0xff] }
 0x5ca   : > { %12489 = vmatpush1.bf16.msra.mxu1 %v12488_v0  ;;  %12871 = vmatprep.subr.bf16.mxu0 %v12870_v21  ;;  %v23911_v0 = vld [vmem:[#allocation209_spill] sm:$0xff]  ;;  %v23914_v21 = vld [vmem:[#allocation243_spill] sm:$0xff]  ;;  %v23932_v7 = vld [vmem:[#allocation62_spill] sm:$0xff] }
 0x5cb   : > { %12491 = vmatprep.subr.bf16.mxu1 %v12490_v50  ;;  %v23917_v50 = vld [vmem:[#allocation194_spill] sm:$0xff]  ;;  %v23929_v49 = vld [vmem:[#allocation47_spill] sm:$0xff]  ;;  %v23931_v11 = vld [vmem:[#allocation57_spill] sm:$0xff] }
 0x5cc   : > { %v23934_v52 = vld [vmem:[#allocation79_spill] sm:$0xff]  ;;  %v23935_v41 = vld [vmem:[#allocation85_spill] sm:$0xff]  ;;  %v23938_v34 = vld [vmem:[#allocation210_spill] sm:$0xff] }
 0x5cd   : > { %12873 = vmatpush1.bf16.msra.mxu0 %v12872_v57  ;;  %v23921_v57 = vld [vmem:[#allocation29_spill] sm:$0xff]  ;;  %v23936_v56 = vld [vmem:[#allocation95_spill] sm:$0xff]  ;;  %v23939_v20 = vld [vmem:[#allocation116_spill] sm:$0xff] }
 0x5ce   : > { %12493 = vmatpush1.bf16.msra.mxu1 %v12492_v6  ;;  %12875 = vmatprep.subr.bf16.mxu0 %v12874_v5  ;;  %v23926_v6 = vld [vmem:[#allocation167_spill] sm:$0xff]  ;;  %v23930_v5 = vld [vmem:[#allocation50_spill] sm:$0xff]  ;;  %v23942_v37 = vld [vmem:[#allocation232_spill] sm:$0xff] }
 0x5cf   : > { %12495 = vmatprep.subr.bf16.mxu1 %v12494_v9  ;;  %v23933_v9 = vld [vmem:[#allocation74_spill] sm:$0xff]  ;;  %v23940_v4 = vld [vmem:[#allocation151_spill] sm:$0xff]  ;;  %v23943_v43 = vld [vmem:[#allocation108_spill] sm:$0xff] }
 0x5d0   : > { %v23944_v36 = vld [vmem:[#allocation182_spill] sm:$0xff]  ;;  %v23946_v46 = vld [vmem:[#allocation248_spill] sm:$0xff]  ;;  %v23949_v8 = vld [vmem:[#allocation27_spill] sm:$0xff] }
 0x5d1   : > { %12877 = vmatpush1.bf16.msra.mxu0 %v12876_v3  ;;  %v23937_v3 = vld [vmem:[#allocation101_spill] sm:$0xff]  ;;  %v23947_v14 = vld [vmem:[#allocation226_spill] sm:$0xff]  ;;  %v23948_v33 = vld [vmem:[#allocation16_spill] sm:$0xff] }
 0x5d2   : > { %12497 = vmatpush1.bf16.msra.mxu1 %v12496_v16  ;;  %12879 = vmatprep.subr.bf16.mxu0 %v12878_v55  ;;  %v23941_v16 = vld [vmem:[#allocation157_spill] sm:$0xff] }
 0x5d3   : > { %12499 = vmatprep.subr.bf16.mxu1 %v23888_v39  ;;  %v23945_v55 = vld [vmem:[#allocation249_spill] sm:$0xff]  ;;  %v23951_v39 = vld [vmem:[#allocation134_spill] sm:$0xff] }
 0x5d5   : > { %8860 = vmatmul.mubr.f32.vlgmr.msra.gmra.mrb[16].mxu1 %v23889_v53  ;;  %12881 = vmatpush1.bf16.msra.mxu0 %v12880_v24  ;;  %v23950_v24 = vld [vmem:[#allocation45_spill] sm:$0xff] }
 0x5d6   : > { %8866 = vmatprep.mubr.f32.mxu1 %v23890_v15  ;;  %12501 = vmatpush1.bf16.msra.mxu1 %v23891_v12  ;;  %v23952_v12 = vld [vmem:[#allocation170_spill] sm:$0xff] }
 0x5d7   : > { %12883 = vmatprep.subr.bf16.mxu0 %v23892_v54  ;;  %12503 = vmatprep.subr.bf16.mxu1 %v23893_v19 }
 0x5d8   : > { %10206 = vmatmul.mubr.f32.vlgmr.msra.gmra.mrb[16].mxu0 %v23889_v53 }
 0x5d9   : > { %8868 = vmatmul.mubr.f32.gmra.mrb[18].mxu1 %v23894_v48  ;;  %10212 = vmatprep.mubr.f32.mxu0 %v23890_v15 }
 0x5da   : > { %12885 = vmatpush1.bf16.msra.mxu0 %v23895_v28  ;;  %12505 = vmatpush1.bf16.msra.mxu1 %v23896_v35 }
 0x5db   : > { %9003 = vmatprep.mubr.f32.mxu1 %v23710_v45  ;;  %12887 = vmatprep.subr.bf16.mxu0 %v23897_v44 }
 0x5dc   : > { %12507 = vmatprep.subr.bf16.mxu1 %v23898_v13  ;;  %10214 = vmatmul.mubr.f32.gmra.mrb[18].mxu0 %v23894_v48 }
 0x5dd   : > { %10349 = vmatprep.mubr.f32.mxu0 %v23710_v45  ;;  %v23910_v45 = vld [vmem:[#allocation244_spill] sm:$0xff] }
 0x5de   : > { %12889 = vmatpush1.bf16.msra.mxu0 %v23899_v2  ;;  %12509 = vmatpush1.bf16.msra.mxu1 %v23900_v32 }
 0x5df   : > { %12891 = vmatprep.subr.bf16.mxu0 %v23901_v26  ;;  %12511 = vmatprep.subr.bf16.mxu1 %v23902_v30 }
 0x5e2   : > { %12893 = vmatpush1.bf16.msra.mxu0 %v23903_v59  ;;  %12513 = vmatpush1.bf16.msra.mxu1 %v23904_v10 }
 0x5e3   : > { %12895 = vmatprep.subr.bf16.mxu0 %v23905_v27  ;;  %12515 = vmatprep.subr.bf16.mxu1 %v23906_v47 }
 0x5e6   : > { %12897 = vmatpush1.bf16.msra.mxu0 %v23907_v17  ;;  %12517 = vmatpush1.bf16.msra.mxu1 %v23908_v58 }
 0x5e7   : > { %12899 = vmatprep.subr.bf16.mxu0 %v23909_v61  ;;  %12519 = vmatprep.subr.bf16.mxu1 %v23910_v45 }
 0x5ea   : > { %12901 = vmatpush1.bf16.msra.mxu0 %v23911_v0  ;;  %12521 = vmatpush1.bf16.msra.mxu1 %v23912_v60 }
 0x5eb   : > { %12903 = vmatprep.subr.bf16.mxu0 %v23638_v42  ;;  %12523 = vmatprep.subr.bf16.mxu1 %v23913_v40  ;;  %v23923_v42 = vld [vmem:[#allocation236_spill] sm:$0xff] }
 0x5ee   : > { %12905 = vmatpush1.bf16.msra.mxu0 %v23914_v21  ;;  %12525 = vmatpush1.bf16.msra.mxu1 %v23915_v62 }
 0x5ef   : > { %12907 = vmatprep.subr.bf16.mxu0 %v23916_v25  ;;  %12527 = vmatprep.subr.bf16.mxu1 %v23917_v50 }
 0x5f2   : > { %12909 = vmatpush1.bf16.msra.mxu0 %v23918_v31  ;;  %12529 = vmatpush1.bf16.msra.mxu1 %v23919_v22 }
 0x5f3   : > { %12911 = vmatprep.subr.bf16.mxu0 %v23920_v38  ;;  %12531 = vmatprep.subr.bf16.mxu1 %v23921_v57 }
 0x5f6   : > { %12913 = vmatpush1.bf16.msra.mxu0 %v23922_v29  ;;  %12533 = vmatpush1.bf16.msra.mxu1 %v23923_v42 }
 0x5f7   : > { %12915 = vmatprep.subr.bf16.mxu0 %v23924_v51  ;;  %12535 = vmatprep.subr.bf16.mxu1 %v23925_v1 }
 0x5fa   : > { %12917 = vmatpush1.bf16.msra.mxu0 %v23926_v6  ;;  %12537 = vmatpush1.bf16.msra.mxu1 %v23927_v23 }
 0x5fb   : > { %12919 = vmatprep.subr.bf16.mxu0 %v23928_v63  ;;  %12539 = vmatprep.subr.bf16.mxu1 %v23929_v49 }
 0x5fe   : > { %12921 = vmatpush1.bf16.msra.mxu0 %v23930_v5  ;;  %12541 = vmatpush1.bf16.msra.mxu1 %v23931_v11 }
 0x5ff   : > { %12923 = vmatprep.subr.bf16.mxu0 %v23932_v7  ;;  %12543 = vmatprep.subr.bf16.mxu1 %v23933_v9 }
 0x602   : > { %12925 = vmatpush1.bf16.msra.mxu0 %v23934_v52  ;;  %12545 = vmatpush1.bf16.msra.mxu1 %v23935_v41 }
 0x603   : > { %12927 = vmatprep.subr.bf16.mxu0 %v23936_v56  ;;  %12547 = vmatprep.subr.bf16.mxu1 %v23937_v3 }
 0x606   : > { %12929 = vmatpush1.bf16.msra.mxu0 %v23938_v34  ;;  %12549 = vmatpush1.bf16.msra.mxu1 %v23939_v20 }
 0x607   : > { %12931 = vmatprep.subr.bf16.mxu0 %v23940_v4  ;;  %12551 = vmatprep.subr.bf16.mxu1 %v23941_v16 }
 0x60a   : > { %12933 = vmatpush1.bf16.msra.mxu0 %v23942_v37  ;;  %12553 = vmatpush1.bf16.msra.mxu1 %v23943_v43 }
 0x60b   : > { %12935 = vmatprep.subr.bf16.mxu0 %v23944_v36  ;;  %12555 = vmatprep.subr.bf16.mxu1 %v23945_v55 }
 0x60e   : > { %12937 = vmatpush1.bf16.msra.mxu0 %v23946_v46  ;;  %12557 = vmatpush1.bf16.msra.mxu1 %v23947_v14 }
 0x60f   : > { %12939 = vmatprep.subr.bf16.mxu0 %v23948_v33  ;;  %12559 = vmatprep.subr.bf16.mxu1 %v23949_v8 }
 0x612   : > { %12941 = vmatpush1.bf16.msra.mxu0 %v23950_v24  ;;  %12561 = vmatpush1.bf16.msra.mxu1 %v23951_v39 }
 0x613   : > { %12943 = vmatprep.subr.bf16.mxu0 %v23952_v12 }
 0x615   : > { %9005 = vmatmul.mubr.f32.vlgmr.msra.gmra.mrb[16].mxu1 %v23889_v53 }
 0x616   : > { %12945 = vmatpush1.bf16.msra.mxu0 %v23688_v18  ;;  %9011 = vmatprep.mubr.f32.mxu1 %v23890_v15 }
 0x619   : > { %10351 = vmatmul.mubr.f32.vlgmr.msra.gmra.mrb[16].mxu0 %v23889_v53  ;;  %9013 = vmatmul.mubr.f32.gmra.mrb[18].mxu1 %v23894_v48 }
 0x61a   : > { %10357 = vmatprep.mubr.f32.mxu0 %v23890_v15 }
 0x61d   : > { %10359 = vmatmul.mubr.f32.gmra.mrb[18].mxu0 %v23894_v48 }
 0x6e8   : > { %v9006_v54 = vpop.f32.mrb[16].mxu1 }
 0x6e9   : > { %10556 = vst [vmem:[%s17392_s21 + $0x80] sm:$0xff] %v9006_v54  ;;  %v9008_v19 = vpop.f32.mrb[17].mxu1 }
 0x6ea   : > { %10557 = vst [vmem:[%s17392_s21 + $0x88] sm:$0xff] %v9008_v19 }
 0x6ec   : > { %v10352_v28 = vpop.f32.mrb[16].mxu0  ;;  %v9014_v18 = vpop.f32.mrb[18].mxu1 }
 0x6ed   : > { %10560 = vst [vmem:[%s17392_s21 + $0xa0] sm:$0xff] %v10352_v28  ;;  %v10354_v35 = vpop.f32.mrb[17].mxu0  ;;  %10558 = vst [vmem:[%s17392_s21 + $0x90] sm:$0xff] %v9014_v18  ;;  %v9016_v53 = vpop.f32.mrb[19].mxu1 }
 0x6ee   : > { %10561 = vst [vmem:[%s17392_s21 + $0xa8] sm:$0xff] %v10354_v35  ;;  %10559 = vst [vmem:[%s17392_s21 + $0x98] sm:$0xff] %v9016_v53 }
 0x6f0   : > { %v10360_v44 = vpop.f32.mrb[18].mxu0 }
 0x6f1   : > { %10562 = vst [vmem:[%s17392_s21 + $0xb0] sm:$0xff] %v10360_v44  ;;  %v10362_v13 = vpop.f32.mrb[19].mxu0 }
 0x6f2   : > { %10563 = vst [vmem:[%s17392_s21 + $0xb8] sm:$0xff] %v10362_v13 }
 0x6f3   : > { %s10569_s9 = sshll.u32 %s13370_s15, 9  ;;  %s10413_s8 = sshll.u32 %s17392_s21, 4  ;;  %s10414_s8 = int_to_ptr.vmem [resolvable:$true] %s10413_s8 }
 0x6f4   : > { %s10396_s5 = scalar_lea.hbm %s19765_s3, %s10569_s9  ;;  %s13390_s30 = smov 512  }
 0x6f5   : > { %p23953_p2 = scmp.ne.s32.totalorder %s21022_s22, 0  ;;  %s13391_s26 = smov 1024  }
 0x6f6   : > { %s13392_s25 = smov 2   ;;  %s13393_s6 = smov 256  }
 0x6f7   : > { %13137 = sst [smem:[#allocation10]] (%p23953_p2), %s13390_s30  ;;  %s13394_s15 = smov 16  }
 0x6f8   : > { %13138 = sst [smem:[#allocation10 + $0x1]] (%p23953_p2), %s13391_s26  ;;  %s13395_s28 = smov [#allocation9]  }
 0x6f9   : > { %13139 = sst [smem:[#allocation10 + $0x2]] (%p23953_p2), %s13392_s25  ;;  %s13396_s27 = smov 0  }
 0x6fa   : > { %13140 = sst [smem:[#allocation10 + $0x3]] (%p23953_p2), %s13393_s6 }
 0x6fb   : > { %13141 = sst [smem:[#allocation10 + $0x4]] (%p23953_p2), %s13393_s6 }
 0x6fc   : > { %13142 = sst [smem:[#allocation10 + $0x5]] (%p23953_p2), %s13394_s15 }
 0x6fd   : > { %13143 = dma.general (%p23953_p2), %s10414_s8, 3072, %s10396_s5, %s10381_s7, %s13395_s28, [#allocation10], %s13396_s27, 0  }
 0x6fe PF: > { %s10441_s24 = sand.u32 1, %s13358_s12   ;;  %p23954_p6 = scmp.ne.s32.totalorder %s21023_s23, 0 }
 0x6ff   : > { %p23955_p9 = scmp.ge.s32.totalorder %s13378_s17, 2  ;;  %s10442_s11 = scalar_lea.sflag [#allocation4], %s10441_s24 }
 0x701   : > { %p13157_p5 = pnand %p23955_p9, %p23954_p6 }
 0x703   : > { %13353 = dma.done.wait (!%p13157_p5), %s10442_s11, 3072  }
 0x704   : > { %13355 = vsyncadd (!%p13157_p5), %s10442_s11, 4294964224  ;;  %s18_s17 = sadd.s32 1, %s13378_s17   ;;  %s23956_s12 = smov %s13362_s13 }
 0x705   : > { %p15_p8 = scmp.ge.s32.totalorder %s18_s17, 4   ;;  %s23957_s13 = smov %s13366_s14 }
 0x706   : > { %s23958_s14 = smov %s13571_s19  ;;  %s23959_s15 = smov %s13374_s16 }
 0x707   : > { %s23960_s16 = smov %s23962_s4  ;;  %17 = sbr.rel (!%p15_p8) target bundleno = 6 (0x6), region = 97 }
 0x70e   :  { %10447 = vsyncpa [#allocation3], 1 }
 0x70f   :  { %10449 = vsyncpa [#allocation3 + $0x1], 1 }
 0x710   :  { %10450 = vsyncpa [#allocation6], 1 }
 0x711   :  { %10451 = vsyncpa [#allocation4], 1 }
 0x712   :  { %10453 = vsyncpa [#allocation4 + $0x1], 1 }

</bundles_post_ra>
